<compile_context>
chip_gen: v6e
topology: v6e:2x2x1
jax: 0.10.0
libtpu: 0.0.40
codegen_flags: <defaults>
</compile_context>

<pallas_src>
import functools

import jax
import jax.numpy as jnp
import numpy as np
from jax.experimental import pallas as pl
from jax.experimental.pallas import tpu as pltpu


# ----------------------------------------------------------------------------
# small helpers
# ----------------------------------------------------------------------------
def _round_up(n, m):
    return ((n + m - 1) // m) * m


def _pad_rows(x, n_pad):
    n = x.shape[0]
    if n == n_pad:
        return x
    pad = [(0, n_pad - n)] + [(0, 0)] * (x.ndim - 1)
    return jnp.pad(x, pad)


def _mxu_dot(a, b):
    # bf16 MXU operands, f32 accumulation (v6e/v7x bf16 MXU; halves operand bits)
    return jnp.dot(a.astype(jnp.bfloat16), b.astype(jnp.bfloat16),
                   preferred_element_type=jnp.float32)


# ----------------------------------------------------------------------------
# Kernel 1: fused Linear -> folded-BN affine -> (optional) ReLU
#           variants: +residual, per-channel relu mask (for fused q/k/v)
# ----------------------------------------------------------------------------
def _linear_affine_kernel(x_ref, w_ref, s_ref, t_ref, o_ref, *, relu):
    y = _mxu_dot(x_ref[...], w_ref[...])
    y = y * s_ref[...] + t_ref[...]
    if relu:
        y = jnp.maximum(y, 0.0)
    o_ref[...] = y.astype(o_ref.dtype)


def _linear_affine_res_kernel(x_ref, w_ref, s_ref, t_ref, r_ref, o_ref, *, relu):
    y = _mxu_dot(x_ref[...], w_ref[...])
    y = y * s_ref[...] + t_ref[...] + r_ref[...]
    if relu:
        y = jnp.maximum(y, 0.0)
    o_ref[...] = y.astype(o_ref.dtype)


def _linear_affine_rmask_kernel(x_ref, w_ref, s_ref, t_ref, m_ref, o_ref):
    y = _mxu_dot(x_ref[...], w_ref[...])
    y = y * s_ref[...] + t_ref[...]
    y = jnp.where(m_ref[...] > 0.0, jnp.maximum(y, 0.0), y)
    o_ref[...] = y.astype(o_ref.dtype)


def linear_affine(x, w, scale, shift, *, relu=False, relu_mask=None,
                  residual=None, block_rows=512):
    n, cin = x.shape
    cout = w.shape[1]
    tp = max(8, min(block_rows, _round_up(n, 8)))
    n_pad = _round_up(n, tp)
    xp = _pad_rows(x, n_pad)
    grid = (n_pad // tp,)

    row_in = pl.BlockSpec((tp, cin), lambda i: (i, 0))
    row_out = pl.BlockSpec((tp, cout), lambda i: (i, 0))
    cvec = pl.BlockSpec((1, cout), lambda i: (0, 0))
    wspec = pl.BlockSpec((cin, cout), lambda i: (0, 0))

    args = [xp, w, scale, shift]
    in_specs = [row_in, wspec, cvec, cvec]
    if relu_mask is not None:
        kernel = _linear_affine_rmask_kernel
        args.append(relu_mask)
        in_specs.append(cvec)
    elif residual is not None:
        kernel = functools.partial(_linear_affine_res_kernel, relu=relu)
        args.append(_pad_rows(residual, n_pad))
        in_specs.append(row_out)
    else:
        kernel = functools.partial(_linear_affine_kernel, relu=relu)

    out = pl.pallas_call(
        kernel,
        out_shape=jax.ShapeDtypeStruct((n_pad, cout), x.dtype),
        grid=grid,
        in_specs=in_specs,
        out_specs=row_out,
        compiler_params=pltpu.CompilerParams(dimension_semantics=("parallel",)),
    )(*args)
    return out[:n] if n_pad != n else out


# ----------------------------------------------------------------------------
# Kernel 2: fused GroupedVectorAttention core, gridded over point tiles.
#   peb  = Lin(relu(BN(Lin3->C(pos))))
#   rel  = k_gathered - q + peb ; val = v_gathered + peb
#   w    = LinG->G(relu(BN(LinC->G(rel))))
#   w    = softmax_S(w) * mask ; out = relu(BN2( sum_S val * expand(w) ))
# Everything stays in VMEM for a (tp, S, *) tile; output is (tp, C).
# ----------------------------------------------------------------------------
def _gva_fused_kernel(pos_ref, q_ref, kg_ref, vg_ref, mask_ref,
                      pbw1_ref, pbs_ref, pbt_ref, pbw2_ref, pbb2_ref,
                      wew1_ref, wes_ref, wet_ref, wew2_ref, web2_ref,
                      bn2s_ref, bn2t_ref, exp_ref, o_ref, *, groups):
    tp, s, c = kg_ref.shape
    d = pos_ref.shape[2]
    m = tp * s

    pos2 = pos_ref[...].reshape(m, d)
    kg3 = kg_ref[...]
    vg2 = vg_ref[...].reshape(m, c)

    # positional-encoding bias: Lin(3->C, bias folded into BN shift) BN ReLU, Lin(C->C)
    h = _mxu_dot(pos2, pbw1_ref[...])
    h = jnp.maximum(h * pbs_ref[...] + pbt_ref[...], 0.0)
    peb = _mxu_dot(h, pbw2_ref[...]) + pbb2_ref[...]             # (m, c)
    peb3 = peb.reshape(tp, s, c)

    rel = (kg3 - q_ref[...][:, None, :] + peb3).reshape(m, c)    # q broadcast in VMEM
    val = vg2 + peb                                              # (m, c)

    # weight encoding: Lin(C->G, bias folded) BN ReLU, Lin(G->G)
    w = _mxu_dot(rel, wew1_ref[...])
    w = jnp.maximum(w * wes_ref[...] + wet_ref[...], 0.0)
    w = jnp.dot(w, wew2_ref[...], preferred_element_type=jnp.float32) + web2_ref[...]

    # softmax over the neighbour axis (f32), masking after softmax (as in ref)
    w3 = w.reshape(tp, s, groups)
    mx = jnp.max(w3, axis=1, keepdims=True)
    e = jnp.exp(w3 - mx)
    den = jnp.sum(e, axis=1, keepdims=True)
    w3 = e * pl.reciprocal(den, approx=True)
    w3 = w3 * mask_ref[...][:, :, None]

    # expand per-group weights to channel width via 0/1 (G, C) matmul, aggregate over S
    wc = jnp.dot(w3.reshape(m, groups), exp_ref[...],
                 preferred_element_type=jnp.float32)             # (m, c)
    agg = jnp.sum((val * wc).reshape(tp, s, c), axis=1)          # (tp, c)

    out = jnp.maximum(agg * bn2s_ref[...] + bn2t_ref[...], 0.0)  # norm2 + ReLU
    o_ref[...] = out.astype(o_ref.dtype)


def gva_fused(pos, q, kg, vg, mask, p, *, groups,
              max_block_rows=512, vmem_budget_bytes=4 * 1024 * 1024):
    n, s, c = kg.shape
    d = pos.shape[2]
    g = groups
    gi = c // g

    # adaptive point-tile under a per-step VMEM budget (keeps v7x's 64 MiB safe)
    bytes_per_row = 4 * (d * s + 2 * s * c + 2 * c + s)
    tp = max(8, min(max_block_rows,
                    (vmem_budget_bytes // bytes_per_row) // 8 * 8,
                    _round_up(n, 8)))
    n_pad = _round_up(n, tp)
    pos, q, kg, vg, mask = (_pad_rows(a, n_pad) for a in (pos, q, kg, vg, mask))
    grid = (n_pad // tp,)

    # fold Linear biases that precede a BatchNorm into the BN shift
    pb_t1 = p["pb_b1"] * p["pb_s"] + p["pb_t"]
    we_t1 = p["we_b1"] * p["we_s"] + p["we_t"]
    # pad the 3-wide positional weight to d(=8) rows so the contraction is a dot
    pb_w1p = jnp.concatenate(
        [p["pb_w1"], jnp.zeros((d - 3, c), p["pb_w1"].dtype)], axis=0)
    # 0/1 group -> channel expansion matrix
    expand = (jnp.arange(c)[None, :] // gi
              == jnp.arange(g)[:, None]).astype(jnp.float32)

    def const(shape):
        return pl.BlockSpec(shape, lambda i: (0, 0))

    in_specs = [
        pl.BlockSpec((tp, s, d), lambda i: (i, 0, 0)),
        pl.BlockSpec((tp, c), lambda i: (i, 0)),
        pl.BlockSpec((tp, s, c), lambda i: (i, 0, 0)),
        pl.BlockSpec((tp, s, c), lambda i: (i, 0, 0)),
        pl.BlockSpec((tp, s), lambda i: (i, 0)),
        const((d, c)), const((1, c)), const((1, c)), const((c, c)), const((1, c)),
        const((c, g)), const((1, g)), const((1, g)), const((g, g)), const((1, g)),
        const((1, c)), const((1, c)), const((g, c)),
    ]
    out = pl.pallas_call(
        functools.partial(_gva_fused_kernel, groups=groups),
        out_shape=jax.ShapeDtypeStruct((n_pad, c), q.dtype),
        grid=grid,
        in_specs=in_specs,
        out_specs=pl.BlockSpec((tp, c), lambda i: (i, 0)),
        compiler_params=pltpu.CompilerParams(dimension_semantics=("parallel",)),
    )(pos, q, kg, vg, mask,
      pb_w1p, p["pb_s"], pb_t1, p["pb_w2"], p["pb_b2"],
      p["we_w1"], p["we_s"], we_t1, p["we_w2"], p["we_b2"],
      p["bn2_s"], p["bn2_t"], expand)
    return out[:n] if n_pad != n else out


# ----------------------------------------------------------------------------
# Plain-JAX glue: knn_query (chunked), gather, block orchestration
# ----------------------------------------------------------------------------
def knn_query(k, coord, offset, *, chunk=1024):
    # TODO(synk): replace with a Pallas knn/gather kernel; chunking bounds the
    # distance-matrix working set but compute is still O(N^2).
    n = coord.shape[0]
    batch = jnp.searchsorted(offset, jnp.arange(n), side="right")
    chunk = min(chunk, _round_up(n, 8))
    n_pad = _round_up(n, chunk)
    cq = _pad_rows(coord, n_pad).reshape(n_pad // chunk, chunk, 3)
    bq = jnp.pad(batch, (0, n_pad - n),
                 constant_values=-1).reshape(n_pad // chunk, chunk)

    def one_chunk(args):
        cqi, bqi = args
        d2 = jnp.sum((cqi[:, None, :] - coord[None, :, :]) ** 2, axis=-1)
        d2 = jnp.where(bqi[:, None] == batch[None, :], d2, jnp.inf)
        _, idx = jax.lax.top_k(-d2, k)
        return idx.astype(jnp.int32)

    idx = jax.lax.map(one_chunk, (cq, bq))
    return idx.reshape(n_pad, k)[:n]


def block_forward(p, feat, pos, ref_idx, mask, *, groups):
    n, c = feat.shape
    identity = feat

    # fc1 -> norm1 -> relu
    x = linear_affine(feat, p["fc1_w"], p["bn1_s"], p["bn1_t"], relu=True)

    # fused q/k/v projection: one (C, 3C) matmul; ReLU only on q/k via channel mask
    ones_c = jnp.ones((1, c), feat.dtype)
    zeros_c = jnp.zeros((1, c), feat.dtype)
    qkv_w = jnp.concatenate([p["q_w"], p["k_w"], p["v_w"]], axis=1)
    qkv_s = jnp.concatenate([p["bnq_s"], p["bnk_s"], ones_c], axis=1)
    qkv_t = jnp.concatenate([p["q_b"] * p["bnq_s"] + p["bnq_t"],
                             p["k_b"] * p["bnk_s"] + p["bnk_t"],
                             p["v_b"]], axis=1)
    qkv_rm = jnp.concatenate([ones_c, ones_c, zeros_c], axis=1)
    qkv = linear_affine(x, qkv_w, qkv_s, qkv_t, relu_mask=qkv_rm)
    q, k, v = qkv[:, :c], qkv[:, c:2 * c], qkv[:, 2 * c:]

    # pointops.grouping equivalent (data-dependent gather, plain JAX)
    idx_c = jnp.maximum(ref_idx, 0)
    kg = k[idx_c]                                        # (N, S, C)
    vg = v[idx_c]                                        # (N, S, C)

    attn = gva_fused(pos, q, kg, vg, mask, p, groups=groups)

    # fc3 -> norm3 -> +identity -> relu   (drop_path = identity)
    out = linear_affine(attn, p["fc3_w"], p["bn3_s"], p["bn3_t"],
                        relu=True, residual=identity)
    return out


def block_sequence_forward(params_list, coord, feat, offset, *, neighbours, groups):
    ref_idx = knn_query(neighbours, coord, offset)
    mask = jnp.sign(ref_idx + 1).astype(feat.dtype)
    # relative positions depend only on coord/idx -> compute once for all blocks;
    # padded to 8 lanes so the 3->C PE contraction runs on the MXU.
    coord8 = jnp.pad(coord, ((0, 0), (0, 5)))
    idx_c = jnp.maximum(ref_idx, 0)
    pos = coord8[idx_c] - coord8[:, None, :]             # (N, S, 8)
    for p in params_list:
        feat = block_forward(p, feat, pos, ref_idx, mask, groups=groups)
    return coord, feat, offset


# ----------------------------------------------------------------------------
# Deterministic parameter construction (inference-mode BN folded to scale/shift)
# ----------------------------------------------------------------------------
def _init_linear(key, fin, fout, bias=True):
    kw, kb = jax.random.split(key)
    w = jax.random.normal(kw, (fin, fout), jnp.float32) / jnp.sqrt(float(fin))
    b = (0.01 * jax.random.normal(kb, (1, fout), jnp.float32)) if bias \
        else jnp.zeros((1, fout), jnp.float32)
    return w, b


def _init_bn(key, c):
    kg_, kb = jax.random.split(key)
    gamma = 1.0 + 0.1 * jax.random.normal(kg_, (1, c), jnp.float32)
    beta = 0.1 * jax.random.normal(kb, (1, c), jnp.float32)
    mean = jnp.zeros((1, c), jnp.float32)
    var = jnp.ones((1, c), jnp.float32)
    eps = 1e-5
    scale = gamma / jnp.sqrt(var + eps)
    shift = beta - mean * scale
    return scale, shift


def init_block_params(key, c, g):
    ks = jax.random.split(key, 16)
    p = {}
    p["fc1_w"], _ = _init_linear(ks[0], c, c, bias=False)
    p["bn1_s"], p["bn1_t"] = _init_bn(ks[1], c)
    p["q_w"], p["q_b"] = _init_linear(ks[2], c, c)
    p["bnq_s"], p["bnq_t"] = _init_bn(ks[3], c)
    p["k_w"], p["k_b"] = _init_linear(ks[4], c, c)
    p["bnk_s"], p["bnk_t"] = _init_bn(ks[5], c)
    p["v_w"], p["v_b"] = _init_linear(ks[6], c, c)
    p["pb_w1"], p["pb_b1"] = _init_linear(ks[7], 3, c)
    p["pb_s"], p["pb_t"] = _init_bn(ks[8], c)
    p["pb_w2"], p["pb_b2"] = _init_linear(ks[9], c, c)
    p["we_w1"], p["we_b1"] = _init_linear(ks[10], c, g)
    p["we_s"], p["we_t"] = _init_bn(ks[11], g)
    p["we_w2"], p["we_b2"] = _init_linear(ks[12], g, g)
    p["bn2_s"], p["bn2_t"] = _init_bn(ks[13], c)
    p["fc3_w"], _ = _init_linear(ks[14], c, c, bias=False)
    p["bn3_s"], p["bn3_t"] = _init_bn(ks[15], c)
    return p


# ----------------------------------------------------------------------------
# Pure-JAX f32 reference (same folded params) for validation
# ----------------------------------------------------------------------------
def _ref_block(p, coord, feat, idx, mask, groups):
    n, c = feat.shape
    identity = feat

    def lin(x, w, b, s, t, relu):
        y = (x @ w + b) * s + t
        return jnp.maximum(y, 0.0) if relu else y

    x = lin(feat, p["fc1_w"], 0.0, p["bn1_s"], p["bn1_t"], True)
    q = lin(x, p["q_w"], p["q_b"], p["bnq_s"], p["bnq_t"], True)
    k = lin(x, p["k_w"], p["k_b"], p["bnk_s"], p["bnk_t"], True)
    v = x @ p["v_w"] + p["v_b"]
    idx_c = jnp.maximum(idx, 0)
    kg, vg = k[idx_c], v[idx_c]
    pos = coord[idx_c] - coord[:, None, :]
    h = jnp.einsum("nsd,dc->nsc", pos, p["pb_w1"]) + p["pb_b1"]
    h = jnp.maximum(h * p["pb_s"] + p["pb_t"], 0.0)
    peb = jnp.einsum("nsc,cd->nsd", h, p["pb_w2"]) + p["pb_b2"]
    rel = kg - q[:, None, :] + peb
    val = vg + peb
    w = jnp.einsum("nsc,cg->nsg", rel, p["we_w1"]) + p["we_b1"]
    w = jnp.maximum(w * p["we_s"] + p["we_t"], 0.0)
    w = jnp.einsum("nsg,gh->nsh", w, p["we_w2"]) + p["we_b2"]
    w = jax.nn.softmax(w, axis=1)
    w = w * mask[:, :, None]
    gi = c // groups
    v4 = val.reshape(n, -1, groups, gi)
    out = jnp.einsum("nsgi,nsg->ngi", v4, w).reshape(n, c)
    out = jnp.maximum(out * p["bn2_s"] + p["bn2_t"], 0.0)
    out = (out @ p["fc3_w"]) * p["bn3_s"] + p["bn3_t"]
    return jnp.maximum(identity + out, 0.0)


def _ref_forward(params_list, coord, feat, offset, neighbours, groups):
    idx = knn_query(neighbours, coord, offset)
    mask = jnp.sign(idx + 1).astype(feat.dtype)
    for p in params_list:
        feat = _ref_block(p, coord, feat, idx, mask, groups)
    return feat


# ----------------------------------------------------------------------------
if __name__ == "__main__":
    key = jax.random.PRNGKey(0)
    N, B, C, G, S, DEPTH = 64, 2, 32, 4, 8, 2
    k_coord, k_feat, k_params = jax.random.split(key, 3)
    coord = jax.random.normal(k_coord, (N, 3), jnp.float32)
    feat = jax.random.normal(k_feat, (N, C), jnp.float32)
    offset = jnp.array([N // B, N], dtype=jnp.int32)
    params = [init_block_params(k, C, G) for k in jax.random.split(k_params, DEPTH)]

    fwd = jax.jit(functools.partial(block_sequence_forward, neighbours=S, groups=G))
    coord_out, feat_out, offset_out = fwd(params, coord, feat, offset)
    jax.block_until_ready(feat_out)

    ref = _ref_forward(params, coord, feat, offset, S, G)
    np.testing.assert_allclose(np.asarray(feat_out), np.asarray(ref),
                               rtol=5e-2, atol=5e-2)
    print("KERNEL_OK")
</pallas_src>

<mosaic_0001>
module attributes {stable_mosaic.version = 11 : i64} {
  func.func @_linear_affine_kernel(%arg0: i32, %arg1: memref<64x32xf32, #tpu.memory_space<vmem>>, %arg2: memref<32x32xf32, #tpu.memory_space<vmem>>, %arg3: memref<1x32xf32, #tpu.memory_space<vmem>>, %arg4: memref<1x32xf32, #tpu.memory_space<vmem>>, %arg5: memref<64x32xf32, #tpu.memory_space<vmem>>) attributes {dimension_semantics = [#tpu.dimension_semantics<parallel>], iteration_bounds = array<i64: 1>, scalar_prefetch = 0 : i64, scratch_operands = 0 : i64, tpu.core_type = #tpu.core_type<tc>, window_params = [{transform_indices = @transform_0, window_bounds = array<i64: 64, 32>}, {pipeline_mode = #tpu.pipeline_mode<synchronous>, transform_indices = @transform_1, window_bounds = array<i64: 32, 32>}, {pipeline_mode = #tpu.pipeline_mode<synchronous>, transform_indices = @transform_2, window_bounds = array<i64: 1, 32>}, {pipeline_mode = #tpu.pipeline_mode<synchronous>, transform_indices = @transform_3, window_bounds = array<i64: 1, 32>}, {transform_indices = @transform_4, window_bounds = array<i64: 64, 32>}]} {
    %c0 = arith.constant 0 : index
    %c0_0 = arith.constant 0 : index
    %0 = vector.load %arg1[%c0, %c0_0] : memref<64x32xf32, #tpu.memory_space<vmem>>, vector<64x32xf32>
    %c0_1 = arith.constant 0 : index
    %c0_2 = arith.constant 0 : index
    %1 = vector.load %arg2[%c0_1, %c0_2] : memref<32x32xf32, #tpu.memory_space<vmem>>, vector<32x32xf32>
    %2 = arith.truncf %0 : vector<64x32xf32> to vector<64x32xbf16>
    %3 = arith.truncf %1 : vector<32x32xf32> to vector<32x32xbf16>
    %cst = arith.constant dense<0.000000e+00> : vector<64x32xf32>
    %4 = tpu.matmul %2, %3, %cst {dimension_numbers = #tpu.dot_dimension_numbers<[1], [0], [0], [1], [0, 0, 1, 1], [], []>} : vector<64x32xbf16>, vector<32x32xbf16>, vector<64x32xf32> -> vector<64x32xf32>
    %c0_3 = arith.constant 0 : index
    %c0_4 = arith.constant 0 : index
    %5 = vector.load %arg3[%c0_3, %c0_4] : memref<1x32xf32, #tpu.memory_space<vmem>>, vector<1x32xf32>
    %6 = vector.broadcast %5 : vector<1x32xf32> to vector<64x32xf32>
    %7 = arith.mulf %4, %6 : vector<64x32xf32>
    %c0_5 = arith.constant 0 : index
    %c0_6 = arith.constant 0 : index
    %8 = vector.load %arg4[%c0_5, %c0_6] : memref<1x32xf32, #tpu.memory_space<vmem>>, vector<1x32xf32>
    %9 = vector.broadcast %8 : vector<1x32xf32> to vector<64x32xf32>
    %10 = arith.addf %7, %9 : vector<64x32xf32>
    %cst_7 = arith.constant 0.000000e+00 : f32
    %11 = vector.broadcast %cst_7 : f32 to vector<64x32xf32>
    %12 = arith.maximumf %10, %11 : vector<64x32xf32>
    %c0_8 = arith.constant 0 : index
    %c0_9 = arith.constant 0 : index
    %13 = vector.load %arg5[%c0_8, %c0_9] : memref<64x32xf32, #tpu.memory_space<vmem>>, vector<64x32xf32>
    tpu.vector_store %arg5[%c0_8, %c0_9], %12 {strides = array<i32>} : memref<64x32xf32, #tpu.memory_space<vmem>>, vector<64x32xf32>,
    return
  }
  func.func @transform_0(%arg0: i32) -> (i32, i32) {
    %c0_i32 = arith.constant 0 : i32
    %c0_i32_0 = arith.constant 0 : i32
    return %arg0, %c0_i32 : i32, i32
  }
  func.func @transform_1(%arg0: i32) -> (i32, i32) {
    %c0_i32 = arith.constant 0 : i32
    %c0_i32_0 = arith.constant 0 : i32
    %c0_i32_1 = arith.constant 0 : i32
    return %c0_i32, %c0_i32_0 : i32, i32
  }
  func.func @transform_2(%arg0: i32) -> (i32, i32) {
    %c0_i32 = arith.constant 0 : i32
    %c0_i32_0 = arith.constant 0 : i32
    %c0_i32_1 = arith.constant 0 : i32
    return %c0_i32, %c0_i32_0 : i32, i32
  }
  func.func @transform_3(%arg0: i32) -> (i32, i32) {
    %c0_i32 = arith.constant 0 : i32
    %c0_i32_0 = arith.constant 0 : i32
    %c0_i32_1 = arith.constant 0 : i32
    return %c0_i32, %c0_i32_0 : i32, i32
  }
  func.func @transform_4(%arg0: i32) -> (i32, i32) {
    %c0_i32 = arith.constant 0 : i32
    %c0_i32_0 = arith.constant 0 : i32
    return %arg0, %c0_i32 : i32, i32
  }
}

module attributes {stable_mosaic.version = 11 : i64} {
  func.func @_linear_affine_rmask_kernel(%arg0: i32, %arg1: memref<64x32xf32, #tpu.memory_space<vmem>>, %arg2: memref<32x96xf32, #tpu.memory_space<vmem>>, %arg3: memref<1x96xf32, #tpu.memory_space<vmem>>, %arg4: memref<1x96xf32, #tpu.memory_space<vmem>>, %arg5: memref<1x96xf32, #tpu.memory_space<vmem>>, %arg6: memref<64x96xf32, #tpu.memory_space<vmem>>) attributes {dimension_semantics = [#tpu.dimension_semantics<parallel>], iteration_bounds = array<i64: 1>, scalar_prefetch = 0 : i64, scratch_operands = 0 : i64, tpu.core_type = #tpu.core_type<tc>, window_params = [{transform_indices = @transform_0, window_bounds = array<i64: 64, 32>}, {pipeline_mode = #tpu.pipeline_mode<synchronous>, transform_indices = @transform_1, window_bounds = array<i64: 32, 96>}, {pipeline_mode = #tpu.pipeline_mode<synchronous>, transform_indices = @transform_2, window_bounds = array<i64: 1, 96>}, {pipeline_mode = #tpu.pipeline_mode<synchronous>, transform_indices = @transform_3, window_bounds = array<i64: 1, 96>}, {pipeline_mode = #tpu.pipeline_mode<synchronous>, transform_indices = @transform_4, window_bounds = array<i64: 1, 96>}, {transform_indices = @transform_5, window_bounds = array<i64: 64, 96>}]} {
    %c0 = arith.constant 0 : index
    %c0_0 = arith.constant 0 : index
    %0 = vector.load %arg1[%c0, %c0_0] : memref<64x32xf32, #tpu.memory_space<vmem>>, vector<64x32xf32>
    %c0_1 = arith.constant 0 : index
    %c0_2 = arith.constant 0 : index
    %1 = vector.load %arg2[%c0_1, %c0_2] : memref<32x96xf32, #tpu.memory_space<vmem>>, vector<32x96xf32>
    %2 = arith.truncf %0 : vector<64x32xf32> to vector<64x32xbf16>
    %3 = arith.truncf %1 : vector<32x96xf32> to vector<32x96xbf16>
    %cst = arith.constant dense<0.000000e+00> : vector<64x96xf32>
    %4 = tpu.matmul %2, %3, %cst {dimension_numbers = #tpu.dot_dimension_numbers<[1], [0], [0], [1], [0, 0, 1, 1], [], []>} : vector<64x32xbf16>, vector<32x96xbf16>, vector<64x96xf32> -> vector<64x96xf32>
    %c0_3 = arith.constant 0 : index
    %c0_4 = arith.constant 0 : index
    %5 = vector.load %arg3[%c0_3, %c0_4] : memref<1x96xf32, #tpu.memory_space<vmem>>, vector<1x96xf32>
    %6 = vector.broadcast %5 : vector<1x96xf32> to vector<64x96xf32>
    %7 = arith.mulf %4, %6 : vector<64x96xf32>
    %c0_5 = arith.constant 0 : index
    %c0_6 = arith.constant 0 : index
    %8 = vector.load %arg4[%c0_5, %c0_6] : memref<1x96xf32, #tpu.memory_space<vmem>>, vector<1x96xf32>
    %9 = vector.broadcast %8 : vector<1x96xf32> to vector<64x96xf32>
    %10 = arith.addf %7, %9 : vector<64x96xf32>
    %c0_7 = arith.constant 0 : index
    %c0_8 = arith.constant 0 : index
    %11 = vector.load %arg5[%c0_7, %c0_8] : memref<1x96xf32, #tpu.memory_space<vmem>>, vector<1x96xf32>
    %cst_9 = arith.constant 0.000000e+00 : f32
    %12 = vector.broadcast %cst_9 : f32 to vector<1x96xf32>
    %13 = arith.cmpf ogt, %11, %12 : vector<1x96xf32>
    %cst_10 = arith.constant 0.000000e+00 : f32
    %14 = vector.broadcast %cst_10 : f32 to vector<64x96xf32>
    %15 = arith.maximumf %10, %14 : vector<64x96xf32>
    %16 = vector.shape_cast %13 : vector<1x96xi1> to vector<1x96xi1>
    %17 = vector.broadcast %16 : vector<1x96xi1> to vector<64x96xi1>
    %18 = arith.select %17, %15, %10 : vector<64x96xi1>, vector<64x96xf32>
    %c0_11 = arith.constant 0 : index
    %c0_12 = arith.constant 0 : index
    %19 = vector.load %arg6[%c0_11, %c0_12] : memref<64x96xf32, #tpu.memory_space<vmem>>, vector<64x96xf32>
    tpu.vector_store %arg6[%c0_11, %c0_12], %18 {strides = array<i32>} : memref<64x96xf32, #tpu.memory_space<vmem>>, vector<64x96xf32>,
    return
  }
  func.func @transform_0(%arg0: i32) -> (i32, i32) {
    %c0_i32 = arith.constant 0 : i32
    %c0_i32_0 = arith.constant 0 : i32
    return %arg0, %c0_i32 : i32, i32
  }
  func.func @transform_1(%arg0: i32) -> (i32, i32) {
    %c0_i32 = arith.constant 0 : i32
    %c0_i32_0 = arith.constant 0 : i32
    %c0_i32_1 = arith.constant 0 : i32
    return %c0_i32, %c0_i32_0 : i32, i32
  }
  func.func @transform_2(%arg0: i32) -> (i32, i32) {
    %c0_i32 = arith.constant 0 : i32
    %c0_i32_0 = arith.constant 0 : i32
    %c0_i32_1 = arith.constant 0 : i32
    return %c0_i32, %c0_i32_0 : i32, i32
  }
  func.func @transform_3(%arg0: i32) -> (i32, i32) {
    %c0_i32 = arith.constant 0 : i32
    %c0_i32_0 = arith.constant 0 : i32
    %c0_i32_1 = arith.constant 0 : i32
    return %c0_i32, %c0_i32_0 : i32, i32
  }
  func.func @transform_4(%arg0: i32) -> (i32, i32) {
    %c0_i32 = arith.constant 0 : i32
    %c0_i32_0 = arith.constant 0 : i32
    %c0_i32_1 = arith.constant 0 : i32
    return %c0_i32, %c0_i32_0 : i32, i32
  }
  func.func @transform_5(%arg0: i32) -> (i32, i32) {
    %c0_i32 = arith.constant 0 : i32
    %c0_i32_0 = arith.constant 0 : i32
    return %arg0, %c0_i32 : i32, i32
  }
}

module attributes {stable_mosaic.version = 11 : i64} {
  func.func @_gva_fused_kernel(%arg0: i32, %arg1: memref<64x8x8xf32, #tpu.memory_space<vmem>>, %arg2: memref<64x32xf32, #tpu.memory_space<vmem>>, %arg3: memref<64x8x32xf32, #tpu.memory_space<vmem>>, %arg4: memref<64x8x32xf32, #tpu.memory_space<vmem>>, %arg5: memref<64x8xf32, #tpu.memory_space<vmem>>, %arg6: memref<8x32xf32, #tpu.memory_space<vmem>>, %arg7: memref<1x32xf32, #tpu.memory_space<vmem>>, %arg8: memref<1x32xf32, #tpu.memory_space<vmem>>, %arg9: memref<32x32xf32, #tpu.memory_space<vmem>>, %arg10: memref<1x32xf32, #tpu.memory_space<vmem>>, %arg11: memref<32x4xf32, #tpu.memory_space<vmem>>, %arg12: memref<1x4xf32, #tpu.memory_space<vmem>>, %arg13: memref<1x4xf32, #tpu.memory_space<vmem>>, %arg14: memref<4x4xf32, #tpu.memory_space<vmem>>, %arg15: memref<1x4xf32, #tpu.memory_space<vmem>>, %arg16: memref<1x32xf32, #tpu.memory_space<vmem>>, %arg17: memref<1x32xf32, #tpu.memory_space<vmem>>, %arg18: memref<4x32xf32, #tpu.memory_space<vmem>>, %arg19: memref<64x32xf32, #tpu.memory_space<vmem>>) attributes {dimension_semantics = [#tpu.dimension_semantics<parallel>], iteration_bounds = array<i64: 1>, scalar_prefetch = 0 : i64, scratch_operands = 0 : i64, tpu.core_type = #tpu.core_type<tc>, window_params = [{transform_indices = @transform_0, window_bounds = array<i64: 64, 8, 8>}, {transform_indices = @transform_1, window_bounds = array<i64: 64, 32>}, {transform_indices = @transform_2, window_bounds = array<i64: 64, 8, 32>}, {transform_indices = @transform_3, window_bounds = array<i64: 64, 8, 32>}, {transform_indices = @transform_4, window_bounds = array<i64: 64, 8>}, {pipeline_mode = #tpu.pipeline_mode<synchronous>, transform_indices = @transform_5, window_bounds = array<i64: 8, 32>}, {pipeline_mode = #tpu.pipeline_mode<synchronous>, transform_indices = @transform_6, window_bounds = array<i64: 1, 32>}, {pipeline_mode = #tpu.pipeline_mode<synchronous>, transform_indices = @transform_7, window_bounds = array<i64: 1, 32>}, {pipeline_mode = #tpu.pipeline_mode<synchronous>, transform_indices = @transform_8, window_bounds = array<i64: 32, 32>}, {pipeline_mode = #tpu.pipeline_mode<synchronous>, transform_indices = @transform_9, window_bounds = array<i64: 1, 32>}, {pipeline_mode = #tpu.pipeline_mode<synchronous>, transform_indices = @transform_10, window_bounds = array<i64: 32, 4>}, {pipeline_mode = #tpu.pipeline_mode<synchronous>, transform_indices = @transform_11, window_bounds = array<i64: 1, 4>}, {pipeline_mode = #tpu.pipeline_mode<synchronous>, transform_indices = @transform_12, window_bounds = array<i64: 1, 4>}, {pipeline_mode = #tpu.pipeline_mode<synchronous>, transform_indices = @transform_13, window_bounds = array<i64: 4, 4>}, {pipeline_mode = #tpu.pipeline_mode<synchronous>, transform_indices = @transform_14, window_bounds = array<i64: 1, 4>}, {pipeline_mode = #tpu.pipeline_mode<synchronous>, transform_indices = @transform_15, window_bounds = array<i64: 1, 32>}, {pipeline_mode = #tpu.pipeline_mode<synchronous>, transform_indices = @transform_16, window_bounds = array<i64: 1, 32>}, {pipeline_mode = #tpu.pipeline_mode<synchronous>, transform_indices = @transform_17, window_bounds = array<i64: 4, 32>}, {transform_indices = @transform_18, window_bounds = array<i64: 64, 32>}]} {
    %c0 = arith.constant 0 : index
    %c0_0 = arith.constant 0 : index
    %c0_1 = arith.constant 0 : index
    %0 = vector.load %arg1[%c0, %c0_0, %c0_1] : memref<64x8x8xf32, #tpu.memory_space<vmem>>, vector<64x8x8xf32>
    %1 = vector.shape_cast %0 : vector<64x8x8xf32> to vector<512x8xf32>
    %c0_2 = arith.constant 0 : index
    %c0_3 = arith.constant 0 : index
    %c0_4 = arith.constant 0 : index
    %2 = vector.load %arg3[%c0_2, %c0_3, %c0_4] : memref<64x8x32xf32, #tpu.memory_space<vmem>>, vector<64x8x32xf32>
    %c0_5 = arith.constant 0 : index
    %c0_6 = arith.constant 0 : index
    %c0_7 = arith.constant 0 : index
    %3 = vector.load %arg4[%c0_5, %c0_6, %c0_7] : memref<64x8x32xf32, #tpu.memory_space<vmem>>, vector<64x8x32xf32>
    %4 = vector.shape_cast %3 : vector<64x8x32xf32> to vector<512x32xf32>
    %c0_8 = arith.constant 0 : index
    %c0_9 = arith.constant 0 : index
    %5 = vector.load %arg6[%c0_8, %c0_9] : memref<8x32xf32, #tpu.memory_space<vmem>>, vector<8x32xf32>
    %6 = arith.truncf %1 : vector<512x8xf32> to vector<512x8xbf16>
    %7 = arith.truncf %5 : vector<8x32xf32> to vector<8x32xbf16>
    %cst = arith.constant dense<0.000000e+00> : vector<512x32xf32>
    %8 = tpu.matmul %6, %7, %cst {dimension_numbers = #tpu.dot_dimension_numbers<[1], [0], [0], [1], [0, 0, 1, 1], [], []>} : vector<512x8xbf16>, vector<8x32xbf16>, vector<512x32xf32> -> vector<512x32xf32>
    %c0_10 = arith.constant 0 : index
    %c0_11 = arith.constant 0 : index
    %9 = vector.load %arg7[%c0_10, %c0_11] : memref<1x32xf32, #tpu.memory_space<vmem>>, vector<1x32xf32>
    %10 = vector.broadcast %9 : vector<1x32xf32> to vector<512x32xf32>
    %11 = arith.mulf %8, %10 : vector<512x32xf32>
    %c0_12 = arith.constant 0 : index
    %c0_13 = arith.constant 0 : index
    %12 = vector.load %arg8[%c0_12, %c0_13] : memref<1x32xf32, #tpu.memory_space<vmem>>, vector<1x32xf32>
    %13 = vector.broadcast %12 : vector<1x32xf32> to vector<512x32xf32>
    %14 = arith.addf %11, %13 : vector<512x32xf32>
    %cst_14 = arith.constant 0.000000e+00 : f32
    %15 = vector.broadcast %cst_14 : f32 to vector<512x32xf32>
    %16 = arith.maximumf %14, %15 : vector<512x32xf32>
    %c0_15 = arith.constant 0 : index
    %c0_16 = arith.constant 0 : index
    %17 = vector.load %arg9[%c0_15, %c0_16] : memref<32x32xf32, #tpu.memory_space<vmem>>, vector<32x32xf32>
    %18 = arith.truncf %16 : vector<512x32xf32> to vector<512x32xbf16>
    %19 = arith.truncf %17 : vector<32x32xf32> to vector<32x32xbf16>
    %cst_17 = arith.constant dense<0.000000e+00> : vector<512x32xf32>
    %20 = tpu.matmul %18, %19, %cst_17 {dimension_numbers = #tpu.dot_dimension_numbers<[1], [0], [0], [1], [0, 0, 1, 1], [], []>} : vector<512x32xbf16>, vector<32x32xbf16>, vector<512x32xf32> -> vector<512x32xf32>
    %c0_18 = arith.constant 0 : index
    %c0_19 = arith.constant 0 : index
    %21 = vector.load %arg10[%c0_18, %c0_19] : memref<1x32xf32, #tpu.memory_space<vmem>>, vector<1x32xf32>
    %22 = vector.broadcast %21 : vector<1x32xf32> to vector<512x32xf32>
    %23 = arith.addf %20, %22 : vector<512x32xf32>
    %24 = vector.shape_cast %23 : vector<512x32xf32> to vector<64x8x32xf32>
    %c0_20 = arith.constant 0 : index
    %c0_21 = arith.constant 0 : index
    %25 = vector.load %arg2[%c0_20, %c0_21] : memref<64x32xf32, #tpu.memory_space<vmem>>, vector<64x32xf32>
    %26 = vector.shape_cast %25 : vector<64x32xf32> to vector<64x1x32xf32>
    %27 = vector.broadcast %26 : vector<64x1x32xf32> to vector<64x8x32xf32>
    %28 = arith.subf %2, %27 : vector<64x8x32xf32>
    %29 = arith.addf %28, %24 : vector<64x8x32xf32>
    %30 = vector.shape_cast %29 : vector<64x8x32xf32> to vector<512x32xf32>
    %31 = arith.addf %4, %23 : vector<512x32xf32>
    %c0_22 = arith.constant 0 : index
    %c0_23 = arith.constant 0 : index
    %32 = vector.load %arg11[%c0_22, %c0_23] : memref<32x4xf32, #tpu.memory_space<vmem>>, vector<32x4xf32>
    %33 = arith.truncf %30 : vector<512x32xf32> to vector<512x32xbf16>
    %34 = arith.truncf %32 : vector<32x4xf32> to vector<32x4xbf16>
    %cst_24 = arith.constant dense<0.000000e+00> : vector<512x4xf32>
    %35 = tpu.matmul %33, %34, %cst_24 {dimension_numbers = #tpu.dot_dimension_numbers<[1], [0], [0], [1], [0, 0, 1, 1], [], []>} : vector<512x32xbf16>, vector<32x4xbf16>, vector<512x4xf32> -> vector<512x4xf32>
    %c0_25 = arith.constant 0 : index
    %c0_26 = arith.constant 0 : index
    %36 = vector.load %arg12[%c0_25, %c0_26] : memref<1x4xf32, #tpu.memory_space<vmem>>, vector<1x4xf32>
    %37 = vector.broadcast %36 : vector<1x4xf32> to vector<512x4xf32>
    %38 = arith.mulf %35, %37 : vector<512x4xf32>
    %c0_27 = arith.constant 0 : index
    %c0_28 = arith.constant 0 : index
    %39 = vector.load %arg13[%c0_27, %c0_28] : memref<1x4xf32, #tpu.memory_space<vmem>>, vector<1x4xf32>
    %40 = vector.broadcast %39 : vector<1x4xf32> to vector<512x4xf32>
    %41 = arith.addf %38, %40 : vector<512x4xf32>
    %cst_29 = arith.constant 0.000000e+00 : f32
    %42 = vector.broadcast %cst_29 : f32 to vector<512x4xf32>
    %43 = arith.maximumf %41, %42 : vector<512x4xf32>
    %c0_30 = arith.constant 0 : index
    %c0_31 = arith.constant 0 : index
    %44 = vector.load %arg14[%c0_30, %c0_31] : memref<4x4xf32, #tpu.memory_space<vmem>>, vector<4x4xf32>
    %cst_32 = arith.constant dense<0.000000e+00> : vector<512x4xf32>
    %45 = tpu.matmul %43, %44, %cst_32 {dimension_numbers = #tpu.dot_dimension_numbers<[1], [0], [0], [1], [0, 0, 1, 1], [], []>} : vector<512x4xf32>, vector<4x4xf32>, vector<512x4xf32> -> vector<512x4xf32>
    %c0_33 = arith.constant 0 : index
    %c0_34 = arith.constant 0 : index
    %46 = vector.load %arg15[%c0_33, %c0_34] : memref<1x4xf32, #tpu.memory_space<vmem>>, vector<1x4xf32>
    %47 = vector.broadcast %46 : vector<1x4xf32> to vector<512x4xf32>
    %48 = arith.addf %45, %47 : vector<512x4xf32>
    %49 = vector.shape_cast %48 : vector<512x4xf32> to vector<64x8x4xf32>
    %cst_35 = arith.constant dense<0xFF800000> : vector<64x4xf32>
    %50 = vector.multi_reduction <maximumf>, %49, %cst_35 [1] : vector<64x8x4xf32> to vector<64x4xf32>
    %51 = vector.shape_cast %50 : vector<64x4xf32> to vector<64x1x4xf32>
    %52 = vector.broadcast %51 : vector<64x1x4xf32> to vector<64x8x4xf32>
    %53 = arith.subf %49, %52 : vector<64x8x4xf32>
    %54 = math.exp %53 : vector<64x8x4xf32>
    %cst_36 = arith.constant dense<0.000000e+00> : vector<64x4xf32>
    %55 = vector.multi_reduction <add>, %54, %cst_36 [1] : vector<64x8x4xf32> to vector<64x4xf32>
    %56 = vector.shape_cast %55 : vector<64x4xf32> to vector<64x1x4xf32>
    %57 = tpu.reciprocal %56 {approx = true} : vector<64x1x4xf32> -> vector<64x1x4xf32>
    %58 = vector.broadcast %57 : vector<64x1x4xf32> to vector<64x8x4xf32>
    %59 = arith.mulf %54, %58 : vector<64x8x4xf32>
    %c0_37 = arith.constant 0 : index
    %c0_38 = arith.constant 0 : index
    %60 = vector.load %arg5[%c0_37, %c0_38] : memref<64x8xf32, #tpu.memory_space<vmem>>, vector<64x8xf32>
    %61 = vector.shape_cast %60 : vector<64x8xf32> to vector<64x8x1xf32>
    %62 = vector.broadcast %61 : vector<64x8x1xf32> to vector<64x8x4xf32>
    %63 = arith.mulf %59, %62 : vector<64x8x4xf32>
    %64 = vector.shape_cast %63 : vector<64x8x4xf32> to vector<512x4xf32>
    %c0_39 = arith.constant 0 : index
    %c0_40 = arith.constant 0 : index
    %65 = vector.load %arg18[%c0_39, %c0_40] : memref<4x32xf32, #tpu.memory_space<vmem>>, vector<4x32xf32>
    %cst_41 = arith.constant dense<0.000000e+00> : vector<512x32xf32>
    %66 = tpu.matmul %64, %65, %cst_41 {dimension_numbers = #tpu.dot_dimension_numbers<[1], [0], [0], [1], [0, 0, 1, 1], [], []>} : vector<512x4xf32>, vector<4x32xf32>, vector<512x32xf32> -> vector<512x32xf32>
    %67 = arith.mulf %31, %66 : vector<512x32xf32>
    %68 = vector.shape_cast %67 : vector<512x32xf32> to vector<64x8x32xf32>
    %cst_42 = arith.constant dense<0.000000e+00> : vector<64x32xf32>
    %69 = vector.multi_reduction <add>, %68, %cst_42 [1] : vector<64x8x32xf32> to vector<64x32xf32>
    %c0_43 = arith.constant 0 : index
    %c0_44 = arith.constant 0 : index
    %70 = vector.load %arg16[%c0_43, %c0_44] : memref<1x32xf32, #tpu.memory_space<vmem>>, vector<1x32xf32>
    %71 = vector.broadcast %70 : vector<1x32xf32> to vector<64x32xf32>
    %72 = arith.mulf %69, %71 : vector<64x32xf32>
    %c0_45 = arith.constant 0 : index
    %c0_46 = arith.constant 0 : index
    %73 = vector.load %arg17[%c0_45, %c0_46] : memref<1x32xf32, #tpu.memory_space<vmem>>, vector<1x32xf32>
    %74 = vector.broadcast %73 : vector<1x32xf32> to vector<64x32xf32>
    %75 = arith.addf %72, %74 : vector<64x32xf32>
    %cst_47 = arith.constant 0.000000e+00 : f32
    %76 = vector.broadcast %cst_47 : f32 to vector<64x32xf32>
    %77 = arith.maximumf %75, %76 : vector<64x32xf32>
    %c0_48 = arith.constant 0 : index
    %c0_49 = arith.constant 0 : index
    %78 = vector.load %arg19[%c0_48, %c0_49] : memref<64x32xf32, #tpu.memory_space<vmem>>, vector<64x32xf32>
    tpu.vector_store %arg19[%c0_48, %c0_49], %77 {strides = array<i32>} : memref<64x32xf32, #tpu.memory_space<vmem>>, vector<64x32xf32>,
    return
  }
  func.func @transform_0(%arg0: i32) -> (i32, i32, i32) {
    %c0_i32 = arith.constant 0 : i32
    %c0_i32_0 = arith.constant 0 : i32
    %c0_i32_1 = arith.constant 0 : i32
    return %arg0, %c0_i32, %c0_i32_0 : i32, i32, i32
  }
  func.func @transform_1(%arg0: i32) -> (i32, i32) {
    %c0_i32 = arith.constant 0 : i32
    %c0_i32_0 = arith.constant 0 : i32
    return %arg0, %c0_i32 : i32, i32
  }
  func.func @transform_2(%arg0: i32) -> (i32, i32, i32) {
    %c0_i32 = arith.constant 0 : i32
    %c0_i32_0 = arith.constant 0 : i32
    %c0_i32_1 = arith.constant 0 : i32
    return %arg0, %c0_i32, %c0_i32_0 : i32, i32, i32
  }
  func.func @transform_3(%arg0: i32) -> (i32, i32, i32) {
    %c0_i32 = arith.constant 0 : i32
    %c0_i32_0 = arith.constant 0 : i32
    %c0_i32_1 = arith.constant 0 : i32
    return %arg0, %c0_i32, %c0_i32_0 : i32, i32, i32
  }
  func.func @transform_4(%arg0: i32) -> (i32, i32) {
    %c0_i32 = arith.constant 0 : i32
    %c0_i32_0 = arith.constant 0 : i32
    return %arg0, %c0_i32 : i32, i32
  }
  func.func @transform_5(%arg0: i32) -> (i32, i32) {
    %c0_i32 = arith.constant 0 : i32
    %c0_i32_0 = arith.constant 0 : i32
    %c0_i32_1 = arith.constant 0 : i32
    return %c0_i32, %c0_i32_0 : i32, i32
  }
  func.func @transform_6(%arg0: i32) -> (i32, i32) {
    %c0_i32 = arith.constant 0 : i32
    %c0_i32_0 = arith.constant 0 : i32
    %c0_i32_1 = arith.constant 0 : i32
    return %c0_i32, %c0_i32_0 : i32, i32
  }
  func.func @transform_7(%arg0: i32) -> (i32, i32) {
    %c0_i32 = arith.constant 0 : i32
    %c0_i32_0 = arith.constant 0 : i32
    %c0_i32_1 = arith.constant 0 : i32
    return %c0_i32, %c0_i32_0 : i32, i32
  }
  func.func @transform_8(%arg0: i32) -> (i32, i32) {
    %c0_i32 = arith.constant 0 : i32
    %c0_i32_0 = arith.constant 0 : i32
    %c0_i32_1 = arith.constant 0 : i32
    return %c0_i32, %c0_i32_0 : i32, i32
  }
  func.func @transform_9(%arg0: i32) -> (i32, i32) {
    %c0_i32 = arith.constant 0 : i32
    %c0_i32_0 = arith.constant 0 : i32
    %c0_i32_1 = arith.constant 0 : i32
    return %c0_i32, %c0_i32_0 : i32, i32
  }
  func.func @transform_10(%arg0: i32) -> (i32, i32) {
    %c0_i32 = arith.constant 0 : i32
    %c0_i32_0 = arith.constant 0 : i32
    %c0_i32_1 = arith.constant 0 : i32
    return %c0_i32, %c0_i32_0 : i32, i32
  }
  func.func @transform_11(%arg0: i32) -> (i32, i32) {
    %c0_i32 = arith.constant 0 : i32
    %c0_i32_0 = arith.constant 0 : i32
    %c0_i32_1 = arith.constant 0 : i32
    return %c0_i32, %c0_i32_0 : i32, i32
  }
  func.func @transform_12(%arg0: i32) -> (i32, i32) {
    %c0_i32 = arith.constant 0 : i32
    %c0_i32_0 = arith.constant 0 : i32
    %c0_i32_1 = arith.constant 0 : i32
    return %c0_i32, %c0_i32_0 : i32, i32
  }
  func.func @transform_13(%arg0: i32) -> (i32, i32) {
    %c0_i32 = arith.constant 0 : i32
    %c0_i32_0 = arith.constant 0 : i32
    %c0_i32_1 = arith.constant 0 : i32
    return %c0_i32, %c0_i32_0 : i32, i32
  }
  func.func @transform_14(%arg0: i32) -> (i32, i32) {
    %c0_i32 = arith.constant 0 : i32
    %c0_i32_0 = arith.constant 0 : i32
    %c0_i32_1 = arith.constant 0 : i32
    return %c0_i32, %c0_i32_0 : i32, i32
  }
  func.func @transform_15(%arg0: i32) -> (i32, i32) {
    %c0_i32 = arith.constant 0 : i32
    %c0_i32_0 = arith.constant 0 : i32
    %c0_i32_1 = arith.constant 0 : i32
    return %c0_i32, %c0_i32_0 : i32, i32
  }
  func.func @transform_16(%arg0: i32) -> (i32, i32) {
    %c0_i32 = arith.constant 0 : i32
    %c0_i32_0 = arith.constant 0 : i32
    %c0_i32_1 = arith.constant 0 : i32
    return %c0_i32, %c0_i32_0 : i32, i32
  }
  func.func @transform_17(%arg0: i32) -> (i32, i32) {
    %c0_i32 = arith.constant 0 : i32
    %c0_i32_0 = arith.constant 0 : i32
    %c0_i32_1 = arith.constant 0 : i32
    return %c0_i32, %c0_i32_0 : i32, i32
  }
  func.func @transform_18(%arg0: i32) -> (i32, i32) {
    %c0_i32 = arith.constant 0 : i32
    %c0_i32_0 = arith.constant 0 : i32
    return %arg0, %c0_i32 : i32, i32
  }
}

module attributes {stable_mosaic.version = 11 : i64} {
  func.func @_linear_affine_res_kernel(%arg0: i32, %arg1: memref<64x32xf32, #tpu.memory_space<vmem>>, %arg2: memref<32x32xf32, #tpu.memory_space<vmem>>, %arg3: memref<1x32xf32, #tpu.memory_space<vmem>>, %arg4: memref<1x32xf32, #tpu.memory_space<vmem>>, %arg5: memref<64x32xf32, #tpu.memory_space<vmem>>, %arg6: memref<64x32xf32, #tpu.memory_space<vmem>>) attributes {dimension_semantics = [#tpu.dimension_semantics<parallel>], iteration_bounds = array<i64: 1>, scalar_prefetch = 0 : i64, scratch_operands = 0 : i64, tpu.core_type = #tpu.core_type<tc>, window_params = [{transform_indices = @transform_0, window_bounds = array<i64: 64, 32>}, {pipeline_mode = #tpu.pipeline_mode<synchronous>, transform_indices = @transform_1, window_bounds = array<i64: 32, 32>}, {pipeline_mode = #tpu.pipeline_mode<synchronous>, transform_indices = @transform_2, window_bounds = array<i64: 1, 32>}, {pipeline_mode = #tpu.pipeline_mode<synchronous>, transform_indices = @transform_3, window_bounds = array<i64: 1, 32>}, {transform_indices = @transform_4, window_bounds = array<i64: 64, 32>}, {transform_indices = @transform_5, window_bounds = array<i64: 64, 32>}]} {
    %c0 = arith.constant 0 : index
    %c0_0 = arith.constant 0 : index
    %0 = vector.load %arg1[%c0, %c0_0] : memref<64x32xf32, #tpu.memory_space<vmem>>, vector<64x32xf32>
    %c0_1 = arith.constant 0 : index
    %c0_2 = arith.constant 0 : index
    %1 = vector.load %arg2[%c0_1, %c0_2] : memref<32x32xf32, #tpu.memory_space<vmem>>, vector<32x32xf32>
    %2 = arith.truncf %0 : vector<64x32xf32> to vector<64x32xbf16>
    %3 = arith.truncf %1 : vector<32x32xf32> to vector<32x32xbf16>
    %cst = arith.constant dense<0.000000e+00> : vector<64x32xf32>
    %4 = tpu.matmul %2, %3, %cst {dimension_numbers = #tpu.dot_dimension_numbers<[1], [0], [0], [1], [0, 0, 1, 1], [], []>} : vector<64x32xbf16>, vector<32x32xbf16>, vector<64x32xf32> -> vector<64x32xf32>
    %c0_3 = arith.constant 0 : index
    %c0_4 = arith.constant 0 : index
    %5 = vector.load %arg3[%c0_3, %c0_4] : memref<1x32xf32, #tpu.memory_space<vmem>>, vector<1x32xf32>
    %6 = vector.broadcast %5 : vector<1x32xf32> to vector<64x32xf32>
    %7 = arith.mulf %4, %6 : vector<64x32xf32>
    %c0_5 = arith.constant 0 : index
    %c0_6 = arith.constant 0 : index
    %8 = vector.load %arg4[%c0_5, %c0_6] : memref<1x32xf32, #tpu.memory_space<vmem>>, vector<1x32xf32>
    %9 = vector.broadcast %8 : vector<1x32xf32> to vector<64x32xf32>
    %10 = arith.addf %7, %9 : vector<64x32xf32>
    %c0_7 = arith.constant 0 : index
    %c0_8 = arith.constant 0 : index
    %11 = vector.load %arg5[%c0_7, %c0_8] : memref<64x32xf32, #tpu.memory_space<vmem>>, vector<64x32xf32>
    %12 = arith.addf %10, %11 : vector<64x32xf32>
    %cst_9 = arith.constant 0.000000e+00 : f32
    %13 = vector.broadcast %cst_9 : f32 to vector<64x32xf32>
    %14 = arith.maximumf %12, %13 : vector<64x32xf32>
    %c0_10 = arith.constant 0 : index
    %c0_11 = arith.constant 0 : index
    %15 = vector.load %arg6[%c0_10, %c0_11] : memref<64x32xf32, #tpu.memory_space<vmem>>, vector<64x32xf32>
    tpu.vector_store %arg6[%c0_10, %c0_11], %14 {strides = array<i32>} : memref<64x32xf32, #tpu.memory_space<vmem>>, vector<64x32xf32>,
    return
  }
  func.func @transform_0(%arg0: i32) -> (i32, i32) {
    %c0_i32 = arith.constant 0 : i32
    %c0_i32_0 = arith.constant 0 : i32
    return %arg0, %c0_i32 : i32, i32
  }
  func.func @transform_1(%arg0: i32) -> (i32, i32) {
    %c0_i32 = arith.constant 0 : i32
    %c0_i32_0 = arith.constant 0 : i32
    %c0_i32_1 = arith.constant 0 : i32
    return %c0_i32, %c0_i32_0 : i32, i32
  }
  func.func @transform_2(%arg0: i32) -> (i32, i32) {
    %c0_i32 = arith.constant 0 : i32
    %c0_i32_0 = arith.constant 0 : i32
    %c0_i32_1 = arith.constant 0 : i32
    return %c0_i32, %c0_i32_0 : i32, i32
  }
  func.func @transform_3(%arg0: i32) -> (i32, i32) {
    %c0_i32 = arith.constant 0 : i32
    %c0_i32_0 = arith.constant 0 : i32
    %c0_i32_1 = arith.constant 0 : i32
    return %c0_i32, %c0_i32_0 : i32, i32
  }
  func.func @transform_4(%arg0: i32) -> (i32, i32) {
    %c0_i32 = arith.constant 0 : i32
    %c0_i32_0 = arith.constant 0 : i32
    return %arg0, %c0_i32 : i32, i32
  }
  func.func @transform_5(%arg0: i32) -> (i32, i32) {
    %c0_i32 = arith.constant 0 : i32
    %c0_i32_0 = arith.constant 0 : i32
    return %arg0, %c0_i32 : i32, i32
  }
}

</mosaic_0001>

<bundles_post_ra>
// kernel: custom-call
= control target key start
LH: loop header
LB: loop body
LE: loop exit
PB: predicated region body
PF: predicated region fallthrough
CT: control target
= control target key end

     0   :  { %s6_s0 = inlined_call_operand.vmem [shape: u32[64], index: 0, kind: output, shape index: {}]  }

// kernel: block_sequence_forward.8
= control target key start
LH: loop header
LB: loop body
LE: loop exit
PB: predicated region body
PF: predicated region fallthrough
CT: control target
= control target key end

     0   :  { %vm36_vm0 = vcmask 261120   ;;  %s295_s1 = inlined_call_operand.vmem [shape: f32[32,32], index: 1, kind: input, shape index: {}]   ;;  %s296_s0 = inlined_call_operand.vmem [shape: f32[64,32], index: 0, kind: input, shape index: {}]   ;;  %s297_s2 = inlined_call_operand.vmem [shape: f32[1,32], index: 2, kind: input, shape index: {}]   ;;  %s298_s3 = inlined_call_operand.vmem [shape: f32[1,32], index: 3, kind: input, shape index: {}]   ;;  %s299_s4 = inlined_call_operand.vmem [shape: f32[64,32], index: 4, kind: output, shape index: {}]  }
   0x1   :  { %v28_v0 = vld [vmem:[%s295_s1 + $0x10] sm:$0xff]  ;;  %v29_v1 = vld [vmem:[%s295_s1 + $0x18] sm:$0xff]  ;;  %v26_v2 = vld [vmem:[%s295_s1] sm:$0xff] }
   0x2   :  { %v35_v3 = vpack.c.bf16 %v29_v1, %v28_v0  ;;  %v27_v4 = vld [vmem:[%s295_s1 + $0x8] sm:$0xff]  ;;  %v18_v5 = vld [vmem:[%s296_s0] sm:$0xff]  ;;  %v20_v12 = vld [vmem:[%s296_s0 + $0x10] sm:$0xff] }
   0x3   :  { %v19_v6 = vld [vmem:[%s296_s0 + $0x8] sm:$0xff]  ;;  %v34_v7 = vpack.c.bf16 %v27_v4, %v26_v2  ;;  %v22_v9 = vld [vmem:[%s296_s0 + $0x20] sm:$0xff]  ;;  %v21_v13 = vld [vmem:[%s296_s0 + $0x18] sm:$0xff] }
   0x4   :  { %v30_v8 = vpack.c.bf16 %v19_v6, %v18_v5  ;;  %v23_v10 = vld [vmem:[%s296_s0 + $0x28] sm:$0xff]  ;;  %176 = vmatprep.subr.bf16.mxu0 %v35_v3  ;;  %188 = vmatprep.subr.bf16.mxu1 %v35_v3  ;;  %v24_v14 = vld [vmem:[%s296_s0 + $0x30] sm:$0xff]  ;;  %v25_v15 = vld [vmem:[%s296_s0 + $0x38] sm:$0xff]  ;;  %v31_v16 = vpack.c.bf16 %v21_v13, %v20_v12 }
   0x5   :  { %v32_v11 = vpack.c.bf16 %v23_v10, %v22_v9  ;;  %177 = vmatpush3.bf16.msra.mxu0 %v35_v3  ;;  %190 = vmatpush3.bf16.msra.mxu1 %v35_v3  ;;  %v33_v17 = vpack.c.bf16 %v25_v15, %v24_v14  ;;  %v168_v18 = vld [vmem:[%s297_s2] ss:$0 sm:$0xff] }
   0x6   :  { %178 = vmatprep.subr.bf16.mxu0 %v34_v7  ;;  %189 = vmatprep.subr.bf16.mxu1 %v34_v7  ;;  %v169_v20 = vld [vmem:[%s298_s3] ss:$0 sm:$0xff] }
   0x7   :  { %180 = vmatprep.mubr.msk.bf16.mxu0 %vm36_vm0, %v30_v8  ;;  %184 = vmatprep.mubr.msk.bf16.mxu1 %vm36_vm0, %v32_v11 }
   0x9   :  { %179 = vmatpush3.bf16.msra.mxu0 %v34_v7  ;;  %191 = vmatpush3.bf16.msra.mxu1 %v34_v7 }
   0xc   :  { %181 = vmatmul.mubr.msk.bf16.vlgmr.msra.gmra.mxu0 %vm36_vm0, %v31_v16  ;;  %185 = vmatmul.mubr.msk.bf16.vlgmr.msra.gmra.mxu1 %vm36_vm0, %v33_v17 }
  0xcc   :  { %v182_v19 = vpop.f32.mrf.mxu0  ;;  %v186_v21 = vpop.f32.mrf.mxu1 }
  0xcd   :  { %v123_v22 = vmul.f32 %v182_v19, %v168_v18  ;;  %v127_v23 = vmul.f32 %v186_v21, %v168_v18 }
  0xce   :  { %v83_v24 = vpop.f32.mrf.mxu0  ;;  %v99_v25 = vpop.f32.mrf.mxu1 }
  0xcf   :  { %v138_v26 = vadd.f32 %v169_v20, %v123_v22  ;;  %v142_v27 = vadd.f32 %v169_v20, %v127_v23  ;;  %v121_v28 = vmul.f32 %v168_v18, %v83_v24  ;;  %v125_v29 = vmul.f32 %v168_v18, %v99_v25 }
  0xd0   :  { %v183_v30 = vpop.f32.mrf.mxu0  ;;  %v187_v31 = vpop.f32.mrf.mxu1 }
  0xd1   :  { %v146_v32 = vmax.f32 %v138_v26, 0.0  ;;  %v150_v33 = vmax.f32 %v142_v27, 0.0  ;;  %v136_v34 = vadd.f32 %v169_v20, %v121_v28  ;;  %v140_v35 = vadd.f32 %v169_v20, %v125_v29 }
  0xd2   :  { %v124_v36 = vmul.f32 %v183_v30, %v168_v18  ;;  %v128_v37 = vmul.f32 %v187_v31, %v168_v18  ;;  %v86_v38 = vpop.f32.mrf.mxu0  ;;  %v102_v39 = vpop.f32.mrf.mxu1 }
  0xd3   :  { %154 = vst.msk [vmem:[%s299_s4 + $0x10] sm:$0xff] %vm36_vm0, %v146_v32  ;;  %158 = vst.msk [vmem:[%s299_s4 + $0x30] sm:$0xff] %vm36_vm0, %v150_v33  ;;  %v144_v40 = vmax.f32 %v136_v34, 0.0  ;;  %v148_v41 = vmax.f32 %v140_v35, 0.0  ;;  %v122_v42 = vmul.f32 %v168_v18, %v86_v38  ;;  %v126_v43 = vmul.f32 %v168_v18, %v102_v39 }
  0xd4   :  { %v139_v44 = vadd.f32 %v169_v20, %v124_v36  ;;  %v143_v45 = vadd.f32 %v169_v20, %v128_v37 }
  0xd5   :  { %152 = vst.msk [vmem:[%s299_s4] sm:$0xff] %vm36_vm0, %v144_v40  ;;  %156 = vst.msk [vmem:[%s299_s4 + $0x20] sm:$0xff] %vm36_vm0, %v148_v41  ;;  %v137_v46 = vadd.f32 %v169_v20, %v122_v42  ;;  %v141_v47 = vadd.f32 %v169_v20, %v126_v43 }
  0xd6   :  { %v147_v48 = vmax.f32 %v139_v44, 0.0  ;;  %v151_v49 = vmax.f32 %v143_v45, 0.0 }
  0xd7   :  { %v145_v50 = vmax.f32 %v137_v46, 0.0  ;;  %v149_v51 = vmax.f32 %v141_v47, 0.0 }
  0xd8   :  { %155 = vst.msk [vmem:[%s299_s4 + $0x18] sm:$0xff] %vm36_vm0, %v147_v48  ;;  %159 = vst.msk [vmem:[%s299_s4 + $0x38] sm:$0xff] %vm36_vm0, %v151_v49 }
  0xd9   :  { %153 = vst.msk [vmem:[%s299_s4 + $0x8] sm:$0xff] %vm36_vm0, %v145_v50  ;;  %157 = vst.msk [vmem:[%s299_s4 + $0x28] sm:$0xff] %vm36_vm0, %v149_v51 }

// kernel: block_sequence_forward.9
= control target key start
LH: loop header
LB: loop body
LE: loop exit
PB: predicated region body
PF: predicated region fallthrough
CT: control target
= control target key end

     0   :  { %vm39_vm0 = vcmask 261120   ;;  %v158_v18 = vlaneseq  ;;  %v213_v22 = vmov 0   ;;  %vm171_vm3 = vcmask 785408   ;;  %s333_s1 = inlined_call_operand.vmem [shape: f32[32,96], index: 1, kind: input, shape index: {}]   ;;  %s334_s0 = inlined_call_operand.vmem [shape: f32[64,32], index: 0, kind: input, shape index: {}]   ;;  %s335_s4 = inlined_call_operand.vmem [shape: f32[1,96], index: 4, kind: input, shape index: {}]   ;;  %s336_s2 = inlined_call_operand.vmem [shape: f32[1,96], index: 2, kind: input, shape index: {}]   ;;  %s337_s3 = inlined_call_operand.vmem [shape: f32[1,96], index: 3, kind: input, shape index: {}]   ;;  %s338_s5 = inlined_call_operand.vmem [shape: f32[64,96], index: 5, kind: output, shape index: {}]  }
   0x1   :  { %v31_v0 = vld [vmem:[%s333_s1 + $0x10] sm:$0xff]  ;;  %v32_v1 = vld [vmem:[%s333_s1 + $0x18] sm:$0xff]  ;;  %v29_v2 = vld [vmem:[%s333_s1] sm:$0xff] }
   0x2   :  { %v38_v3 = vpack.c.bf16 %v32_v1, %v31_v0  ;;  %v30_v4 = vld [vmem:[%s333_s1 + $0x8] sm:$0xff]  ;;  %v21_v5 = vld [vmem:[%s334_s0] sm:$0xff]  ;;  %v23_v12 = vld [vmem:[%s334_s0 + $0x10] sm:$0xff]  ;;  %v159_v20 = vshrl.u32 %v158_v18, 7 }
   0x3   :  { %v22_v6 = vld [vmem:[%s334_s0 + $0x8] sm:$0xff]  ;;  %v37_v7 = vpack.c.bf16 %v30_v4, %v29_v2  ;;  %v25_v9 = vld [vmem:[%s334_s0 + $0x20] sm:$0xff]  ;;  %v24_v13 = vld [vmem:[%s334_s0 + $0x18] sm:$0xff] }
   0x4   :  { %v33_v8 = vpack.c.bf16 %v22_v6, %v21_v5  ;;  %v26_v10 = vld [vmem:[%s334_s0 + $0x28] sm:$0xff]  ;;  %196 = vmatprep.subr.bf16.mxu0 %v38_v3  ;;  %208 = vmatprep.subr.bf16.mxu1 %v38_v3  ;;  %v27_v14 = vld [vmem:[%s334_s0 + $0x30] sm:$0xff]  ;;  %v28_v15 = vld [vmem:[%s334_s0 + $0x38] sm:$0xff]  ;;  %v34_v16 = vpack.c.bf16 %v24_v13, %v23_v12  ;;  %v160_v21 = vsub.s32 0, %v159_v20 }
   0x5   :  { %v35_v11 = vpack.c.bf16 %v26_v10, %v25_v9  ;;  %197 = vmatpush3.bf16.msra.mxu0 %v38_v3  ;;  %210 = vmatpush3.bf16.msra.mxu1 %v38_v3  ;;  %v36_v17 = vpack.c.bf16 %v28_v15, %v27_v14  ;;  %v147_v19 = vld [vmem:[%s335_s4] sm:$0x1] }
   0x6   :  { %198 = vmatprep.subr.bf16.mxu0 %v37_v7  ;;  %209 = vmatprep.subr.bf16.mxu1 %v37_v7  ;;  %vm148_vm1 = vcmp.gt.f32.partialorder %v147_v19, 0.0  ;;  %v188_v24 = vld [vmem:[%s336_s2] ss:$0 sm:$0xff] }
   0x7   :  { %200 = vmatprep.mubr.msk.bf16.mxu0 %vm39_vm0, %v33_v8  ;;  %204 = vmatprep.mubr.msk.bf16.mxu1 %vm39_vm0, %v35_v11  ;;  %v157_v23 = vsel %vm148_vm1, 1, %v213_v22  ;;  %v189_v26 = vld [vmem:[%s337_s3] ss:$0 sm:$0xff] }
   0x8   :  { %v161_v27 = vrot.slane %v157_v23, %v160_v21 }
   0x9   :  { %199 = vmatpush3.bf16.msra.mxu0 %v37_v7  ;;  %211 = vmatpush3.bf16.msra.mxu1 %v37_v7 }
   0xa   :  { %vm162_vm2 = vcmp.eq.s32.totalorder %v161_v27, 1 }
   0xc   :  { %201 = vmatmul.mubr.msk.bf16.vlgmr.msra.gmra.mxu0 %vm39_vm0, %v34_v16  ;;  %205 = vmatmul.mubr.msk.bf16.vlgmr.msra.gmra.mxu1 %vm39_vm0, %v36_v17 }
  0xcc   :  { %v202_v25 = vpop.f32.mrf.mxu0  ;;  %v206_v28 = vpop.f32.mrf.mxu1 }
  0xcd   :  { %v126_v29 = vmul.f32 %v202_v25, %v188_v24  ;;  %v130_v30 = vmul.f32 %v206_v28, %v188_v24 }
  0xce   :  { %v86_v31 = vpop.f32.mrf.mxu0  ;;  %v102_v32 = vpop.f32.mrf.mxu1 }
  0xcf   :  { %v141_v33 = vadd.f32 %v189_v26, %v126_v29  ;;  %v145_v34 = vadd.f32 %v189_v26, %v130_v30  ;;  %v124_v35 = vmul.f32 %v188_v24, %v86_v31  ;;  %v128_v36 = vmul.f32 %v188_v24, %v102_v32 }
  0xd0   :  { %v203_v37 = vpop.f32.mrf.mxu0  ;;  %v207_v38 = vpop.f32.mrf.mxu1 }
  0xd1   :  { %v151_v39 = vmax.f32 %v141_v33, 0.0  ;;  %v155_v40 = vmax.f32 %v145_v34, 0.0  ;;  %v139_v41 = vadd.f32 %v189_v26, %v124_v35  ;;  %v143_v42 = vadd.f32 %v189_v26, %v128_v36 }
  0xd2   :  { %v127_v43 = vmul.f32 %v203_v37, %v188_v24  ;;  %v131_v44 = vmul.f32 %v207_v38, %v188_v24  ;;  %v89_v45 = vpop.f32.mrf.mxu0  ;;  %v105_v46 = vpop.f32.mrf.mxu1 }
  0xd3   :  { %v165_v47 = vsel %vm162_vm2, %v151_v39, %v141_v33  ;;  %v169_v48 = vsel %vm162_vm2, %v155_v40, %v145_v34  ;;  %v149_v49 = vmax.f32 %v139_v41, 0.0  ;;  %v153_v50 = vmax.f32 %v143_v42, 0.0 }
  0xd4   :  { %174 = vst.msk [vmem:[%s338_s5 + $0x10] sm:$0xff] %vm171_vm3, %v165_v47  ;;  %178 = vst.msk [vmem:[%s338_s5 + $0x30] sm:$0xff] %vm171_vm3, %v169_v48  ;;  %v142_v51 = vadd.f32 %v189_v26, %v127_v43  ;;  %v146_v52 = vadd.f32 %v189_v26, %v131_v44  ;;  %v125_v53 = vmul.f32 %v188_v24, %v89_v45 }
  0xd5   :  { %v129_v54 = vmul.f32 %v188_v24, %v105_v46  ;;  %v163_v55 = vsel %vm162_vm2, %v149_v49, %v139_v41  ;;  %v167_v56 = vsel %vm162_vm2, %v153_v50, %v143_v42 }
  0xd6   :  { %172 = vst.msk [vmem:[%s338_s5] sm:$0xff] %vm171_vm3, %v163_v55  ;;  %176 = vst.msk [vmem:[%s338_s5 + $0x20] sm:$0xff] %vm171_vm3, %v167_v56  ;;  %v152_v57 = vmax.f32 %v142_v51, 0.0  ;;  %v156_v58 = vmax.f32 %v146_v52, 0.0  ;;  %v140_v59 = vadd.f32 %v189_v26, %v125_v53 }
  0xd7   :  { %v144_v60 = vadd.f32 %v189_v26, %v129_v54 }
  0xd8   :  { %v166_v61 = vsel %vm162_vm2, %v152_v57, %v142_v51  ;;  %v170_v62 = vsel %vm162_vm2, %v156_v58, %v146_v52  ;;  %v150_v63 = vmax.f32 %v140_v59, 0.0 }
  0xd9   :  { %v154_v0 = vmax.f32 %v144_v60, 0.0  ;;  %175 = vst.msk [vmem:[%s338_s5 + $0x18] sm:$0xff] %vm171_vm3, %v166_v61  ;;  %179 = vst.msk [vmem:[%s338_s5 + $0x38] sm:$0xff] %vm171_vm3, %v170_v62 }
  0xda   :  { %v164_v1 = vsel %vm162_vm2, %v150_v63, %v140_v59 }
  0xdb   :  { %v168_v2 = vsel %vm162_vm2, %v154_v0, %v144_v60  ;;  %173 = vst.msk [vmem:[%s338_s5 + $0x8] sm:$0xff] %vm171_vm3, %v164_v1 }
  0xdc   :  { %177 = vst.msk [vmem:[%s338_s5 + $0x28] sm:$0xff] %vm171_vm3, %v168_v2 }

// kernel: block_sequence_forward.11
= control target key start
LH: loop header
LB: loop body
LE: loop exit
PB: predicated region body
PF: predicated region fallthrough
CT: control target
= control target key end

     0   :  { %vm39_vm0 = vcmask 261120   ;;  %s343_s1 = inlined_call_operand.vmem [shape: f32[32,32], index: 1, kind: input, shape index: {}]   ;;  %s344_s0 = inlined_call_operand.vmem [shape: f32[64,32], index: 0, kind: input, shape index: {}]   ;;  %s345_s2 = inlined_call_operand.vmem [shape: f32[1,32], index: 2, kind: input, shape index: {}]   ;;  %s346_s3 = inlined_call_operand.vmem [shape: f32[1,32], index: 3, kind: input, shape index: {}]   ;;  %s347_s4 = inlined_call_operand.vmem [shape: f32[64,32], index: 4, kind: input, shape index: {}]   ;;  %s348_s5 = inlined_call_operand.vmem [shape: f32[64,32], index: 5, kind: output, shape index: {}]  }
   0x1   :  { %v31_v0 = vld [vmem:[%s343_s1 + $0x10] sm:$0xff]  ;;  %v32_v1 = vld [vmem:[%s343_s1 + $0x18] sm:$0xff]  ;;  %v29_v2 = vld [vmem:[%s343_s1] sm:$0xff] }
   0x2   :  { %v38_v3 = vpack.c.bf16 %v32_v1, %v31_v0  ;;  %v30_v4 = vld [vmem:[%s343_s1 + $0x8] sm:$0xff]  ;;  %v21_v5 = vld [vmem:[%s344_s0] sm:$0xff]  ;;  %v23_v12 = vld [vmem:[%s344_s0 + $0x10] sm:$0xff] }
   0x3   :  { %v22_v6 = vld [vmem:[%s344_s0 + $0x8] sm:$0xff]  ;;  %v37_v7 = vpack.c.bf16 %v30_v4, %v29_v2  ;;  %v25_v9 = vld [vmem:[%s344_s0 + $0x20] sm:$0xff]  ;;  %v24_v13 = vld [vmem:[%s344_s0 + $0x18] sm:$0xff] }
   0x4   :  { %v33_v8 = vpack.c.bf16 %v22_v6, %v21_v5  ;;  %v26_v10 = vld [vmem:[%s344_s0 + $0x28] sm:$0xff]  ;;  %195 = vmatprep.subr.bf16.mxu0 %v38_v3  ;;  %207 = vmatprep.subr.bf16.mxu1 %v38_v3  ;;  %v27_v14 = vld [vmem:[%s344_s0 + $0x30] sm:$0xff]  ;;  %v28_v15 = vld [vmem:[%s344_s0 + $0x38] sm:$0xff]  ;;  %v34_v16 = vpack.c.bf16 %v24_v13, %v23_v12 }
   0x5   :  { %v35_v11 = vpack.c.bf16 %v26_v10, %v25_v9  ;;  %196 = vmatpush3.bf16.msra.mxu0 %v38_v3  ;;  %209 = vmatpush3.bf16.msra.mxu1 %v38_v3  ;;  %v36_v17 = vpack.c.bf16 %v28_v15, %v27_v14  ;;  %v187_v18 = vld [vmem:[%s345_s2] ss:$0 sm:$0xff]  ;;  %v149_v24 = vld [vmem:[%s347_s4 + $0x10] sm:$0xff]  ;;  %v150_v48 = vld [vmem:[%s347_s4 + $0x18] sm:$0xff] }
   0x6   :  { %197 = vmatprep.subr.bf16.mxu0 %v37_v7  ;;  %208 = vmatprep.subr.bf16.mxu1 %v37_v7  ;;  %v188_v20 = vld [vmem:[%s346_s3] ss:$0 sm:$0xff]  ;;  %v153_v25 = vld [vmem:[%s347_s4 + $0x30] sm:$0xff]  ;;  %v154_v49 = vld [vmem:[%s347_s4 + $0x38] sm:$0xff] }
   0x7   :  { %199 = vmatprep.mubr.msk.bf16.mxu0 %vm39_vm0, %v33_v8  ;;  %203 = vmatprep.mubr.msk.bf16.mxu1 %vm39_vm0, %v35_v11  ;;  %v147_v32 = vld [vmem:[%s347_s4] sm:$0xff]  ;;  %v148_v56 = vld [vmem:[%s347_s4 + $0x8] sm:$0xff] }
   0x8   :  { %v151_v33 = vld [vmem:[%s347_s4 + $0x20] sm:$0xff]  ;;  %v152_v57 = vld [vmem:[%s347_s4 + $0x28] sm:$0xff] }
   0x9   :  { %198 = vmatpush3.bf16.msra.mxu0 %v37_v7  ;;  %210 = vmatpush3.bf16.msra.mxu1 %v37_v7 }
   0xc   :  { %200 = vmatmul.mubr.msk.bf16.vlgmr.msra.gmra.mxu0 %vm39_vm0, %v34_v16  ;;  %204 = vmatmul.mubr.msk.bf16.vlgmr.msra.gmra.mxu1 %vm39_vm0, %v36_v17 }
  0xcc   :  { %v201_v19 = vpop.f32.mrf.mxu0  ;;  %v205_v21 = vpop.f32.mrf.mxu1 }
  0xcd   :  { %v126_v22 = vmul.f32 %v201_v19, %v187_v18  ;;  %v130_v23 = vmul.f32 %v205_v21, %v187_v18 }
  0xce   :  { %v86_v26 = vpop.f32.mrf.mxu0  ;;  %v102_v27 = vpop.f32.mrf.mxu1 }
  0xcf   :  { %v141_v28 = vadd.f32 %v188_v20, %v126_v22  ;;  %v145_v29 = vadd.f32 %v188_v20, %v130_v23  ;;  %v124_v30 = vmul.f32 %v187_v18, %v86_v26  ;;  %v128_v31 = vmul.f32 %v187_v18, %v102_v27 }
  0xd0   :  { %v202_v34 = vpop.f32.mrf.mxu0  ;;  %v206_v35 = vpop.f32.mrf.mxu1 }
  0xd1   :  { %v157_v36 = vadd.f32 %v149_v24, %v141_v28  ;;  %v161_v37 = vadd.f32 %v153_v25, %v145_v29  ;;  %v139_v38 = vadd.f32 %v188_v20, %v124_v30  ;;  %v143_v39 = vadd.f32 %v188_v20, %v128_v31 }
  0xd2   :  { %v127_v40 = vmul.f32 %v202_v34, %v187_v18  ;;  %v131_v41 = vmul.f32 %v206_v35, %v187_v18  ;;  %v89_v42 = vpop.f32.mrf.mxu0  ;;  %v105_v43 = vpop.f32.mrf.mxu1 }
  0xd3   :  { %v165_v44 = vmax.f32 %v157_v36, 0.0  ;;  %v169_v45 = vmax.f32 %v161_v37, 0.0  ;;  %v155_v46 = vadd.f32 %v147_v32, %v139_v38  ;;  %v159_v47 = vadd.f32 %v151_v33, %v143_v39 }
  0xd4   :  { %v142_v50 = vadd.f32 %v188_v20, %v127_v40  ;;  %v146_v51 = vadd.f32 %v188_v20, %v131_v41  ;;  %v125_v52 = vmul.f32 %v187_v18, %v89_v42  ;;  %v129_v53 = vmul.f32 %v187_v18, %v105_v43 }
  0xd5   :  { %173 = vst.msk [vmem:[%s348_s5 + $0x10] sm:$0xff] %vm39_vm0, %v165_v44  ;;  %177 = vst.msk [vmem:[%s348_s5 + $0x30] sm:$0xff] %vm39_vm0, %v169_v45  ;;  %v163_v54 = vmax.f32 %v155_v46, 0.0  ;;  %v167_v55 = vmax.f32 %v159_v47, 0.0 }
  0xd6   :  { %v158_v58 = vadd.f32 %v150_v48, %v142_v50  ;;  %v162_v59 = vadd.f32 %v154_v49, %v146_v51  ;;  %v140_v60 = vadd.f32 %v188_v20, %v125_v52  ;;  %v144_v61 = vadd.f32 %v188_v20, %v129_v53 }
  0xd7   :  { %171 = vst.msk [vmem:[%s348_s5] sm:$0xff] %vm39_vm0, %v163_v54  ;;  %175 = vst.msk [vmem:[%s348_s5 + $0x20] sm:$0xff] %vm39_vm0, %v167_v55 }
  0xd8   :  { %v166_v62 = vmax.f32 %v158_v58, 0.0  ;;  %v170_v63 = vmax.f32 %v162_v59, 0.0  ;;  %v156_v0 = vadd.f32 %v148_v56, %v140_v60  ;;  %v160_v1 = vadd.f32 %v152_v57, %v144_v61 }
  0xda   :  { %174 = vst.msk [vmem:[%s348_s5 + $0x18] sm:$0xff] %vm39_vm0, %v166_v62  ;;  %178 = vst.msk [vmem:[%s348_s5 + $0x38] sm:$0xff] %vm39_vm0, %v170_v63  ;;  %v164_v2 = vmax.f32 %v156_v0, 0.0  ;;  %v168_v3 = vmax.f32 %v160_v1, 0.0 }
  0xdc   :  { %172 = vst.msk [vmem:[%s348_s5 + $0x8] sm:$0xff] %vm39_vm0, %v164_v2  ;;  %176 = vst.msk [vmem:[%s348_s5 + $0x28] sm:$0xff] %vm39_vm0, %v168_v3 }

// kernel: block_sequence_forward.10
= control target key start
LH: loop header
LB: loop body
LE: loop exit
PB: predicated region body
PF: predicated region fallthrough
CT: control target
= control target key end

     0   :  { %vm383_vm0 = vcmask 1043456   ;;  %vm286_vm1 = vcmask 64512   ;;  %vm927_vm2 = vcmask 261120   ;;  %vm2870_vm3 = vcmask 31744   ;;  %s11310_s5 = inlined_call_operand.vmem [shape: f32[8,32], index: 5, kind: input, shape index: {}]   ;;  %s11311_s0 = inlined_call_operand.vmem [shape: f32[64,8,8], index: 0, kind: input, shape index: {}]   ;;  %s11312_s8 = inlined_call_operand.vmem [shape: f32[32,32], index: 8, kind: input, shape index: {}]   ;;  %s11313_s6 = inlined_call_operand.vmem [shape: f32[1,32], index: 6, kind: input, shape index: {}]   ;;  %s11314_s7 = inlined_call_operand.vmem [shape: f32[1,32], index: 7, kind: input, shape index: {}]   ;;  %s11315_s10 = inlined_call_operand.vmem [shape: f32[32,4], index: 10, kind: input, shape index: {}]   ;;  %s11316_s13 = inlined_call_operand.vmem [shape: f32[4,4], index: 13, kind: input, shape index: {}]   ;;  %s11317_s1 = inlined_call_operand.vmem [shape: f32[64,32], index: 1, kind: input, shape index: {}]   ;;  %s11318_s2 = inlined_call_operand.vmem [shape: f32[64,8,32], index: 2, kind: input, shape index: {}]   ;;  %s11319_s9 = inlined_call_operand.vmem [shape: f32[1,32], index: 9, kind: input, shape index: {}]   ;;  %s11320_s11 = inlined_call_operand.vmem [shape: f32[1,4], index: 11, kind: input, shape index: {}]   ;;  %s11321_s12 = inlined_call_operand.vmem [shape: f32[1,4], index: 12, kind: input, shape index: {}]   ;;  %s11322_s17 = inlined_call_operand.vmem [shape: f32[4,32], index: 17, kind: input, shape index: {}]   ;;  %s11323_s4 = inlined_call_operand.vmem [shape: f32[64,8], index: 4, kind: input, shape index: {}]   ;;  %s11324_s14 = inlined_call_operand.vmem [shape: f32[1,4], index: 14, kind: input, shape index: {}]   ;;  %s11325_s3 = inlined_call_operand.vmem [shape: f32[64,8,32], index: 3, kind: input, shape index: {}]   ;;  %s11326_s15 = inlined_call_operand.vmem [shape: f32[1,32], index: 15, kind: input, shape index: {}]   ;;  %s11327_s16 = inlined_call_operand.vmem [shape: f32[1,32], index: 16, kind: input, shape index: {}]   ;;  %s11328_s18 = inlined_call_operand.vmem [shape: f32[64,32], index: 18, kind: output, shape index: {}]  }
   0x1   :  { %11438 = sst [smem:[#allocation93_spill]] %s11310_s5  ;;  %vm6551_vm4 = vcmask 1041409   ;;  %vm6554_vm5 = vcmask 1042434   ;;  %vm6557_vm6 = vcmask 1043459   ;;  %vm6560_vm7 = vcmask 1044484  }
   0x2   :  { %11439 = sst [smem:[#allocation94_spill]] %s11311_s0  ;;  %vm6563_vm8 = vcmask 1045509   ;;  %vm6566_vm9 = vcmask 1046534   ;;  %vm6569_vm10 = vcmask 1047559  }
   0x3   :  { %11440 = sst [smem:[#allocation95_spill]] %s11312_s8 }
   0x4   :  { %s11441_s29 = sld [smem:[#allocation93_spill]] }
   0x5   :  { %s11442_s19 = sld [smem:[#allocation94_spill]] }
   0x6   :  { %s11443_s24 = sld [smem:[#allocation95_spill]] }
   0xa   :  { %v252_v0 = vld [vmem:[%s11441_s29] sm:$0xff] }
   0xb   :  { %v60_v1 = vld [vmem:[%s11442_s19] sm:$0xff]  ;;  %v61_v2 = vld [vmem:[%s11442_s19 + $0x8] sm:$0xff]  ;;  %v285_v3 = vpack.c.bf16 %v252_v0, %v252_v0  ;;  %v62_v5 = vld [vmem:[%s11442_s19 + $0x10] sm:$0xff] }
   0xc   :  { %v253_v4 = vpack.c.bf16 %v61_v2, %v60_v1  ;;  %v63_v6 = vld [vmem:[%s11442_s19 + $0x18] sm:$0xff]  ;;  %v64_v7 = vld [vmem:[%s11442_s19 + $0x20] sm:$0xff]  ;;  %v65_v8 = vld [vmem:[%s11442_s19 + $0x28] sm:$0xff] }
   0xd   :  { %7554 = vmatprep.subr.msk.bf16.mxu0 %vm383_vm0, %v285_v3  ;;  %v385_v9 = vsel %vm383_vm0, %v285_v3, 0  ;;  %v254_v10 = vpack.c.bf16 %v63_v6, %v62_v5  ;;  %v255_v11 = vpack.c.bf16 %v65_v8, %v64_v7  ;;  %7555 = vmatprep.subr.msk.bf16.mxu1 %vm383_vm0, %v285_v3  ;;  %v66_v12 = vld [vmem:[%s11442_s19 + $0x30] sm:$0xff]  ;;  %v67_v13 = vld [vmem:[%s11442_s19 + $0x38] sm:$0xff]  ;;  %v68_v14 = vld [vmem:[%s11442_s19 + $0x40] sm:$0xff] }
   0xe   :  { %7156 = vmatprep.mubr.msk.bf16.mxu0 %vm286_vm1, %v253_v4  ;;  %7155 = vmatpush3.bf16.msra.mxu0 %v385_v9  ;;  %v69_v15 = vld [vmem:[%s11442_s19 + $0x48] sm:$0xff]  ;;  %v256_v16 = vpack.c.bf16 %v67_v13, %v66_v12  ;;  %v92_v17 = vld [vmem:[%s11442_s19 + $0x100] sm:$0xff]  ;;  %v94_v19 = vld [vmem:[%s11442_s19 + $0x110] sm:$0xff] }
   0xf   :  { %7553 = vmatpush3.bf16.msra.mxu1 %v385_v9  ;;  %v93_v18 = vld [vmem:[%s11442_s19 + $0x108] sm:$0xff]  ;;  %v257_v20 = vpack.c.bf16 %v69_v15, %v68_v14  ;;  %v95_v22 = vld [vmem:[%s11442_s19 + $0x118] sm:$0xff]  ;;  %v96_v23 = vld [vmem:[%s11442_s19 + $0x120] sm:$0xff] }
  0x10   :  { %v269_v21 = vpack.c.bf16 %v93_v18, %v92_v17  ;;  %v97_v24 = vld [vmem:[%s11442_s19 + $0x128] sm:$0xff]  ;;  %v270_v25 = vpack.c.bf16 %v95_v22, %v94_v19  ;;  %v70_v27 = vld [vmem:[%s11442_s19 + $0x50] sm:$0xff]  ;;  %v71_v28 = vld [vmem:[%s11442_s19 + $0x58] sm:$0xff] }
  0x11   :  { %7157 = vmatmul.mubr.msk.bf16.vlgmr.msra.gmra.mxu0 %vm286_vm1, %v254_v10  ;;  %v271_v26 = vpack.c.bf16 %v97_v24, %v96_v23  ;;  %v72_v29 = vld [vmem:[%s11442_s19 + $0x60] sm:$0xff]  ;;  %v98_v30 = vld [vmem:[%s11442_s19 + $0x130] sm:$0xff]  ;;  %v99_v31 = vld [vmem:[%s11442_s19 + $0x138] sm:$0xff]  ;;  %v258_v35 = vpack.c.bf16 %v71_v28, %v70_v27 }
  0x12   :  { %7160 = vmatprep.mubr.msk.bf16.mxu0 %vm286_vm1, %v255_v11  ;;  %7188 = vmatprep.mubr.msk.bf16.mxu1 %vm286_vm1, %v269_v21  ;;  %v73_v32 = vld [vmem:[%s11442_s19 + $0x68] sm:$0xff]  ;;  %v100_v33 = vld [vmem:[%s11442_s19 + $0x140] sm:$0xff]  ;;  %v272_v36 = vpack.c.bf16 %v99_v31, %v98_v30  ;;  %v884_v39 = vld [vmem:[%s11443_s24 + $0x10] sm:$0xff] }
  0x13   :  { %7189 = vmatmul.mubr.msk.bf16.vlgmr.msra.gmra.mxu1 %vm286_vm1, %v270_v25  ;;  %v101_v34 = vld [vmem:[%s11442_s19 + $0x148] sm:$0xff]  ;;  %v259_v37 = vpack.c.bf16 %v73_v32, %v72_v29  ;;  %v885_v40 = vld [vmem:[%s11443_s24 + $0x18] sm:$0xff]  ;;  %v882_v41 = vld [vmem:[%s11443_s24] sm:$0xff] }
  0x14   :  { %7192 = vmatprep.mubr.msk.bf16.mxu1 %vm286_vm1, %v271_v26  ;;  %v273_v38 = vpack.c.bf16 %v101_v34, %v100_v33  ;;  %v883_v42 = vld [vmem:[%s11443_s24 + $0x8] sm:$0xff]  ;;  %v74_v43 = vld [vmem:[%s11442_s19 + $0x70] sm:$0xff]  ;;  %v75_v44 = vld [vmem:[%s11442_s19 + $0x78] sm:$0xff]  ;;  %v919_v45 = vpack.c.bf16 %v885_v40, %v884_v39 }
  0x15   :  { %v918_v46 = vpack.c.bf16 %v883_v42, %v882_v41  ;;  %v76_v47 = vld [vmem:[%s11442_s19 + $0x80] sm:$0xff]  ;;  %v102_v48 = vld [vmem:[%s11442_s19 + $0x150] sm:$0xff]  ;;  %v103_v49 = vld [vmem:[%s11442_s19 + $0x158] sm:$0xff]  ;;  %v260_v53 = vpack.c.bf16 %v75_v44, %v74_v43 }
  0x16   :  { %v77_v50 = vld [vmem:[%s11442_s19 + $0x88] sm:$0xff]  ;;  %v104_v51 = vld [vmem:[%s11442_s19 + $0x160] sm:$0xff]  ;;  %7220 = vmatprep.subr.bf16.mxu1 %v919_v45  ;;  %v274_v54 = vpack.c.bf16 %v103_v49, %v102_v48  ;;  %v78_v57 = vld [vmem:[%s11442_s19 + $0x90] sm:$0xff] }
  0x17   :  { %v105_v52 = vld [vmem:[%s11442_s19 + $0x168] sm:$0xff]  ;;  %7221 = vmatpush3.bf16.msra.mxu1 %v919_v45  ;;  %v261_v55 = vpack.c.bf16 %v77_v50, %v76_v47  ;;  %v79_v58 = vld [vmem:[%s11442_s19 + $0x98] sm:$0xff]  ;;  %v80_v59 = vld [vmem:[%s11442_s19 + $0xa0] sm:$0xff] }
  0x18   :  { %7222 = vmatprep.subr.bf16.mxu1 %v918_v46  ;;  %v275_v56 = vpack.c.bf16 %v105_v52, %v104_v51  ;;  %v106_v60 = vld [vmem:[%s11442_s19 + $0x170] sm:$0xff]  ;;  %v107_v61 = vld [vmem:[%s11442_s19 + $0x178] sm:$0xff]  ;;  %v81_v62 = vld [vmem:[%s11442_s19 + $0xa8] sm:$0xff]  ;;  %v262_v1 = vpack.c.bf16 %v79_v58, %v78_v57 }
  0x19   :  { %7161 = vmatmul.mubr.msk.bf16.gmra.mxu0 %vm286_vm1, %v256_v16  ;;  %v108_v63 = vld [vmem:[%s11442_s19 + $0x180] sm:$0xff]  ;;  %v109_v0 = vld [vmem:[%s11442_s19 + $0x188] sm:$0xff]  ;;  %v276_v2 = vpack.c.bf16 %v107_v61, %v106_v60  ;;  %v263_v3 = vpack.c.bf16 %v81_v62, %v80_v59  ;;  %v82_v5 = vld [vmem:[%s11442_s19 + $0xb0] sm:$0xff] }
  0x1a   :  { %7164 = vmatprep.mubr.msk.bf16.mxu0 %vm286_vm1, %v257_v20  ;;  %v277_v4 = vpack.c.bf16 %v109_v0, %v108_v63  ;;  %v83_v6 = vld [vmem:[%s11442_s19 + $0xb8] sm:$0xff]  ;;  %v84_v7 = vld [vmem:[%s11442_s19 + $0xc0] sm:$0xff]  ;;  %v110_v8 = vld [vmem:[%s11442_s19 + $0x190] sm:$0xff] }
  0x1b   :  { %7193 = vmatmul.mubr.msk.bf16.gmra.mxu1 %vm286_vm1, %v272_v36  ;;  %v111_v9 = vld [vmem:[%s11442_s19 + $0x198] sm:$0xff]  ;;  %v85_v10 = vld [vmem:[%s11442_s19 + $0xc8] sm:$0xff]  ;;  %v112_v11 = vld [vmem:[%s11442_s19 + $0x1a0] sm:$0xff]  ;;  %v264_v13 = vpack.c.bf16 %v83_v6, %v82_v5 }
  0x1c   :  { %7196 = vmatprep.mubr.msk.bf16.mxu1 %vm286_vm1, %v273_v38  ;;  %7223 = vmatpush3.bf16.msra.mxu1 %v918_v46  ;;  %v113_v12 = vld [vmem:[%s11442_s19 + $0x1a8] sm:$0xff]  ;;  %v278_v14 = vpack.c.bf16 %v111_v9, %v110_v8  ;;  %v265_v15 = vpack.c.bf16 %v85_v10, %v84_v7  ;;  %v86_v17 = vld [vmem:[%s11442_s19 + $0xd0] sm:$0xff]  ;;  %v87_v18 = vld [vmem:[%s11442_s19 + $0xd8] sm:$0xff] }
  0x1d   :  { %v279_v16 = vpack.c.bf16 %v113_v12, %v112_v11  ;;  %v88_v19 = vld [vmem:[%s11442_s19 + $0xe0] sm:$0xff]  ;;  %v114_v20 = vld [vmem:[%s11442_s19 + $0x1b0] sm:$0xff]  ;;  %v115_v21 = vld [vmem:[%s11442_s19 + $0x1b8] sm:$0xff]  ;;  %v266_v25 = vpack.c.bf16 %v87_v18, %v86_v17 }
  0x1e   :  { %v89_v22 = vld [vmem:[%s11442_s19 + $0xe8] sm:$0xff]  ;;  %v116_v23 = vld [vmem:[%s11442_s19 + $0x1c0] sm:$0xff]  ;;  %v280_v26 = vpack.c.bf16 %v115_v21, %v114_v20  ;;  %v90_v29 = vld [vmem:[%s11442_s19 + $0xf0] sm:$0xff] }
  0x1f   :  { %v117_v24 = vld [vmem:[%s11442_s19 + $0x1c8] sm:$0xff]  ;;  %v267_v27 = vpack.c.bf16 %v89_v22, %v88_v19  ;;  %v91_v30 = vld [vmem:[%s11442_s19 + $0xf8] sm:$0xff]  ;;  %v118_v31 = vld [vmem:[%s11442_s19 + $0x1d0] sm:$0xff] }
  0x20   :  { %v281_v28 = vpack.c.bf16 %v117_v24, %v116_v23  ;;  %v119_v32 = vld [vmem:[%s11442_s19 + $0x1d8] sm:$0xff]  ;;  %v120_v33 = vld [vmem:[%s11442_s19 + $0x1e0] sm:$0xff]  ;;  %v121_v34 = vld [vmem:[%s11442_s19 + $0x1e8] sm:$0xff] }
  0x21   :  { %7165 = vmatmul.mubr.msk.bf16.gmra.mxu0 %vm286_vm1, %v258_v35  ;;  %v268_v35 = vpack.c.bf16 %v91_v30, %v90_v29  ;;  %v282_v36 = vpack.c.bf16 %v119_v32, %v118_v31  ;;  %v122_v38 = vld [vmem:[%s11442_s19 + $0x1f0] sm:$0xff]  ;;  %v123_v39 = vld [vmem:[%s11442_s19 + $0x1f8] sm:$0xff]  ;;  %v8168_v42 = vld [vmem:[%s11313_s6] ss:$0 sm:$0xff] }
  0x22   :  { %7168 = vmatprep.mubr.msk.bf16.mxu0 %vm286_vm1, %v259_v37  ;;  %v283_v37 = vpack.c.bf16 %v121_v34, %v120_v33  ;;  %v284_v40 = vpack.c.bf16 %v123_v39, %v122_v38  ;;  %v8175_v47 = vld [vmem:[%s11314_s7] ss:$0 sm:$0xff]  ;;  %v2235_v57 = vld [vmem:[%s11315_s10 + $0x10] sm:$0xff]  ;;  %v2236_v58 = vld [vmem:[%s11315_s10 + $0x18] sm:$0xff] }
  0x23   :  { %7197 = vmatmul.mubr.msk.bf16.gmra.mxu1 %vm286_vm1, %v274_v54  ;;  %v2233_v59 = vld [vmem:[%s11315_s10] sm:$0xff]  ;;  %v2270_v63 = vpack.c.bf16 %v2236_v58, %v2235_v57  ;;  %v2234_v0 = vld [vmem:[%s11315_s10 + $0x8] sm:$0xff] }
  0x24   :  { %7200 = vmatprep.mubr.msk.bf16.mxu1 %vm286_vm1, %v275_v56  ;;  %v2269_v8 = vpack.c.bf16 %v2234_v0, %v2233_v59 }
  0x25   :  { %7288 = vmatprep.subr.bf16.mxu0 %v2270_v63 }
  0x26   :  { %7289 = vmatpush3.bf16.msra.mxu0 %v2270_v63 }
  0x27   :  { %7290 = vmatprep.subr.bf16.mxu0 %v2269_v8 }
  0x29   :  { %7169 = vmatmul.mubr.msk.bf16.gmra.mxu0 %vm286_vm1, %v260_v53 }
  0x2a   :  { %7172 = vmatprep.mubr.msk.bf16.mxu0 %vm286_vm1, %v261_v55  ;;  %7291 = vmatpush3.bf16.msra.mxu0 %v2269_v8 }
  0x2b   :  { %7201 = vmatmul.mubr.msk.bf16.gmra.mxu1 %vm286_vm1, %v276_v2 }
  0x2c   :  { %7204 = vmatprep.mubr.msk.bf16.mxu1 %vm286_vm1, %v277_v4 }
  0x31   :  { %7173 = vmatmul.mubr.msk.bf16.gmra.mxu0 %vm286_vm1, %v262_v1 }
  0x32   :  { %7176 = vmatprep.mubr.msk.bf16.mxu0 %vm286_vm1, %v263_v3 }
  0x33   :  { %7205 = vmatmul.mubr.msk.bf16.gmra.mxu1 %vm286_vm1, %v278_v14 }
  0x34   :  { %7208 = vmatprep.mubr.msk.bf16.mxu1 %vm286_vm1, %v279_v16 }
  0x39   :  { %7177 = vmatmul.mubr.msk.bf16.gmra.mxu0 %vm286_vm1, %v264_v13 }
  0x3a   :  { %7180 = vmatprep.mubr.msk.bf16.mxu0 %vm286_vm1, %v265_v15 }
  0x3b   :  { %7209 = vmatmul.mubr.msk.bf16.gmra.mxu1 %vm286_vm1, %v280_v26 }
  0x3c   :  { %7212 = vmatprep.mubr.msk.bf16.mxu1 %vm286_vm1, %v281_v28 }
  0x41   :  { %7181 = vmatmul.mubr.msk.bf16.gmra.mxu0 %vm286_vm1, %v266_v25 }
  0x42   :  { %7184 = vmatprep.mubr.msk.bf16.mxu0 %vm286_vm1, %v267_v27 }
  0x43   :  { %7213 = vmatmul.mubr.msk.bf16.gmra.mxu1 %vm286_vm1, %v282_v36 }
  0x44   :  { %7216 = vmatprep.mubr.msk.bf16.mxu1 %vm286_vm1, %v283_v37 }
  0x49   :  { %7185 = vmatmul.mubr.msk.bf16.gmra.mxu0 %vm286_vm1, %v268_v35 }
  0x4b   :  { %7217 = vmatmul.mubr.msk.bf16.gmra.mxu1 %vm286_vm1, %v284_v40 }
  0xd1   :  { %v7158_v41 = vpop.f32.mrf.mxu0 }
  0xd2   :  { %v685_v45 = vmul.f32 %v7158_v41, %v8168_v42 }
  0xd3   :  { %v421_v43 = vpop.f32.mrf.mxu0  ;;  %v8182_v55 = vpop.f32.mrf.mxu1 }
  0xd4   :  { %v683_v44 = vmul.f32 %v8168_v42, %v421_v43  ;;  %v756_v53 = vadd.f32 %v8175_v47, %v685_v45 }
  0xd5   :  { %v7159_v46 = vpop.f32.mrf.mxu0  ;;  %v8194_v62 = vpop.f32.mrf.mxu1 }
  0xd6   :  { %v686_v48 = vmul.f32 %v7159_v46, %v8168_v42  ;;  %v754_v50 = vadd.f32 %v8175_v47, %v683_v44  ;;  %v820_v4 = vmax.f32 %v756_v53, 0.0 }
  0xd7   :  { %v424_v49 = vpop.f32.mrf.mxu0  ;;  %v8201_v7 = vpop.f32.mrf.mxu1 }
  0xd8   :  { %v757_v51 = vadd.f32 %v8175_v47, %v686_v48  ;;  %v684_v52 = vmul.f32 %v8168_v42, %v424_v49  ;;  %v818_v1 = vmax.f32 %v754_v50, 0.0 }
  0xd9   :  { %v7162_v54 = vpop.f32.mrf.mxu0  ;;  %v8204_v13 = vpop.f32.mrf.mxu1 }
  0xda   :  { %v755_v56 = vadd.f32 %v8175_v47, %v684_v52  ;;  %v821_v60 = vmax.f32 %v757_v51, 0.0  ;;  %v689_v5 = vmul.f32 %v7162_v54, %v8168_v42 }
  0xdb   :  { %v437_v61 = vpop.f32.mrf.mxu0  ;;  %v8212_v19 = vpop.f32.mrf.mxu1 }
  0xdc   :  { %v819_v2 = vmax.f32 %v755_v56, 0.0  ;;  %v687_v3 = vmul.f32 %v8168_v42, %v437_v61  ;;  %v887_v11 = vpack.c.bf16 %v821_v60, %v820_v4  ;;  %v760_v17 = vadd.f32 %v8175_v47, %v689_v5 }
  0xdd   :  { %v7163_v6 = vpop.f32.mrf.mxu0  ;;  %v8215_v23 = vpop.f32.mrf.mxu1 }
  0xde   :  { %v886_v9 = vpack.c.bf16 %v819_v2, %v818_v1  ;;  %v690_v10 = vmul.f32 %v7163_v6, %v8168_v42  ;;  %v758_v14 = vadd.f32 %v8175_v47, %v687_v3  ;;  %v824_v27 = vmax.f32 %v760_v17, 0.0 }
  0xdf   :  { %v440_v12 = vpop.f32.mrf.mxu0  ;;  %v8219_v30 = vpop.f32.mrf.mxu1 }
  0xe0   :  { %v761_v15 = vadd.f32 %v8175_v47, %v690_v10  ;;  %v688_v16 = vmul.f32 %v8168_v42, %v440_v12  ;;  %7224 = vmatprep.mubr.msk.bf16.mxu1 %vm927_vm2, %v886_v9  ;;  %v822_v24 = vmax.f32 %v758_v14, 0.0 }
  0xe1   :  { %v7166_v18 = vpop.f32.mrf.mxu0  ;;  %7225 = vmatmul.mubr.msk.bf16.vlgmr.msra.gmra.mxu1 %vm927_vm2, %v887_v11  ;;  %v8222_v35 = vpop.f32.mrf.mxu1 }
  0xe2   :  { %v759_v20 = vadd.f32 %v8175_v47, %v688_v16  ;;  %v825_v21 = vmax.f32 %v761_v15, 0.0  ;;  %v693_v28 = vmul.f32 %v7166_v18, %v8168_v42 }
  0xe3   :  { %v453_v22 = vpop.f32.mrf.mxu0  ;;  %v8230_v41 = vpop.f32.mrf.mxu1 }
  0xe4   :  { %v823_v25 = vmax.f32 %v759_v20, 0.0  ;;  %v691_v26 = vmul.f32 %v8168_v42, %v453_v22  ;;  %v889_v33 = vpack.c.bf16 %v825_v21, %v824_v27  ;;  %v764_v39 = vadd.f32 %v8175_v47, %v693_v28 }
  0xe5   :  { %v7167_v29 = vpop.f32.mrf.mxu0  ;;  %v8233_v46 = vpop.f32.mrf.mxu1 }
  0xe6   :  { %v888_v31 = vpack.c.bf16 %v823_v25, %v822_v24  ;;  %v694_v32 = vmul.f32 %v7167_v29, %v8168_v42  ;;  %v762_v36 = vadd.f32 %v8175_v47, %v691_v26  ;;  %v828_v51 = vmax.f32 %v764_v39, 0.0 }
  0xe7   :  { %v456_v34 = vpop.f32.mrf.mxu0  ;;  %v8237_v54 = vpop.f32.mrf.mxu1 }
  0xe8   :  { %v765_v37 = vadd.f32 %v8175_v47, %v694_v32  ;;  %v692_v38 = vmul.f32 %v8168_v42, %v456_v34  ;;  %7228 = vmatprep.mubr.msk.bf16.mxu1 %vm927_vm2, %v888_v31  ;;  %v826_v48 = vmax.f32 %v762_v36, 0.0 }
  0xe9   :  { %v7170_v40 = vpop.f32.mrf.mxu0  ;;  %7229 = vmatmul.mubr.msk.bf16.gmra.mxu1 %vm927_vm2, %v889_v33  ;;  %v8240_v60 = vpop.f32.mrf.mxu1 }
  0xea   :  { %v763_v43 = vadd.f32 %v8175_v47, %v692_v38  ;;  %v829_v44 = vmax.f32 %v765_v37, 0.0  ;;  %v697_v52 = vmul.f32 %v7170_v40, %v8168_v42 }
  0xeb   :  { %v469_v45 = vpop.f32.mrf.mxu0  ;;  %v8249_v6 = vpop.f32.mrf.mxu1 }
  0xec   :  { %v827_v49 = vmax.f32 %v763_v43, 0.0  ;;  %v695_v50 = vmul.f32 %v8168_v42, %v469_v45  ;;  %v891_v58 = vpack.c.bf16 %v829_v44, %v828_v51  ;;  %v768_v1 = vadd.f32 %v8175_v47, %v697_v52 }
  0xed   :  { %v7171_v53 = vpop.f32.mrf.mxu0  ;;  %v8254_v20 = vpop.f32.mrf.mxu1 }
  0xee   :  { %v890_v56 = vpack.c.bf16 %v827_v49, %v826_v48  ;;  %v698_v57 = vmul.f32 %v7171_v53, %v8168_v42  ;;  %v766_v61 = vadd.f32 %v8175_v47, %v695_v50  ;;  %v832_v11 = vmax.f32 %v768_v1, 0.0 }
  0xef   :  { %v472_v59 = vpop.f32.mrf.mxu0  ;;  %v8263_v31 = vpop.f32.mrf.mxu1 }
  0xf0   :  { %v769_v63 = vadd.f32 %v8175_v47, %v698_v57  ;;  %v696_v0 = vmul.f32 %v8168_v42, %v472_v59  ;;  %7232 = vmatprep.mubr.msk.bf16.mxu1 %vm927_vm2, %v890_v56  ;;  %v830_v8 = vmax.f32 %v766_v61, 0.0 }
  0xf1   :  { %v7174_v2 = vpop.f32.mrf.mxu0  ;;  %7233 = vmatmul.mubr.msk.bf16.gmra.mxu1 %vm927_vm2, %v891_v58  ;;  %v8268_v45 = vpop.f32.mrf.mxu1 }
  0xf2   :  { %v767_v3 = vadd.f32 %v8175_v47, %v696_v0  ;;  %v833_v4 = vmax.f32 %v769_v63, 0.0  ;;  %v701_v12 = vmul.f32 %v7174_v2, %v8168_v42 }
  0xf3   :  { %v485_v5 = vpop.f32.mrf.mxu0  ;;  %v8277_v58 = vpop.f32.mrf.mxu1 }
  0xf4   :  { %v831_v9 = vmax.f32 %v767_v3, 0.0  ;;  %v699_v10 = vmul.f32 %v8168_v42, %v485_v5  ;;  %v893_v17 = vpack.c.bf16 %v833_v4, %v832_v11  ;;  %v772_v25 = vadd.f32 %v8175_v47, %v701_v12 }
  0xf5   :  { %v7175_v14 = vpop.f32.mrf.mxu0 }
  0xf6   :  { %v892_v15 = vpack.c.bf16 %v831_v9, %v830_v8  ;;  %v702_v16 = vmul.f32 %v7175_v14, %v8168_v42  ;;  %v770_v21 = vadd.f32 %v8175_v47, %v699_v10  ;;  %v836_v36 = vmax.f32 %v772_v25, 0.0  ;;  %v8282_v9 = vpop.f32.mrf.mxu1 }
  0xf7   :  { %v488_v18 = vpop.f32.mrf.mxu0 }
  0xf8   :  { %v773_v22 = vadd.f32 %v8175_v47, %v702_v16  ;;  %v700_v24 = vmul.f32 %v8168_v42, %v488_v18  ;;  %7236 = vmatprep.mubr.msk.bf16.mxu1 %vm927_vm2, %v892_v15  ;;  %v834_v32 = vmax.f32 %v770_v21, 0.0  ;;  %v715_v16 = vmul.f32 %v8168_v42, %v8194_v62 }
  0xf9   :  { %v7178_v26 = vpop.f32.mrf.mxu0  ;;  %7237 = vmatmul.mubr.msk.bf16.gmra.mxu1 %vm927_vm2, %v893_v17  ;;  %v716_v18 = vmul.f32 %v8168_v42, %v8204_v13 }
  0xfa   :  { %v771_v27 = vadd.f32 %v8175_v47, %v700_v24  ;;  %v837_v28 = vmax.f32 %v773_v22, 0.0  ;;  %v705_v37 = vmul.f32 %v7178_v26, %v8168_v42  ;;  %v8295_v24 = vpop.f32.mrf.mxu1 }
  0xfb   :  { %v501_v29 = vpop.f32.mrf.mxu0 }
  0xfc   :  { %v835_v33 = vmax.f32 %v771_v27, 0.0  ;;  %v703_v34 = vmul.f32 %v8168_v42, %v501_v29  ;;  %v895_v43 = vpack.c.bf16 %v837_v28, %v836_v36  ;;  %v776_v51 = vadd.f32 %v8175_v47, %v705_v37 }
  0xfd   :  { %v7179_v38 = vpop.f32.mrf.mxu0  ;;  %v787_v36 = vadd.f32 %v8175_v47, %v716_v18 }
  0xfe   :  { %v894_v39 = vpack.c.bf16 %v835_v33, %v834_v32  ;;  %v706_v40 = vmul.f32 %v7179_v38, %v8168_v42  ;;  %v774_v48 = vadd.f32 %v8175_v47, %v703_v34  ;;  %v840_v0 = vmax.f32 %v776_v51, 0.0  ;;  %v8302_v38 = vpop.f32.mrf.mxu1 }
  0xff   :  { %v504_v44 = vpop.f32.mrf.mxu0  ;;  %v786_v33 = vadd.f32 %v8175_v47, %v715_v16  ;;  %v719_v51 = vmul.f32 %v8168_v42, %v8215_v23  ;;  %v722_v16 = vmul.f32 %v8219_v30, %v8168_v42  ;;  %v727_v30 = vmul.f32 %v8168_v42, %v8254_v20 }
 0x100   :  { %v777_v49 = vadd.f32 %v8175_v47, %v706_v40  ;;  %v704_v50 = vmul.f32 %v8168_v42, %v504_v44  ;;  %7240 = vmatprep.mubr.msk.bf16.mxu1 %vm927_vm2, %v894_v39  ;;  %v838_v59 = vmax.f32 %v774_v48, 0.0 }
 0x101   :  { %v7182_v52 = vpop.f32.mrf.mxu0  ;;  %7241 = vmatmul.mubr.msk.bf16.gmra.mxu1 %vm927_vm2, %v895_v43  ;;  %v850_v48 = vmax.f32 %v786_v33, 0.0  ;;  %v725_v33 = vmul.f32 %v8230_v41, %v8168_v42 }
 0x102   :  { %v775_v53 = vadd.f32 %v8175_v47, %v704_v50  ;;  %v841_v56 = vmax.f32 %v777_v49, 0.0  ;;  %v709_v1 = vmul.f32 %v7182_v52, %v8168_v42  ;;  %v851_v50 = vmax.f32 %v787_v36, 0.0 }
 0x103   :  { %v517_v57 = vpop.f32.mrf.mxu0  ;;  %v720_v52 = vmul.f32 %v8168_v42, %v8222_v35  ;;  %v796_v20 = vadd.f32 %v8175_v47, %v725_v33 }
 0x104   :  { %v839_v61 = vmax.f32 %v775_v53, 0.0  ;;  %v707_v63 = vmul.f32 %v8168_v42, %v517_v57  ;;  %v897_v5 = vpack.c.bf16 %v841_v56, %v840_v0  ;;  %v780_v14 = vadd.f32 %v8175_v47, %v709_v1 }
 0x105   :  { %v7183_v2 = vpop.f32.mrf.mxu0  ;;  %v717_v53 = vmul.f32 %v8182_v55, %v8168_v42  ;;  %v718_v57 = vmul.f32 %v8201_v7, %v8168_v42  ;;  %v791_v23 = vadd.f32 %v8175_v47, %v720_v52 }
 0x106   :  { %v896_v3 = vpack.c.bf16 %v839_v61, %v838_v59  ;;  %v710_v4 = vmul.f32 %v7183_v2, %v8168_v42  ;;  %v778_v10 = vadd.f32 %v8175_v47, %v707_v63  ;;  %v844_v28 = vmax.f32 %v780_v14, 0.0  ;;  %v8319_v59 = vpop.f32.mrf.mxu1 }
 0x107   :  { %v520_v8 = vpop.f32.mrf.mxu0  ;;  %v902_v2 = vpack.c.bf16 %v851_v50, %v850_v48  ;;  %v788_v35 = vadd.f32 %v8175_v47, %v717_v53  ;;  %v789_v55 = vadd.f32 %v8175_v47, %v718_v57  ;;  %v860_v48 = vmax.f32 %v796_v20, 0.0 }
 0x108   :  { %v781_v11 = vadd.f32 %v8175_v47, %v710_v4  ;;  %v708_v12 = vmul.f32 %v8168_v42, %v520_v8  ;;  %7244 = vmatprep.mubr.msk.bf16.mxu1 %vm927_vm2, %v896_v3  ;;  %v842_v25 = vmax.f32 %v778_v10, 0.0  ;;  %v790_v3 = vadd.f32 %v8175_v47, %v719_v51 }
 0x109   :  { %v7186_v15 = vpop.f32.mrf.mxu0  ;;  %7245 = vmatmul.mubr.msk.bf16.gmra.mxu1 %vm927_vm2, %v897_v5  ;;  %v629_v5 = vpop.f32.mrf.mxu1  ;;  %v855_v8 = vmax.f32 %v791_v23, 0.0  ;;  %v723_v10 = vmul.f32 %v8168_v42, %v8233_v46  ;;  %v853_v14 = vmax.f32 %v789_v55, 0.0  ;;  %v729_v50 = vmul.f32 %v8249_v6, %v8168_v42 }
 0x10a   :  { %v779_v17 = vadd.f32 %v8175_v47, %v708_v12  ;;  %v845_v21 = vmax.f32 %v781_v11, 0.0  ;;  %v713_v29 = vmul.f32 %v7186_v15, %v8168_v42  ;;  %v854_v7 = vmax.f32 %v790_v3, 0.0 }
 0x10b   :  { %v533_v22 = vpop.f32.mrf.mxu0  ;;  %v724_v11 = vmul.f32 %v8168_v42, %v8240_v60  ;;  %v852_v12 = vmax.f32 %v788_v35, 0.0  ;;  %v721_v15 = vmul.f32 %v8212_v19, %v8168_v42  ;;  %v793_v60 = vadd.f32 %v8175_v47, %v722_v16 }
 0x10c   :  { %v843_v26 = vmax.f32 %v779_v17, 0.0  ;;  %v711_v27 = vmul.f32 %v8168_v42, %v533_v22  ;;  %v899_v13 = vpack.c.bf16 %v845_v21, %v844_v28  ;;  %v784_v44 = vadd.f32 %v8175_v47, %v713_v29  ;;  %v8336_v17 = vpop.f32.mrf.mxu1 }
 0x10d   :  { %v7187_v32 = vpop.f32.mrf.mxu0  ;;  %v904_v18 = vpack.c.bf16 %v855_v8, %v854_v7  ;;  %v794_v21 = vadd.f32 %v8175_v47, %v723_v10  ;;  %v795_v22 = vadd.f32 %v8175_v47, %v724_v11  ;;  %v792_v46 = vadd.f32 %v8175_v47, %v721_v15 }
 0x10e   :  { %v898_v62 = vpack.c.bf16 %v843_v26, %v842_v25  ;;  %v714_v34 = vmul.f32 %v7187_v32, %v8168_v42  ;;  %v782_v39 = vadd.f32 %v8175_v47, %v711_v27  ;;  %v848_v0 = vmax.f32 %v784_v44, 0.0  ;;  %v632_v26 = vpop.f32.mrf.mxu1 }
 0x10f   :  { %v536_v37 = vpop.f32.mrf.mxu0  ;;  %v903_v25 = vpack.c.bf16 %v853_v14, %v852_v12  ;;  %v858_v27 = vmax.f32 %v794_v21, 0.0  ;;  %v859_v19 = vmax.f32 %v795_v22, 0.0  ;;  %v728_v28 = vmul.f32 %v8168_v42, %v8268_v45 }
 0x110   :  { %v785_v40 = vadd.f32 %v8175_v47, %v714_v34  ;;  %v712_v43 = vmul.f32 %v8168_v42, %v536_v37  ;;  %7248 = vmatprep.mubr.msk.bf16.mxu1 %vm927_vm2, %v898_v62  ;;  %v846_v61 = vmax.f32 %v782_v39, 0.0  ;;  %v856_v29 = vmax.f32 %v792_v46, 0.0  ;;  %v8352_v34 = vpop.f32.mrf.mxu1 }
 0x111   :  { %7249 = vmatmul.mubr.msk.bf16.gmra.mxu1 %vm927_vm2, %v899_v13  ;;  %v857_v32 = vmax.f32 %v793_v60, 0.0  ;;  %v726_v62 = vmul.f32 %v8237_v54, %v8168_v42  ;;  %v906_v36 = vpack.c.bf16 %v859_v19, %v858_v27  ;;  %v798_v13 = vadd.f32 %v8175_v47, %v727_v30 }
 0x112   :  { %v783_v49 = vadd.f32 %v8175_v47, %v712_v43  ;;  %v849_v56 = vmax.f32 %v785_v40, 0.0  ;;  %v799_v37 = vadd.f32 %v8175_v47, %v728_v28  ;;  %v645_v40 = vpop.f32.mrf.mxu1  ;;  %v731_v54 = vmul.f32 %v8168_v42, %v8282_v9 }
 0x113   :  { %v905_v39 = vpack.c.bf16 %v857_v32, %v856_v29  ;;  %v797_v45 = vadd.f32 %v8175_v47, %v726_v62  ;;  %v862_v43 = vmax.f32 %v798_v13, 0.0  ;;  %v732_v44 = vmul.f32 %v8168_v42, %v8302_v38 }
 0x114   :  { %v847_v63 = vmax.f32 %v783_v49, 0.0  ;;  %v901_v4 = vpack.c.bf16 %v849_v56, %v848_v0  ;;  %v863_v41 = vmax.f32 %v799_v37, 0.0  ;;  %v730_v51 = vmul.f32 %v8263_v31, %v8168_v42  ;;  %v7215_v52 = vpop.f32.mrf.mxu1 }
 0x115   :  { %v861_v49 = vmax.f32 %v797_v45, 0.0  ;;  %v802_v56 = vadd.f32 %v8175_v47, %v731_v54  ;;  %v803_v57 = vadd.f32 %v8175_v47, %v732_v44  ;;  %v800_v9 = vadd.f32 %v8175_v47, %v729_v50 }
 0x116   :  { %v900_v1 = vpack.c.bf16 %v847_v63, %v846_v61  ;;  %v908_v53 = vpack.c.bf16 %v863_v41, %v862_v43  ;;  %v801_v63 = vadd.f32 %v8175_v47, %v730_v51  ;;  %v648_v38 = vpop.f32.mrf.mxu1  ;;  %v735_v6 = vmul.f32 %v8168_v42, %v629_v5 }
 0x117   :  { %v907_v61 = vpack.c.bf16 %v861_v49, %v860_v48  ;;  %v866_v0 = vmax.f32 %v802_v56, 0.0  ;;  %v736_v31 = vmul.f32 %v8168_v42, %v632_v26  ;;  %v733_v23 = vmul.f32 %v8277_v58, %v8168_v42 }
 0x118   :  { %7252 = vmatprep.mubr.msk.bf16.mxu1 %vm927_vm2, %v900_v1  ;;  %v867_v1 = vmax.f32 %v803_v57, 0.0  ;;  %v865_v3 = vmax.f32 %v801_v63, 0.0  ;;  %v734_v35 = vmul.f32 %v8295_v24, %v8168_v42  ;;  %v806_v7 = vadd.f32 %v8175_v47, %v735_v6  ;;  %v1313_v6 = vld [vmem:[%s11317_s1] sm:$0xff] }
 0x119   :  { %7253 = vmatmul.mubr.msk.bf16.gmra.mxu1 %vm927_vm2, %v901_v4  ;;  %v7218_v4 = vpop.f32.mrf.mxu1  ;;  %v807_v8 = vadd.f32 %v8175_v47, %v736_v31  ;;  %v804_v11 = vadd.f32 %v8175_v47, %v733_v23  ;;  %v739_v58 = vmul.f32 %v8168_v42, %v645_v40  ;;  %v740_v24 = vmul.f32 %v8168_v42, %v648_v38 }
 0x11a   :  { %7256 = vmatprep.mubr.msk.bf16.mxu1 %vm927_vm2, %v902_v2  ;;  %v864_v2 = vmax.f32 %v800_v9, 0.0  ;;  %v910_v55 = vpack.c.bf16 %v867_v1, %v866_v0  ;;  %v805_v5 = vadd.f32 %v8175_v47, %v734_v35  ;;  %v870_v14 = vmax.f32 %v806_v7, 0.0  ;;  %v2862_v9 = vld [vmem:[%s11316_s13] sm:$0xf] }
 0x11b   :  { %v661_v12 = vpop.f32.mrf.mxu1  ;;  %v871_v15 = vmax.f32 %v807_v8, 0.0  ;;  %v868_v16 = vmax.f32 %v804_v11, 0.0  ;;  %v737_v21 = vmul.f32 %v8319_v59, %v8168_v42  ;;  %v738_v22 = vmul.f32 %v8336_v17, %v8168_v42  ;;  %7356 = vmatprep.subr.msk.mxu1 %vm383_vm0, %v2862_v9  ;;  %v1314_v11 = vld [vmem:[%s11317_s1 + $0x8] sm:$0xff] }
 0x11c   :  { %v909_v10 = vpack.c.bf16 %v865_v3, %v864_v2  ;;  %v810_v60 = vadd.f32 %v8175_v47, %v739_v58  ;;  %v811_v26 = vadd.f32 %v8175_v47, %v740_v24  ;;  %v743_v59 = vmul.f32 %v8168_v42, %v661_v12  ;;  %7357 = vmatpush3.msk.msra.mxu1 %vm383_vm0, %v2862_v9  ;;  %v127_v58 = vld [vmem:[%s11318_s2 + $0x18] sm:$0xff]  ;;  %v130_v9 = vld [vmem:[%s11318_s2 + $0x30] sm:$0xff] }
 0x11d   :  { %v912_v46 = vpack.c.bf16 %v871_v15, %v870_v14  ;;  %v808_v19 = vadd.f32 %v8175_v47, %v737_v21  ;;  %v809_v30 = vadd.f32 %v8175_v47, %v738_v22  ;;  %v742_v13 = vmul.f32 %v7215_v52, %v8168_v42  ;;  %v125_v22 = vld [vmem:[%s11318_s2 + $0x8] sm:$0xff] }
 0x11e   :  { %v874_v29 = vmax.f32 %v810_v60, 0.0  ;;  %v875_v32 = vmax.f32 %v811_v26, 0.0  ;;  %v745_v48 = vmul.f32 %v7218_v4, %v8168_v42  ;;  %v1329_v3 = vcombine.high %v1313_v6, %v1313_v6  ;;  %v126_v60 = vld [vmem:[%s11318_s2 + $0x10] sm:$0xff]  ;;  %v8461_v26 = vld [vmem:[%s11319_s9] ss:$0 sm:$0xff] }
 0x11f   :  { %v872_v33 = vmax.f32 %v808_v19, 0.0  ;;  %v873_v62 = vmax.f32 %v809_v30, 0.0  ;;  %v813_v43 = vadd.f32 %v8175_v47, %v742_v13 }
 0x120   :  { %v914_v37 = vpack.c.bf16 %v875_v32, %v874_v29  ;;  %v816_v52 = vadd.f32 %v8175_v47, %v745_v48 }
 0x121   :  { %7257 = vmatmul.mubr.msk.bf16.gmra.mxu1 %vm927_vm2, %v903_v25  ;;  %v7219_v25 = vpop.f32.mrf.mxu1  ;;  %v913_v45 = vpack.c.bf16 %v873_v62, %v872_v33 }
 0x122   :  { %7260 = vmatprep.mubr.msk.bf16.mxu1 %vm927_vm2, %v904_v18  ;;  %v869_v18 = vmax.f32 %v805_v5, 0.0  ;;  %v746_v49 = vmul.f32 %v7219_v25, %v8168_v42  ;;  %v880_v56 = vmax.f32 %v816_v52, 0.0 }
 0x123   :  { %v664_v28 = vpop.f32.mrf.mxu1 }
 0x124   :  { %v911_v27 = vpack.c.bf16 %v869_v18, %v868_v16  ;;  %v744_v17 = vmul.f32 %v8168_v42, %v664_v28  ;;  %v124_v18 = vld [vmem:[%s11318_s2] sm:$0xff] }
 0x126   :  { %v815_v20 = vadd.f32 %v8175_v47, %v744_v17 }
 0x128   :  { %v879_v54 = vmax.f32 %v815_v20, 0.0 }
 0x129   :  { %7261 = vmatmul.mubr.msk.bf16.gmra.mxu1 %vm927_vm2, %v905_v39  ;;  %v814_v39 = vadd.f32 %v8175_v47, %v743_v59 }
 0x12a   :  { %7264 = vmatprep.mubr.msk.bf16.mxu1 %vm927_vm2, %v906_v36  ;;  %v741_v36 = vmul.f32 %v8352_v34, %v8168_v42  ;;  %v877_v34 = vmax.f32 %v813_v43, 0.0  ;;  %v7827_v42 = vmov 1966171168  }
 0x12b   :  { %v878_v41 = vmax.f32 %v814_v39, 0.0  ;;  %v1331_v63 = vunpack.c.l.s4 %v7827_v42 }
 0x12c   :  { %v812_v40 = vadd.f32 %v8175_v47, %v741_v36 }
 0x12d   :  { %v916_v50 = vpack.c.bf16 %v879_v54, %v878_v41  ;;  %v1332_v38 = vunpack.c.0.s8 %v1331_v63 }
 0x12e   :  { %v876_v44 = vmax.f32 %v812_v40, 0.0 }
 0x130   :  { %v915_v51 = vpack.c.bf16 %v877_v34, %v876_v44  ;;  %v131_v34 = vld [vmem:[%s11318_s2 + $0x38] sm:$0xff] }
 0x131   :  { %7265 = vmatmul.mubr.msk.bf16.gmra.mxu1 %vm927_vm2, %v907_v61 }
 0x132   :  { %7268 = vmatprep.mubr.msk.bf16.mxu1 %vm927_vm2, %v908_v53  ;;  %v817_v53 = vadd.f32 %v8175_v47, %v746_v49  ;;  %v1333_v47 = vlaneseq }
 0x134   :  { %v881_v57 = vmax.f32 %v817_v53, 0.0  ;;  %v8421_v0 = vshrl.u32 %v1333_v47, 7  ;;  %v129_v53 = vld [vmem:[%s11318_s2 + $0x28] sm:$0xff] }
 0x136   :  { %v917_v61 = vpack.c.bf16 %v881_v57, %v880_v56  ;;  %v8424_v1 = vsub.s32 %v1332_v38, %v8421_v0 }
 0x138   :  { %v1336_v31 = vrot.slane %v1313_v6, %v8424_v1  ;;  %v1343_v4 = vrot.slane %v1329_v3, %v8424_v1 }
 0x139   :  { %7269 = vmatmul.mubr.msk.bf16.gmra.mxu1 %vm927_vm2, %v909_v10  ;;  %v8434_v10 = vsub.s32 0, %v8421_v0 }
 0x13a   :  { %7272 = vmatprep.mubr.msk.bf16.mxu1 %vm927_vm2, %v910_v55  ;;  %v1344_v2 = vcombine.high %v1336_v31, %v1336_v31  ;;  %v1352_v35 = vrot.slane %v1336_v31, %v8424_v1  ;;  %v1345_v7 = vcombine.high %v1343_v4, %v1343_v4  ;;  %v1359_v25 = vrot.slane %v1343_v4, %v8424_v1 }
 0x13c   :  { %v1366_v23 = vrot.slane %v1344_v2, %v8424_v1  ;;  %v1374_v8 = vcombine.high %v1352_v35, %v1352_v35  ;;  %v1373_v14 = vrot.slane %v1345_v7, %v8424_v1  ;;  %v1724_v15 = vrot.slane %v1352_v35, %v8434_v10 }
 0x13d   :  { %v1375_v13 = vcombine.high %v1359_v25, %v1359_v25  ;;  %v1740_v44 = vrot.slane %v1359_v25, %v8434_v10 }
 0x13e   :  { %v1376_v55 = vcombine.high %v1366_v23, %v1366_v23  ;;  %v1728_v24 = vrot.slane %v1366_v23, %v8434_v10  ;;  %v1732_v16 = vrot.slane %v1374_v8, %v8434_v10  ;;  %v1377_v30 = vcombine.high %v1373_v14, %v1373_v14 }
 0x13f   :  { %v2041_v32 = vsub.f32 %v124_v18, %v1724_v15  ;;  %v1744_v48 = vrot.slane %v1373_v14, %v8434_v10  ;;  %v135_v18 = vld [vmem:[%s11318_s2 + $0x58] sm:$0xff] }
 0x140   :  { %v1736_v12 = vrot.slane %v1376_v55, %v8434_v10  ;;  %v2042_v17 = vsub.f32 %v125_v22, %v1728_v24  ;;  %v2043_v62 = vsub.f32 %v126_v60, %v1732_v16  ;;  %v1752_v40 = vrot.slane %v1377_v30, %v8434_v10 }
 0x141   :  { %7273 = vmatmul.mubr.msk.bf16.gmra.mxu1 %vm927_vm2, %v911_v27  ;;  %v2046_v23 = vsub.f32 %v129_v53, %v1744_v48 }
 0x142   :  { %7276 = vmatprep.mubr.msk.bf16.mxu1 %vm927_vm2, %v912_v46  ;;  %v1385_v46 = vrot.slane %v1314_v11, %v8424_v1  ;;  %v2044_v19 = vsub.f32 %v127_v58, %v1736_v12  ;;  %v2048_v47 = vsub.f32 %v131_v34, %v1752_v40 }
 0x144   :  { %v1393_v28 = vcombine.high %v1385_v46, %v1385_v46  ;;  %v1401_v56 = vrot.slane %v1385_v46, %v8424_v1  ;;  %v132_v46 = vld [vmem:[%s11318_s2 + $0x40] sm:$0xff] }
 0x146   :  { %v1415_v43 = vrot.slane %v1393_v28, %v8424_v1  ;;  %v1423_v7 = vcombine.high %v1401_v56, %v1401_v56  ;;  %v1756_v16 = vrot.slane %v1401_v56, %v8434_v10 }
 0x148   :  { %v1425_v38 = vcombine.high %v1415_v43, %v1415_v43  ;;  %v1764_v25 = vrot.slane %v1423_v7, %v8434_v10  ;;  %v138_v7 = vld [vmem:[%s11318_s2 + $0x70] sm:$0xff] }
 0x149   :  { %7277 = vmatmul.mubr.msk.bf16.gmra.mxu1 %vm927_vm2, %v913_v45 }
 0x14a   :  { %7280 = vmatprep.mubr.msk.bf16.mxu1 %vm927_vm2, %v914_v37  ;;  %v1378_v37 = vcombine.high %v1314_v11, %v1314_v11  ;;  %v1315_v11 = vld [vmem:[%s11317_s1 + $0x10] sm:$0xff]  ;;  %v1768_v14 = vrot.slane %v1425_v38, %v8434_v10  ;;  %v136_v38 = vld [vmem:[%s11318_s2 + $0x60] sm:$0xff] }
 0x14b   :  { %v1434_v30 = vrot.slane %v1315_v11, %v8424_v1  ;;  %v1427_v48 = vcombine.high %v1315_v11, %v1315_v11 }
 0x14c   :  { %v1392_v57 = vrot.slane %v1378_v37, %v8424_v1 }
 0x14d   :  { %v1442_v37 = vcombine.high %v1434_v30, %v1434_v30 }
 0x14e   :  { %v1394_v6 = vcombine.high %v1392_v57, %v1392_v57 }
 0x14f   :  { %v1464_v53 = vrot.slane %v1442_v37, %v8424_v1 }
 0x150   :  { %v1422_v15 = vrot.slane %v1394_v6, %v8424_v1 }
 0x151   :  { %7281 = vmatmul.mubr.msk.bf16.gmra.mxu1 %vm927_vm2, %v915_v51  ;;  %v128_v51 = vld [vmem:[%s11318_s2 + $0x20] sm:$0xff]  ;;  %v1792_v37 = vrot.slane %v1464_v53, %v8434_v10 }
 0x152   :  { %7284 = vmatprep.mubr.msk.bf16.mxu1 %vm927_vm2, %v916_v50  ;;  %v1748_v50 = vrot.slane %v1375_v13, %v8434_v10  ;;  %v2045_v2 = vsub.f32 %v128_v51, %v1740_v44  ;;  %v1426_v13 = vcombine.high %v1422_v15, %v1422_v15 }
 0x154   :  { %v2047_v4 = vsub.f32 %v130_v9, %v1748_v50  ;;  %v139_v9 = vld [vmem:[%s11318_s2 + $0x78] sm:$0xff] }
 0x159   :  { %7285 = vmatmul.mubr.msk.bf16.gmra.mxu1 %vm927_vm2, %v917_v61 }
 0x1a1   :  { %v7226_v5 = vpop.f32.mrf.mxu1 }
 0x1a2   :  { %v8470_v33 = vadd.f32 %v7226_v5, %v8461_v26 }
 0x1a3   :  { %v1058_v21 = vpop.f32.mrf.mxu1 }
 0x1a4   :  { %v8464_v29 = vadd.f32 %v8461_v26, %v1058_v21  ;;  %v2107_v49 = vadd.f32 %v2043_v62, %v8470_v33  ;;  %v1760_v21 = vrot.slane %v1415_v43, %v8434_v10 }
 0x1a5   :  { %v7227_v27 = vpop.f32.mrf.mxu1 }
 0x1a6   :  { %v8467_v59 = vadd.f32 %v7227_v27, %v8461_v26  ;;  %v2105_v41 = vadd.f32 %v2041_v32, %v8464_v29  ;;  %v133_v27 = vld [vmem:[%s11318_s2 + $0x48] sm:$0xff]  ;;  %v134_v32 = vld [vmem:[%s11318_s2 + $0x50] sm:$0xff] }
 0x1a7   :  { %v1061_v36 = vpop.f32.mrf.mxu1  ;;  %v2050_v43 = vsub.f32 %v133_v27, %v1760_v21  ;;  %v1316_v27 = vld [vmem:[%s11317_s1 + $0x18] sm:$0xff] }
 0x1a8   :  { %11444 = vst [vmem:[#allocation2_spill] sm:$0xff] %v8467_v59  ;;  %v8473_v39 = vadd.f32 %v8461_v26, %v1061_v36  ;;  %v2108_v20 = vadd.f32 %v2044_v19, %v8467_v59  ;;  %v1408_v19 = vrot.slane %v1392_v57, %v8424_v1  ;;  %v2052_v36 = vsub.f32 %v135_v18, %v1768_v14 }
 0x1a9   :  { %v7230_v45 = vpop.f32.mrf.mxu1  ;;  %v1474_v14 = vcombine.high %v1464_v53, %v1464_v53 }
 0x1aa   :  { %11445 = vst [vmem:[#allocation3_spill] sm:$0xff] %v8473_v39  ;;  %v2106_v54 = vadd.f32 %v2042_v17, %v8473_v39  ;;  %v2238_v42 = vpack.c.bf16 %v2108_v20, %v2107_v49  ;;  %v8506_v35 = vadd.f32 %v7230_v45, %v8461_v26  ;;  %v2049_v45 = vsub.f32 %v132_v46, %v1756_v16 }
 0x1ab   :  { %v1074_v52 = vpop.f32.mrf.mxu1  ;;  %v1424_v34 = vcombine.high %v1408_v19, %v1408_v19 }
 0x1ac   :  { %v2237_v61 = vpack.c.bf16 %v2106_v54, %v2105_v41  ;;  %v8499_v31 = vadd.f32 %v8461_v26, %v1074_v52  ;;  %11448 = vst [vmem:[#allocation6_spill] sm:$0xff] %v8506_v35  ;;  %v2111_v22 = vadd.f32 %v2047_v4, %v8506_v35  ;;  %v2051_v54 = vsub.f32 %v134_v32, %v1764_v25 }
 0x1ad   :  { %v7231_v63 = vpop.f32.mrf.mxu1  ;;  %v1784_v52 = vrot.slane %v1426_v13, %v8434_v10  ;;  %v1441_v4 = vrot.slane %v1427_v48, %v8424_v1  ;;  %v143_v13 = vld [vmem:[%s11318_s2 + $0x98] sm:$0xff] }
 0x1ae   :  { %11446 = vst [vmem:[#allocation4_spill] sm:$0xff] %v8499_v31  ;;  %v8502_v3 = vadd.f32 %v7231_v63, %v8461_v26  ;;  %7292 = vmatprep.mubr.msk.bf16.mxu0 %vm927_vm2, %v2237_v61  ;;  %v2109_v58 = vadd.f32 %v2045_v2, %v8499_v31  ;;  %v1772_v61 = vrot.slane %v1408_v19, %v8434_v10  ;;  %v137_v2 = vld [vmem:[%s11318_s2 + $0x68] sm:$0xff] }
 0x1af   :  { %v1077_v55 = vpop.f32.mrf.mxu1  ;;  %7293 = vmatmul.mubr.msk.bf16.vlgmr.msra.gmra.mxu0 %vm927_vm2, %v2238_v42  ;;  %v1776_v42 = vrot.slane %v1422_v15, %v8434_v10  ;;  %v1443_v15 = vcombine.high %v1441_v4, %v1441_v4  ;;  %v1457_v48 = vrot.slane %v1441_v4, %v8424_v1 }
 0x1b0   :  { %11447 = vst [vmem:[#allocation5_spill] sm:$0xff] %v8502_v3  ;;  %v8510_v8 = vadd.f32 %v8461_v26, %v1077_v55  ;;  %v2112_v5 = vadd.f32 %v2048_v47, %v8502_v3  ;;  %v1780_v47 = vrot.slane %v1424_v34, %v8434_v10  ;;  %v141_v34 = vld [vmem:[%s11318_s2 + $0x88] sm:$0xff] }
 0x1b1   :  { %v7234_v12 = vpop.f32.mrf.mxu1  ;;  %v2054_v18 = vsub.f32 %v137_v2, %v1776_v42  ;;  %v1471_v32 = vrot.slane %v1443_v15, %v8424_v1  ;;  %v1473_v4 = vcombine.high %v1457_v48, %v1457_v48 }
 0x1b2   :  { %11449 = vst [vmem:[#allocation7_spill] sm:$0xff] %v8510_v8  ;;  %v2110_v24 = vadd.f32 %v2046_v23, %v8510_v8  ;;  %v2240_v17 = vpack.c.bf16 %v2112_v5, %v2111_v22  ;;  %v8546_v41 = vadd.f32 %v7234_v12, %v8461_v26  ;;  %v1450_v23 = vrot.slane %v1434_v30, %v8424_v1 }
 0x1b3   :  { %v1090_v60 = vpop.f32.mrf.mxu1  ;;  %v2056_v12 = vsub.f32 %v139_v9, %v1784_v52  ;;  %v2055_v22 = vsub.f32 %v138_v7, %v1780_v47  ;;  %v142_v52 = vld [vmem:[%s11318_s2 + $0x90] sm:$0xff] }
 0x1b4   :  { %v2239_v28 = vpack.c.bf16 %v2110_v24, %v2109_v58  ;;  %v8539_v20 = vadd.f32 %v8461_v26, %v1090_v60  ;;  %11452 = vst [vmem:[#allocation10_spill] sm:$0xff] %v8546_v41  ;;  %v2115_v63 = vadd.f32 %v2051_v54, %v8546_v41  ;;  %v2053_v24 = vsub.f32 %v136_v38, %v1772_v61  ;;  %v140_v54 = vld [vmem:[%s11318_s2 + $0x80] sm:$0xff] }
 0x1b5   :  { %v7235_v62 = vpop.f32.mrf.mxu1  ;;  %v1472_v46 = vcombine.high %v1450_v23, %v1450_v23  ;;  %v1475_v61 = vcombine.high %v1471_v32, %v1471_v32  ;;  %v2058_v38 = vsub.f32 %v141_v34, %v1792_v37 }
 0x1b6   :  { %11450 = vst [vmem:[#allocation8_spill] sm:$0xff] %v8539_v20  ;;  %v8542_v40 = vadd.f32 %v7235_v62, %v8461_v26  ;;  %7296 = vmatprep.mubr.msk.bf16.mxu0 %vm927_vm2, %v2239_v28  ;;  %v2113_v56 = vadd.f32 %v2049_v45, %v8539_v20  ;;  %v1800_v28 = vrot.slane %v1474_v14, %v8434_v10 }
 0x1b7   :  { %v1093_v44 = vpop.f32.mrf.mxu1  ;;  %7297 = vmatmul.mubr.msk.bf16.gmra.mxu0 %vm927_vm2, %v2240_v17 }
 0x1b8   :  { %11451 = vst [vmem:[#allocation9_spill] sm:$0xff] %v8542_v40  ;;  %v8550_v49 = vadd.f32 %v8461_v26, %v1093_v44  ;;  %v2116_v50 = vadd.f32 %v2052_v36, %v8542_v40  ;;  %v1788_v36 = vrot.slane %v1450_v23, %v8434_v10 }
 0x1b9   :  { %v7238_v51 = vpop.f32.mrf.mxu1 }
 0x1ba   :  { %11453 = vst [vmem:[#allocation11_spill] sm:$0xff] %v8550_v49  ;;  %v2114_v57 = vadd.f32 %v2050_v43, %v8550_v49  ;;  %v2242_v11 = vpack.c.bf16 %v2116_v50, %v2115_v63  ;;  %v8583_v21 = vadd.f32 %v7238_v51, %v8461_v26  ;;  %v1796_v43 = vrot.slane %v1472_v46, %v8434_v10 }
 0x1bb   :  { %v1106_v6 = vpop.f32.mrf.mxu1  ;;  %v1483_v50 = vrot.slane %v1316_v27, %v8424_v1  ;;  %v2057_v63 = vsub.f32 %v140_v54, %v1788_v36 }
 0x1bc   :  { %v2241_v55 = vpack.c.bf16 %v2114_v57, %v2113_v56  ;;  %v8576_v58 = vadd.f32 %v8461_v26, %v1106_v6  ;;  %11456 = vst [vmem:[#allocation14_spill] sm:$0xff] %v8583_v21  ;;  %v2119_v45 = vadd.f32 %v2055_v22, %v8583_v21  ;;  %v2060_v57 = vsub.f32 %v143_v13, %v1800_v28  ;;  %v147_v22 = vld [vmem:[%s11318_s2 + $0xb8] sm:$0xff]  ;;  %v145_v28 = vld [vmem:[%s11318_s2 + $0xa8] sm:$0xff] }
 0x1bd   :  { %v7239_v5 = vpop.f32.mrf.mxu1  ;;  %v1491_v9 = vcombine.high %v1483_v50, %v1483_v50  ;;  %v2059_v2 = vsub.f32 %v142_v52, %v1796_v43 }
 0x1be   :  { %11454 = vst [vmem:[#allocation12_spill] sm:$0xff] %v8576_v58  ;;  %v8579_v16 = vadd.f32 %v7239_v5, %v8461_v26  ;;  %7300 = vmatprep.mubr.msk.bf16.mxu0 %vm927_vm2, %v2241_v55  ;;  %v2117_v17 = vadd.f32 %v2053_v24, %v8576_v58  ;;  %v1476_v55 = vcombine.high %v1316_v27, %v1316_v27 }
 0x1bf   :  { %v1109_v25 = vpop.f32.mrf.mxu1  ;;  %7301 = vmatmul.mubr.msk.bf16.gmra.mxu0 %vm927_vm2, %v2242_v11  ;;  %v1513_v14 = vrot.slane %v1491_v9, %v8424_v1  ;;  %v1812_v27 = vrot.slane %v1473_v4, %v8434_v10 }
 0x1c0   :  { %11455 = vst [vmem:[#allocation13_spill] sm:$0xff] %v8579_v16  ;;  %v8587_v60 = vadd.f32 %v8461_v26, %v1109_v25  ;;  %v2120_v19 = vadd.f32 %v2056_v12, %v8579_v16  ;;  %v1816_v12 = vrot.slane %v1475_v61, %v8434_v10  ;;  %v1808_v25 = vrot.slane %v1471_v32, %v8434_v10  ;;  %v146_v32 = vld [vmem:[%s11318_s2 + $0xb0] sm:$0xff]  ;;  %v1317_v61 = vld [vmem:[%s11317_s1 + $0x20] sm:$0xff] }
 0x1c1   :  { %v7242_v30 = vpop.f32.mrf.mxu1  ;;  %v1523_v43 = vcombine.high %v1513_v14, %v1513_v14  ;;  %v2063_v52 = vsub.f32 %v146_v32, %v1812_v27 }
 0x1c2   :  { %11457 = vst [vmem:[#allocation15_spill] sm:$0xff] %v8587_v60  ;;  %v2118_v62 = vadd.f32 %v2054_v18, %v8587_v60  ;;  %v2244_v53 = vpack.c.bf16 %v2120_v19, %v2119_v45  ;;  %v8623_v6 = vadd.f32 %v7242_v30, %v8461_v26  ;;  %v1804_v18 = vrot.slane %v1457_v48, %v8434_v10  ;;  %v144_v19 = vld [vmem:[%s11318_s2 + $0xa0] sm:$0xff] }
 0x1c3   :  { %v1122_v44 = vpop.f32.mrf.mxu1  ;;  %v2064_v45 = vsub.f32 %v147_v22, %v1816_v12  ;;  %v149_v22 = vld [vmem:[%s11318_s2 + $0xc8] sm:$0xff] }
 0x1c4   :  { %v2243_v51 = vpack.c.bf16 %v2118_v62, %v2117_v17  ;;  %v8616_v42 = vadd.f32 %v8461_v26, %v1122_v44  ;;  %11460 = vst [vmem:[#allocation18_spill] sm:$0xff] %v8623_v6  ;;  %v2123_v46 = vadd.f32 %v2059_v2, %v8623_v6  ;;  %v1499_v17 = vrot.slane %v1483_v50, %v8424_v1 }
 0x1c5   :  { %v7243_v56 = vpop.f32.mrf.mxu1  ;;  %v1490_v62 = vrot.slane %v1476_v55, %v8424_v1  ;;  %v2061_v34 = vsub.f32 %v144_v19, %v1804_v18  ;;  %v2062_v50 = vsub.f32 %v145_v28, %v1808_v25 }
 0x1c6   :  { %11458 = vst [vmem:[#allocation16_spill] sm:$0xff] %v8616_v42  ;;  %v8619_v47 = vadd.f32 %v7243_v56, %v8461_v26  ;;  %7304 = vmatprep.mubr.msk.bf16.mxu0 %vm927_vm2, %v2243_v51  ;;  %v2121_v15 = vadd.f32 %v2057_v63, %v8616_v42  ;;  %v1521_v56 = vcombine.high %v1499_v17, %v1499_v17 }
 0x1c7   :  { %v1125_v23 = vpop.f32.mrf.mxu1  ;;  %7305 = vmatmul.mubr.msk.bf16.gmra.mxu0 %vm927_vm2, %v2244_v53  ;;  %v1492_v54 = vcombine.high %v1490_v62, %v1490_v62  ;;  %v1820_v55 = vrot.slane %v1499_v17, %v8434_v10  ;;  %v1506_v25 = vrot.slane %v1490_v62, %v8424_v1 }
 0x1c8   :  { %11459 = vst [vmem:[#allocation17_spill] sm:$0xff] %v8619_v47  ;;  %v8627_v7 = vadd.f32 %v8461_v26, %v1125_v23  ;;  %v2124_v11 = vadd.f32 %v2060_v57, %v8619_v47 }
 0x1c9   :  { %v7246_v5 = vpop.f32.mrf.mxu1  ;;  %v1520_v2 = vrot.slane %v1492_v54, %v8424_v1 }
 0x1ca   :  { %11461 = vst [vmem:[#allocation19_spill] sm:$0xff] %v8627_v7  ;;  %v2122_v24 = vadd.f32 %v2058_v38, %v8627_v7  ;;  %v2246_v13 = vpack.c.bf16 %v2124_v11, %v2123_v46  ;;  %v8660_v51 = vadd.f32 %v7246_v5, %v8461_v26  ;;  %v1832_v38 = vrot.slane %v1523_v43, %v8434_v10  ;;  %v151_v11 = vld [vmem:[%s11318_s2 + $0xd8] sm:$0xff] }
 0x1cb   :  { %v1138_v30 = vpop.f32.mrf.mxu1  ;;  %v1824_v5 = vrot.slane %v1513_v14, %v8434_v10  ;;  %v1532_v46 = vrot.slane %v1317_v61, %v8424_v1  ;;  %v150_v14 = vld [vmem:[%s11318_s2 + $0xd0] sm:$0xff]  ;;  %v1524_v17 = vcombine.high %v1520_v2, %v1520_v2 }
 0x1cc   :  { %v2245_v36 = vpack.c.bf16 %v2122_v24, %v2121_v15  ;;  %v8653_v44 = vadd.f32 %v8461_v26, %v1138_v30  ;;  %11464 = vst [vmem:[#allocation22_spill] sm:$0xff] %v8660_v51  ;;  %v2127_v12 = vadd.f32 %v2063_v52, %v8660_v51  ;;  %v1828_v15 = vrot.slane %v1521_v56, %v8434_v10  ;;  %v148_v24 = vld [vmem:[%s11318_s2 + $0xc0] sm:$0xff] }
 0x1cd   :  { %v7247_v37 = vpop.f32.mrf.mxu1  ;;  %v2068_v28 = vsub.f32 %v151_v11, %v1832_v38  ;;  %v2066_v62 = vsub.f32 %v149_v22, %v1824_v5 }
 0x1ce   :  { %11462 = vst [vmem:[#allocation20_spill] sm:$0xff] %v8653_v44  ;;  %v8656_v48 = vadd.f32 %v7247_v37, %v8461_v26  ;;  %7308 = vmatprep.mubr.msk.bf16.mxu0 %vm927_vm2, %v2245_v36  ;;  %v2125_v23 = vadd.f32 %v2061_v34, %v8653_v44  ;;  %v1540_v36 = vcombine.high %v1532_v46, %v1532_v46 }
 0x1cf   :  { %v1141_v53 = vpop.f32.mrf.mxu1  ;;  %7309 = vmatmul.mubr.msk.bf16.gmra.mxu0 %vm927_vm2, %v2246_v13  ;;  %v2065_v13 = vsub.f32 %v148_v24, %v1820_v55  ;;  %v2067_v43 = vsub.f32 %v150_v14, %v1828_v15  ;;  %v1522_v34 = vcombine.high %v1506_v25, %v1506_v25  ;;  %v1840_v55 = vrot.slane %v1520_v2, %v8434_v10  ;;  %v153_v24 = vld [vmem:[%s11318_s2 + $0xe8] sm:$0xff]  ;;  %v154_v2 = vld [vmem:[%s11318_s2 + $0xf0] sm:$0xff] }
 0x1d0   :  { %11463 = vst [vmem:[#allocation21_spill] sm:$0xff] %v8656_v48  ;;  %v8664_v57 = vadd.f32 %v8461_v26, %v1141_v53  ;;  %v2128_v9 = vadd.f32 %v2064_v45, %v8656_v48  ;;  %v1562_v38 = vrot.slane %v1540_v36, %v8424_v1 }
 0x1d1   :  { %v7250_v63 = vpop.f32.mrf.mxu1  ;;  %v1844_v5 = vrot.slane %v1522_v34, %v8434_v10 }
 0x1d2   :  { %11465 = vst [vmem:[#allocation23_spill] sm:$0xff] %v8664_v57  ;;  %v2126_v4 = vadd.f32 %v2062_v50, %v8664_v57  ;;  %v2248_v19 = vpack.c.bf16 %v2128_v9, %v2127_v12  ;;  %v8700_v45 = vadd.f32 %v7250_v63, %v8461_v26  ;;  %v1525_v50 = vcombine.high %v1317_v61, %v1317_v61  ;;  %v155_v61 = vld [vmem:[%s11318_s2 + $0xf8] sm:$0xff]  ;;  %v152_v12 = vld [vmem:[%s11318_s2 + $0xe0] sm:$0xff] }
 0x1d3   :  { %v1154_v18 = vpop.f32.mrf.mxu1  ;;  %v1848_v9 = vrot.slane %v1524_v17, %v8434_v10 }
 0x1d4   :  { %v2247_v27 = vpack.c.bf16 %v2126_v4, %v2125_v23  ;;  %v8693_v32 = vadd.f32 %v8461_v26, %v1154_v18  ;;  %11468 = vst [vmem:[#allocation26_spill] sm:$0xff] %v8700_v45  ;;  %v1836_v4 = vrot.slane %v1506_v25, %v8434_v10  ;;  %v2131_v11 = vadd.f32 %v2067_v43, %v8700_v45 }
 0x1d5   :  { %v7251_v30 = vpop.f32.mrf.mxu1  ;;  %v1548_v18 = vrot.slane %v1532_v46, %v8424_v1  ;;  %v1539_v22 = vrot.slane %v1525_v50, %v8424_v1  ;;  %v2070_v46 = vsub.f32 %v153_v24, %v1840_v55  ;;  %v2071_v43 = vsub.f32 %v154_v2, %v1844_v5  ;;  %v156_v24 = vld [vmem:[%s11318_s2 + $0x100] sm:$0xff]  ;;  %v157_v2 = vld [vmem:[%s11318_s2 + $0x108] sm:$0xff] }
 0x1d6   :  { %11466 = vst [vmem:[#allocation24_spill] sm:$0xff] %v8693_v32  ;;  %v8696_v37 = vadd.f32 %v7251_v30, %v8461_v26  ;;  %7312 = vmatprep.mubr.msk.bf16.mxu0 %vm927_vm2, %v2247_v27  ;;  %v2129_v23 = vadd.f32 %v2065_v13, %v8693_v32  ;;  %v1572_v30 = vcombine.high %v1562_v38, %v1562_v38 }
 0x1d7   :  { %v1157_v54 = vpop.f32.mrf.mxu1  ;;  %7313 = vmatmul.mubr.msk.bf16.gmra.mxu0 %vm927_vm2, %v2248_v19  ;;  %v2072_v19 = vsub.f32 %v155_v61, %v1848_v9  ;;  %v2069_v36 = vsub.f32 %v152_v12, %v1836_v4  ;;  %v1570_v34 = vcombine.high %v1548_v18, %v1548_v18  ;;  %v1852_v55 = vrot.slane %v1548_v18, %v8434_v10 }
 0x1d8   :  { %11467 = vst [vmem:[#allocation25_spill] sm:$0xff] %v8696_v37  ;;  %v8704_v52 = vadd.f32 %v8461_v26, %v1157_v54  ;;  %v2132_v53 = vadd.f32 %v2068_v28, %v8696_v37  ;;  %v1541_v28 = vcombine.high %v1539_v22, %v1539_v22  ;;  %v1856_v5 = vrot.slane %v1562_v38, %v8434_v10  ;;  %v158_v38 = vld [vmem:[%s11318_s2 + $0x110] sm:$0xff] }
 0x1d9   :  { %v7254_v56 = vpop.f32.mrf.mxu1  ;;  %v1555_v18 = vrot.slane %v1539_v22, %v8424_v1 }
 0x1da   :  { %11469 = vst [vmem:[#allocation27_spill] sm:$0xff] %v8704_v52  ;;  %v2130_v63 = vadd.f32 %v2066_v62, %v8704_v52  ;;  %v2250_v27 = vpack.c.bf16 %v2132_v53, %v2131_v11  ;;  %v8737_v62 = vadd.f32 %v7254_v56, %v8461_v26  ;;  %v1318_v53 = vld [vmem:[%s11317_s1 + $0x28] sm:$0xff]  ;;  %v1569_v56 = vrot.slane %v1541_v28, %v8424_v1  ;;  %v159_v11 = vld [vmem:[%s11318_s2 + $0x118] sm:$0xff] }
 0x1db   :  { %v1170_v15 = vpop.f32.mrf.mxu1  ;;  %v2074_v22 = vsub.f32 %v157_v2, %v1856_v5 }
 0x1dc   :  { %v2249_v25 = vpack.c.bf16 %v2130_v63, %v2129_v23  ;;  %v8730_v17 = vadd.f32 %v8461_v26, %v1170_v15  ;;  %11472 = vst [vmem:[#allocation30_spill] sm:$0xff] %v8737_v62  ;;  %v1864_v63 = vrot.slane %v1572_v30, %v8434_v10  ;;  %v2135_v12 = vadd.f32 %v2071_v43, %v8737_v62 }
 0x1dd   :  { %v7255_v14 = vpop.f32.mrf.mxu1  ;;  %v1860_v15 = vrot.slane %v1570_v34, %v8434_v10 }
 0x1de   :  { %11470 = vst [vmem:[#allocation28_spill] sm:$0xff] %v8730_v17  ;;  %v8733_v13 = vadd.f32 %v7255_v14, %v8461_v26  ;;  %7316 = vmatprep.mubr.msk.bf16.mxu0 %vm927_vm2, %v2249_v25  ;;  %v2133_v4 = vadd.f32 %v2069_v36, %v8730_v17  ;;  %v2076_v28 = vsub.f32 %v159_v11, %v1864_v63 }
 0x1df   :  { %v1173_v54 = vpop.f32.mrf.mxu1  ;;  %7317 = vmatmul.mubr.msk.bf16.gmra.mxu0 %vm927_vm2, %v2250_v27  ;;  %v1581_v27 = vrot.slane %v1318_v53, %v8424_v1  ;;  %v1573_v36 = vcombine.high %v1569_v56, %v1569_v56  ;;  %v1574_v63 = vcombine.high %v1318_v53, %v1318_v53  ;;  %v163_v53 = vld [vmem:[%s11318_s2 + $0x138] sm:$0xff] }
 0x1e0   :  { %11471 = vst [vmem:[#allocation29_spill] sm:$0xff] %v8733_v13  ;;  %v8741_v50 = vadd.f32 %v8461_v26, %v1173_v54  ;;  %v2136_v9 = vadd.f32 %v2072_v19, %v8733_v13  ;;  %v2073_v54 = vsub.f32 %v156_v24, %v1852_v55 }
 0x1e1   :  { %v7258_v23 = vpop.f32.mrf.mxu1  ;;  %v1880_v24 = vrot.slane %v1573_v36, %v8434_v10 }
 0x1e2   :  { %11473 = vst [vmem:[#allocation31_spill] sm:$0xff] %v8741_v50  ;;  %v2134_v61 = vadd.f32 %v2070_v46, %v8741_v50  ;;  %v2252_v19 = vpack.c.bf16 %v2136_v9, %v2135_v12  ;;  %v1589_v46 = vcombine.high %v1581_v27, %v1581_v27  ;;  %v1571_v9 = vcombine.high %v1555_v18, %v1555_v18 }
 0x1e3   :  { %v1186_v25 = vpop.f32.mrf.mxu1 }
 0x1e4   :  { %v2251_v14 = vpack.c.bf16 %v2134_v61, %v2133_v4  ;;  %v8770_v43 = vadd.f32 %v8461_v26, %v1186_v25  ;;  %v8777_v4 = vadd.f32 %v7258_v23, %v8461_v26  ;;  %v2075_v61 = vsub.f32 %v158_v38, %v1860_v15  ;;  %v160_v38 = vld [vmem:[%s11318_s2 + $0x120] sm:$0xff] }
 0x1e5   :  { %v7259_v30 = vpop.f32.mrf.mxu1  ;;  %v1611_v25 = vrot.slane %v1589_v46, %v8424_v1  ;;  %v1868_v15 = vrot.slane %v1555_v18, %v8434_v10  ;;  %v1597_v18 = vrot.slane %v1581_v27, %v8424_v1 }
 0x1e6   :  { %11474 = vst [vmem:[#allocation32_spill] sm:$0xff] %v8770_v43  ;;  %v8773_v34 = vadd.f32 %v7259_v30, %v8461_v26  ;;  %7320 = vmatprep.mubr.msk.bf16.mxu0 %vm927_vm2, %v2251_v14  ;;  %11476 = vst [vmem:[#allocation34_spill] sm:$0xff] %v8777_v4  ;;  %v2137_v5 = vadd.f32 %v2073_v54, %v8770_v43  ;;  %v2139_v2 = vadd.f32 %v2075_v61, %v8777_v4  ;;  %v161_v30 = vld [vmem:[%s11318_s2 + $0x128] sm:$0xff] }
 0x1e7   :  { %v1189_v62 = vpop.f32.mrf.mxu1  ;;  %7321 = vmatmul.mubr.msk.bf16.gmra.mxu0 %vm927_vm2, %v2252_v19  ;;  %v1876_v14 = vrot.slane %v1571_v9, %v8434_v10  ;;  %v1621_v61 = vcombine.high %v1611_v25, %v1611_v25 }
 0x1e8   :  { %11475 = vst [vmem:[#allocation33_spill] sm:$0xff] %v8773_v34  ;;  %v8781_v11 = vadd.f32 %v8461_v26, %v1189_v62  ;;  %v2140_v55 = vadd.f32 %v2076_v28, %v8773_v34  ;;  %v1872_v62 = vrot.slane %v1569_v56, %v8434_v10  ;;  %v1588_v28 = vrot.slane %v1574_v63, %v8424_v1  ;;  %v162_v56 = vld [vmem:[%s11318_s2 + $0x130] sm:$0xff] }
 0x1e9   :  { %v7262_v12 = vpop.f32.mrf.mxu1  ;;  %v2077_v34 = vsub.f32 %v160_v38, %v1868_v15  ;;  %v1319_v15 = vld [vmem:[%s11317_s1 + $0x30] sm:$0xff] }
 0x1ea   :  { %11477 = vst [vmem:[#allocation35_spill] sm:$0xff] %v8781_v11  ;;  %v2138_v23 = vadd.f32 %v2074_v22, %v8781_v11  ;;  %v2254_v46 = vpack.c.bf16 %v2140_v55, %v2139_v2  ;;  %v2080_v22 = vsub.f32 %v163_v53, %v1880_v24  ;;  %v1590_v9 = vcombine.high %v1588_v28, %v1588_v28 }
 0x1eb   :  { %v1202_v19 = vpop.f32.mrf.mxu1  ;;  %v2078_v27 = vsub.f32 %v161_v30, %v1872_v62  ;;  %v8814_v63 = vadd.f32 %v7262_v12, %v8461_v26  ;;  %v1619_v55 = vcombine.high %v1597_v18, %v1597_v18  ;;  %v1896_v62 = vrot.slane %v1621_v61, %v8434_v10  ;;  %v167_v30 = vld [vmem:[%s11318_s2 + $0x158] sm:$0xff] }
 0x1ec   :  { %v2253_v36 = vpack.c.bf16 %v2138_v23, %v2137_v5  ;;  %v8807_v11 = vadd.f32 %v8461_v26, %v1202_v19  ;;  %v2079_v5 = vsub.f32 %v162_v56, %v1876_v14  ;;  %v1618_v12 = vrot.slane %v1590_v9, %v8424_v1 }
 0x1ed   :  { %v7263_v54 = vpop.f32.mrf.mxu1  ;;  %11480 = vst [vmem:[#allocation38_spill] sm:$0xff] %v8814_v63  ;;  %v1884_v19 = vrot.slane %v1597_v18, %v8434_v10  ;;  %v1604_v18 = vrot.slane %v1588_v28, %v8424_v1  ;;  %v1630_v61 = vrot.slane %v1319_v15, %v8424_v1 }
 0x1ee   :  { %11478 = vst [vmem:[#allocation36_spill] sm:$0xff] %v8807_v11  ;;  %v8810_v43 = vadd.f32 %v7263_v54, %v8461_v26  ;;  %7324 = vmatprep.mubr.msk.bf16.mxu0 %vm927_vm2, %v2253_v36  ;;  %v2141_v14 = vadd.f32 %v2077_v34, %v8807_v11  ;;  %v1888_v36 = vrot.slane %v1611_v25, %v8434_v10  ;;  %v164_v54 = vld [vmem:[%s11318_s2 + $0x140] sm:$0xff]  ;;  %v165_v34 = vld [vmem:[%s11318_s2 + $0x148] sm:$0xff]  ;;  %v166_v25 = vld [vmem:[%s11318_s2 + $0x150] sm:$0xff] }
 0x1ef   :  { %v1205_v23 = vpop.f32.mrf.mxu1  ;;  %7325 = vmatmul.mubr.msk.bf16.gmra.mxu0 %vm927_vm2, %v2254_v46  ;;  %v2143_v56 = vadd.f32 %v2079_v5, %v8814_v63  ;;  %v1892_v46 = vrot.slane %v1619_v55, %v8434_v10  ;;  %v1622_v55 = vcombine.high %v1618_v12, %v1618_v12  ;;  %v2081_v11 = vsub.f32 %v164_v54, %v1884_v19 }
 0x1f0   :  { %11479 = vst [vmem:[#allocation37_spill] sm:$0xff] %v8810_v43  ;;  %v8818_v24 = vadd.f32 %v8461_v26, %v1205_v23  ;;  %v2144_v53 = vadd.f32 %v2080_v22, %v8810_v43  ;;  %v2084_v23 = vsub.f32 %v167_v30, %v1896_v62  ;;  %v2082_v28 = vsub.f32 %v165_v34, %v1888_v36 }
 0x1f1   :  { %v7266_v2 = vpop.f32.mrf.mxu1  ;;  %v1623_v62 = vcombine.high %v1319_v15, %v1319_v15  ;;  %v1912_v54 = vrot.slane %v1622_v55, %v8434_v10  ;;  %v171_v15 = vld [vmem:[%s11318_s2 + $0x178] sm:$0xff] }
 0x1f2   :  { %11481 = vst [vmem:[#allocation39_spill] sm:$0xff] %v8818_v24  ;;  %v2142_v38 = vadd.f32 %v2078_v27, %v8818_v24  ;;  %v2256_v27 = vpack.c.bf16 %v2144_v53, %v2143_v56  ;;  %v1638_v24 = vcombine.high %v1630_v61, %v1630_v61  ;;  %v1620_v53 = vcombine.high %v1604_v18, %v1604_v18 }
 0x1f3   :  { %v1218_v22 = vpop.f32.mrf.mxu1 }
 0x1f4   :  { %v2255_v9 = vpack.c.bf16 %v2142_v38, %v2141_v14  ;;  %v8847_v43 = vadd.f32 %v8461_v26, %v1218_v22  ;;  %v8854_v14 = vadd.f32 %v7266_v2, %v8461_v26  ;;  %v2083_v38 = vsub.f32 %v166_v25, %v1892_v46 }
 0x1f5   :  { %v7267_v5 = vpop.f32.mrf.mxu1  ;;  %v1660_v22 = vrot.slane %v1638_v24, %v8424_v1  ;;  %v1900_v46 = vrot.slane %v1604_v18, %v8434_v10  ;;  %v168_v24 = vld [vmem:[%s11318_s2 + $0x160] sm:$0xff]  ;;  %v1646_v18 = vrot.slane %v1630_v61, %v8424_v1 }
 0x1f6   :  { %11482 = vst [vmem:[#allocation40_spill] sm:$0xff] %v8847_v43  ;;  %v8850_v63 = vadd.f32 %v7267_v5, %v8461_v26  ;;  %7328 = vmatprep.mubr.msk.bf16.mxu0 %vm927_vm2, %v2255_v9  ;;  %11484 = vst [vmem:[#allocation42_spill] sm:$0xff] %v8854_v14  ;;  %v2145_v36 = vadd.f32 %v2081_v11, %v8847_v43  ;;  %v2147_v34 = vadd.f32 %v2083_v38, %v8854_v14  ;;  %v169_v11 = vld [vmem:[%s11318_s2 + $0x168] sm:$0xff] }
 0x1f7   :  { %v1221_v4 = vpop.f32.mrf.mxu1  ;;  %7329 = vmatmul.mubr.msk.bf16.gmra.mxu0 %vm927_vm2, %v2256_v27  ;;  %v1908_v9 = vrot.slane %v1620_v53, %v8434_v10  ;;  %v1637_v27 = vrot.slane %v1623_v62, %v8424_v1  ;;  %v1670_v38 = vcombine.high %v1660_v22, %v1660_v22  ;;  %v2085_v14 = vsub.f32 %v168_v24, %v1900_v46  ;;  %v1320_v46 = vld [vmem:[%s11317_s1 + $0x38] sm:$0xff] }
 0x1f8   :  { %11483 = vst [vmem:[#allocation41_spill] sm:$0xff] %v8850_v63  ;;  %v8858_v30 = vadd.f32 %v8461_v26, %v1221_v4  ;;  %v2148_v19 = vadd.f32 %v2084_v23, %v8850_v63  ;;  %v1904_v4 = vrot.slane %v1618_v12, %v8434_v10  ;;  %v170_v12 = vld [vmem:[%s11318_s2 + $0x170] sm:$0xff] }
 0x1f9   :  { %v7270_v56 = vpop.f32.mrf.mxu1  ;;  %v1639_v53 = vcombine.high %v1637_v27, %v1637_v27 }
 0x1fa   :  { %11485 = vst [vmem:[#allocation43_spill] sm:$0xff] %v8858_v30  ;;  %v2146_v2 = vadd.f32 %v2082_v28, %v8858_v30  ;;  %v2258_v23 = vpack.c.bf16 %v2148_v19, %v2147_v34  ;;  %v2088_v28 = vsub.f32 %v171_v15, %v1912_v54  ;;  %v2086_v61 = vsub.f32 %v169_v11, %v1904_v4  ;;  %v175_v11 = vld [vmem:[%s11318_s2 + $0x198] sm:$0xff] }
 0x1fb   :  { %v1234_v25 = vpop.f32.mrf.mxu1  ;;  %v8891_v62 = vadd.f32 %v7270_v56, %v8461_v26  ;;  %v1668_v19 = vcombine.high %v1646_v18, %v1646_v18  ;;  %v1928_v4 = vrot.slane %v1670_v38, %v8434_v10  ;;  %v1667_v56 = vrot.slane %v1639_v53, %v8424_v1 }
 0x1fc   :  { %v2257_v5 = vpack.c.bf16 %v2146_v2, %v2145_v36  ;;  %v8884_v63 = vadd.f32 %v8461_v26, %v1234_v25  ;;  %v2087_v36 = vsub.f32 %v170_v12, %v1908_v9  ;;  %v1916_v25 = vrot.slane %v1646_v18, %v8434_v10 }
 0x1fd   :  { %v7271_v55 = vpop.f32.mrf.mxu1  ;;  %11488 = vst [vmem:[#allocation46_spill] sm:$0xff] %v8891_v62  ;;  %v1653_v18 = vrot.slane %v1637_v27, %v8424_v1  ;;  %v1679_v38 = vrot.slane %v1320_v46, %v8424_v1 }
 0x1fe   :  { %11486 = vst [vmem:[#allocation44_spill] sm:$0xff] %v8884_v63  ;;  %v8887_v43 = vadd.f32 %v7271_v55, %v8461_v26  ;;  %7332 = vmatprep.mubr.msk.bf16.mxu0 %vm927_vm2, %v2257_v5  ;;  %v2149_v9 = vadd.f32 %v2085_v14, %v8884_v63  ;;  %v1920_v5 = vrot.slane %v1660_v22, %v8434_v10  ;;  %v172_v55 = vld [vmem:[%s11318_s2 + $0x180] sm:$0xff]  ;;  %v173_v14 = vld [vmem:[%s11318_s2 + $0x188] sm:$0xff]  ;;  %v174_v22 = vld [vmem:[%s11318_s2 + $0x190] sm:$0xff] }
 0x1ff   :  { %v1237_v2 = vpop.f32.mrf.mxu1  ;;  %7333 = vmatmul.mubr.msk.bf16.gmra.mxu0 %vm927_vm2, %v2258_v23  ;;  %v2151_v12 = vadd.f32 %v2087_v36, %v8891_v62  ;;  %v1924_v23 = vrot.slane %v1668_v19, %v8434_v10  ;;  %v1671_v19 = vcombine.high %v1667_v56, %v1667_v56 }
 0x200   :  { %11487 = vst [vmem:[#allocation45_spill] sm:$0xff] %v8887_v43  ;;  %v8895_v54 = vadd.f32 %v8461_v26, %v1237_v2  ;;  %v2152_v15 = vadd.f32 %v2088_v28, %v8887_v43  ;;  %v2092_v2 = vsub.f32 %v175_v11, %v1928_v4  ;;  %v2089_v43 = vsub.f32 %v172_v55, %v1916_v25 }
 0x201   :  { %v7274_v34 = vpop.f32.mrf.mxu1  ;;  %v2090_v27 = vsub.f32 %v173_v14, %v1920_v5  ;;  %v1672_v4 = vcombine.high %v1320_v46, %v1320_v46  ;;  %v1944_v55 = vrot.slane %v1671_v19, %v8434_v10  ;;  %v179_v46 = vld [vmem:[%s11318_s2 + $0x1b8] sm:$0xff] }
 0x202   :  { %11489 = vst [vmem:[#allocation47_spill] sm:$0xff] %v8895_v54  ;;  %v2150_v24 = vadd.f32 %v2086_v61, %v8895_v54  ;;  %v2260_v61 = vpack.c.bf16 %v2152_v15, %v2151_v12  ;;  %v1687_v54 = vcombine.high %v1679_v38, %v1679_v38  ;;  %v1669_v15 = vcombine.high %v1653_v18, %v1653_v18 }
 0x203   :  { %v1250_v28 = vpop.f32.mrf.mxu1 }
 0x204   :  { %v2259_v53 = vpack.c.bf16 %v2150_v24, %v2149_v9  ;;  %v8924_v62 = vadd.f32 %v8461_v26, %v1250_v28  ;;  %v8931_v9 = vadd.f32 %v7274_v34, %v8461_v26  ;;  %v2091_v24 = vsub.f32 %v174_v22, %v1924_v23 }
 0x205   :  { %v7275_v36 = vpop.f32.mrf.mxu1  ;;  %v1709_v28 = vrot.slane %v1687_v54, %v8424_v1  ;;  %v1932_v23 = vrot.slane %v1653_v18, %v8434_v10  ;;  %v176_v54 = vld [vmem:[%s11318_s2 + $0x1a0] sm:$0xff]  ;;  %v1695_v18 = vrot.slane %v1679_v38, %v8424_v1 }
 0x206   :  { %11490 = vst [vmem:[#allocation48_spill] sm:$0xff] %v8924_v62  ;;  %v8927_v63 = vadd.f32 %v7275_v36, %v8461_v26  ;;  %7336 = vmatprep.mubr.msk.bf16.mxu0 %vm927_vm2, %v2259_v53  ;;  %11492 = vst [vmem:[#allocation50_spill] sm:$0xff] %v8931_v9  ;;  %v2153_v5 = vadd.f32 %v2089_v43, %v8924_v62  ;;  %v2155_v14 = vadd.f32 %v2091_v24, %v8931_v9  ;;  %v177_v43 = vld [vmem:[%s11318_s2 + $0x1a8] sm:$0xff] }
 0x207   :  { %v1253_v30 = vpop.f32.mrf.mxu1  ;;  %7337 = vmatmul.mubr.msk.bf16.gmra.mxu0 %vm927_vm2, %v2260_v61  ;;  %v1940_v53 = vrot.slane %v1669_v15, %v8434_v10  ;;  %v1686_v61 = vrot.slane %v1672_v4, %v8424_v1  ;;  %v1719_v24 = vcombine.high %v1709_v28, %v1709_v28 }
 0x208   :  { %11491 = vst [vmem:[#allocation49_spill] sm:$0xff] %v8927_v63  ;;  %v8935_v11 = vadd.f32 %v8461_v26, %v1253_v30  ;;  %v2156_v25 = vadd.f32 %v2092_v2, %v8927_v63  ;;  %v1936_v30 = vrot.slane %v1667_v56, %v8434_v10  ;;  %v178_v56 = vld [vmem:[%s11318_s2 + $0x1b0] sm:$0xff] }
 0x209   :  { %v7278_v12 = vpop.f32.mrf.mxu1  ;;  %v1688_v15 = vcombine.high %v1686_v61, %v1686_v61 }
 0x20a   :  { %11493 = vst [vmem:[#allocation51_spill] sm:$0xff] %v8935_v11  ;;  %v2154_v34 = vadd.f32 %v2090_v27, %v8935_v11  ;;  %v2262_v2 = vpack.c.bf16 %v2156_v25, %v2155_v14  ;;  %v2096_v27 = vsub.f32 %v179_v46, %v1944_v55  ;;  %v2093_v11 = vsub.f32 %v176_v54, %v1932_v23 }
 0x20b   :  { %v1266_v22 = vpop.f32.mrf.mxu1  ;;  %v2094_v38 = vsub.f32 %v177_v43, %v1936_v30  ;;  %v8968_v4 = vadd.f32 %v7278_v12, %v8461_v26  ;;  %v1717_v25 = vcombine.high %v1695_v18, %v1695_v18  ;;  %v1960_v14 = vrot.slane %v1719_v24, %v8434_v10 }
 0x20c   :  { %v2261_v36 = vpack.c.bf16 %v2154_v34, %v2153_v5  ;;  %v8961_v63 = vadd.f32 %v8461_v26, %v1266_v22  ;;  %v2095_v5 = vsub.f32 %v178_v56, %v1940_v53  ;;  %v1716_v54 = vrot.slane %v1688_v15, %v8424_v1  ;;  %v183_v22 = vld [vmem:[%s11318_s2 + $0x1d8] sm:$0xff] }
 0x20d   :  { %v7279_v19 = vpop.f32.mrf.mxu1  ;;  %11496 = vst [vmem:[#allocation54_spill] sm:$0xff] %v8968_v4  ;;  %v1948_v53 = vrot.slane %v1695_v18, %v8434_v10  ;;  %v1952_v43 = vrot.slane %v1709_v28, %v8434_v10  ;;  %v1956_v56 = vrot.slane %v1717_v25, %v8434_v10  ;;  %v1702_v18 = vrot.slane %v1686_v61, %v8424_v1  ;;  %v182_v28 = vld [vmem:[%s11318_s2 + $0x1d0] sm:$0xff] }
 0x20e   :  { %11494 = vst [vmem:[#allocation52_spill] sm:$0xff] %v8961_v63  ;;  %v8964_v9 = vadd.f32 %v7279_v19, %v8461_v26  ;;  %7340 = vmatprep.mubr.msk.bf16.mxu0 %vm927_vm2, %v2261_v36  ;;  %v2157_v30 = vadd.f32 %v2093_v11, %v8961_v63  ;;  %v2159_v36 = vadd.f32 %v2095_v5, %v8968_v4  ;;  %v181_v11 = vld [vmem:[%s11318_s2 + $0x1c8] sm:$0xff] }
 0x20f   :  { %v1269_v34 = vpop.f32.mrf.mxu1  ;;  %7341 = vmatmul.mubr.msk.bf16.gmra.mxu0 %vm927_vm2, %v2262_v2  ;;  %v180_v2 = vld [vmem:[%s11318_s2 + $0x1c0] sm:$0xff]  ;;  %v1720_v5 = vcombine.high %v1716_v54, %v1716_v54  ;;  %v2098_v63 = vsub.f32 %v181_v11, %v1952_v43  ;;  %v2099_v61 = vsub.f32 %v182_v28, %v1956_v56  ;;  %v187_v56 = vld [vmem:[%s11318_s2 + $0x1f8] sm:$0xff]  ;;  %v186_v28 = vld [vmem:[%s11318_s2 + $0x1f0] sm:$0xff] }
 0x210   :  { %11495 = vst [vmem:[#allocation53_spill] sm:$0xff] %v8964_v9  ;;  %v8972_v55 = vadd.f32 %v8461_v26, %v1269_v34  ;;  %v2160_v46 = vadd.f32 %v2096_v27, %v8964_v9  ;;  %v2097_v25 = vsub.f32 %v180_v2, %v1948_v53  ;;  %v1968_v2 = vrot.slane %v1716_v54, %v8434_v10  ;;  %v184_v11 = vld [vmem:[%s11318_s2 + $0x1e0] sm:$0xff] }
 0x211   :  { %v7282_v23 = vpop.f32.mrf.mxu1 }
 0x212   :  { %11497 = vst [vmem:[#allocation55_spill] sm:$0xff] %v8972_v55  ;;  %v2158_v12 = vadd.f32 %v2094_v38, %v8972_v55  ;;  %v2264_v24 = vpack.c.bf16 %v2160_v46, %v2159_v36  ;;  %v2100_v38 = vsub.f32 %v183_v22, %v1960_v14  ;;  %v9004_v1 = vadd.f32 %v7282_v23, %v8461_v26 }
 0x213   :  { %v1282_v19 = vpop.f32.mrf.mxu1  ;;  %v1718_v46 = vcombine.high %v1702_v18, %v1702_v18  ;;  %v1976_v22 = vrot.slane %v1720_v5, %v8434_v10  ;;  %v1964_v23 = vrot.slane %v1702_v18, %v8434_v10 }
 0x214   :  { %v2263_v27 = vpack.c.bf16 %v2158_v12, %v2157_v30  ;;  %v8997_v34 = vadd.f32 %v8461_v26, %v1282_v19  ;;  %11500 = vst [vmem:[#allocation58_spill] sm:$0xff] %v9004_v1 }
 0x215   :  { %v7283_v15 = vpop.f32.mrf.mxu1  ;;  %v1972_v19 = vrot.slane %v1718_v46, %v8434_v10 }
 0x216   :  { %11498 = vst [vmem:[#allocation56_spill] sm:$0xff] %v8997_v34  ;;  %v9000_v9 = vadd.f32 %v7283_v15, %v8461_v26  ;;  %7344 = vmatprep.mubr.msk.bf16.mxu0 %vm927_vm2, %v2263_v27  ;;  %v2161_v36 = vadd.f32 %v2097_v25, %v8997_v34  ;;  %v2104_v15 = vsub.f32 %v187_v56, %v1976_v22 }
 0x217   :  { %v1285_v30 = vpop.f32.mrf.mxu1  ;;  %7345 = vmatmul.mubr.msk.bf16.gmra.mxu0 %vm927_vm2, %v2264_v24  ;;  %v2101_v25 = vsub.f32 %v184_v11, %v1964_v23 }
 0x218   :  { %11499 = vst [vmem:[#allocation57_spill] sm:$0xff] %v9000_v9  ;;  %v9008_v14 = vadd.f32 %v8461_v26, %v1285_v30  ;;  %v2164_v12 = vadd.f32 %v2100_v38, %v9000_v9  ;;  %v2163_v26 = vadd.f32 %v2099_v61, %v9004_v1  ;;  %v7821_v38 = vld [vmem:[%s11319_s9] ss:$0 sm:$0xff] }
 0x219   :  { %v7286_v53 = vpop.f32.mrf.mxu1 }
 0x21a   :  { %11501 = vst [vmem:[#allocation59_spill] sm:$0xff] %v9008_v14  ;;  %v2162_v43 = vadd.f32 %v2098_v63, %v9008_v14  ;;  %v185_v63 = vld [vmem:[%s11318_s2 + $0x1e8] sm:$0xff]  ;;  %v2266_v24 = vpack.c.bf16 %v2164_v12, %v2163_v26  ;;  %v9038_v46 = vadd.f32 %v7821_v38, %v7286_v53 }
 0x21b   :  { %v1298_v27 = vpop.f32.mrf.mxu1  ;;  %v2102_v30 = vsub.f32 %v185_v63, %v1968_v2  ;;  %v9052_v2 = vld [vmem:[%s11320_s11] ss:$0 sm:$0xff] }
 0x21c   :  { %v2265_v18 = vpack.c.bf16 %v2162_v43, %v2161_v36  ;;  %v9033_v5 = vadd.f32 %v7821_v38, %v1298_v27  ;;  %11504 = vst [vmem:[#allocation62_spill] sm:$0xff] %v9038_v46  ;;  %v2103_v36 = vsub.f32 %v186_v28, %v1972_v19  ;;  %v9059_v28 = vld [vmem:[%s11321_s12] ss:$0 sm:$0xff] }
 0x21d   :  { %v7287_v54 = vpop.f32.mrf.mxu1 }
 0x21e   :  { %11502 = vst [vmem:[#allocation60_spill] sm:$0xff] %v9033_v5  ;;  %v9035_v61 = vadd.f32 %v7821_v38, %v7287_v54  ;;  %7348 = vmatprep.mubr.msk.bf16.mxu0 %vm927_vm2, %v2265_v18  ;;  %v2165_v56 = vadd.f32 %v2101_v25, %v9033_v5  ;;  %v2167_v23 = vadd.f32 %v2103_v36, %v9038_v46 }
 0x21f   :  { %v1301_v43 = vpop.f32.mrf.mxu1  ;;  %7349 = vmatmul.mubr.msk.bf16.gmra.mxu0 %vm927_vm2, %v2266_v24 }
 0x220   :  { %11503 = vst [vmem:[#allocation61_spill] sm:$0xff] %v9035_v61  ;;  %v9041_v12 = vadd.f32 %v7821_v38, %v1301_v43  ;;  %v2168_v22 = vadd.f32 %v2104_v15, %v9035_v61 }
 0x222   :  { %11505 = vst [vmem:[#allocation63_spill] sm:$0xff] %v9041_v12  ;;  %v2166_v26 = vadd.f32 %v2102_v30, %v9041_v12  ;;  %v2268_v27 = vpack.c.bf16 %v2168_v22, %v2167_v23  ;;  %v5187_v23 = vld [vmem:[%s11322_s17] sm:$0xf] }
 0x223   :  { %7454 = vmatprep.subr.msk.mxu0 %vm383_vm0, %v5187_v23 }
 0x224   :  { %v2267_v11 = vpack.c.bf16 %v2166_v26, %v2165_v56  ;;  %v9068_v56 = vsub.s32 2, %v8421_v0  ;;  %7455 = vmatpush3.msk.msra.mxu0 %vm383_vm0, %v5187_v23 }
 0x226   :  { %7352 = vmatprep.mubr.msk.bf16.mxu0 %vm927_vm2, %v2267_v11  ;;  %v9076_v11 = vld [vmem:[%s11323_s4] sm:$0xff] }
 0x227   :  { %7353 = vmatmul.mubr.msk.bf16.gmra.mxu0 %vm927_vm2, %v2268_v27  ;;  %v9079_v27 = vsub.s32 1, %v8421_v0 }
 0x26f   :  { %v7294_v53 = vpop.f32.mrf.mxu0 }
 0x270   :  { %v2665_v18 = vmul.f32 %v7294_v53, %v9052_v2  ;;  %v9082_v53 = vsub.s32 3, %v8421_v0 }
 0x271   :  { %v2401_v19 = vpop.f32.mrf.mxu0 }
 0x272   :  { %v2663_v63 = vmul.f32 %v9052_v2, %v2401_v19  ;;  %v2736_v36 = vadd.f32 %v9059_v28, %v2665_v18 }
 0x273   :  { %v7295_v24 = vpop.f32.mrf.mxu0 }
 0x274   :  { %v2734_v54 = vadd.f32 %v9059_v28, %v2663_v63  ;;  %v2666_v25 = vmul.f32 %v7295_v24, %v9052_v2  ;;  %v4678_v24 = vrot.slane %v9076_v11, %v8434_v10 }
 0x275   :  { %v2404_v15 = vpop.f32.mrf.mxu0 }
 0x276   :  { %v2798_v38 = vmax.f32 %v2734_v54, 0.0  ;;  %v2664_v30 = vmul.f32 %v9052_v2, %v2404_v15  ;;  %v2737_v19 = vadd.f32 %v9059_v28, %v2666_v25  ;;  %v2800_v54 = vmax.f32 %v2736_v36, 0.0  ;;  %4680 = vbcast.lane.b32.xlu0 %v4678_v24, 256 }
 0x277   :  { %v7298_v43 = vpop.f32.mrf.mxu0  ;;  %v4685_v25 = vrot.slane %v9076_v11, %v9079_v27 }
 0x278   :  { %v2735_v22 = vadd.f32 %v9059_v28, %v2664_v30  ;;  %7358 = vmatprep.mubr.msk.f32.mxu1 %vm2870_vm3, %v2798_v38  ;;  %v2669_v15 = vmul.f32 %v7298_v43, %v9052_v2  ;;  %v4692_v30 = vrot.slane %v9076_v11, %v9068_v56  ;;  %v4699_v43 = vrot.slane %v9076_v11, %v9082_v53 }
 0x279   :  { %v2417_v26 = vpop.f32.mrf.mxu0  ;;  %v2801_v23 = vmax.f32 %v2737_v19, 0.0 }
 0x27a   :  { %v2799_v63 = vmax.f32 %v2735_v22, 0.0  ;;  %v2667_v18 = vmul.f32 %v9052_v2, %v2417_v26  ;;  %v9098_v22 = vsub.s32 4, %v8421_v0  ;;  %4694 = vbcast.lane.b32.xlu1 %v4692_v30, 256  ;;  %v9104_v26 = vsub.s32 5, %v8421_v0  ;;  %4687 = vbcast.lane.b32.xlu0 %v4685_v25, 256 }
 0x27b   :  { %v7299_v38 = vpop.f32.mrf.mxu0  ;;  %v2740_v12 = vadd.f32 %v9059_v28, %v2669_v15  ;;  %v9114_v30 = vsub.s32 6, %v8421_v0  ;;  %v9120_v15 = vsub.s32 7, %v8421_v0 }
 0x27c   :  { %v2738_v61 = vadd.f32 %v9059_v28, %v2667_v18  ;;  %7359 = vmatmul.mubr.msk.f32.vlgmr.msra.gmra.mxu1 %vm2870_vm3, %v2799_v63  ;;  %v2670_v63 = vmul.f32 %v7299_v38, %v9052_v2 }
 0x27d   :  { %v2420_v36 = vpop.f32.mrf.mxu0  ;;  %7361 = vmatprep.mubr.msk.f32.mxu1 %vm2870_vm3, %v2800_v54  ;;  %v4706_v54 = vrot.slane %v9076_v11, %v9098_v22  ;;  %v4727_v0 = vrot.slane %v9076_v11, %v9120_v15 }
 0x27e   :  { %v2802_v18 = vmax.f32 %v2738_v61, 0.0  ;;  %v2668_v24 = vmul.f32 %v9052_v2, %v2420_v36  ;;  %4701 = vbcast.lane.b32.xlu1 %v4699_v43, 256  ;;  %v4713_v61 = vrot.slane %v9076_v11, %v9104_v26  ;;  %v2741_v38 = vadd.f32 %v9059_v28, %v2670_v63 }
 0x27f   :  { %v7302_v5 = vpop.f32.mrf.mxu0  ;;  %4708 = vbcast.lane.b32.xlu0 %v4706_v54, 256  ;;  %v4720_v43 = vrot.slane %v9076_v11, %v9114_v30  ;;  %v9137_v54 = vld [vmem:[%s11323_s4 + $0x8] sm:$0xff] }
 0x280   :  { %v2739_v46 = vadd.f32 %v9059_v28, %v2668_v24  ;;  %7362 = vmatmul.mubr.msk.f32.gmra.mxu1 %vm2870_vm3, %v2801_v23  ;;  %v2804_v23 = vmax.f32 %v2740_v12, 0.0  ;;  %v2673_v24 = vmul.f32 %v7302_v5, %v9052_v2 }
 0x281   :  { %v2433_v19 = vpop.f32.mrf.mxu0  ;;  %7364 = vmatprep.mubr.msk.f32.mxu1 %vm2870_vm3, %v2802_v18 }
 0x282   :  { %v2803_v36 = vmax.f32 %v2739_v46, 0.0  ;;  %v2671_v25 = vmul.f32 %v9052_v2, %v2433_v19  ;;  %4715 = vbcast.lane.b32.xlu1 %v4713_v61, 256  ;;  %v2805_v46 = vmax.f32 %v2741_v38, 0.0  ;;  %v2744_v19 = vadd.f32 %v9059_v28, %v2673_v24 }
 0x283   :  { %v7303_v14 = vpop.f32.mrf.mxu0  ;;  %4722 = vbcast.lane.b32.xlu0 %v4720_v43, 256 }
 0x284   :  { %v2742_v9 = vadd.f32 %v9059_v28, %v2671_v25  ;;  %7365 = vmatmul.mubr.msk.f32.gmra.mxu1 %vm2870_vm3, %v2803_v36  ;;  %v2674_v5 = vmul.f32 %v7303_v14, %v9052_v2  ;;  %v4741_v14 = vrot.slane %v9137_v54, %v9079_v27  ;;  %v2808_v24 = vmax.f32 %v2744_v19, 0.0 }
 0x285   :  { %v2436_v18 = vpop.f32.mrf.mxu0  ;;  %7367 = vmatprep.mubr.msk.f32.mxu1 %vm2870_vm3, %v2804_v23 }
 0x286   :  { %v2806_v12 = vmax.f32 %v2742_v9, 0.0  ;;  %v2672_v63 = vmul.f32 %v9052_v2, %v2436_v18  ;;  %v4734_v9 = vrot.slane %v9137_v54, %v8434_v10  ;;  %4729 = vbcast.lane.b32.xlu1 %v4727_v0, 256  ;;  %v2745_v61 = vadd.f32 %v9059_v28, %v2674_v5 }
 0x287   :  { %v7306_v36 = vpop.f32.mrf.mxu0  ;;  %v4748_v0 = vrot.slane %v9137_v54, %v9068_v56  ;;  %v4755_v5 = vrot.slane %v9137_v54, %v9082_v53 }
 0x288   :  { %v2743_v25 = vadd.f32 %v9059_v28, %v2672_v63  ;;  %7368 = vmatmul.mubr.msk.f32.gmra.mxu1 %vm2870_vm3, %v2805_v46  ;;  %v2677_v18 = vmul.f32 %v7306_v36, %v9052_v2  ;;  %4736 = vbcast.lane.b32.xlu0 %v4734_v9, 256  ;;  %v2809_v63 = vmax.f32 %v2745_v61, 0.0  ;;  %v4769_v61 = vrot.slane %v9137_v54, %v9104_v26 }
 0x289   :  { %v2449_v11 = vpop.f32.mrf.mxu0  ;;  %7370 = vmatprep.mubr.msk.f32.mxu1 %vm2870_vm3, %v2806_v12 }
 0x28a   :  { %v2807_v38 = vmax.f32 %v2743_v25, 0.0  ;;  %v2675_v23 = vmul.f32 %v9052_v2, %v2449_v11  ;;  %4743 = vbcast.lane.b32.xlu1 %v4741_v14, 256  ;;  %v2748_v11 = vadd.f32 %v9059_v28, %v2677_v18  ;;  %v4762_v14 = vrot.slane %v9137_v54, %v9098_v22 }
 0x28b   :  { %v7307_v46 = vpop.f32.mrf.mxu0 }
 0x28c   :  { %v2746_v43 = vadd.f32 %v9059_v28, %v2675_v23  ;;  %7371 = vmatmul.mubr.msk.f32.gmra.mxu1 %vm2870_vm3, %v2807_v38  ;;  %v2678_v36 = vmul.f32 %v7307_v46, %v9052_v2  ;;  %4750 = vbcast.lane.b32.xlu0 %v4748_v0, 256 }
 0x28d   :  { %v2452_v12 = vpop.f32.mrf.mxu0  ;;  %7373 = vmatprep.mubr.msk.f32.mxu1 %vm2870_vm3, %v2808_v24 }
 0x28e   :  { %v2810_v19 = vmax.f32 %v2746_v43, 0.0  ;;  %v2676_v25 = vmul.f32 %v9052_v2, %v2452_v12  ;;  %4757 = vbcast.lane.b32.xlu1 %v4755_v5, 256  ;;  %v2749_v24 = vadd.f32 %v9059_v28, %v2678_v36  ;;  %v2812_v43 = vmax.f32 %v2748_v11, 0.0 }
 0x28f   :  { %v7310_v38 = vpop.f32.mrf.mxu0  ;;  %v4776_v5 = vrot.slane %v9137_v54, %v9114_v30  ;;  %v4783_v36 = vrot.slane %v9137_v54, %v9120_v15 }
 0x290   :  { %v2747_v9 = vadd.f32 %v9059_v28, %v2676_v25  ;;  %7374 = vmatmul.mubr.msk.f32.gmra.mxu1 %vm2870_vm3, %v2809_v63  ;;  %v2681_v12 = vmul.f32 %v7310_v38, %v9052_v2  ;;  %4764 = vbcast.lane.b32.xlu0 %v4762_v14, 256  ;;  %v2813_v25 = vmax.f32 %v2749_v24, 0.0  ;;  %v9182_v14 = vld [vmem:[%s11323_s4 + $0x10] sm:$0xff] }
 0x291   :  { %v2465_v23 = vpop.f32.mrf.mxu0  ;;  %7376 = vmatprep.mubr.msk.f32.mxu1 %vm2870_vm3, %v2810_v19  ;;  %v4790_v54 = vrot.slane %v9182_v14, %v8434_v10  ;;  %v4797_v24 = vrot.slane %v9182_v14, %v9079_v27 }
 0x292   :  { %v2811_v46 = vmax.f32 %v2747_v9, 0.0  ;;  %v2679_v18 = vmul.f32 %v9052_v2, %v2465_v23  ;;  %4771 = vbcast.lane.b32.xlu1 %v4769_v61, 256  ;;  %v2752_v23 = vadd.f32 %v9059_v28, %v2681_v12 }
 0x293   :  { %v7311_v63 = vpop.f32.mrf.mxu0 }
 0x294   :  { %v2750_v0 = vadd.f32 %v9059_v28, %v2679_v18  ;;  %7377 = vmatmul.mubr.msk.f32.gmra.mxu1 %vm2870_vm3, %v2811_v46  ;;  %v2682_v38 = vmul.f32 %v7311_v63, %v9052_v2  ;;  %4778 = vbcast.lane.b32.xlu0 %v4776_v5, 256 }
 0x295   :  { %v2468_v19 = vpop.f32.mrf.mxu0  ;;  %7379 = vmatprep.mubr.msk.f32.mxu1 %vm2870_vm3, %v2812_v43 }
 0x296   :  { %v2814_v11 = vmax.f32 %v2750_v0, 0.0  ;;  %v2680_v9 = vmul.f32 %v9052_v2, %v2468_v19  ;;  %4785 = vbcast.lane.b32.xlu1 %v4783_v36, 256  ;;  %v2753_v43 = vadd.f32 %v9059_v28, %v2682_v38  ;;  %v2816_v0 = vmax.f32 %v2752_v23, 0.0 }
 0x297   :  { %v7314_v46 = vpop.f32.mrf.mxu0  ;;  %v4804_v36 = vrot.slane %v9182_v14, %v9068_v56  ;;  %v4811_v38 = vrot.slane %v9182_v14, %v9082_v53 }
 0x298   :  { %v2751_v18 = vadd.f32 %v9059_v28, %v2680_v9  ;;  %7380 = vmatmul.mubr.msk.f32.gmra.mxu1 %vm2870_vm3, %v2813_v25  ;;  %v2685_v19 = vmul.f32 %v7314_v46, %v9052_v2  ;;  %4792 = vbcast.lane.b32.xlu0 %v4790_v54, 256  ;;  %v2817_v9 = vmax.f32 %v2753_v43, 0.0  ;;  %v4825_v43 = vrot.slane %v9182_v14, %v9104_v26 }
 0x299   :  { %v2481_v61 = vpop.f32.mrf.mxu0  ;;  %7382 = vmatprep.mubr.msk.f32.mxu1 %vm2870_vm3, %v2814_v11 }
 0x29a   :  { %v2815_v63 = vmax.f32 %v2751_v18, 0.0  ;;  %v2683_v12 = vmul.f32 %v9052_v2, %v2481_v61  ;;  %4799 = vbcast.lane.b32.xlu1 %v4797_v24, 256  ;;  %v2756_v61 = vadd.f32 %v9059_v28, %v2685_v19  ;;  %v4818_v24 = vrot.slane %v9182_v14, %v9098_v22 }
 0x29b   :  { %v7315_v25 = vpop.f32.mrf.mxu0 }
 0x29c   :  { %v2754_v5 = vadd.f32 %v9059_v28, %v2683_v12  ;;  %7383 = vmatmul.mubr.msk.f32.gmra.mxu1 %vm2870_vm3, %v2815_v63  ;;  %v2686_v46 = vmul.f32 %v7315_v25, %v9052_v2  ;;  %4806 = vbcast.lane.b32.xlu0 %v4804_v36, 256 }
 0x29d   :  { %v2484_v11 = vpop.f32.mrf.mxu0  ;;  %7385 = vmatprep.mubr.msk.f32.mxu1 %vm2870_vm3, %v2816_v0 }
 0x29e   :  { %v2818_v23 = vmax.f32 %v2754_v5, 0.0  ;;  %v2684_v18 = vmul.f32 %v9052_v2, %v2484_v11  ;;  %4813 = vbcast.lane.b32.xlu1 %v4811_v38, 256  ;;  %v2757_v0 = vadd.f32 %v9059_v28, %v2686_v46  ;;  %v2820_v5 = vmax.f32 %v2756_v61, 0.0 }
 0x29f   :  { %v7318_v63 = vpop.f32.mrf.mxu0  ;;  %v4832_v38 = vrot.slane %v9182_v14, %v9114_v30  ;;  %v4839_v46 = vrot.slane %v9182_v14, %v9120_v15 }
 0x2a0   :  { %v2755_v54 = vadd.f32 %v9059_v28, %v2684_v18  ;;  %7386 = vmatmul.mubr.msk.f32.gmra.mxu1 %vm2870_vm3, %v2817_v9  ;;  %v2689_v11 = vmul.f32 %v7318_v63, %v9052_v2  ;;  %4820 = vbcast.lane.b32.xlu0 %v4818_v24, 256  ;;  %v2821_v18 = vmax.f32 %v2757_v0, 0.0  ;;  %v9227_v24 = vld [vmem:[%s11323_s4 + $0x18] sm:$0xff] }
 0x2a1   :  { %v2497_v12 = vpop.f32.mrf.mxu0  ;;  %7388 = vmatprep.mubr.msk.f32.mxu1 %vm2870_vm3, %v2818_v23  ;;  %v4846_v14 = vrot.slane %v9227_v24, %v8434_v10  ;;  %v4853_v0 = vrot.slane %v9227_v24, %v9079_v27 }
 0x2a2   :  { %v2819_v25 = vmax.f32 %v2755_v54, 0.0  ;;  %v2687_v19 = vmul.f32 %v9052_v2, %v2497_v12  ;;  %4827 = vbcast.lane.b32.xlu1 %v4825_v43, 256  ;;  %v2760_v12 = vadd.f32 %v9059_v28, %v2689_v11 }
 0x2a3   :  { %v7319_v9 = vpop.f32.mrf.mxu0 }
 0x2a4   :  { %v2758_v36 = vadd.f32 %v9059_v28, %v2687_v19  ;;  %7389 = vmatmul.mubr.msk.f32.gmra.mxu1 %vm2870_vm3, %v2819_v25  ;;  %v2690_v63 = vmul.f32 %v7319_v9, %v9052_v2  ;;  %4834 = vbcast.lane.b32.xlu0 %v4832_v38, 256 }
 0x2a5   :  { %v2500_v23 = vpop.f32.mrf.mxu0  ;;  %7391 = vmatprep.mubr.msk.f32.mxu1 %vm2870_vm3, %v2820_v5 }
 0x2a6   :  { %v2822_v61 = vmax.f32 %v2758_v36, 0.0  ;;  %v2688_v54 = vmul.f32 %v9052_v2, %v2500_v23  ;;  %4841 = vbcast.lane.b32.xlu1 %v4839_v46, 256  ;;  %v2761_v5 = vadd.f32 %v9059_v28, %v2690_v63  ;;  %v2824_v36 = vmax.f32 %v2760_v12, 0.0 }
 0x2a7   :  { %v7322_v25 = vpop.f32.mrf.mxu0  ;;  %v4867_v46 = vrot.slane %v9227_v24, %v9082_v53 }
 0x2a8   :  { %v2759_v19 = vadd.f32 %v9059_v28, %v2688_v54  ;;  %7392 = vmatmul.mubr.msk.f32.gmra.mxu1 %vm2870_vm3, %v2821_v18  ;;  %v2693_v23 = vmul.f32 %v7322_v25, %v9052_v2  ;;  %4848 = vbcast.lane.b32.xlu0 %v4846_v14, 256 }
 0x2a9   :  { %v2513_v43 = vpop.f32.mrf.mxu0  ;;  %7394 = vmatprep.mubr.msk.f32.mxu1 %vm2870_vm3, %v2822_v61  ;;  %v2825_v61 = vmax.f32 %v2761_v5, 0.0 }
 0x2aa   :  { %v2823_v9 = vmax.f32 %v2759_v19, 0.0  ;;  %v2691_v11 = vmul.f32 %v9052_v2, %v2513_v43  ;;  %4855 = vbcast.lane.b32.xlu1 %v4853_v0, 256  ;;  %v2764_v25 = vadd.f32 %v9059_v28, %v2693_v23 }
 0x2ab   :  { %v7323_v18 = vpop.f32.mrf.mxu0 }
 0x2ac   :  { %v2762_v38 = vadd.f32 %v9059_v28, %v2691_v11  ;;  %7395 = vmatmul.mubr.msk.f32.gmra.mxu1 %vm2870_vm3, %v2823_v9  ;;  %v2694_v19 = vmul.f32 %v7323_v18, %v9052_v2 }
 0x2ad   :  { %v2516_v54 = vpop.f32.mrf.mxu0  ;;  %7397 = vmatprep.mubr.msk.f32.mxu1 %vm2870_vm3, %v2824_v36  ;;  %v2828_v36 = vmax.f32 %v2764_v25, 0.0 }
 0x2ae   :  { %v2826_v63 = vmax.f32 %v2762_v38, 0.0  ;;  %v2692_v12 = vmul.f32 %v9052_v2, %v2516_v54  ;;  %4869 = vbcast.lane.b32.xlu1 %v4867_v46, 256  ;;  %v2765_v0 = vadd.f32 %v9059_v28, %v2694_v19 }
 0x2af   :  { %v7326_v43 = vpop.f32.mrf.mxu0 }
 0x2b0   :  { %v2763_v11 = vadd.f32 %v9059_v28, %v2692_v12  ;;  %7398 = vmatmul.mubr.msk.f32.gmra.mxu1 %vm2870_vm3, %v2825_v61  ;;  %v2697_v18 = vmul.f32 %v7326_v43, %v9052_v2 }
 0x2b1   :  { %v2529_v14 = vpop.f32.mrf.mxu0  ;;  %7400 = vmatprep.mubr.msk.f32.mxu1 %vm2870_vm3, %v2826_v63  ;;  %v2829_v63 = vmax.f32 %v2765_v0, 0.0 }
 0x2b2   :  { %v2827_v9 = vmax.f32 %v2763_v11, 0.0  ;;  %v2695_v5 = vmul.f32 %v9052_v2, %v2529_v14  ;;  %v2768_v12 = vadd.f32 %v9059_v28, %v2697_v18  ;;  %v4860_v18 = vrot.slane %v9227_v24, %v9068_v56 }
 0x2b3   :  { %v7327_v38 = vpop.f32.mrf.mxu0 }
 0x2b4   :  { %v2766_v23 = vadd.f32 %v9059_v28, %v2695_v5  ;;  %7401 = vmatmul.mubr.msk.f32.gmra.mxu1 %vm2870_vm3, %v2827_v9  ;;  %v2698_v54 = vmul.f32 %v7327_v38, %v9052_v2  ;;  %4862 = vbcast.lane.b32.xlu0 %v4860_v18, 256 }
 0x2b5   :  { %v2532_v61 = vpop.f32.mrf.mxu0  ;;  %7403 = vmatprep.mubr.msk.f32.mxu1 %vm2870_vm3, %v2828_v36  ;;  %v2832_v36 = vmax.f32 %v2768_v12, 0.0  ;;  %v4881_v12 = vrot.slane %v9227_v24, %v9104_v26 }
 0x2b6   :  { %v2830_v46 = vmax.f32 %v2766_v23, 0.0  ;;  %v2696_v19 = vmul.f32 %v9052_v2, %v2532_v61  ;;  %v2769_v43 = vadd.f32 %v9059_v28, %v2698_v54 }
 0x2b7   :  { %v7330_v11 = vpop.f32.mrf.mxu0  ;;  %4883 = vbcast.lane.b32.xlu1 %v4881_v12, 256 }
 0x2b8   :  { %v2767_v25 = vadd.f32 %v9059_v28, %v2696_v19  ;;  %7404 = vmatmul.mubr.msk.f32.gmra.mxu1 %vm2870_vm3, %v2829_v63  ;;  %v2701_v0 = vmul.f32 %v7330_v11, %v9052_v2  ;;  %v2833_v61 = vmax.f32 %v2769_v43, 0.0  ;;  %v4874_v43 = vrot.slane %v9227_v24, %v9098_v22 }
 0x2b9   :  { %v2545_v14 = vpop.f32.mrf.mxu0  ;;  %7406 = vmatprep.mubr.msk.f32.mxu1 %vm2870_vm3, %v2830_v46 }
 0x2ba   :  { %v2831_v9 = vmax.f32 %v2767_v25, 0.0  ;;  %v2699_v5 = vmul.f32 %v9052_v2, %v2545_v14  ;;  %v2772_v11 = vadd.f32 %v9059_v28, %v2701_v0  ;;  %4876 = vbcast.lane.b32.xlu0 %v4874_v43, 256  ;;  %v4895_v0 = vrot.slane %v9227_v24, %v9120_v15 }
 0x2bb   :  { %v7331_v38 = vpop.f32.mrf.mxu0 }
 0x2bc   :  { %v2770_v23 = vadd.f32 %v9059_v28, %v2699_v5  ;;  %7407 = vmatmul.mubr.msk.f32.gmra.mxu1 %vm2870_vm3, %v2831_v9  ;;  %v2702_v46 = vmul.f32 %v7331_v38, %v9052_v2  ;;  %4897 = vbcast.lane.b32.xlu1 %v4895_v0, 256 }
 0x2bd   :  { %v2548_v63 = vpop.f32.mrf.mxu0  ;;  %7409 = vmatprep.mubr.msk.f32.mxu1 %vm2870_vm3, %v2832_v36 }
 0x2be   :  { %v2834_v54 = vmax.f32 %v2770_v23, 0.0  ;;  %v2700_v19 = vmul.f32 %v9052_v2, %v2548_v63  ;;  %v2773_v5 = vadd.f32 %v9059_v28, %v2702_v46  ;;  %v2836_v23 = vmax.f32 %v2772_v11, 0.0 }
 0x2bf   :  { %v7334_v25 = vpop.f32.mrf.mxu0 }
 0x2c0   :  { %v2771_v14 = vadd.f32 %v9059_v28, %v2700_v19  ;;  %7410 = vmatmul.mubr.msk.f32.gmra.mxu1 %vm2870_vm3, %v2833_v61  ;;  %v2705_v18 = vmul.f32 %v7334_v25, %v9052_v2  ;;  %v2837_v46 = vmax.f32 %v2773_v5, 0.0  ;;  %v9296_v25 = vld [vmem:[%s11323_s4 + $0x20] sm:$0xff] }
 0x2c1   :  { %v2561_v9 = vpop.f32.mrf.mxu0  ;;  %7412 = vmatprep.mubr.msk.f32.mxu1 %vm2870_vm3, %v2834_v54  ;;  %v4888_v54 = vrot.slane %v9227_v24, %v9114_v30 }
 0x2c2   :  { %v2835_v36 = vmax.f32 %v2771_v14, 0.0  ;;  %v2703_v38 = vmul.f32 %v9052_v2, %v2561_v9  ;;  %v2776_v43 = vadd.f32 %v9059_v28, %v2705_v18 }
 0x2c3   :  { %v7335_v61 = vpop.f32.mrf.mxu0  ;;  %4890 = vbcast.lane.b32.xlu0 %v4888_v54, 256  ;;  %v4923_v54 = vrot.slane %v9296_v25, %v9082_v53 }
 0x2c4   :  { %v2774_v63 = vadd.f32 %v9059_v28, %v2703_v38  ;;  %7413 = vmatmul.mubr.msk.f32.gmra.mxu1 %vm2870_vm3, %v2835_v36  ;;  %v2706_v14 = vmul.f32 %v7335_v61, %v9052_v2  ;;  %v4909_v36 = vrot.slane %v9296_v25, %v9079_v27  ;;  %v4902_v38 = vrot.slane %v9296_v25, %v8434_v10 }
 0x2c5   :  { %v2564_v19 = vpop.f32.mrf.mxu0  ;;  %7415 = vmatprep.mubr.msk.f32.mxu1 %vm2870_vm3, %v2836_v23  ;;  %v2840_v61 = vmax.f32 %v2776_v43, 0.0 }
 0x2c6   :  { %v2838_v12 = vmax.f32 %v2774_v63, 0.0  ;;  %v2704_v11 = vmul.f32 %v9052_v2, %v2564_v19  ;;  %4911 = vbcast.lane.b32.xlu1 %v4909_v36, 256  ;;  %v2777_v0 = vadd.f32 %v9059_v28, %v2706_v14 }
 0x2c7   :  { %v7338_v9 = vpop.f32.mrf.mxu0  ;;  %4904 = vbcast.lane.b32.xlu0 %v4902_v38, 256 }
 0x2c8   :  { %v2775_v24 = vadd.f32 %v9059_v28, %v2704_v11  ;;  %7416 = vmatmul.mubr.msk.f32.gmra.mxu1 %vm2870_vm3, %v2837_v46  ;;  %v2709_v63 = vmul.f32 %v7338_v9, %v9052_v2  ;;  %v2841_v14 = vmax.f32 %v2777_v0, 0.0  ;;  %v4916_v0 = vrot.slane %v9296_v25, %v9068_v56 }
 0x2c9   :  { %v2577_v5 = vpop.f32.mrf.mxu0  ;;  %7418 = vmatprep.mubr.msk.f32.mxu1 %vm2870_vm3, %v2838_v12 }
 0x2ca   :  { %v2839_v23 = vmax.f32 %v2775_v24, 0.0  ;;  %v2707_v18 = vmul.f32 %v9052_v2, %v2577_v5  ;;  %4925 = vbcast.lane.b32.xlu1 %v4923_v54, 256  ;;  %v2780_v9 = vadd.f32 %v9059_v28, %v2709_v63 }
 0x2cb   :  { %v7339_v19 = vpop.f32.mrf.mxu0  ;;  %4918 = vbcast.lane.b32.xlu0 %v4916_v0, 256 }
 0x2cc   :  { %v2778_v46 = vadd.f32 %v9059_v28, %v2707_v18  ;;  %7419 = vmatmul.mubr.msk.f32.gmra.mxu1 %vm2870_vm3, %v2839_v23  ;;  %v2710_v12 = vmul.f32 %v7339_v19, %v9052_v2  ;;  %v2844_v19 = vmax.f32 %v2780_v9, 0.0 }
 0x2cd   :  { %v2580_v11 = vpop.f32.mrf.mxu0  ;;  %7421 = vmatprep.mubr.msk.f32.mxu1 %vm2870_vm3, %v2840_v61 }
 0x2ce   :  { %v2842_v36 = vmax.f32 %v2778_v46, 0.0  ;;  %v2708_v43 = vmul.f32 %v9052_v2, %v2580_v11  ;;  %v2781_v38 = vadd.f32 %v9059_v28, %v2710_v12  ;;  %v4937_v12 = vrot.slane %v9296_v25, %v9104_v26 }
 0x2cf   :  { %v7342_v24 = vpop.f32.mrf.mxu0 }
 0x2d0   :  { %v2779_v5 = vadd.f32 %v9059_v28, %v2708_v43  ;;  %7422 = vmatmul.mubr.msk.f32.gmra.mxu1 %vm2870_vm3, %v2841_v14  ;;  %v2713_v54 = vmul.f32 %v7342_v24, %v9052_v2  ;;  %v2845_v11 = vmax.f32 %v2781_v38, 0.0  ;;  %4939 = vbcast.lane.b32.xlu1 %v4937_v12, 256  ;;  %v4930_v24 = vrot.slane %v9296_v25, %v9098_v22 }
 0x2d1   :  { %v2593_v23 = vpop.f32.mrf.mxu0  ;;  %7424 = vmatprep.mubr.msk.f32.mxu1 %vm2870_vm3, %v2842_v36  ;;  %v4951_v38 = vrot.slane %v9296_v25, %v9120_v15 }
 0x2d2   :  { %v2843_v18 = vmax.f32 %v2779_v5, 0.0  ;;  %v2711_v61 = vmul.f32 %v9052_v2, %v2593_v23  ;;  %v2784_v5 = vadd.f32 %v9059_v28, %v2713_v54  ;;  %4932 = vbcast.lane.b32.xlu0 %v4930_v24, 256 }
 0x2d3   :  { %v7343_v63 = vpop.f32.mrf.mxu0 }
 0x2d4   :  { %v2782_v46 = vadd.f32 %v9059_v28, %v2711_v61  ;;  %7425 = vmatmul.mubr.msk.f32.gmra.mxu1 %vm2870_vm3, %v2843_v18  ;;  %v2714_v43 = vmul.f32 %v7343_v63, %v9052_v2  ;;  %4953 = vbcast.lane.b32.xlu1 %v4951_v38, 256 }
 0x2d5   :  { %v2596_v14 = vpop.f32.mrf.mxu0  ;;  %7427 = vmatprep.mubr.msk.f32.mxu1 %vm2870_vm3, %v2844_v19 }
 0x2d6   :  { %v2846_v36 = vmax.f32 %v2782_v46, 0.0  ;;  %v2712_v9 = vmul.f32 %v9052_v2, %v2596_v14  ;;  %v2785_v0 = vadd.f32 %v9059_v28, %v2714_v43  ;;  %v2848_v46 = vmax.f32 %v2784_v5, 0.0 }
 0x2d7   :  { %v7346_v23 = vpop.f32.mrf.mxu0 }
 0x2d8   :  { %v2783_v18 = vadd.f32 %v9059_v28, %v2712_v9  ;;  %7428 = vmatmul.mubr.msk.f32.gmra.mxu1 %vm2870_vm3, %v2845_v11  ;;  %v2717_v54 = vmul.f32 %v7346_v23, %v9052_v2  ;;  %v2849_v9 = vmax.f32 %v2785_v0, 0.0  ;;  %v4944_v23 = vrot.slane %v9296_v25, %v9114_v30 }
 0x2d9   :  { %v2609_v61 = vpop.f32.mrf.mxu0  ;;  %7430 = vmatprep.mubr.msk.f32.mxu1 %vm2870_vm3, %v2846_v36 }
 0x2da   :  { %v2847_v19 = vmax.f32 %v2783_v18, 0.0  ;;  %v2715_v63 = vmul.f32 %v9052_v2, %v2609_v61  ;;  %v2788_v18 = vadd.f32 %v9059_v28, %v2717_v54  ;;  %4946 = vbcast.lane.b32.xlu0 %v4944_v23, 256 }
 0x2db   :  { %v7347_v12 = vpop.f32.mrf.mxu0 }
 0x2dc   :  { %v2786_v14 = vadd.f32 %v9059_v28, %v2715_v63  ;;  %7431 = vmatmul.mubr.msk.f32.gmra.mxu1 %vm2870_vm3, %v2847_v19  ;;  %v2718_v36 = vmul.f32 %v7347_v12, %v9052_v2 }
 0x2dd   :  { %v2612_v11 = vpop.f32.mrf.mxu0  ;;  %7433 = vmatprep.mubr.msk.f32.mxu1 %vm2870_vm3, %v2848_v46  ;;  %v2852_v46 = vmax.f32 %v2788_v18, 0.0  ;;  %v4672_v18 = vld [vmem:[%s11323_s4 + $0x28] sm:$0xff] }
 0x2de   :  { %v2850_v24 = vmax.f32 %v2786_v14, 0.0  ;;  %v2716_v43 = vmul.f32 %v9052_v2, %v2612_v11  ;;  %v2789_v0 = vadd.f32 %v9059_v28, %v2718_v36  ;;  %v4965_v23 = vrot.slane %v4672_v18, %v9079_v27 }
 0x2df   :  { %v7350_v38 = vpop.f32.mrf.mxu0 }
 0x2e0   :  { %v2787_v5 = vadd.f32 %v9059_v28, %v2716_v43  ;;  %7434 = vmatmul.mubr.msk.f32.gmra.mxu1 %vm2870_vm3, %v2849_v9  ;;  %v2721_v54 = vmul.f32 %v7350_v38, %v9052_v2  ;;  %v2853_v9 = vmax.f32 %v2789_v0, 0.0  ;;  %4967 = vbcast.lane.b32.xlu1 %v4965_v23, 256 }
 0x2e1   :  { %v2625_v61 = vpop.f32.mrf.mxu0  ;;  %7436 = vmatprep.mubr.msk.f32.mxu1 %vm2870_vm3, %v2850_v24 }
 0x2e2   :  { %v2851_v19 = vmax.f32 %v2787_v5, 0.0  ;;  %v2719_v63 = vmul.f32 %v9052_v2, %v2625_v61  ;;  %v2792_v43 = vadd.f32 %v9059_v28, %v2721_v54 }
 0x2e3   :  { %v7351_v12 = vpop.f32.mrf.mxu0 }
 0x2e4   :  { %v2790_v14 = vadd.f32 %v9059_v28, %v2719_v63  ;;  %7437 = vmatmul.mubr.msk.f32.gmra.mxu1 %vm2870_vm3, %v2851_v19  ;;  %v2722_v11 = vmul.f32 %v7351_v12, %v9052_v2 }
 0x2e5   :  { %v2628_v25 = vpop.f32.mrf.mxu0  ;;  %7439 = vmatprep.mubr.msk.f32.mxu1 %vm2870_vm3, %v2852_v46  ;;  %v2856_v46 = vmax.f32 %v2792_v43, 0.0  ;;  %v4979_v43 = vrot.slane %v4672_v18, %v9082_v53 }
 0x2e6   :  { %v2854_v24 = vmax.f32 %v2790_v14, 0.0  ;;  %v2720_v36 = vmul.f32 %v9052_v2, %v2628_v25  ;;  %v2793_v61 = vadd.f32 %v9059_v28, %v2722_v11  ;;  %v4958_v25 = vrot.slane %v4672_v18, %v8434_v10 }
 0x2e7   :  { %v7354_v5 = vpop.f32.mrf.mxu0  ;;  %4981 = vbcast.lane.b32.xlu1 %v4979_v43, 256 }
 0x2e8   :  { %v2791_v38 = vadd.f32 %v9059_v28, %v2720_v36  ;;  %7440 = vmatmul.mubr.msk.f32.gmra.mxu1 %vm2870_vm3, %v2853_v9  ;;  %v2725_v54 = vmul.f32 %v7354_v5, %v9052_v2  ;;  %v2857_v9 = vmax.f32 %v2793_v61, 0.0  ;;  %4960 = vbcast.lane.b32.xlu0 %v4958_v25, 256  ;;  %v4972_v61 = vrot.slane %v4672_v18, %v9068_v56 }
 0x2e9   :  { %v2641_v19 = vpop.f32.mrf.mxu0  ;;  %7442 = vmatprep.mubr.msk.f32.mxu1 %vm2870_vm3, %v2854_v24 }
 0x2ea   :  { %v2855_v0 = vmax.f32 %v2791_v38, 0.0  ;;  %v2723_v63 = vmul.f32 %v9052_v2, %v2641_v19  ;;  %v2796_v5 = vadd.f32 %v9059_v28, %v2725_v54  ;;  %v4986_v54 = vrot.slane %v4672_v18, %v9098_v22 }
 0x2eb   :  { %v7355_v12 = vpop.f32.mrf.mxu0 }
 0x2ec   :  { %v2794_v14 = vadd.f32 %v9059_v28, %v2723_v63  ;;  %7443 = vmatmul.mubr.msk.f32.gmra.mxu1 %vm2870_vm3, %v2855_v0  ;;  %v2726_v24 = vmul.f32 %v7355_v12, %v9052_v2  ;;  %4974 = vbcast.lane.b32.xlu0 %v4972_v61, 256  ;;  %v2860_v63 = vmax.f32 %v2796_v5, 0.0  ;;  %v5007_v12 = vrot.slane %v4672_v18, %v9120_v15  ;;  %v4674_v5 = vld [vmem:[%s11323_s4 + $0x38] sm:$0xff] }
 0x2ed   :  { %v2644_v36 = vpop.f32.mrf.mxu0  ;;  %7445 = vmatprep.mubr.msk.f32.mxu1 %vm2870_vm3, %v2856_v46  ;;  %v5070_v61 = vrot.slane %v4674_v5, %v8434_v10 }
 0x2ee   :  { %v2858_v11 = vmax.f32 %v2794_v14, 0.0  ;;  %v2724_v38 = vmul.f32 %v9052_v2, %v2644_v36  ;;  %v2797_v19 = vadd.f32 %v9059_v28, %v2726_v24  ;;  %v4993_v2 = vrot.slane %v4672_v18, %v9104_v26  ;;  %v4673_v14 = vld [vmem:[%s11323_s4 + $0x30] sm:$0xff] }
 0x2ef   :  { %v5021_v25 = vrot.slane %v4673_v14, %v9079_v27  ;;  %v5035_v36 = vrot.slane %v4673_v14, %v9082_v53  ;;  %v5049_v24 = vrot.slane %v4673_v14, %v9104_v26  ;;  %v5056_v43 = vrot.slane %v4673_v14, %v9114_v30 }
 0x2f0   :  { %v2795_v23 = vadd.f32 %v9059_v28, %v2724_v38  ;;  %7446 = vmatmul.mubr.msk.f32.gmra.mxu1 %vm2870_vm3, %v2857_v9  ;;  %4995 = vbcast.lane.b32.xlu1 %v4993_v2, 256  ;;  %v2861_v46 = vmax.f32 %v2797_v19, 0.0  ;;  %v5000_v28 = vrot.slane %v4672_v18, %v9114_v30  ;;  %v5014_v9 = vrot.slane %v4673_v14, %v8434_v10  ;;  %v9412_v19 = vld [vmem:[%s11324_s14] ss:$0 sm:$0xff] }
 0x2f1   :  { %7448 = vmatprep.mubr.msk.f32.mxu1 %vm2870_vm3, %v2858_v11  ;;  %4988 = vbcast.lane.b32.xlu0 %v4986_v54, 256  ;;  %v5028_v11 = vrot.slane %v4673_v14, %v9068_v56  ;;  %v5042_v18 = vrot.slane %v4673_v14, %v9098_v22  ;;  %v5063_v38 = vrot.slane %v4673_v14, %v9120_v15 }
 0x2f2   :  { %v2859_v0 = vmax.f32 %v2795_v23, 0.0  ;;  %v5077_v23 = vrot.slane %v4674_v5, %v9079_v27  ;;  %v5091_v14 = vrot.slane %v4674_v5, %v9082_v53 }
 0x2f4   :  { %7449 = vmatmul.mubr.msk.f32.gmra.mxu1 %vm2870_vm3, %v2859_v0  ;;  %5009 = vbcast.lane.b32.xlu1 %v5007_v12, 256 }
 0x2f5   :  { %7451 = vmatprep.mubr.msk.f32.mxu1 %vm2870_vm3, %v2860_v63  ;;  %5002 = vbcast.lane.b32.xlu0 %v5000_v28, 256 }
 0x2f8   :  { %7452 = vmatmul.mubr.msk.f32.gmra.mxu1 %vm2870_vm3, %v2861_v46  ;;  %5023 = vbcast.lane.b32.xlu1 %v5021_v25, 256 }
 0x2f9   :  { %5016 = vbcast.lane.b32.xlu0 %v5014_v9, 256 }
 0x2fc   :  { %5037 = vbcast.lane.b32.xlu1 %v5035_v36, 256 }
 0x2fd   :  { %5030 = vbcast.lane.b32.xlu0 %v5028_v11, 256 }
 0x300   :  { %5051 = vbcast.lane.b32.xlu1 %v5049_v24, 256 }
 0x301   :  { %5044 = vbcast.lane.b32.xlu0 %v5042_v18, 256 }
 0x304   :  { %5065 = vbcast.lane.b32.xlu1 %v5063_v38, 256 }
 0x305   :  { %5058 = vbcast.lane.b32.xlu0 %v5056_v43, 256 }
 0x308   :  { %5079 = vbcast.lane.b32.xlu1 %v5077_v23, 256 }
 0x309   :  { %5072 = vbcast.lane.b32.xlu0 %v5070_v61, 256 }
 0x30c   :  { %5093 = vbcast.lane.b32.xlu1 %v5091_v14, 256 }
 0x33c   :  { %v7360_v0 = vpop.f32.mrf.mxu1 }
 0x33d   :  { %v3138_v63 = vadd.f32 %v7360_v0, %v9412_v19 }
 0x33e   :  { %v3132_v2 = vpop.f32.mrf.mxu1 }
 0x33f   :  { %v3458_v46 = vsel %vm2870_vm3, %v3138_v63, -inf  ;;  %v9417_v54 = vadd.f32 %v9412_v19, %v3132_v2 }
 0x340   :  { %v3459_v12 = vrot.slane %v3458_v46, 4  ;;  %v7363_v27 = vpop.f32.mrf.mxu1 }
 0x341   :  { %v3451_v10 = vsel %vm2870_vm3, %v9417_v54, -inf  ;;  %v9422_v28 = vadd.f32 %v7363_v27, %v9412_v19 }
 0x342   :  { %v3460_v25 = vmax.f32 %v3458_v46, %v3459_v12  ;;  %v3452_v9 = vrot.slane %v3451_v10, 4  ;;  %v3142_v36 = vpop.f32.mrf.mxu1 }
 0x343   :  { %v3472_v11 = vsel %vm2870_vm3, %v9422_v28, -inf  ;;  %v9428_v24 = vadd.f32 %v9412_v19, %v3142_v36 }
 0x344   :  { %v3461_v18 = vrot.slane %v3460_v25, 2  ;;  %v3453_v38 = vmax.f32 %v3451_v10, %v3452_v9  ;;  %v3473_v43 = vrot.slane %v3472_v11, 4  ;;  %v7366_v23 = vpop.f32.mrf.mxu1  ;;  %v5084_v10 = vrot.slane %v4674_v5, %v9068_v56 }
 0x345   :  { %v3465_v61 = vsel %vm2870_vm3, %v9428_v24, -inf  ;;  %v9433_v0 = vadd.f32 %v7366_v23, %v9412_v19 }
 0x346   :  { %v3462_v53 = vmax.f32 %v3460_v25, %v3461_v18  ;;  %v3454_v2 = vrot.slane %v3453_v38, 2  ;;  %v3474_v46 = vmax.f32 %v3472_v11, %v3473_v43  ;;  %v3466_v12 = vrot.slane %v3465_v61, 4  ;;  %v3152_v27 = vpop.f32.mrf.mxu1  ;;  %5086 = vbcast.lane.b32.xlu0 %v5084_v10, 256 }
 0x347   :  { %v3486_v36 = vsel %vm2870_vm3, %v9433_v0, -inf  ;;  %v9438_v14 = vadd.f32 %v9412_v19, %v3152_v27  ;;  %v5105_v18 = vrot.slane %v4674_v5, %v9104_v26 }
 0x348   :  { %v3463_v9 = vrot.slane %v3462_v53, 1  ;;  %v3455_v34 = vmax.f32 %v3453_v38, %v3454_v2  ;;  %v3475_v1 = vrot.slane %v3474_v46, 2  ;;  %v3467_v55 = vmax.f32 %v3465_v61, %v3466_v12  ;;  %v7369_v4 = vpop.f32.mrf.mxu1 }
 0x349   :  { %v3487_v23 = vrot.slane %v3486_v36, 4  ;;  %v3479_v25 = vsel %vm2870_vm3, %v9438_v14, -inf  ;;  %v9444_v11 = vadd.f32 %v7369_v4, %v9412_v19  ;;  %5107 = vbcast.lane.b32.xlu1 %v5105_v18, 256 }
 0x34a   :  { %v3464_v43 = vmax.f32 %v3462_v53, %v3463_v9  ;;  %v3456_v27 = vrot.slane %v3455_v34, 1  ;;  %v3476_v62 = vmax.f32 %v3474_v46, %v3475_v1  ;;  %v3468_v13 = vrot.slane %v3467_v55, 2  ;;  %v3162_v56 = vpop.f32.mrf.mxu1 }
 0x34b   :  { %v3488_v17 = vmax.f32 %v3486_v36, %v3487_v23  ;;  %v3480_v38 = vrot.slane %v3479_v25, 4  ;;  %v3500_v61 = vsel %vm2870_vm3, %v9444_v11, -inf  ;;  %v9450_v2 = vadd.f32 %v9412_v19, %v3162_v56 }
 0x34c   :  { %v3900_v12 = vsub.f32 %v3138_v63, %v3464_v43  ;;  %v3457_v4 = vmax.f32 %v3455_v34, %v3456_v27  ;;  %v3477_v50 = vrot.slane %v3476_v62, 1  ;;  %v3469_v10 = vmax.f32 %v3467_v55, %v3468_v13  ;;  %v7372_v45 = vpop.f32.mrf.mxu1 }
 0x34d   :  { %v3489_v26 = vrot.slane %v3488_v17, 2  ;;  %v3481_v5 = vmax.f32 %v3479_v25, %v3480_v38  ;;  %v3501_v53 = vrot.slane %v3500_v61, 4  ;;  %v3493_v1 = vsel %vm2870_vm3, %v9450_v2, -inf }
 0x34e   :  { %v3965_v46 = vmul.f32 1.442695, %v3900_v12  ;;  %v3899_v36 = vsub.f32 %v9417_v54, %v3457_v4  ;;  %v3478_v9 = vmax.f32 %v3476_v62, %v3477_v50  ;;  %v3470_v23 = vrot.slane %v3469_v10, 1  ;;  %v3172_v37 = vpop.f32.mrf.mxu1 }
 0x34f   :  { %v3490_v56 = vmax.f32 %v3488_v17, %v3489_v26  ;;  %v3482_v32 = vrot.slane %v3481_v5, 2  ;;  %v3502_v18 = vmax.f32 %v3500_v61, %v3501_v53  ;;  %v3494_v63 = vrot.slane %v3493_v1, 4 }
 0x350   :  { %7565 = vpow2.f32 %v3965_v46  ;;  %v3963_v34 = vmul.f32 1.442695, %v3899_v36  ;;  %v3902_v13 = vsub.f32 %v9422_v28, %v3478_v9  ;;  %v3471_v55 = vmax.f32 %v3469_v10, %v3470_v23  ;;  %v7375_v25 = vpop.f32.mrf.mxu1 }
 0x351   :  { %v3491_v43 = vrot.slane %v3490_v56, 1  ;;  %v3483_v27 = vmax.f32 %v3481_v5, %v3482_v32  ;;  %v3503_v38 = vrot.slane %v3502_v18, 2  ;;  %v3495_v52 = vmax.f32 %v3493_v1, %v3494_v63 }
 0x352   :  { %7567 = vpow2.f32 %v3963_v34  ;;  %v3969_v12 = vmul.f32 1.442695, %v3902_v13  ;;  %v3901_v50 = vsub.f32 %v9428_v24, %v3471_v55  ;;  %v9458_v62 = vadd.f32 %v7372_v45, %v9412_v19  ;;  %v3182_v17 = vpop.f32.mrf.mxu1 }
 0x353   :  { %v3492_v54 = vmax.f32 %v3490_v56, %v3491_v43  ;;  %v3484_v61 = vrot.slane %v3483_v27, 1  ;;  %v3504_v4 = vmax.f32 %v3502_v18, %v3503_v38  ;;  %v3496_v26 = vrot.slane %v3495_v52, 2 }
 0x354   :  { %7569 = vpow2.f32 %v3969_v12  ;;  %v3967_v28 = vmul.f32 1.442695, %v3901_v50  ;;  %v3514_v10 = vsel %vm2870_vm3, %v9458_v62, -inf  ;;  %v9463_v32 = vadd.f32 %v9412_v19, %v3172_v37  ;;  %v7378_v45 = vpop.f32.mrf.mxu1 }
 0x355   :  { %v3904_v5 = vsub.f32 %v9433_v0, %v3492_v54  ;;  %v3485_v53 = vmax.f32 %v3483_v27, %v3484_v61  ;;  %v3505_v24 = vrot.slane %v3504_v4, 1  ;;  %v3497_v1 = vmax.f32 %v3495_v52, %v3496_v26 }
 0x356   :  { %7571 = vpow2.f32 %v3967_v28  ;;  %v3515_v46 = vrot.slane %v3514_v10, 4  ;;  %v3507_v36 = vsel %vm2870_vm3, %v9463_v32, -inf  ;;  %v9469_v9 = vadd.f32 %v7375_v25, %v9412_v19  ;;  %v3192_v25 = vpop.f32.mrf.mxu1 }
 0x357   :  { %v3973_v23 = vmul.f32 1.442695, %v3904_v5  ;;  %v3903_v56 = vsub.f32 %v9438_v14, %v3485_v53  ;;  %v3506_v18 = vmax.f32 %v3504_v4, %v3505_v24  ;;  %v3498_v37 = vrot.slane %v3497_v1, 1 }
 0x358   :  { %v3516_v63 = vmax.f32 %v3514_v10, %v3515_v46  ;;  %v3508_v34 = vrot.slane %v3507_v36, 4  ;;  %v3528_v0 = vsel %vm2870_vm3, %v9469_v9, -inf  ;;  %v9475_v52 = vadd.f32 %v9412_v19, %v3182_v17  ;;  %v9486_v53 = vpop.f32.mrf.mxu1 }
 0x359   :  { %7573 = vpow2.f32 %v3973_v23  ;;  %v3971_v13 = vmul.f32 1.442695, %v3903_v56  ;;  %v3906_v55 = vsub.f32 %v9444_v11, %v3506_v18  ;;  %v3499_v43 = vmax.f32 %v3497_v1, %v3498_v37 }
 0x35a   :  { %v3517_v27 = vrot.slane %v3516_v63, 2  ;;  %v3509_v38 = vmax.f32 %v3507_v36, %v3508_v34  ;;  %v3529_v12 = vrot.slane %v3528_v0, 4  ;;  %v3521_v14 = vsel %vm2870_vm3, %v9475_v52, -inf }
 0x35b   :  { %7575 = vpow2.f32 %v3971_v13  ;;  %v3977_v50 = vmul.f32 1.442695, %v3906_v55  ;;  %v3905_v54 = vsub.f32 %v9450_v2, %v3499_v43  ;;  %v3522_v61 = vrot.slane %v3521_v14, 4 }
 0x35c   :  { %v3518_v4 = vmax.f32 %v3516_v63, %v3517_v27  ;;  %v3510_v17 = vrot.slane %v3509_v38, 2  ;;  %v3530_v26 = vmax.f32 %v3528_v0, %v3529_v12  ;;  %v9482_v28 = vadd.f32 %v7378_v45, %v9412_v19  ;;  %v190_v0 = vld [vmem:[%s11325_s3 + $0x10] sm:$0xff] }
 0x35d   :  { %v9484_v11 = vpop.eup %7565  ;;  %7577 = vpow2.f32 %v3977_v50  ;;  %v3975_v10 = vmul.f32 1.442695, %v3905_v54  ;;  %v3523_v5 = vmax.f32 %v3521_v14, %v3522_v61  ;;  %v188_v61 = vld [vmem:[%s11325_s3] sm:$0xff] }
 0x35e   :  { %v4098_v24 = vsel %vm2870_vm3, %v9484_v11, 0.0  ;;  %v3519_v1 = vrot.slane %v3518_v4, 1  ;;  %v3511_v46 = vmax.f32 %v3509_v38, %v3510_v17  ;;  %v3531_v2 = vrot.slane %v3530_v26, 2  ;;  %v3202_v38 = vpop.f32.mrf.mxu1 }
 0x35f   :  { %v9490_v36 = vpop.eup %7567  ;;  %v4099_v23 = vrot.slane %v4098_v24, 4  ;;  %7579 = vpow2.f32 %v3975_v10  ;;  %v3524_v56 = vrot.slane %v3523_v5, 2  ;;  %v3542_v45 = vsel %vm2870_vm3, %v9482_v28, -inf }
 0x360   :  { %v4091_v18 = vsel %vm2870_vm3, %v9490_v36, 0.0  ;;  %v3520_v37 = vmax.f32 %v3518_v4, %v3519_v1  ;;  %v3512_v63 = vrot.slane %v3511_v46, 1  ;;  %v3532_v34 = vmax.f32 %v3530_v26, %v3531_v2 }
 0x361   :  { %v9499_v13 = vpop.eup %7569  ;;  %v4092_v55 = vrot.slane %v4091_v18, 4  ;;  %v3525_v43 = vmax.f32 %v3523_v5, %v3524_v56  ;;  %v3543_v27 = vrot.slane %v3542_v45, 4  ;;  %v9509_v17 = vadd.f32 %v4099_v23, %v4098_v24 }
 0x362   :  { %v4112_v12 = vsel %vm2870_vm3, %v9499_v13, 0.0  ;;  %v3908_v14 = vsub.f32 %v9458_v62, %v3520_v37  ;;  %v3513_v50 = vmax.f32 %v3511_v46, %v3512_v63  ;;  %v3533_v54 = vrot.slane %v3532_v34, 1  ;;  %v7384_v63 = vpop.f32.mrf.mxu1 }
 0x363   :  { %v9507_v4 = vpop.eup %7571  ;;  %v3526_v26 = vrot.slane %v3525_v43, 1  ;;  %v9512_v10 = vadd.f32 %v8470_v33, %v190_v0  ;;  %v4113_v5 = vrot.slane %v4112_v12, 4  ;;  %v9515_v62 = vadd.f32 %v4092_v55, %v4091_v18 }
 0x364   :  { %v3981_v1 = vmul.f32 1.442695, %v3908_v14  ;;  %v3907_v2 = vsub.f32 %v9463_v32, %v3513_v50  ;;  %v3534_v56 = vmax.f32 %v3532_v34, %v3533_v54  ;;  %v9518_v37 = vadd.f32 %v9412_v19, %v3192_v25  ;;  %v3212_v54 = vpop.f32.mrf.mxu1 }
 0x365   :  { %11506 = vst [vmem:[#allocation64_spill] sm:$0xff] %v9512_v10  ;;  %v3527_v46 = vmax.f32 %v3525_v43, %v3526_v26  ;;  %v9521_v51 = vadd.f32 %v8464_v29, %v188_v61  ;;  %v3544_v0 = vmax.f32 %v3542_v45, %v3543_v27  ;;  %v4105_v18 = vsel %vm2870_vm3, %v9507_v4, 0.0 }
 0x366   :  { %v9523_v24 = vpop.eup %7573  ;;  %7581 = vpow2.f32 %v3981_v1  ;;  %v3979_v33 = vmul.f32 1.442695, %v3907_v2  ;;  %v3910_v23 = vsub.f32 %v9469_v9, %v3534_v56  ;;  %v9534_v29 = vadd.f32 %v4113_v5, %v4112_v12  ;;  %v7387_v32 = vpop.f32.mrf.mxu1 }
 0x367   :  { %11507 = vst [vmem:[#allocation65_spill] sm:$0xff] %v9521_v51  ;;  %v4126_v25 = vsel %vm2870_vm3, %v9523_v24, 0.0  ;;  %v3909_v34 = vsub.f32 %v9475_v52, %v3527_v46  ;;  %v3545_v14 = vrot.slane %v3544_v0, 2  ;;  %v3535_v50 = vsel %vm2870_vm3, %v9518_v37, -inf }
 0x368   :  { %v9532_v55 = vpop.eup %7575  ;;  %7583 = vpow2.f32 %v3979_v33  ;;  %v3985_v43 = vmul.f32 1.442695, %v3910_v23  ;;  %v4106_v52 = vrot.slane %v4105_v18, 4  ;;  %v4127_v26 = vrot.slane %v4126_v25, 4 }
 0x369   :  { %v4119_v45 = vsel %vm2870_vm3, %v9532_v55, 0.0  ;;  %v3983_v27 = vmul.f32 1.442695, %v3909_v34  ;;  %v3546_v12 = vmax.f32 %v3544_v0, %v3545_v14  ;;  %v3536_v1 = vrot.slane %v3535_v50, 4 }
 0x36a   :  { %v9541_v61 = vpop.eup %7577  ;;  %7585 = vpow2.f32 %v3985_v43  ;;  %v9547_v2 = vadd.f32 %v9486_v53, %v9412_v19  ;;  %v4120_v33 = vrot.slane %v4119_v45, 4  ;;  %v9559_v53 = vadd.f32 %v4106_v52, %v4105_v18 }
 0x36b   :  { %v4140_v5 = vsel %vm2870_vm3, %v9541_v61, 0.0  ;;  %7587 = vpow2.f32 %v3983_v27  ;;  %v3547_v34 = vrot.slane %v3546_v12, 1  ;;  %v3537_v0 = vmax.f32 %v3535_v50, %v3536_v1 }
 0x36c   :  { %v9549_v56 = vpop.eup %7579  ;;  %v4141_v23 = vrot.slane %v4140_v5, 4  ;;  %v3556_v14 = vsel %vm2870_vm3, %v9547_v2, -inf  ;;  %v9557_v27 = vadd.f32 %v9412_v19, %v3202_v38  ;;  %v9561_v9 = vadd.f32 %v4127_v26, %v4126_v25 }
 0x36d   :  { %v4133_v43 = vsel %vm2870_vm3, %v9549_v56, 0.0  ;;  %v3548_v46 = vmax.f32 %v3546_v12, %v3547_v34  ;;  %v3538_v44 = vrot.slane %v3537_v0, 2  ;;  %v3557_v57 = vrot.slane %v3556_v14, 4  ;;  %v3222_v34 = vpop.f32.mrf.mxu1 }
 0x36e   :  { %v4134_v48 = vrot.slane %v4133_v43, 4  ;;  %v3549_v6 = vsel %vm2870_vm3, %v9557_v27, -inf  ;;  %v9566_v50 = vadd.f32 %v7384_v63, %v9412_v19  ;;  %v9568_v1 = vadd.f32 %v4120_v33, %v4119_v45 }
 0x36f   :  { %v9570_v47 = vadd.f32 %v4141_v23, %v4140_v5  ;;  %v3912_v38 = vsub.f32 %v9482_v28, %v3548_v46  ;;  %v3550_v18 = vrot.slane %v3549_v6, 4  ;;  %v3539_v52 = vmax.f32 %v3537_v0, %v3538_v44 }
 0x370   :  { %v3558_v25 = vmax.f32 %v3556_v14, %v3557_v57  ;;  %v3570_v26 = vsel %vm2870_vm3, %v9566_v50, -inf  ;;  %v9576_v12 = vadd.f32 %v9412_v19, %v3212_v54  ;;  %v9578_v42 = vadd.f32 %v4134_v48, %v4133_v43 }
 0x371   :  { %v3989_v63 = vmul.f32 1.442695, %v3912_v38  ;;  %v3551_v7 = vmax.f32 %v3549_v6, %v3550_v18  ;;  %v3571_v45 = vrot.slane %v3570_v26, 4  ;;  %v3540_v5 = vrot.slane %v3539_v52, 1  ;;  %v7390_v38 = vpop.f32.mrf.mxu1 }
 0x372   :  { %v3559_v23 = vrot.slane %v3558_v25, 2  ;;  %v3563_v44 = vsel %vm2870_vm3, %v9576_v12, -inf  ;;  %v9585_v57 = vadd.f32 %v7387_v32, %v9412_v19  ;;  %v9617_v20 = vadd.f32 %v9412_v19, %v3222_v34 }
 0x373   :  { %v9580_v33 = vpop.eup %7581  ;;  %7589 = vpow2.f32 %v3989_v63  ;;  %v3552_v54 = vrot.slane %v3551_v7, 2  ;;  %v3572_v48 = vmax.f32 %v3570_v26, %v3571_v45  ;;  %v3541_v43 = vmax.f32 %v3539_v52, %v3540_v5 }
 0x374   :  { %v4154_v28 = vsel %vm2870_vm3, %v9580_v33, 0.0  ;;  %v3560_v0 = vmax.f32 %v3558_v25, %v3559_v23  ;;  %v3564_v14 = vrot.slane %v3563_v44, 4  ;;  %v3584_v63 = vsel %vm2870_vm3, %v9585_v57, -inf }
 0x375   :  { %v9589_v46 = vpop.eup %7583  ;;  %v4155_v6 = vrot.slane %v4154_v28, 4  ;;  %v3553_v32 = vmax.f32 %v3551_v7, %v3552_v54  ;;  %v3573_v16 = vrot.slane %v3572_v48, 2  ;;  %v3911_v26 = vsub.f32 %v9518_v37, %v3541_v43 }
 0x376   :  { %v4147_v21 = vsel %vm2870_vm3, %v9589_v46, 0.0  ;;  %v3561_v45 = vrot.slane %v3560_v0, 1  ;;  %v3565_v18 = vmax.f32 %v3563_v44, %v3564_v14 }
 0x377   :  { %v9594_v58 = vpop.eup %7585  ;;  %v9597_v60 = vadd.f32 %v4155_v6, %v4154_v28  ;;  %v4148_v25 = vrot.slane %v4147_v21, 4  ;;  %v3554_v5 = vrot.slane %v3553_v32, 1  ;;  %v3574_v23 = vmax.f32 %v3572_v48, %v3573_v16  ;;  %v3232_v28 = vpop.f32.mrf.mxu1 }
 0x378   :  { %v9600_v52 = vpop.eup %7587  ;;  %v4168_v37 = vsel %vm2870_vm3, %v9594_v58, 0.0  ;;  %v3987_v6 = vmul.f32 1.442695, %v3911_v26  ;;  %v3562_v43 = vmax.f32 %v3560_v0, %v3561_v45  ;;  %v3566_v48 = vrot.slane %v3565_v18, 2 }
 0x379   :  { %11508 = vst [vmem:[#allocation66_spill] sm:$0xff] %v9600_v52  ;;  %v3555_v40 = vmax.f32 %v3553_v32, %v3554_v5  ;;  %v4161_v16 = vsel %vm2870_vm3, %v9600_v52, 0.0  ;;  %v3575_v44 = vrot.slane %v3574_v23, 1  ;;  %v9612_v14 = vadd.f32 %v4148_v25, %v4147_v21  ;;  %v7393_v0 = vpop.f32.mrf.mxu1 }
 0x37a   :  { %7591 = vpow2.f32 %v3987_v6  ;;  %v3914_v54 = vsub.f32 %v9547_v2, %v3562_v43  ;;  %v4169_v41 = vrot.slane %v4168_v37, 4  ;;  %v3567_v35 = vmax.f32 %v3565_v18, %v3566_v48 }
 0x37b   :  { %v3913_v7 = vsub.f32 %v9557_v27, %v3555_v40  ;;  %v3576_v49 = vmax.f32 %v3574_v23, %v3575_v44  ;;  %v3585_v26 = vrot.slane %v3584_v63, 4  ;;  %v4162_v32 = vrot.slane %v4161_v16, 4 }
 0x37c   :  { %v3993_v45 = vmul.f32 1.442695, %v3914_v54  ;;  %v3568_v21 = vrot.slane %v3567_v35, 1  ;;  %v9621_v6 = vadd.f32 %v7390_v38, %v9412_v19  ;;  %v3577_v40 = vsel %vm2870_vm3, %v9617_v20, -inf }
 0x37d   :  { %v3991_v5 = vmul.f32 1.442695, %v3913_v7  ;;  %v3916_v3 = vsub.f32 %v9566_v50, %v3576_v49  ;;  %v3586_v25 = vmax.f32 %v3584_v63, %v3585_v26  ;;  %v9626_v2 = vadd.f32 %v9412_v19, %v3232_v28  ;;  %v3242_v63 = vpop.f32.mrf.mxu1 }
 0x37e   :  { %7593 = vpow2.f32 %v3993_v45  ;;  %v9629_v27 = vadd.f32 %v7393_v0, %v9412_v19  ;;  %v3569_v49 = vmax.f32 %v3567_v35, %v3568_v21  ;;  %v3578_v23 = vrot.slane %v3577_v40, 4 }
 0x37f   :  { %7595 = vpow2.f32 %v3991_v5  ;;  %v3997_v34 = vmul.f32 1.442695, %v3916_v3  ;;  %v3587_v50 = vrot.slane %v3586_v25, 2  ;;  %v3598_v7 = vsel %vm2870_vm3, %v9621_v6, -inf  ;;  %v7396_v38 = vpop.f32.mrf.mxu1 }
 0x380   :  { %v9631_v18 = vpop.eup %7589  ;;  %v3591_v54 = vsel %vm2870_vm3, %v9626_v2, -inf  ;;  %v3915_v43 = vsub.f32 %v9576_v12, %v3569_v49  ;;  %v3579_v3 = vmax.f32 %v3577_v40, %v3578_v23  ;;  %v3599_v35 = vrot.slane %v3598_v7, 4 }
 0x381   :  { %11509 = vst [vmem:[#allocation67_spill] sm:$0xff] %v9631_v18  ;;  %v4182_v28 = vsel %vm2870_vm3, %v9631_v18, 0.0  ;;  %7597 = vpow2.f32 %v3997_v34  ;;  %v3588_v44 = vmax.f32 %v3586_v25, %v3587_v50  ;;  %v3592_v48 = vrot.slane %v3591_v54, 4 }
 0x382   :  { %v3612_v26 = vsel %vm2870_vm3, %v9629_v27, -inf  ;;  %v9643_v0 = vadd.f32 %v4169_v41, %v4168_v37  ;;  %v3995_v45 = vmul.f32 1.442695, %v3915_v43  ;;  %v3580_v31 = vrot.slane %v3579_v3, 2 }
 0x383   :  { %v3589_v5 = vrot.slane %v3588_v44, 1  ;;  %v3613_v21 = vrot.slane %v3612_v26, 4  ;;  %v3600_v8 = vmax.f32 %v3598_v7, %v3599_v35  ;;  %v3593_v10 = vmax.f32 %v3591_v54, %v3592_v48 }
 0x384   :  { %v9646_v34 = vadd.f32 %v9412_v19, %v3242_v63  ;;  %v4183_v12 = vrot.slane %v4182_v28, 4  ;;  %7599 = vpow2.f32 %v3995_v45  ;;  %v3581_v49 = vmax.f32 %v3579_v3, %v3580_v31  ;;  %v3252_v63 = vpop.f32.mrf.mxu1 }
 0x385   :  { %v3590_v25 = vmax.f32 %v3588_v44, %v3589_v5  ;;  %v3614_v40 = vmax.f32 %v3612_v26, %v3613_v21  ;;  %v3601_v50 = vrot.slane %v3600_v8, 2  ;;  %v3594_v23 = vrot.slane %v3593_v10, 2 }
 0x386   :  { %v3605_v41 = vsel %vm2870_vm3, %v9646_v34, -inf  ;;  %v9652_v43 = vadd.f32 %v4162_v32, %v4161_v16  ;;  %v3582_v44 = vrot.slane %v3581_v49, 1  ;;  %v9657_v51 = vadd.f32 %v4183_v12, %v4182_v28 }
 0x387   :  { %v9650_v37 = vpop.eup %7591  ;;  %v3918_v7 = vsub.f32 %v9585_v57, %v3590_v25  ;;  %v3615_v54 = vrot.slane %v3614_v40, 2  ;;  %v3606_v35 = vrot.slane %v3605_v41, 4  ;;  %v3602_v26 = vmax.f32 %v3600_v8, %v3601_v50 }
 0x388   :  { %11510 = vst [vmem:[#allocation68_spill] sm:$0xff] %v9650_v37  ;;  %v4175_v48 = vsel %vm2870_vm3, %v9650_v37, 0.0  ;;  %v3595_v31 = vmax.f32 %v3593_v10, %v3594_v23  ;;  %v3583_v59 = vmax.f32 %v3581_v49, %v3582_v44  ;;  %v9662_v18 = vadd.f32 %v7396_v38, %v9412_v19  ;;  %v7399_v37 = vpop.f32.mrf.mxu1 }
 0x389   :  { %v4176_v3 = vrot.slane %v4175_v48, 4  ;;  %v4001_v45 = vmul.f32 1.442695, %v3918_v7  ;;  %v3616_v5 = vmax.f32 %v3614_v40, %v3615_v54  ;;  %v3607_v21 = vmax.f32 %v3605_v41, %v3606_v35 }
 0x38a   :  { %v3603_v16 = vrot.slane %v3602_v26, 1  ;;  %v3596_v32 = vrot.slane %v3595_v31, 1  ;;  %v3917_v28 = vsub.f32 %v9617_v20, %v3583_v59 }
 0x38b   :  { %v9659_v39 = vpop.eup %7593  ;;  %7601 = vpow2.f32 %v4001_v45  ;;  %v3617_v57 = vrot.slane %v3616_v5, 1  ;;  %v3608_v25 = vrot.slane %v3607_v21, 2  ;;  %v9670_v50 = vadd.f32 %v4176_v3, %v4175_v48 }
 0x38c   :  { %11511 = vst [vmem:[#allocation69_spill] sm:$0xff] %v9659_v39  ;;  %v9664_v8 = vpop.eup %7595  ;;  %v4196_v10 = vsel %vm2870_vm3, %v9659_v39, 0.0  ;;  %v3604_v12 = vmax.f32 %v3602_v26, %v3603_v16  ;;  %v3597_v40 = vmax.f32 %v3595_v31, %v3596_v32  ;;  %v3999_v54 = vmul.f32 1.442695, %v3917_v28  ;;  %v3262_v26 = vpop.f32.mrf.mxu1 }
 0x38d   :  { %11512 = vst [vmem:[#allocation70_spill] sm:$0xff] %v9664_v8  ;;  %v4189_v23 = vsel %vm2870_vm3, %v9664_v8, 0.0  ;;  %v3618_v41 = vmax.f32 %v3616_v5, %v3617_v57  ;;  %v4197_v7 = vrot.slane %v4196_v10, 4  ;;  %v3609_v20 = vmax.f32 %v3607_v21, %v3608_v25 }
 0x38e   :  { %v9674_v38 = vpop.eup %7597  ;;  %v3920_v35 = vsub.f32 %v9621_v6, %v3604_v12  ;;  %v3919_v44 = vsub.f32 %v9626_v2, %v3597_v40  ;;  %v4190_v45 = vrot.slane %v4189_v23, 4  ;;  %v3626_v48 = vsel %vm2870_vm3, %v9662_v18, -inf }
 0x38f   :  { %11513 = vst [vmem:[#allocation71_spill] sm:$0xff] %v9674_v38  ;;  %v3922_v59 = vsub.f32 %v9629_v27, %v3618_v41  ;;  %7603 = vpow2.f32 %v3999_v54  ;;  %v4210_v16 = vsel %vm2870_vm3, %v9674_v38, 0.0  ;;  %v3610_v2 = vrot.slane %v3609_v20, 1  ;;  %v7402_v41 = vpop.f32.mrf.mxu1 }
 0x390   :  { %v4005_v5 = vmul.f32 1.442695, %v3920_v35  ;;  %v4003_v6 = vmul.f32 1.442695, %v3919_v44  ;;  %v9688_v21 = vadd.f32 %v4197_v7, %v4196_v10  ;;  %v3627_v25 = vrot.slane %v3626_v48, 4 }
 0x391   :  { %v4009_v32 = vmul.f32 1.442695, %v3922_v59  ;;  %v9685_v57 = vpop.eup %7599  ;;  %v9690_v28 = vadd.f32 %v4190_v45, %v4189_v23  ;;  %v3611_v12 = vmax.f32 %v3609_v20, %v3610_v2  ;;  %v9693_v40 = vadd.f32 %v9412_v19, %v3252_v63 }
 0x392   :  { %11514 = vst [vmem:[#allocation72_spill] sm:$0xff] %v9685_v57  ;;  %7605 = vpow2.f32 %v4005_v5  ;;  %v4211_v54 = vrot.slane %v4210_v16, 4  ;;  %v4203_v35 = vsel %vm2870_vm3, %v9685_v57, 0.0  ;;  %v3628_v44 = vmax.f32 %v3626_v48, %v3627_v25 }
 0x393   :  { %11515 = vst [vmem:[#allocation73_spill] sm:$0xff] %v9690_v28  ;;  %7607 = vpow2.f32 %v4003_v6  ;;  %v3921_v59 = vsub.f32 %v9646_v34, %v3611_v12  ;;  %v3619_v10 = vsel %vm2870_vm3, %v9693_v40, -inf  ;;  %v9701_v23 = vadd.f32 %v7399_v37, %v9412_v19 }
 0x394   :  { %7609 = vpow2.f32 %v4009_v32  ;;  %v9704_v7 = vadd.f32 %v9412_v19, %v3262_v26  ;;  %v3629_v45 = vrot.slane %v3628_v44, 2  ;;  %v3620_v20 = vrot.slane %v3619_v10, 4 }
 0x395   :  { %v9708_v5 = vadd.f32 %v7402_v41, %v9412_v19  ;;  %v4007_v6 = vmul.f32 1.442695, %v3921_v59  ;;  %v3640_v34 = vsel %vm2870_vm3, %v9701_v23, -inf  ;;  %v11516_v37 = vrot.slane %v9515_v62, 2 }
 0x396   :  { %v3633_v48 = vsel %vm2870_vm3, %v9704_v7, -inf  ;;  %v4204_v2 = vrot.slane %v4203_v35, 4  ;;  %v3630_v25 = vmax.f32 %v3628_v44, %v3629_v45  ;;  %v3621_v12 = vmax.f32 %v3619_v10, %v3620_v20  ;;  %v3272_v10 = vpop.f32.mrf.mxu1 }
 0x397   :  { %v4095_v32 = vadd.f32 %v11516_v37, %v9515_v62  ;;  %v3641_v63 = vrot.slane %v3640_v34, 4  ;;  %v3634_v27 = vrot.slane %v3633_v48, 4  ;;  %v3654_v3 = vsel %vm2870_vm3, %v9708_v5, -inf }
 0x398   :  { %v9717_v26 = vpop.eup %7601  ;;  %7611 = vpow2.f32 %v4007_v6  ;;  %v3631_v31 = vrot.slane %v3630_v25, 1  ;;  %v3622_v49 = vrot.slane %v3621_v12, 2  ;;  %v9724_v62 = vadd.f32 %v4211_v54, %v4210_v16 }
 0x399   :  { %11517 = vst [vmem:[#allocation74_spill] sm:$0xff] %v9717_v26  ;;  %v4224_v59 = vsel %vm2870_vm3, %v9717_v26, 0.0  ;;  %v3642_v57 = vmax.f32 %v3640_v34, %v3641_v63  ;;  %v3635_v37 = vmax.f32 %v3633_v48, %v3634_v27  ;;  %v3655_v38 = vrot.slane %v3654_v3, 4 }
 0x39a   :  { %v4096_v44 = vrot.slane %v4095_v32, 1  ;;  %v9726_v45 = vadd.f32 %v4204_v2, %v4203_v35  ;;  %v3632_v20 = vmax.f32 %v3630_v25, %v3631_v31  ;;  %v3623_v41 = vmax.f32 %v3621_v12, %v3622_v49  ;;  %v7405_v25 = vpop.f32.mrf.mxu1 }
 0x39b   :  { %v3643_v8 = vrot.slane %v3642_v57, 2  ;;  %v4225_v39 = vrot.slane %v4224_v59, 4  ;;  %v3636_v52 = vrot.slane %v3635_v37, 2  ;;  %v3656_v28 = vmax.f32 %v3654_v3, %v3655_v38 }
 0x39c   :  { %v9728_v26 = vpop.eup %7603  ;;  %v4097_v6 = vadd.f32 %v4096_v44, %v4095_v32  ;;  %v3924_v16 = vsub.f32 %v9662_v18, %v3632_v20  ;;  %v3624_v27 = vrot.slane %v3623_v41, 1  ;;  %v9734_v54 = vadd.f32 %v9412_v19, %v3272_v10 }
 0x39d   :  { %11518 = vst [vmem:[#allocation75_spill] sm:$0xff] %v9728_v26  ;;  %v4217_v63 = vsel %vm2870_vm3, %v9728_v26, 0.0  ;;  %v3644_v49 = vmax.f32 %v3642_v57, %v3643_v8  ;;  %v3637_v34 = vmax.f32 %v3635_v37, %v3636_v52  ;;  %v3657_v48 = vrot.slane %v3656_v28, 2 }
 0x39e   :  { %v4218_v31 = vrot.slane %v4217_v63, 4  ;;  %v4013_v3 = vmul.f32 1.442695, %v3924_v16  ;;  %v3625_v32 = vmax.f32 %v3623_v41, %v3624_v27  ;;  %7613 = vrcp.f32 %v4097_v6 }
 0x39f   :  { %v9736_v35 = vpop.eup %7605  ;;  %v9744_v12 = vadd.f32 %v4225_v39, %v4224_v59  ;;  %v3645_v8 = vrot.slane %v3644_v49, 1  ;;  %v3647_v37 = vsel %vm2870_vm3, %v9734_v54, -inf  ;;  %v3638_v27 = vrot.slane %v3637_v34, 1 }
 0x3a0   :  { %11519 = vst [vmem:[#allocation76_spill] sm:$0xff] %v9736_v35  ;;  %v9738_v2 = vpop.eup %7607  ;;  %v4238_v38 = vsel %vm2870_vm3, %v9736_v35, 0.0  ;;  %v9748_v52 = vadd.f32 %v4218_v31, %v4217_v63  ;;  %7615 = vpow2.f32 %v4013_v3  ;;  %v3923_v57 = vsub.f32 %v9693_v40, %v3625_v32  ;;  %v3282_v63 = vpop.f32.mrf.mxu1 }
 0x3a1   :  { %11520 = vst [vmem:[#allocation77_spill] sm:$0xff] %v9738_v2  ;;  %v9742_v18 = vpop.eup %7609  ;;  %v4239_v44 = vrot.slane %v4238_v38, 4  ;;  %v4231_v10 = vsel %vm2870_vm3, %v9738_v2, 0.0  ;;  %v3646_v59 = vmax.f32 %v3644_v49, %v3645_v8  ;;  %v3658_v2 = vmax.f32 %v3656_v28, %v3657_v48 }
 0x3a2   :  { %11521 = vst [vmem:[#allocation78_spill] sm:$0xff] %v9742_v18  ;;  %v4232_v20 = vrot.slane %v4231_v10, 4  ;;  %v4252_v39 = vsel %vm2870_vm3, %v9742_v18, 0.0  ;;  %v4011_v16 = vmul.f32 1.442695, %v3923_v57  ;;  %v3648_v32 = vrot.slane %v3647_v37, 4 }
 0x3a3   :  { %v9756_v6 = vadd.f32 %v4239_v44, %v4238_v38  ;;  %v3926_v3 = vsub.f32 %v9701_v23, %v3646_v59  ;;  %v3639_v35 = vmax.f32 %v3637_v34, %v3638_v27  ;;  %v3659_v26 = vrot.slane %v3658_v2, 1  ;;  %v7408_v59 = vpop.f32.mrf.mxu1 }
 0x3a4   :  { %7617 = vpow2.f32 %v4011_v16  ;;  %v9764_v49 = vadd.f32 %v4232_v20, %v4231_v10  ;;  %v4253_v38 = vrot.slane %v4252_v39, 4  ;;  %v3649_v28 = vmax.f32 %v3647_v37, %v3648_v32 }
 0x3a5   :  { %v9762_v18 = vpop.eup %7611  ;;  %v4017_v44 = vmul.f32 1.442695, %v3926_v3  ;;  %v3925_v8 = vsub.f32 %v9704_v7, %v3639_v35  ;;  %v3660_v57 = vmax.f32 %v3658_v2, %v3659_v26  ;;  %v9769_v23 = vadd.f32 %v7405_v25, %v9412_v19 }
 0x3a6   :  { %11522 = vst [vmem:[#allocation79_spill] sm:$0xff] %v9762_v18  ;;  %v3650_v16 = vrot.slane %v3649_v28, 2  ;;  %v11523_v34 = vrot.slane %v9559_v53, 2  ;;  %v11524_v10 = vrot.slane %v9509_v17, 2  ;;  %v4245_v37 = vsel %vm2870_vm3, %v9762_v18, 0.0 }
 0x3a7   :  { %7619 = vpow2.f32 %v4017_v44  ;;  %v4015_v3 = vmul.f32 1.442695, %v3925_v8  ;;  %v3928_v7 = vsub.f32 %v9708_v5, %v3660_v57  ;;  %v3668_v26 = vsel %vm2870_vm3, %v9769_v23, -inf }
 0x3a8   :  { %v4109_v27 = vadd.f32 %v11523_v34, %v9559_v53  ;;  %v4102_v20 = vadd.f32 %v11524_v10, %v9509_v17  ;;  %v3651_v35 = vmax.f32 %v3649_v28, %v3650_v16  ;;  %v3669_v2 = vrot.slane %v3668_v26, 4  ;;  %v3292_v17 = vpop.f32.mrf.mxu1  ;;  %v4681_v16 = vpop.permute.xlu0 %4680 }
 0x3a9   :  { %v9782_v44 = vadd.f32 %v4253_v38, %v4252_v39  ;;  %7621 = vpow2.f32 %v4015_v3  ;;  %v4021_v53 = vmul.f32 1.442695, %v3928_v7  ;;  %v9785_v34 = vadd.f32 %v9412_v19, %v3282_v63 }
 0x3aa   :  { %v4110_v25 = vrot.slane %v4109_v27, 1  ;;  %v4103_v32 = vrot.slane %v4102_v20, 1  ;;  %v3652_v48 = vrot.slane %v3651_v35, 1  ;;  %v3670_v8 = vmax.f32 %v3668_v26, %v3669_v2  ;;  %v7411_v26 = vpop.f32.mrf.mxu1 }
 0x3ab   :  { %v7614_v10 = vpop.eup %7613  ;;  %v4246_v57 = vrot.slane %v4245_v37, 4  ;;  %v3661_v28 = vsel %vm2870_vm3, %v9785_v34, -inf  ;;  %v9791_v39 = vadd.f32 %v7408_v59, %v9412_v19 }
 0x3ac   :  { %v4111_v41 = vadd.f32 %v4110_v25, %v4109_v27  ;;  %v4104_v5 = vadd.f32 %v4103_v32, %v4102_v20  ;;  %v4603_v40 = vmul.f32 %v7614_v10, %v9490_v36  ;;  %v3653_v63 = vmax.f32 %v3651_v35, %v3652_v48 }
 0x3ad   :  { %v9793_v38 = vpop.eup %7615  ;;  %v3671_v3 = vrot.slane %v3670_v8, 2  ;;  %v3662_v7 = vrot.slane %v3661_v28, 4  ;;  %v3682_v36 = vsel %vm2870_vm3, %v9791_v39, -inf }
 0x3ae   :  { %11525 = vst [vmem:[#allocation80_spill] sm:$0xff] %v9793_v38  ;;  %7623 = vrcp.f32 %v4111_v41  ;;  %v4266_v27 = vsel %vm2870_vm3, %v9793_v38, 0.0  ;;  %v5123_v20 = vmul.f32 %v4681_v16, %v4603_v40  ;;  %v3927_v19 = vsub.f32 %v9734_v54, %v3653_v63  ;;  %v9806_v40 = vld [vmem:[%s11324_s14] ss:$0 sm:$0xff] }
 0x3af   :  { %7625 = vrcp.f32 %v4104_v5  ;;  %v3672_v59 = vmax.f32 %v3670_v8, %v3671_v3  ;;  %v3663_v2 = vmax.f32 %v3661_v28, %v3662_v7  ;;  %v4267_v25 = vrot.slane %v4266_v27, 4 }
 0x3b0   :  { %7627 = vpow2.f32 %v4021_v53  ;;  %v3683_v32 = vrot.slane %v3682_v36, 4  ;;  %v11526_v41 = vrot.slane %v9534_v29, 2  ;;  %v9809_v35 = vadd.f32 %v9806_v40, %v3292_v17  ;;  %7456 = vmatprep.mubr.msk.f32.mxu0 %vm2870_vm3, %v5123_v20 }
 0x3b1   :  { %v9812_v53 = vpop.eup %7617  ;;  %v4019_v54 = vmul.f32 1.442695, %v3927_v19  ;;  %v3673_v10 = vrot.slane %v3672_v59, 1  ;;  %v3664_v8 = vrot.slane %v3663_v2, 2  ;;  %v9815_v5 = vadd.f32 %v9806_v40, %v7411_v26 }
 0x3b2   :  { %v4116_v48 = vadd.f32 %v11526_v41, %v9534_v29  ;;  %11527 = vst [vmem:[#allocation81_spill] sm:$0xff] %v9812_v53  ;;  %v4259_v29 = vsel %vm2870_vm3, %v9812_v53, 0.0  ;;  %v3684_v28 = vmax.f32 %v3682_v36, %v3683_v32  ;;  %v3675_v63 = vsel %vm2870_vm3, %v9809_v35, -inf }
 0x3b3   :  { %v9821_v17 = vadd.f32 %v4246_v57, %v4245_v37  ;;  %v4260_v3 = vrot.slane %v4259_v29, 4  ;;  %7629 = vpow2.f32 %v4019_v54  ;;  %v3674_v7 = vmax.f32 %v3672_v59, %v3673_v10 }
 0x3b4   :  { %v4117_v16 = vrot.slane %v4116_v48, 1  ;;  %v9823_v20 = vpop.eup %7619  ;;  %v3665_v19 = vmax.f32 %v3663_v2, %v3664_v8  ;;  %v3685_v41 = vrot.slane %v3684_v28, 2  ;;  %v3676_v26 = vrot.slane %v3675_v63, 4 }
 0x3b5   :  { %11528 = vst [vmem:[#allocation82_spill] sm:$0xff] %v9823_v20  ;;  %v9825_v38 = vadd.f32 %v4267_v25, %v4266_v27  ;;  %v4280_v36 = vsel %vm2870_vm3, %v9823_v20, 0.0  ;;  %v3930_v32 = vsub.f32 %v9769_v23, %v3674_v7  ;;  %v3696_v37 = vsel %vm2870_vm3, %v9815_v5, -inf }
 0x3b6   :  { %v4118_v31 = vadd.f32 %v4117_v16, %v4116_v48  ;;  %v4281_v57 = vrot.slane %v4280_v36, 4  ;;  %v3666_v53 = vrot.slane %v3665_v19, 1  ;;  %v3686_v54 = vmax.f32 %v3684_v28, %v3685_v41  ;;  %v9832_v59 = vpop.eup %7621 }
 0x3b7   :  { %v9834_v2 = vadd.f32 %v4260_v3, %v4259_v29  ;;  %v4025_v48 = vmul.f32 1.442695, %v3930_v32  ;;  %v3677_v10 = vmax.f32 %v3675_v63, %v3676_v26  ;;  %v3697_v27 = vrot.slane %v3696_v37, 4 }
 0x3b8   :  { %7631 = vrcp.f32 %v4118_v31  ;;  %v3667_v16 = vmax.f32 %v3665_v19, %v3666_v53  ;;  %v3687_v23 = vrot.slane %v3686_v54, 1  ;;  %v9838_v7 = vadd.f32 %v4281_v57, %v4280_v36  ;;  %v4688_v36 = vpop.permute.xlu0 %4687  ;;  %v3302_v57 = vpop.f32.mrf.mxu1 }
 0x3b9   :  { %7633 = vpow2.f32 %v4025_v48  ;;  %v3678_v20 = vrot.slane %v3677_v10, 2  ;;  %v3698_v18 = vmax.f32 %v3696_v37, %v3697_v27  ;;  %v4273_v29 = vsel %vm2870_vm3, %v9832_v59, 0.0  ;;  %v4695_v48 = vpop.permute.xlu1 %4694 }
 0x3ba   :  { %v3929_v63 = vsub.f32 %v9785_v34, %v3667_v16  ;;  %v3688_v3 = vmax.f32 %v3686_v54, %v3687_v23  ;;  %v4274_v16 = vrot.slane %v4273_v29, 4 }
 0x3bb   :  { %v7624_v28 = vpop.eup %7623  ;;  %v3679_v32 = vmax.f32 %v3677_v10, %v3678_v20  ;;  %v3699_v34 = vrot.slane %v3698_v18, 2 }
 0x3bc   :  { %v7626_v41 = vpop.eup %7625  ;;  %v4605_v19 = vmul.f32 %v7624_v28, %v9507_v4  ;;  %v4023_v31 = vmul.f32 1.442695, %v3929_v63  ;;  %v3932_v8 = vsub.f32 %v9791_v39, %v3688_v3  ;;  %v7823_v39 = vld [vmem:[%s11323_s4 + $0x38] sm:$0xff] }
 0x3bd   :  { %v9847_v37 = vpop.eup %7627  ;;  %v4604_v27 = vmul.f32 %v7626_v41, %v9484_v11  ;;  %v3680_v26 = vrot.slane %v3679_v32, 1  ;;  %v3700_v28 = vmax.f32 %v3698_v18, %v3699_v34  ;;  %v11530_v11 = vrot.slane %v9561_v9, 2  ;;  %v7414_v41 = vpop.f32.mrf.mxu1 }
 0x3be   :  { %11529 = vst [vmem:[#allocation83_spill] sm:$0xff] %v9847_v37  ;;  %v5125_v23 = vmul.f32 %v4695_v48, %v4605_v19  ;;  %7635 = vpow2.f32 %v4023_v31  ;;  %v4029_v4 = vmul.f32 1.442695, %v3932_v8  ;;  %v4294_v20 = vsel %vm2870_vm3, %v9847_v37, 0.0 }
 0x3bf   :  { %v5124_v53 = vmul.f32 %v4688_v36, %v4604_v27  ;;  %v3681_v10 = vmax.f32 %v3679_v32, %v3680_v26  ;;  %v4130_v63 = vadd.f32 %v11530_v11, %v9561_v9  ;;  %v5098_v3 = vrot.slane %v7823_v39, %v9098_v22 }
 0x3c0   :  { %v9861_v19 = vpop.eup %7629  ;;  %7637 = vpow2.f32 %v4029_v4  ;;  %v3701_v8 = vrot.slane %v3700_v28, 1  ;;  %v9865_v18 = vadd.f32 %v9806_v40, %v3302_v57  ;;  %v5119_v31 = vrot.slane %v7823_v39, %v9120_v15  ;;  %v4702_v57 = vpop.permute.xlu1 %4701 }
 0x3c1   :  { %11531 = vst [vmem:[#allocation84_spill] sm:$0xff] %v9861_v19  ;;  %7457 = vmatmul.mubr.msk.f32.vlgmr.msra.gmra.mxu0 %vm2870_vm3, %v5124_v53  ;;  %v9868_v26 = vadd.f32 %v4274_v16, %v4273_v29  ;;  %v3931_v9 = vsub.f32 %v9809_v35, %v3681_v10  ;;  %v4131_v36 = vrot.slane %v4130_v63, 1  ;;  %5100 = vbcast.lane.b32.xlu0 %v5098_v3, 256  ;;  %v11532_v22 = vrot.slane %v9568_v1, 2 }
 0x3c2   :  { %7459 = vmatprep.mubr.msk.f32.mxu0 %vm2870_vm3, %v5125_v23  ;;  %v4295_v48 = vrot.slane %v4294_v20, 4  ;;  %v3702_v27 = vmax.f32 %v3700_v28, %v3701_v8  ;;  %v3689_v53 = vsel %vm2870_vm3, %v9865_v18, -inf  ;;  %5121 = vbcast.lane.b32.xlu1 %v5119_v31, 256  ;;  %v9878_v15 = vadd.f32 %v9806_v40, %v7414_v41  ;;  %v3312_v23 = vpop.f32.mrf.mxu1 }
 0x3c3   :  { %v4123_v32 = vadd.f32 %v11532_v22, %v9568_v1  ;;  %v4027_v35 = vmul.f32 1.442695, %v3931_v9  ;;  %v4132_v34 = vadd.f32 %v4131_v36, %v4130_v63  ;;  %v3690_v16 = vrot.slane %v3689_v53, 4 }
 0x3c4   :  { %v4287_v10 = vsel %vm2870_vm3, %v9861_v19, 0.0  ;;  %v3934_v28 = vsub.f32 %v9815_v5, %v3702_v27  ;;  %v3710_v11 = vsel %vm2870_vm3, %v9878_v15, -inf  ;;  %v9888_v63 = vadd.f32 %v4295_v48, %v4294_v20  ;;  %v7417_v27 = vpop.f32.mrf.mxu1 }
 0x3c5   :  { %v7632_v29 = vpop.eup %7631  ;;  %v4124_v4 = vrot.slane %v4123_v32, 1  ;;  %7639 = vpow2.f32 %v4027_v35  ;;  %v3691_v3 = vmax.f32 %v3689_v53, %v3690_v16  ;;  %v3711_v8 = vrot.slane %v3710_v11, 4 }
 0x3c6   :  { %v4606_v1 = vmul.f32 %v7632_v29, %v9499_v13  ;;  %v9886_v31 = vpop.eup %7633  ;;  %v4033_v36 = vmul.f32 1.442695, %v3934_v28  ;;  %7641 = vrcp.f32 %v4132_v34  ;;  %v4288_v29 = vrot.slane %v4287_v10, 4 }
 0x3c7   :  { %v4125_v41 = vadd.f32 %v4124_v4, %v4123_v32  ;;  %11533 = vst [vmem:[#allocation85_spill] sm:$0xff] %v9886_v31  ;;  %v4308_v22 = vsel %vm2870_vm3, %v9886_v31, 0.0  ;;  %v3692_v13 = vrot.slane %v3691_v3, 2  ;;  %v3712_v5 = vmax.f32 %v3710_v11, %v3711_v8 }
 0x3c8   :  { %v5126_v9 = vmul.f32 %v4702_v57, %v4606_v1  ;;  %v11534_v32 = vrot.slane %v9570_v47, 2  ;;  %v5112_v20 = vrot.slane %v7823_v39, %v9114_v30  ;;  %v9898_v35 = vadd.f32 %v9806_v40, %v3312_v23 }
 0x3c9   :  { %7643 = vrcp.f32 %v4125_v41  ;;  %v3693_v48 = vmax.f32 %v3691_v3, %v3692_v13  ;;  %v3713_v57 = vrot.slane %v3712_v5, 2  ;;  %v11535_v34 = vrot.slane %v9578_v42, 2 }
 0x3ca   :  { %7645 = vpow2.f32 %v4033_v36  ;;  %7460 = vmatmul.mubr.msk.f32.gmra.mxu0 %vm2870_vm3, %v5126_v9  ;;  %v4144_v53 = vadd.f32 %v11534_v32, %v9570_v47  ;;  %v4309_v1 = vrot.slane %v4308_v22, 4  ;;  %5114 = vbcast.lane.b32.xlu0 %v5112_v20, 256  ;;  %v9905_v11 = vadd.f32 %v9806_v40, %v7417_v27 }
 0x3cb   :  { %v4137_v16 = vadd.f32 %v11535_v34, %v9578_v42  ;;  %v9907_v47 = vpop.eup %7635  ;;  %v3694_v30 = vrot.slane %v3693_v48, 1  ;;  %v3714_v39 = vmax.f32 %v3712_v5, %v3713_v57  ;;  %v3703_v23 = vsel %vm2870_vm3, %v9898_v35, -inf }
 0x3cc   :  { %v4145_v28 = vrot.slane %v4144_v53, 1  ;;  %11536 = vst [vmem:[#allocation86_spill] sm:$0xff] %v9907_v47  ;;  %v3704_v42 = vrot.slane %v3703_v23, 4  ;;  %v11537_v9 = vrot.slane %v9597_v60, 2  ;;  %v9917_v27 = vadd.f32 %v4288_v29, %v4287_v10  ;;  %v3322_v29 = vpop.f32.mrf.mxu1 }
 0x3cd   :  { %v4138_v3 = vrot.slane %v4137_v16, 1  ;;  %v9915_v13 = vpop.eup %7637  ;;  %v3695_v32 = vmax.f32 %v3693_v48, %v3694_v30  ;;  %v3715_v20 = vrot.slane %v3714_v39, 1  ;;  %v4301_v5 = vsel %vm2870_vm3, %v9907_v47, 0.0 }
 0x3ce   :  { %v4146_v8 = vadd.f32 %v4145_v28, %v4144_v53  ;;  %v4158_v36 = vadd.f32 %v11537_v9, %v9597_v60  ;;  %11538 = vst [vmem:[#allocation87_spill] sm:$0xff] %v9915_v13  ;;  %v3705_v57 = vmax.f32 %v3703_v23, %v3704_v42  ;;  %v3724_v53 = vsel %vm2870_vm3, %v9905_v11, -inf }
 0x3cf   :  { %v4139_v34 = vadd.f32 %v4138_v3, %v4137_v16  ;;  %v9923_v28 = vadd.f32 %v4309_v1, %v4308_v22  ;;  %v4322_v60 = vsel %vm2870_vm3, %v9915_v13, 0.0  ;;  %v3933_v9 = vsub.f32 %v9865_v18, %v3695_v32 }
 0x3d0   :  { %7647 = vrcp.f32 %v4146_v8  ;;  %v3716_v10 = vmax.f32 %v3714_v39, %v3715_v20  ;;  %v3706_v48 = vrot.slane %v3705_v57, 2  ;;  %v3725_v16 = vrot.slane %v3724_v53, 4 }
 0x3d1   :  { %7649 = vrcp.f32 %v4139_v34  ;;  %v4159_v30 = vrot.slane %v4158_v36, 1  ;;  %v4302_v8 = vrot.slane %v4301_v5, 4  ;;  %v4031_v23 = vmul.f32 1.442695, %v3933_v9  ;;  %v7420_v34 = vpop.f32.mrf.mxu1 }
 0x3d2   :  { %v3936_v42 = vsub.f32 %v9878_v15, %v3716_v10  ;;  %v9930_v41 = vpop.eup %7639  ;;  %v4323_v22 = vrot.slane %v4322_v60, 4  ;;  %v3707_v1 = vmax.f32 %v3705_v57, %v3706_v48  ;;  %v3726_v4 = vmax.f32 %v3724_v53, %v3725_v16  ;;  %v4709_v10 = vpop.permute.xlu0 %4708 }
 0x3d3   :  { %11539 = vst [vmem:[#allocation88_spill] sm:$0xff] %v9930_v41  ;;  %v9933_v54 = vadd.f32 %v9806_v40, %v3322_v29  ;;  %v7642_v18 = vpop.eup %7641  ;;  %v4315_v39 = vsel %vm2870_vm3, %v9930_v41, 0.0  ;;  %7651 = vpow2.f32 %v4031_v23  ;;  %v4160_v20 = vadd.f32 %v4159_v30, %v4158_v36  ;;  %v4716_v48 = vpop.permute.xlu1 %4715 }
 0x3d4   :  { %v4037_v32 = vmul.f32 1.442695, %v3936_v42  ;;  %v4608_v15 = vmul.f32 %v7642_v18, %v9523_v24  ;;  %v3708_v25 = vrot.slane %v3707_v1, 1  ;;  %v3727_v57 = vrot.slane %v3726_v4, 2 }
 0x3d5   :  { %v4316_v29 = vrot.slane %v4315_v39, 4  ;;  %v3717_v23 = vsel %vm2870_vm3, %v9933_v54, -inf  ;;  %v11540_v36 = vrot.slane %v9612_v14, 2  ;;  %v9947_v42 = vadd.f32 %v4302_v8, %v4301_v5 }
 0x3d6   :  { %v7644_v3 = vpop.eup %7643  ;;  %v9949_v9 = vadd.f32 %v4323_v22, %v4322_v60  ;;  %7653 = vpow2.f32 %v4037_v32  ;;  %v3709_v24 = vmax.f32 %v3707_v1, %v3708_v25  ;;  %v3728_v13 = vmax.f32 %v3726_v4, %v3727_v57  ;;  %v4723_v57 = vpop.permute.xlu0 %4722 }
 0x3d7   :  { %v9939_v53 = vpop.eup %7645  ;;  %v4607_v16 = vmul.f32 %v7644_v3, %v9532_v55  ;;  %v4151_v30 = vadd.f32 %v11540_v36, %v9612_v14  ;;  %7655 = vrcp.f32 %v4160_v20  ;;  %v3332_v55 = vpop.f32.mrf.mxu1  ;;  %v5128_v3 = vmul.f32 %v4716_v48, %v4608_v15 }
 0x3d8   :  { %v4336_v18 = vsel %vm2870_vm3, %v9939_v53, 0.0  ;;  %v3935_v47 = vsub.f32 %v9898_v35, %v3709_v24  ;;  %v3718_v31 = vrot.slane %v3717_v23, 4  ;;  %v9954_v37 = vadd.f32 %v4316_v29, %v4315_v39  ;;  %v4730_v32 = vpop.permute.xlu1 %4729 }
 0x3d9   :  { %v5127_v41 = vmul.f32 %v4709_v10, %v4607_v16  ;;  %v4152_v19 = vrot.slane %v4151_v30, 1  ;;  %v3729_v14 = vrot.slane %v3728_v13, 1  ;;  %v9958_v5 = vadd.f32 %v9806_v40, %v7420_v34  ;;  %v7423_v48 = vpop.f32.mrf.mxu1 }
 0x3da   :  { %v11541_v25 = vrot.slane %v9643_v0, 2  ;;  %v4035_v4 = vmul.f32 1.442695, %v3935_v47  ;;  %v3719_v8 = vmax.f32 %v3717_v23, %v3718_v31  ;;  %v9965_v35 = vadd.f32 %v9806_v40, %v3332_v55 }
 0x3db   :  { %7462 = vmatprep.mubr.msk.f32.mxu0 %vm2870_vm3, %v5127_v41  ;;  %v4153_v22 = vadd.f32 %v4152_v19, %v4151_v30  ;;  %v4337_v39 = vrot.slane %v4336_v18, 4  ;;  %v3730_v41 = vmax.f32 %v3728_v13, %v3729_v14  ;;  %v3738_v20 = vsel %vm2870_vm3, %v9958_v5, -inf }
 0x3dc   :  { %v4172_v60 = vadd.f32 %v11541_v25, %v9643_v0  ;;  %7463 = vmatmul.mubr.msk.f32.gmra.mxu0 %vm2870_vm3, %v5128_v3  ;;  %7657 = vpow2.f32 %v4035_v4  ;;  %v3720_v0 = vrot.slane %v3719_v8, 2  ;;  %v3739_v47 = vrot.slane %v3738_v20, 4 }
 0x3dd   :  { %v7648_v1 = vpop.eup %7647  ;;  %v3938_v19 = vsub.f32 %v9905_v11, %v3730_v41  ;;  %7659 = vrcp.f32 %v4153_v22  ;;  %v3731_v29 = vsel %vm2870_vm3, %v9965_v35, -inf  ;;  %v11542_v24 = vrot.slane %v9652_v43, 2 }
 0x3de   :  { %v4173_v34 = vrot.slane %v4172_v60, 1  ;;  %v4610_v15 = vmul.f32 %v7648_v1, %v9541_v61  ;;  %v7650_v10 = vpop.eup %7649  ;;  %v3721_v23 = vmax.f32 %v3719_v8, %v3720_v0  ;;  %v3740_v36 = vmax.f32 %v3738_v20, %v3739_v47 }
 0x3df   :  { %v4609_v16 = vmul.f32 %v7650_v10, %v9549_v56  ;;  %v4041_v30 = vmul.f32 1.442695, %v3938_v19  ;;  %v3732_v61 = vrot.slane %v3731_v29, 4  ;;  %v4165_v55 = vadd.f32 %v11542_v24, %v9652_v43 }
 0x3e0   :  { %v4174_v31 = vadd.f32 %v4173_v34, %v4172_v60  ;;  %v5130_v13 = vmul.f32 %v4730_v32, %v4610_v15  ;;  %v9977_v3 = vpop.eup %7651  ;;  %v3722_v14 = vrot.slane %v3721_v23, 1  ;;  %v3741_v25 = vrot.slane %v3740_v36, 2 }
 0x3e1   :  { %v5129_v11 = vmul.f32 %v4723_v57, %v4609_v16  ;;  %v9980_v60 = vadd.f32 %v9806_v40, %v7423_v48  ;;  %v4329_v56 = vsel %vm2870_vm3, %v9977_v3, 0.0  ;;  %v3733_v4 = vmax.f32 %v3731_v29, %v3732_v61  ;;  %v3342_v48 = vpop.f32.mrf.mxu1  ;;  %v4744_v61 = vpop.permute.xlu1 %4743 }
 0x3e2   :  { %7661 = vrcp.f32 %v4174_v31  ;;  %v4166_v8 = vrot.slane %v4165_v55, 1  ;;  %v9984_v22 = vadd.f32 %v4337_v39, %v4336_v18  ;;  %v3723_v1 = vmax.f32 %v3721_v23, %v3722_v14 }
 0x3e3   :  { %7663 = vpow2.f32 %v4041_v30  ;;  %7465 = vmatprep.mubr.msk.f32.mxu0 %vm2870_vm3, %v5129_v11  ;;  %v3742_v43 = vmax.f32 %v3740_v36, %v3741_v25  ;;  %v3752_v32 = vsel %vm2870_vm3, %v9980_v60, -inf  ;;  %v9989_v41 = vpop.eup %7653  ;;  %v3734_v34 = vrot.slane %v3733_v4, 2 }
 0x3e4   :  { %11543 = vst [vmem:[#allocation89_spill] sm:$0xff] %v9989_v41  ;;  %7466 = vmatmul.mubr.msk.f32.gmra.mxu0 %vm2870_vm3, %v5130_v13  ;;  %v4167_v15 = vadd.f32 %v4166_v8, %v4165_v55  ;;  %v3753_v0 = vrot.slane %v3752_v32, 4  ;;  %v7656_v47 = vpop.eup %7655  ;;  %v4330_v39 = vrot.slane %v4329_v56, 4  ;;  %v3937_v10 = vsub.f32 %v9933_v54, %v3723_v1 }
 0x3e5   :  { %v3743_v57 = vrot.slane %v3742_v43, 1  ;;  %v3735_v31 = vmax.f32 %v3733_v4, %v3734_v34  ;;  %v4612_v13 = vmul.f32 %v7656_v47, %v9580_v33  ;;  %v4350_v30 = vsel %vm2870_vm3, %v9989_v41, 0.0 }
 0x3e6   :  { %7665 = vrcp.f32 %v4167_v15  ;;  %v3754_v29 = vmax.f32 %v3752_v32, %v3753_v0  ;;  %v4039_v23 = vmul.f32 1.442695, %v3937_v10  ;;  %v11544_v54 = vrot.slane %v9657_v51, 2 }
 0x3e7   :  { %v3744_v36 = vmax.f32 %v3742_v43, %v3743_v57  ;;  %v3736_v24 = vrot.slane %v3735_v31, 1  ;;  %v10003_v14 = vadd.f32 %v4330_v39, %v4329_v56  ;;  %v10007_v4 = vadd.f32 %v9806_v40, %v3342_v48  ;;  %v4737_v56 = vpop.permute.xlu0 %4736  ;;  %v7426_v39 = vpop.f32.mrf.mxu1 }
 0x3e8   :  { %v3755_v55 = vrot.slane %v3754_v29, 2  ;;  %v4186_v11 = vadd.f32 %v11544_v54, %v9657_v51  ;;  %7667 = vpow2.f32 %v4039_v23  ;;  %v11546_v32 = vrot.slane %v9670_v50, 2 }
 0x3e9   :  { %v3940_v25 = vsub.f32 %v9958_v5, %v3744_v36  ;;  %v10009_v33 = vpop.eup %7657  ;;  %v3737_v8 = vmax.f32 %v3735_v31, %v3736_v24  ;;  %v4351_v0 = vrot.slane %v4350_v30, 4  ;;  %v5132_v51 = vmul.f32 %v4744_v61, %v4612_v13 }
 0x3ea   :  { %11545 = vst [vmem:[#allocation90_spill] sm:$0xff] %v10009_v33  ;;  %v3756_v1 = vmax.f32 %v3754_v29, %v3755_v55  ;;  %v4187_v43 = vrot.slane %v4186_v11, 1  ;;  %v4179_v34 = vadd.f32 %v11546_v32, %v9670_v50  ;;  %v7660_v15 = vpop.eup %7659  ;;  %v3745_v5 = vsel %vm2870_vm3, %v10007_v4, -inf }
 0x3eb   :  { %v4045_v47 = vmul.f32 1.442695, %v3940_v25  ;;  %v10018_v10 = vsel %vm2870_vm3, %v10009_v33, 0.0  ;;  %v4611_v57 = vmul.f32 %v7660_v15, %v9589_v46  ;;  %v3939_v31 = vsub.f32 %v9965_v35, %v3737_v8  ;;  %v3352_v35 = vpop.f32.mrf.mxu1 }
 0x3ec   :  { %v3757_v29 = vrot.slane %v3756_v1, 1  ;;  %v4188_v50 = vadd.f32 %v4187_v43, %v4186_v11  ;;  %v3746_v23 = vrot.slane %v3745_v5, 4  ;;  %v4180_v13 = vrot.slane %v4179_v34, 1  ;;  %v4758_v43 = vpop.permute.xlu1 %4757 }
 0x3ed   :  { %7669 = vpow2.f32 %v4045_v47  ;;  %v5131_v36 = vmul.f32 %v4737_v56, %v4611_v57  ;;  %v4043_v24 = vmul.f32 1.442695, %v3939_v31  ;;  %v10024_v55 = vadd.f32 %v9806_v40, %v7426_v39 }
 0x3ee   :  { %v3758_v25 = vmax.f32 %v3756_v1, %v3757_v29  ;;  %7671 = vrcp.f32 %v4188_v50  ;;  %v3747_v46 = vmax.f32 %v3745_v5, %v3746_v23  ;;  %v4181_v32 = vadd.f32 %v4180_v13, %v4179_v34  ;;  %v11549_v5 = vld [vmem:[#allocation73_spill] sm:$0xff]  ;;  %v4751_v29 = vpop.permute.xlu0 %4750  ;;  %v11551_v23 = vld [vmem:[#allocation66_spill] sm:$0xff] }
 0x3ef   :  { %v7662_v48 = vpop.eup %7661  ;;  %v10029_v15 = vadd.f32 %v4351_v0, %v4350_v30  ;;  %v4344_v11 = vrot.slane %v10018_v10, 4  ;;  %7673 = vpow2.f32 %v4043_v24  ;;  %7468 = vmatprep.mubr.msk.f32.mxu0 %vm2870_vm3, %v5131_v36  ;;  %v3766_v34 = vsel %vm2870_vm3, %v10024_v55, -inf }
 0x3f0   :  { %v4614_v61 = vmul.f32 %v7662_v48, %v9594_v58  ;;  %v10026_v54 = vpop.eup %7663  ;;  %v3942_v56 = vsub.f32 %v9980_v60, %v3758_v25  ;;  %7469 = vmatmul.mubr.msk.f32.gmra.mxu0 %vm2870_vm3, %v5132_v51  ;;  %v3748_v1 = vrot.slane %v3747_v46, 2  ;;  %7675 = vrcp.f32 %v4181_v32  ;;  %v7429_v25 = vpop.f32.mrf.mxu1 }
 0x3f1   :  { %11547 = vst [vmem:[#allocation91_spill] sm:$0xff] %v10026_v54  ;;  %v4364_v58 = vsel %vm2870_vm3, %v10026_v54, 0.0  ;;  %v11548_v30 = vrot.slane %v9688_v21, 2  ;;  %v10043_v47 = vadd.f32 %v9806_v40, %v3352_v35  ;;  %v11550_v39 = vrot.slane %v11549_v5, 2 }
 0x3f2   :  { %v5134_v60 = vmul.f32 %v4758_v43, %v4614_v61  ;;  %v4049_v51 = vmul.f32 1.442695, %v3942_v56  ;;  %v3749_v48 = vmax.f32 %v3747_v46, %v3748_v1  ;;  %v3767_v50 = vrot.slane %v3766_v34, 4 }
 0x3f3   :  { %v4200_v0 = vadd.f32 %v11548_v30, %v9688_v21  ;;  %v4193_v57 = vadd.f32 %v11550_v39, %v11549_v5  ;;  %v7666_v31 = vpop.eup %7665  ;;  %v3759_v24 = vsel %vm2870_vm3, %v10043_v47, -inf  ;;  %v4365_v32 = vrot.slane %v4364_v58, 4 }
 0x3f4   :  { %v4613_v13 = vmul.f32 %v7666_v31, %v11551_v23  ;;  %7677 = vpow2.f32 %v4049_v51  ;;  %v3750_v35 = vrot.slane %v3749_v48, 1  ;;  %v3768_v30 = vmax.f32 %v3766_v34, %v3767_v50 }
 0x3f5   :  { %v4201_v36 = vrot.slane %v4200_v0, 1  ;;  %v4194_v21 = vrot.slane %v4193_v57, 1  ;;  %v10051_v8 = vpop.eup %7667  ;;  %v3760_v43 = vrot.slane %v3759_v24, 4  ;;  %v10056_v31 = vadd.f32 %v9806_v40, %v7429_v25  ;;  %v3362_v25 = vpop.f32.mrf.mxu1 }
 0x3f6   :  { %11552 = vst [vmem:[#allocation73_spill] sm:$0xff] %v10051_v8  ;;  %v5133_v5 = vmul.f32 %v4751_v29, %v4613_v13  ;;  %v4357_v46 = vsel %vm2870_vm3, %v10051_v8, 0.0  ;;  %v3751_v1 = vmax.f32 %v3749_v48, %v3750_v35  ;;  %v3769_v39 = vrot.slane %v3768_v30, 2  ;;  %v11593_v8 = vld [vmem:[#allocation81_spill] sm:$0xff] }
 0x3f7   :  { %v4202_v61 = vadd.f32 %v4201_v36, %v4200_v0  ;;  %v4195_v56 = vadd.f32 %v4194_v21, %v4193_v57  ;;  %v4358_v23 = vrot.slane %v4357_v46, 4  ;;  %v3761_v51 = vmax.f32 %v3759_v24, %v3760_v43 }
 0x3f8   :  { %7471 = vmatprep.mubr.msk.f32.mxu0 %vm2870_vm3, %v5133_v5  ;;  %v11553_v34 = vrot.slane %v9724_v62, 2  ;;  %v3941_v0 = vsub.f32 %v10007_v4, %v3751_v1  ;;  %v3770_v57 = vmax.f32 %v3768_v30, %v3769_v39  ;;  %v3780_v48 = vsel %vm2870_vm3, %v10056_v31, -inf }
 0x3f9   :  { %7679 = vrcp.f32 %v4202_v61  ;;  %7472 = vmatmul.mubr.msk.f32.gmra.mxu0 %vm2870_vm3, %v5134_v60  ;;  %v10069_v13 = vadd.f32 %v4344_v11, %v10018_v10  ;;  %v10071_v36 = vadd.f32 %v4365_v32, %v4364_v58  ;;  %v3762_v24 = vrot.slane %v3761_v51, 2  ;;  %v11556_v11 = vld [vmem:[#allocation67_spill] sm:$0xff] }
 0x3fa   :  { %v4214_v29 = vadd.f32 %v11553_v34, %v9724_v62  ;;  %7681 = vrcp.f32 %v4195_v56  ;;  %v10066_v50 = vpop.eup %7669  ;;  %v3781_v21 = vrot.slane %v3780_v48, 4  ;;  %v10074_v4 = vadd.f32 %v4358_v23, %v4357_v46  ;;  %v4772_v34 = vpop.permute.xlu1 %4771 }
 0x3fb   :  { %11554 = vst [vmem:[#allocation66_spill] sm:$0xff] %v10066_v50  ;;  %v4047_v35 = vmul.f32 1.442695, %v3941_v0  ;;  %v3771_v60 = vrot.slane %v3770_v57, 1  ;;  %v7672_v30 = vpop.eup %7671  ;;  %v4378_v5 = vsel %vm2870_vm3, %v10066_v50, 0.0  ;;  %v3763_v61 = vmax.f32 %v3761_v51, %v3762_v24  ;;  %v4765_v0 = vpop.permute.xlu0 %4764 }
 0x3fc   :  { %v3782_v43 = vmax.f32 %v3780_v48, %v3781_v21  ;;  %v4215_v56 = vrot.slane %v4214_v29, 1  ;;  %v10078_v10 = vpop.eup %7673  ;;  %v4616_v58 = vmul.f32 %v7672_v30, %v11556_v11  ;;  %v10082_v1 = vadd.f32 %v9806_v40, %v3362_v25  ;;  %v11557_v21 = vld [vmem:[#allocation68_spill] sm:$0xff] }
 0x3fd   :  { %11555 = vst [vmem:[#allocation92_spill] sm:$0xff] %v10078_v10  ;;  %7683 = vpow2.f32 %v4047_v35  ;;  %v3772_v32 = vmax.f32 %v3770_v57, %v3771_v60  ;;  %v7676_v46 = vpop.eup %7675  ;;  %v3764_v62 = vrot.slane %v3763_v61, 1  ;;  %v4379_v24 = vrot.slane %v4378_v5, 4  ;;  %v7432_v57 = vpop.f32.mrf.mxu1 }
 0x3fe   :  { %v3783_v51 = vrot.slane %v3782_v43, 2  ;;  %v4615_v16 = vmul.f32 %v7676_v46, %v11557_v21  ;;  %v4371_v25 = vsel %vm2870_vm3, %v10078_v10, 0.0  ;;  %v4216_v11 = vadd.f32 %v4215_v56, %v4214_v29 }
 0x3ff   :  { %v3944_v35 = vsub.f32 %v10024_v55, %v3772_v32  ;;  %v3765_v60 = vmax.f32 %v3763_v61, %v3764_v62  ;;  %v5136_v39 = vmul.f32 %v4772_v34, %v4616_v58  ;;  %v3773_v18 = vsel %vm2870_vm3, %v10082_v1, -inf  ;;  %v3372_v29 = vpop.f32.mrf.mxu1 }
 0x400   :  { %v3784_v30 = vmax.f32 %v3782_v43, %v3783_v51  ;;  %v5135_v23 = vmul.f32 %v4765_v0, %v4615_v16  ;;  %v3774_v21 = vrot.slane %v3773_v18, 4  ;;  %v11559_v55 = vrot.slane %v9726_v45, 2  ;;  %v11561_v0 = vld [vmem:[#allocation69_spill] sm:$0xff] }
 0x401   :  { %v4053_v19 = vmul.f32 1.442695, %v3944_v35  ;;  %v10093_v20 = vpop.eup %7677  ;;  %v3943_v48 = vsub.f32 %v10043_v47, %v3765_v60  ;;  %v10099_v10 = vadd.f32 %v4379_v24, %v4378_v5  ;;  %v4372_v62 = vrot.slane %v4371_v25, 4  ;;  %v4786_v24 = vpop.permute.xlu1 %4785  ;;  %v11562_v35 = vld [vmem:[#allocation70_spill] sm:$0xff] }
 0x402   :  { %11558 = vst [vmem:[#allocation67_spill] sm:$0xff] %v10093_v20  ;;  %v3785_v46 = vrot.slane %v3784_v30, 1  ;;  %v4207_v32 = vadd.f32 %v11559_v55, %v9726_v45  ;;  %7474 = vmatprep.mubr.msk.f32.mxu0 %vm2870_vm3, %v5135_v23  ;;  %v10103_v16 = vadd.f32 %v9806_v40, %v7432_v57  ;;  %v3775_v47 = vmax.f32 %v3773_v18, %v3774_v21 }
 0x403   :  { %7685 = vpow2.f32 %v4053_v19  ;;  %v4051_v61 = vmul.f32 1.442695, %v3943_v48  ;;  %7475 = vmatmul.mubr.msk.f32.gmra.mxu0 %vm2870_vm3, %v5136_v39  ;;  %v4392_v45 = vsel %vm2870_vm3, %v10093_v20, 0.0  ;;  %v11560_v58 = vrot.slane %v9744_v12, 2  ;;  %v4779_v48 = vpop.permute.xlu0 %4778 }
 0x404   :  { %v3786_v43 = vmax.f32 %v3784_v30, %v3785_v46  ;;  %7687 = vrcp.f32 %v4216_v11  ;;  %v4208_v5 = vrot.slane %v4207_v32, 1  ;;  %v3794_v19 = vsel %vm2870_vm3, %v10103_v16, -inf }
 0x405   :  { %v4228_v23 = vadd.f32 %v11560_v58, %v9744_v12  ;;  %7689 = vpow2.f32 %v4051_v61  ;;  %v10116_v18 = vadd.f32 %v9806_v40, %v3372_v29  ;;  %v3776_v60 = vrot.slane %v3775_v47, 2 }
 0x406   :  { %v7680_v56 = vpop.eup %7679  ;;  %v3946_v39 = vsub.f32 %v10056_v31, %v3786_v43  ;;  %v4209_v30 = vadd.f32 %v4208_v5, %v4207_v32  ;;  %v3795_v11 = vrot.slane %v3794_v19, 4  ;;  %v10119_v46 = vadd.f32 %v4372_v62, %v4371_v25 }
 0x407   :  { %v7682_v34 = vpop.eup %7681  ;;  %v4618_v51 = vmul.f32 %v7680_v56, %v11561_v0  ;;  %v4393_v21 = vrot.slane %v4392_v45, 4  ;;  %v4229_v55 = vrot.slane %v4228_v23, 1  ;;  %v3777_v56 = vmax.f32 %v3775_v47, %v3776_v60  ;;  %v7435_v0 = vpop.f32.mrf.mxu1 }
 0x408   :  { %v4617_v57 = vmul.f32 %v7682_v34, %v11562_v35  ;;  %v4057_v12 = vmul.f32 1.442695, %v3946_v39  ;;  %7691 = vrcp.f32 %v4209_v30  ;;  %v3796_v61 = vmax.f32 %v3794_v19, %v3795_v11 }
 0x409   :  { %v5138_v29 = vmul.f32 %v4786_v24, %v4618_v51  ;;  %v4230_v43 = vadd.f32 %v4229_v55, %v4228_v23  ;;  %v3787_v34 = vsel %vm2870_vm3, %v10116_v18, -inf  ;;  %v11564_v32 = vrot.slane %v9748_v52, 2 }
 0x40a   :  { %v5137_v58 = vmul.f32 %v4779_v48, %v4617_v57  ;;  %v10121_v31 = vpop.eup %7683  ;;  %7693 = vpow2.f32 %v4057_v12  ;;  %v3778_v62 = vrot.slane %v3777_v56, 1  ;;  %v3797_v5 = vrot.slane %v3796_v61, 2 }
 0x40b   :  { %11563 = vst [vmem:[#allocation68_spill] sm:$0xff] %v10121_v31  ;;  %v4221_v25 = vadd.f32 %v11564_v32, %v9748_v52  ;;  %v3788_v47 = vrot.slane %v3787_v34, 4  ;;  %v4385_v19 = vsel %vm2870_vm3, %v10121_v31, 0.0  ;;  %7695 = vrcp.f32 %v4230_v43 }
 0x40c   :  { %7477 = vmatprep.mubr.msk.f32.mxu0 %vm2870_vm3, %v5137_v58  ;;  %v10133_v51 = vadd.f32 %v9806_v40, %v7435_v0  ;;  %v3779_v48 = vmax.f32 %v3777_v56, %v3778_v62  ;;  %v3798_v39 = vmax.f32 %v3796_v61, %v3797_v5  ;;  %v11565_v52 = vrot.slane %v9756_v6, 2  ;;  %v3382_v56 = vpop.f32.mrf.mxu1 }
 0x40d   :  { %7478 = vmatmul.mubr.msk.f32.gmra.mxu0 %vm2870_vm3, %v5138_v29  ;;  %v4222_v23 = vrot.slane %v4221_v25, 1  ;;  %v3789_v24 = vmax.f32 %v3787_v34, %v3788_v47  ;;  %v10145_v29 = vadd.f32 %v4393_v21, %v4392_v45  ;;  %v4386_v43 = vrot.slane %v4385_v19, 4 }
 0x40e   :  { %v4242_v35 = vadd.f32 %v11565_v52, %v9756_v6  ;;  %v3808_v11 = vsel %vm2870_vm3, %v10133_v51, -inf  ;;  %v3945_v12 = vsub.f32 %v10082_v1, %v3779_v48  ;;  %v3799_v55 = vrot.slane %v3798_v39, 1 }
 0x40f   :  { %v4223_v30 = vadd.f32 %v4222_v23, %v4221_v25  ;;  %v3790_v58 = vrot.slane %v3789_v24, 2  ;;  %v3809_v0 = vrot.slane %v3808_v11, 4  ;;  %v10150_v48 = vadd.f32 %v9806_v40, %v3382_v56  ;;  %v11569_v40 = vld [vmem:[#allocation71_spill] sm:$0xff] }
 0x410   :  { %v10143_v61 = vpop.eup %7685  ;;  %v4243_v6 = vrot.slane %v4242_v35, 1  ;;  %v4055_v25 = vmul.f32 1.442695, %v3945_v12  ;;  %v3800_v62 = vmax.f32 %v3798_v39, %v3799_v55  ;;  %v10159_v39 = vadd.f32 %v4386_v43, %v4385_v19 }
 0x411   :  { %11566 = vst [vmem:[#allocation69_spill] sm:$0xff] %v10143_v61  ;;  %7697 = vrcp.f32 %v4223_v30  ;;  %v7688_v34 = vpop.eup %7687  ;;  %v4406_v32 = vsel %vm2870_vm3, %v10143_v61, 0.0  ;;  %v3791_v5 = vmax.f32 %v3789_v24, %v3790_v58  ;;  %v3810_v1 = vmax.f32 %v3808_v11, %v3809_v0  ;;  %v4800_v24 = vpop.permute.xlu1 %4799 }
 0x412   :  { %v4407_v47 = vrot.slane %v4406_v32, 4  ;;  %v4244_v23 = vadd.f32 %v4243_v6, %v4242_v35  ;;  %v10152_v52 = vpop.eup %7689  ;;  %7699 = vpow2.f32 %v4055_v25  ;;  %v3948_v45 = vsub.f32 %v10103_v16, %v3800_v62  ;;  %v7438_v35 = vpop.f32.mrf.mxu1 }
 0x413   :  { %11567 = vst [vmem:[#allocation70_spill] sm:$0xff] %v10152_v52  ;;  %v3792_v21 = vrot.slane %v3791_v5, 1  ;;  %v11568_v30 = vrot.slane %v9764_v49, 2  ;;  %v3811_v11 = vrot.slane %v3810_v1, 2  ;;  %v4620_v55 = vmul.f32 %v7688_v34, %v11569_v40 }
 0x414   :  { %7701 = vrcp.f32 %v4244_v23  ;;  %v4061_v58 = vmul.f32 1.442695, %v3948_v45  ;;  %v3801_v16 = vsel %vm2870_vm3, %v10150_v48, -inf  ;;  %v4399_v6 = vsel %vm2870_vm3, %v10152_v52, 0.0  ;;  %v3392_v57 = vpop.f32.mrf.mxu1 }
 0x415   :  { %v4235_v60 = vadd.f32 %v11568_v30, %v9764_v49  ;;  %v3793_v0 = vmax.f32 %v3791_v5, %v3792_v21  ;;  %v7692_v56 = vpop.eup %7691  ;;  %v4793_v49 = vpop.permute.xlu0 %4792  ;;  %v3812_v25 = vmax.f32 %v3810_v1, %v3811_v11  ;;  %v3802_v62 = vrot.slane %v3801_v16, 4  ;;  %v11570_v30 = vld [vmem:[#allocation72_spill] sm:$0xff] }
 0x416   :  { %v10166_v43 = vadd.f32 %v4407_v47, %v4406_v32  ;;  %v4619_v23 = vmul.f32 %v7692_v56, %v11570_v30  ;;  %7703 = vpow2.f32 %v4061_v58  ;;  %v4400_v52 = vrot.slane %v4399_v6, 4  ;;  %v4814_v32 = vpop.permute.xlu1 %4813  ;;  %v11572_v47 = vld [vmem:[#allocation74_spill] sm:$0xff] }
 0x417   :  { %v4236_v19 = vrot.slane %v4235_v60, 1  ;;  %v3947_v34 = vsub.f32 %v10116_v18, %v3793_v0  ;;  %v10170_v45 = vpop.eup %7693  ;;  %v3813_v21 = vrot.slane %v3812_v25, 1  ;;  %v3803_v40 = vmax.f32 %v3801_v16, %v3802_v62 }
 0x418   :  { %11571 = vst [vmem:[#allocation71_spill] sm:$0xff] %v10170_v45  ;;  %v7696_v61 = vpop.eup %7695  ;;  %v5140_v1 = vmul.f32 %v4800_v24, %v4620_v55  ;;  %v5139_v11 = vmul.f32 %v4793_v49, %v4619_v23  ;;  %v10177_v0 = vsel %vm2870_vm3, %v10170_v45, 0.0 }
 0x419   :  { %v4237_v12 = vadd.f32 %v4236_v19, %v4235_v60  ;;  %v4059_v31 = vmul.f32 1.442695, %v3947_v34  ;;  %v4622_v20 = vmul.f32 %v7696_v61, %v11572_v47  ;;  %v3814_v56 = vmax.f32 %v3812_v25, %v3813_v21  ;;  %v10183_v60 = vld [vmem:[%s11324_s14] ss:$0 sm:$0xff]  ;;  %v7441_v25 = vpop.f32.mrf.mxu1  ;;  %v4807_v30 = vpop.permute.xlu0 %4806  ;;  %v11575_v34 = vld [vmem:[#allocation75_spill] sm:$0xff] }
 0x41a   :  { %v3804_v58 = vrot.slane %v3803_v40, 2  ;;  %7480 = vmatprep.mubr.msk.f32.mxu0 %vm2870_vm3, %v5139_v11  ;;  %v10186_v24 = vadd.f32 %v10183_v60, %v7438_v35  ;;  %v11573_v61 = vrot.slane %v9782_v44, 2  ;;  %v10194_v49 = vadd.f32 %v10183_v60, %v3392_v57 }
 0x41b   :  { %7705 = vrcp.f32 %v4237_v12  ;;  %v3950_v55 = vsub.f32 %v10133_v51, %v3814_v56  ;;  %7481 = vmatmul.mubr.msk.f32.gmra.mxu0 %vm2870_vm3, %v5140_v1  ;;  %v5142_v19 = vmul.f32 %v4814_v32, %v4622_v20  ;;  %v10205_v20 = vadd.f32 %v10183_v60, %v7441_v25 }
 0x41c   :  { %v4256_v12 = vadd.f32 %v11573_v61, %v9782_v44  ;;  %7707 = vpow2.f32 %v4059_v31  ;;  %v3805_v16 = vmax.f32 %v3803_v40, %v3804_v58  ;;  %v3822_v35 = vsel %vm2870_vm3, %v10186_v24, -inf }
 0x41d   :  { %v11574_v44 = vrot.slane %v9821_v17, 2  ;;  %v4065_v21 = vmul.f32 1.442695, %v3950_v55  ;;  %v3823_v40 = vrot.slane %v3822_v35, 4  ;;  %v3815_v57 = vsel %vm2870_vm3, %v10194_v49, -inf }
 0x41e   :  { %v7698_v62 = vpop.eup %7697  ;;  %v4257_v23 = vrot.slane %v4256_v12, 1  ;;  %v3806_v1 = vrot.slane %v3805_v16, 1 }
 0x41f   :  { %v4249_v31 = vadd.f32 %v11574_v44, %v9821_v17  ;;  %v4621_v51 = vmul.f32 %v7698_v62, %v11575_v34  ;;  %v10207_v32 = vpop.eup %7699  ;;  %7709 = vpow2.f32 %v4065_v21  ;;  %v3824_v61 = vmax.f32 %v3822_v35, %v3823_v40  ;;  %v11579_v21 = vld [vmem:[#allocation76_spill] sm:$0xff] }
 0x420   :  { %v4258_v11 = vadd.f32 %v4257_v23, %v4256_v12  ;;  %11576 = vst [vmem:[#allocation72_spill] sm:$0xff] %v10207_v32  ;;  %v3807_v58 = vmax.f32 %v3805_v16, %v3806_v1  ;;  %v4413_v55 = vsel %vm2870_vm3, %v10207_v32, 0.0  ;;  %v3816_v62 = vrot.slane %v3815_v57, 4 }
 0x421   :  { %v4250_v47 = vrot.slane %v4249_v31, 1  ;;  %v5141_v56 = vmul.f32 %v4807_v30, %v4621_v51  ;;  %v7702_v17 = vpop.eup %7701  ;;  %v10211_v23 = vadd.f32 %v4400_v52, %v4399_v6  ;;  %v4421_v44 = vrot.slane %v10177_v0, 4  ;;  %v4821_v30 = vpop.permute.xlu0 %4820 }
 0x422   :  { %7711 = vrcp.f32 %v4258_v11  ;;  %v3949_v25 = vsub.f32 %v10150_v48, %v3807_v58  ;;  %v3825_v34 = vrot.slane %v3824_v61, 2  ;;  %v3817_v16 = vmax.f32 %v3815_v57, %v3816_v62  ;;  %v3402_v11 = vpop.f32.mrf.mxu1 }
 0x423   :  { %v4251_v12 = vadd.f32 %v4250_v47, %v4249_v31  ;;  %7483 = vmatprep.mubr.msk.f32.mxu0 %vm2870_vm3, %v5141_v56  ;;  %v3836_v35 = vsel %vm2870_vm3, %v10205_v20, -inf  ;;  %v11577_v31 = vrot.slane %v9825_v38, 2  ;;  %v10222_v6 = vpop.eup %7703  ;;  %v4414_v51 = vrot.slane %v4413_v55, 4 }
 0x424   :  { %7484 = vmatmul.mubr.msk.f32.gmra.mxu0 %vm2870_vm3, %v5142_v19  ;;  %11578 = vst [vmem:[#allocation74_spill] sm:$0xff] %v10222_v6  ;;  %v4624_v48 = vmul.f32 %v7702_v17, %v11579_v21  ;;  %v4063_v1 = vmul.f32 1.442695, %v3949_v25  ;;  %v3826_v40 = vmax.f32 %v3824_v61, %v3825_v34  ;;  %v4434_v19 = vsel %vm2870_vm3, %v10222_v6, 0.0  ;;  %v11580_v25 = vld [vmem:[#allocation77_spill] sm:$0xff] }
 0x425   :  { %7713 = vrcp.f32 %v4251_v12  ;;  %v4270_v52 = vadd.f32 %v11577_v31, %v9825_v38  ;;  %v3818_v57 = vrot.slane %v3817_v16, 2  ;;  %v3837_v47 = vrot.slane %v3836_v35, 4  ;;  %v4828_v12 = vpop.permute.xlu1 %4827 }
 0x426   :  { %v4435_v62 = vrot.slane %v4434_v19, 4  ;;  %7715 = vpow2.f32 %v4063_v1  ;;  %v3827_v38 = vrot.slane %v3826_v40, 1  ;;  %v10229_v17 = vadd.f32 %v10183_v60, %v3402_v11  ;;  %v7444_v11 = vpop.f32.mrf.mxu1 }
 0x427   :  { %v4271_v56 = vrot.slane %v4270_v52, 1  ;;  %v3819_v18 = vmax.f32 %v3817_v16, %v3818_v57  ;;  %v3838_v5 = vmax.f32 %v3836_v35, %v3837_v47  ;;  %v10232_v61 = vadd.f32 %v4421_v44, %v10177_v0 }
 0x428   :  { %v7706_v31 = vpop.eup %7705  ;;  %v3828_v21 = vmax.f32 %v3826_v40, %v3827_v38  ;;  %v11581_v58 = vrot.slane %v9834_v2, 2  ;;  %v10240_v1 = vadd.f32 %v4414_v51, %v4413_v55  ;;  %v5144_v16 = vmul.f32 %v4828_v12, %v4624_v48 }
 0x429   :  { %v4272_v45 = vadd.f32 %v4271_v56, %v4270_v52  ;;  %v4623_v34 = vmul.f32 %v7706_v31, %v11580_v25  ;;  %v10238_v32 = vpop.eup %7707  ;;  %v3820_v35 = vrot.slane %v3819_v18, 1  ;;  %v4835_v52 = vpop.permute.xlu0 %4834  ;;  %v3839_v57 = vrot.slane %v3838_v5, 2 }
 0x42a   :  { %v4263_v6 = vadd.f32 %v11581_v58, %v9834_v2  ;;  %11582 = vst [vmem:[#allocation75_spill] sm:$0xff] %v10238_v32  ;;  %v10242_v47 = vadd.f32 %v4435_v62, %v4434_v19  ;;  %v3952_v44 = vsub.f32 %v10186_v24, %v3828_v21  ;;  %v3829_v2 = vsel %vm2870_vm3, %v10229_v17, -inf  ;;  %v4842_v25 = vpop.permute.xlu1 %4841  ;;  %v3412_v21 = vpop.f32.mrf.mxu1 }
 0x42b   :  { %v5143_v0 = vmul.f32 %v4821_v30, %v4623_v34  ;;  %7717 = vrcp.f32 %v4272_v45  ;;  %v3821_v40 = vmax.f32 %v3819_v18, %v3820_v35  ;;  %v3840_v56 = vmax.f32 %v3838_v5, %v3839_v57  ;;  %v11585_v57 = vld [vmem:[#allocation78_spill] sm:$0xff] }
 0x42c   :  { %v4264_v58 = vrot.slane %v4263_v6, 1  ;;  %v4427_v55 = vsel %vm2870_vm3, %v10238_v32, 0.0  ;;  %v4069_v51 = vmul.f32 1.442695, %v3952_v44  ;;  %v3830_v48 = vrot.slane %v3829_v2, 4  ;;  %v10253_v30 = vpop.eup %7709 }
 0x42d   :  { %7486 = vmatprep.mubr.msk.f32.mxu0 %vm2870_vm3, %v5143_v0  ;;  %v10251_v19 = vadd.f32 %v10183_v60, %v7444_v11  ;;  %11583 = vst [vmem:[#allocation76_spill] sm:$0xff] %v10253_v30  ;;  %v3951_v45 = vsub.f32 %v10194_v49, %v3821_v40  ;;  %v3841_v18 = vrot.slane %v3840_v56, 1  ;;  %v11584_v24 = vrot.slane %v9838_v7, 2 }
 0x42e   :  { %7487 = vmatmul.mubr.msk.f32.gmra.mxu0 %vm2870_vm3, %v5144_v16  ;;  %v4265_v5 = vadd.f32 %v4264_v58, %v4263_v6  ;;  %7719 = vpow2.f32 %v4069_v51  ;;  %v3831_v34 = vmax.f32 %v3829_v2, %v3830_v48  ;;  %v4428_v35 = vrot.slane %v4427_v55, 4  ;;  %v10263_v16 = vpop.permute.xlu0 %4848  ;;  %v11586_v51 = vld [vmem:[#allocation79_spill] sm:$0xff] }
 0x42f   :  { %v4284_v62 = vadd.f32 %v11584_v24, %v9838_v7  ;;  %v7712_v12 = vpop.eup %7711  ;;  %v4067_v11 = vmul.f32 1.442695, %v3951_v45  ;;  %v3842_v0 = vmax.f32 %v3840_v56, %v3841_v18  ;;  %v3850_v7 = vsel %vm2870_vm3, %v10251_v19, -inf }
 0x430   :  { %v4626_v49 = vmul.f32 %v7712_v12, %v11585_v57  ;;  %v3832_v44 = vrot.slane %v3831_v34, 2  ;;  %7721 = vrcp.f32 %v4265_v5  ;;  %v4448_v2 = vsel %vm2870_vm3, %v10253_v30, 0.0  ;;  %v7447_v12 = vpop.f32.mrf.mxu1 }
 0x431   :  { %v4285_v40 = vrot.slane %v4284_v62, 1  ;;  %7723 = vpow2.f32 %v4067_v11  ;;  %v3954_v45 = vsub.f32 %v10205_v20, %v3842_v0  ;;  %v3851_v18 = vrot.slane %v3850_v7, 4 }
 0x432   :  { %v7714_v6 = vpop.eup %7713  ;;  %v3833_v56 = vmax.f32 %v3831_v34, %v3832_v44  ;;  %v10274_v5 = vadd.f32 %v4428_v35, %v4427_v55  ;;  %v10277_v38 = vadd.f32 %v10183_v60, %v3412_v21  ;;  %v11588_v58 = vrot.slane %v9868_v26, 2 }
 0x433   :  { %v4625_v48 = vmul.f32 %v7714_v6, %v11586_v51  ;;  %v4286_v24 = vadd.f32 %v4285_v40, %v4284_v62  ;;  %v10272_v57 = vpop.eup %7715  ;;  %v5146_v30 = vmul.f32 %v4842_v25, %v4626_v49  ;;  %v4073_v6 = vmul.f32 1.442695, %v3954_v45  ;;  %v4856_v51 = vpop.permute.xlu1 %4855 }
 0x434   :  { %11587 = vst [vmem:[#allocation77_spill] sm:$0xff] %v10272_v57  ;;  %v4277_v11 = vadd.f32 %v11588_v58, %v9868_v26  ;;  %v3834_v20 = vrot.slane %v3833_v56, 1  ;;  %v3852_v34 = vmax.f32 %v3850_v7, %v3851_v18  ;;  %v4449_v0 = vrot.slane %v4448_v2, 4  ;;  %v3422_v49 = vpop.f32.mrf.mxu1 }
 0x435   :  { %v5145_v31 = vmul.f32 %v4835_v52, %v4625_v48  ;;  %7725 = vrcp.f32 %v4286_v24  ;;  %v3843_v55 = vsel %vm2870_vm3, %v10277_v38, -inf  ;;  %v10285_v52 = vpop.permute.xlu0 %4862  ;;  %v4441_v21 = vsel %vm2870_vm3, %v10272_v57, 0.0 }
 0x436   :  { %v4278_v62 = vrot.slane %v4277_v11, 1  ;;  %v3835_v35 = vmax.f32 %v3833_v56, %v3834_v20  ;;  %v3853_v26 = vrot.slane %v3852_v34, 2  ;;  %v3844_v25 = vrot.slane %v3843_v55, 4 }
 0x437   :  { %7489 = vmatprep.mubr.msk.f32.mxu0 %vm2870_vm3, %v5145_v31  ;;  %7727 = vpow2.f32 %v4073_v6  ;;  %v10292_v40 = vadd.f32 %v10183_v60, %v7447_v12  ;;  %v11589_v56 = vrot.slane %v9888_v63, 2  ;;  %v10298_v24 = vadd.f32 %v4449_v0, %v4448_v2 }
 0x438   :  { %7490 = vmatmul.mubr.msk.f32.gmra.mxu0 %vm2870_vm3, %v5146_v30  ;;  %v7718_v44 = vpop.eup %7717  ;;  %v4279_v31 = vadd.f32 %v4278_v62, %v4277_v11  ;;  %v3953_v58 = vsub.f32 %v10229_v17, %v3835_v35  ;;  %v3854_v48 = vmax.f32 %v3852_v34, %v3853_v26  ;;  %v3845_v45 = vmax.f32 %v3843_v55, %v3844_v25  ;;  %v10302_v62 = vpop.permute.xlu1 %4869  ;;  %v11591_v55 = vld [vmem:[#allocation80_spill] sm:$0xff] }
 0x439   :  { %v4298_v18 = vadd.f32 %v11589_v56, %v9888_v63  ;;  %v4442_v30 = vrot.slane %v4441_v21, 4  ;;  %v3864_v20 = vsel %vm2870_vm3, %v10292_v40, -inf  ;;  %v7450_v17 = vpop.f32.mrf.mxu1  ;;  %v4628_v35 = vmul.f32 %v7718_v44, %v11591_v55  ;;  %v10310_v2 = vpop.permute.xlu0 %4876 }
 0x43a   :  { %7729 = vrcp.f32 %v4279_v31  ;;  %v4071_v6 = vmul.f32 1.442695, %v3953_v58  ;;  %v3855_v11 = vrot.slane %v3854_v48, 1  ;;  %v3846_v12 = vrot.slane %v3845_v45, 2 }
 0x43b   :  { %v3865_v7 = vrot.slane %v3864_v20, 4  ;;  %v10304_v34 = vpop.eup %7719  ;;  %v4299_v26 = vrot.slane %v4298_v18, 1  ;;  %v10308_v63 = vadd.f32 %v10183_v60, %v3422_v49  ;;  %v11592_v0 = vrot.slane %v9917_v27, 2 }
 0x43c   :  { %11590 = vst [vmem:[#allocation78_spill] sm:$0xff] %v10304_v34  ;;  %v4462_v31 = vsel %vm2870_vm3, %v10304_v34, 0.0  ;;  %7731 = vpow2.f32 %v4071_v6  ;;  %v3856_v58 = vmax.f32 %v3854_v48, %v3855_v11  ;;  %v3847_v56 = vmax.f32 %v3845_v45, %v3846_v12  ;;  %v10331_v33 = vpop.permute.xlu1 %4883 }
 0x43d   :  { %v4291_v25 = vadd.f32 %v11592_v0, %v9917_v27  ;;  %v7722_v57 = vpop.eup %7721  ;;  %v4463_v32 = vrot.slane %v4462_v31, 4  ;;  %v3866_v50 = vmax.f32 %v3864_v20, %v3865_v7  ;;  %v3857_v44 = vsel %vm2870_vm3, %v10308_v63, -inf  ;;  %v10335_v41 = vpop.permute.xlu0 %4890 }
 0x43e   :  { %v10320_v49 = vadd.f32 %v10183_v60, %v7450_v17  ;;  %v10322_v55 = vpop.eup %7723  ;;  %v4627_v54 = vmul.f32 %v7722_v57, %v11593_v8  ;;  %v3956_v27 = vsub.f32 %v10251_v19, %v3856_v58  ;;  %v3848_v0 = vrot.slane %v3847_v56, 1 }
 0x43f   :  { %v3858_v34 = vrot.slane %v3857_v44, 4  ;;  %v10326_v6 = vadd.f32 %v4442_v30, %v4441_v21  ;;  %v5148_v48 = vmul.f32 %v4856_v51, %v4628_v35  ;;  %v3867_v45 = vrot.slane %v3866_v50, 2  ;;  %v3432_v30 = vpop.f32.mrf.mxu1 }
 0x440   :  { %v4300_v11 = vadd.f32 %v4299_v26, %v4298_v18  ;;  %v10328_v7 = vadd.f32 %v4463_v32, %v4462_v31  ;;  %v5147_v20 = vmul.f32 %v10263_v16, %v4627_v54  ;;  %v4077_v12 = vmul.f32 1.442695, %v3956_v27 }
 0x441   :  { %v3849_v17 = vmax.f32 %v3847_v56, %v3848_v0  ;;  %v4455_v8 = vsel %vm2870_vm3, %v10322_v55, 0.0  ;;  %v3868_v57 = vmax.f32 %v3866_v50, %v3867_v45  ;;  %v3859_v19 = vmax.f32 %v3857_v44, %v3858_v34  ;;  %v11595_v44 = vld [vmem:[#allocation82_spill] sm:$0xff] }
 0x442   :  { %v4292_v58 = vrot.slane %v4291_v25, 1  ;;  %v7726_v21 = vpop.eup %7725  ;;  %7733 = vpow2.f32 %v4077_v12  ;;  %7492 = vmatprep.mubr.msk.f32.mxu0 %vm2870_vm3, %v5147_v20  ;;  %v3878_v54 = vsel %vm2870_vm3, %v10320_v49, -inf  ;;  %v4456_v35 = vrot.slane %v4455_v8, 4 }
 0x443   :  { %v3955_v32 = vsub.f32 %v10277_v38, %v3849_v17  ;;  %v3869_v18 = vrot.slane %v3868_v57, 1  ;;  %7493 = vmatmul.mubr.msk.f32.gmra.mxu0 %vm2870_vm3, %v5148_v48  ;;  %7735 = vrcp.f32 %v4300_v11  ;;  %v3860_v50 = vrot.slane %v3859_v19, 2  ;;  %v10348_v17 = vpop.permute.xlu1 %4897 }
 0x444   :  { %v10344_v34 = vpop.eup %7727  ;;  %v4293_v31 = vadd.f32 %v4292_v58, %v4291_v25  ;;  %v3879_v56 = vrot.slane %v3878_v54, 4  ;;  %v4630_v27 = vmul.f32 %v7726_v21, %v11595_v44  ;;  %v11596_v48 = vrot.slane %v9923_v28, 2  ;;  %v10360_v21 = vpop.permute.xlu0 %4904 }
 0x445   :  { %11594 = vst [vmem:[#allocation79_spill] sm:$0xff] %v10344_v34  ;;  %v4075_v26 = vmul.f32 1.442695, %v3955_v32  ;;  %v3870_v0 = vmax.f32 %v3868_v57, %v3869_v18  ;;  %v3861_v45 = vmax.f32 %v3859_v19, %v3860_v50  ;;  %v10354_v16 = vadd.f32 %v10183_v60, %v3432_v30 }
 0x446   :  { %v3880_v12 = vmax.f32 %v3878_v54, %v3879_v56  ;;  %v4312_v11 = vadd.f32 %v11596_v48, %v9923_v28  ;;  %v4476_v25 = vsel %vm2870_vm3, %v10344_v34, 0.0  ;;  %v10366_v50 = vadd.f32 %v4456_v35, %v4455_v8 }
 0x447   :  { %v7730_v20 = vpop.eup %7729  ;;  %7737 = vpow2.f32 %v4075_v26  ;;  %v3958_v57 = vsub.f32 %v10292_v40, %v3870_v0  ;;  %v3862_v19 = vrot.slane %v3861_v45, 1  ;;  %v3871_v18 = vsel %vm2870_vm3, %v10354_v16, -inf }
 0x448   :  { %v4629_v58 = vmul.f32 %v7730_v20, %v9832_v59  ;;  %7739 = vrcp.f32 %v4293_v31  ;;  %v3881_v32 = vrot.slane %v3880_v12, 2  ;;  %v4313_v54 = vrot.slane %v4312_v11, 1  ;;  %v7453_v59 = vpop.f32.mrf.mxu1 }
 0x449   :  { %v10364_v28 = vpop.eup %7731  ;;  %v4081_v26 = vmul.f32 1.442695, %v3958_v57  ;;  %v3863_v56 = vmax.f32 %v3861_v45, %v3862_v19  ;;  %v5150_v40 = vmul.f32 %v10302_v62, %v4630_v27  ;;  %v3872_v20 = vrot.slane %v3871_v18, 4  ;;  %v10384_v57 = vpop.permute.xlu0 %4918 }
 0x44a   :  { %11597 = vst [vmem:[#allocation80_spill] sm:$0xff] %v10364_v28  ;;  %v5149_v30 = vmul.f32 %v10285_v52, %v4629_v58  ;;  %v3882_v44 = vmax.f32 %v3880_v12, %v3881_v32  ;;  %v4314_v0 = vadd.f32 %v4313_v54, %v4312_v11  ;;  %v4477_v31 = vrot.slane %v4476_v25, 4  ;;  %v10381_v12 = vpop.permute.xlu1 %4911 }
 0x44b   :  { %7741 = vpow2.f32 %v4081_v26  ;;  %v3957_v48 = vsub.f32 %v10308_v63, %v3863_v56  ;;  %v11598_v8 = vrot.slane %v9947_v42, 2  ;;  %v4469_v52 = vsel %vm2870_vm3, %v10364_v28, 0.0 }
 0x44c   :  { %7495 = vmatprep.mubr.msk.f32.mxu0 %vm2870_vm3, %v5149_v30  ;;  %v3883_v45 = vrot.slane %v3882_v44, 1  ;;  %v3873_v62 = vmax.f32 %v3871_v18, %v3872_v20  ;;  %v10379_v27 = vadd.f32 %v10183_v60, %v7453_v59  ;;  %7743 = vrcp.f32 %v4314_v0  ;;  %v3442_v30 = vpop.f32.mrf.mxu1 }
 0x44d   :  { %v4305_v35 = vadd.f32 %v11598_v8, %v9947_v42  ;;  %7496 = vmatmul.mubr.msk.f32.gmra.mxu0 %vm2870_vm3, %v5150_v40  ;;  %v4079_v11 = vmul.f32 1.442695, %v3957_v48  ;;  %v11599_v54 = vrot.slane %v9949_v9, 2  ;;  %v10393_v56 = vadd.f32 %v4477_v31, %v4476_v25 }
 0x44e   :  { %v3884_v42 = vmax.f32 %v3882_v44, %v3883_v45  ;;  %v3874_v19 = vrot.slane %v3873_v62, 2  ;;  %v3892_v32 = vsel %vm2870_vm3, %v10379_v27, -inf  ;;  %v4470_v59 = vrot.slane %v4469_v52, 4 }
 0x44f   :  { %v4306_v58 = vrot.slane %v4305_v35, 1  ;;  %v4326_v18 = vadd.f32 %v11599_v54, %v9949_v9  ;;  %v10391_v26 = vpop.eup %7733  ;;  %7745 = vpow2.f32 %v4079_v11  ;;  %v3893_v8 = vrot.slane %v3892_v32, 4 }
 0x450   :  { %11600 = vst [vmem:[#allocation81_spill] sm:$0xff] %v10391_v26  ;;  %v7736_v0 = vpop.eup %7735  ;;  %v4490_v44 = vsel %vm2870_vm3, %v10391_v26, 0.0  ;;  %v3960_v20 = vsub.f32 %v10320_v49, %v3884_v42  ;;  %v3875_v48 = vmax.f32 %v3873_v62, %v3874_v19  ;;  %v10399_v9 = vadd.f32 %v10183_v60, %v3442_v30  ;;  %v10415_v30 = vpop.permute.xlu0 %4932 }
 0x451   :  { %v4307_v40 = vadd.f32 %v4306_v58, %v4305_v35  ;;  %v4491_v45 = vrot.slane %v4490_v44, 4  ;;  %v4327_v63 = vrot.slane %v4326_v18, 1  ;;  %v3894_v31 = vmax.f32 %v3892_v32, %v3893_v8  ;;  %v10404_v58 = vpop.permute.xlu1 %4925 }
 0x452   :  { %v4085_v54 = vmul.f32 1.442695, %v3960_v20  ;;  %v3876_v25 = vrot.slane %v3875_v48, 1  ;;  %v11601_v35 = vrot.slane %v9954_v37, 2  ;;  %v10408_v49 = vadd.f32 %v4470_v59, %v4469_v52 }
 0x453   :  { %7747 = vrcp.f32 %v4307_v40  ;;  %v4328_v62 = vadd.f32 %v4327_v63, %v4326_v18  ;;  %v3885_v42 = vsel %vm2870_vm3, %v10399_v9, -inf  ;;  %v11603_v60 = vrot.slane %v9984_v22, 2  ;;  %v11604_v63 = vld [vmem:[#allocation83_spill] sm:$0xff] }
 0x454   :  { %v4319_v11 = vadd.f32 %v11601_v35, %v9954_v37  ;;  %v10406_v38 = vpop.eup %7737  ;;  %7749 = vpow2.f32 %v4085_v54  ;;  %v3877_v37 = vmax.f32 %v3875_v48, %v3876_v25  ;;  %v3895_v40 = vrot.slane %v3894_v31, 2  ;;  %v11605_v35 = vld [vmem:[#allocation84_spill] sm:$0xff] }
 0x455   :  { %11602 = vst [vmem:[#allocation82_spill] sm:$0xff] %v10406_v38  ;;  %v4340_v19 = vadd.f32 %v11603_v60, %v9984_v22  ;;  %v4483_v32 = vsel %vm2870_vm3, %v10406_v38, 0.0  ;;  %v7740_v20 = vpop.eup %7739  ;;  %v10419_v8 = vadd.f32 %v4491_v45, %v4490_v44  ;;  %v4632_v18 = vmul.f32 %v7736_v0, %v11604_v63  ;;  %v10430_v38 = vpop.permute.xlu1 %4939 }
 0x456   :  { %v4484_v52 = vrot.slane %v4483_v32, 4  ;;  %v3886_v59 = vrot.slane %v3885_v42, 4  ;;  %v4631_v51 = vmul.f32 %v7740_v20, %v11605_v35  ;;  %v3959_v26 = vsub.f32 %v10354_v16, %v3877_v37  ;;  %v10434_v37 = vpop.permute.xlu0 %4946 }
 0x457   :  { %v3896_v22 = vmax.f32 %v3894_v31, %v3895_v40  ;;  %v4320_v60 = vrot.slane %v4319_v11, 1  ;;  %7751 = vrcp.f32 %v4328_v62  ;;  %v4341_v28 = vrot.slane %v4340_v19, 1 }
 0x458   :  { %v3887_v34 = vmax.f32 %v3885_v42, %v3886_v59  ;;  %v11606_v48 = vrot.slane %v10003_v14, 2  ;;  %v10427_v25 = vpop.eup %7741  ;;  %v5151_v44 = vmul.f32 %v10310_v2, %v4631_v51  ;;  %v4083_v45 = vmul.f32 1.442695, %v3959_v26 }
 0x459   :  { %v3897_v0 = vrot.slane %v3896_v22, 1  ;;  %v4321_v63 = vadd.f32 %v4320_v60, %v4319_v11  ;;  %v4479_v16 = vrot.slane %v10393_v56, 2  ;;  %v5152_v31 = vmul.f32 %v10331_v33, %v4632_v18  ;;  %v7744_v40 = vpop.eup %7743 }
 0x45a   :  { %v4333_v54 = vadd.f32 %v11606_v48, %v10003_v14  ;;  %v3888_v62 = vrot.slane %v3887_v34, 2  ;;  %v4342_v42 = vadd.f32 %v4341_v28, %v4340_v19  ;;  %v4472_v14 = vrot.slane %v10408_v49, 2  ;;  %7498 = vmatprep.mubr.msk.f32.mxu0 %vm2870_vm3, %v5151_v44 }
 0x45b   :  { %v4504_v20 = vsel %vm2870_vm3, %v10427_v25, 0.0  ;;  %7753 = vpow2.f32 %v4083_v45  ;;  %v3898_v2 = vmax.f32 %v3896_v22, %v3897_v0  ;;  %7499 = vmatmul.mubr.msk.f32.gmra.mxu0 %vm2870_vm3, %v5152_v31  ;;  %v11607_v33 = vrot.slane %v10029_v15, 2  ;;  %v11608_v45 = vld [vmem:[#allocation85_spill] sm:$0xff] }
 0x45c   :  { %v3889_v51 = vmax.f32 %v3887_v34, %v3888_v62  ;;  %7755 = vrcp.f32 %v4321_v63  ;;  %v4334_v26 = vrot.slane %v4333_v54, 1  ;;  %v10444_v11 = vpop.eup %7745  ;;  %v4493_v19 = vrot.slane %v10419_v8, 2 }
 0x45d   :  { %v4354_v28 = vadd.f32 %v11607_v33, %v10029_v15  ;;  %v10447_v18 = vadd.f32 %v4484_v52, %v4483_v32  ;;  %v3962_v59 = vsub.f32 %v10379_v27, %v3898_v2  ;;  %7757 = vrcp.f32 %v4342_v42  ;;  %v10456_v32 = vpop.permute.xlu1 %4953  ;;  %v11610_v52 = vld [vmem:[#allocation86_spill] sm:$0xff]  ;;  %v10459_v2 = vpop.permute.xlu0 %4960 }
 0x45e   :  { %v4497_v35 = vsel %vm2870_vm3, %v10444_v11, 0.0  ;;  %v3890_v22 = vrot.slane %v3889_v51, 1  ;;  %v4335_v34 = vadd.f32 %v4334_v26, %v4333_v54  ;;  %v4505_v44 = vrot.slane %v4504_v20, 4 }
 0x45f   :  { %v4355_v60 = vrot.slane %v4354_v28, 1  ;;  %v4634_v0 = vmul.f32 %v7744_v40, %v11608_v45  ;;  %v4089_v15 = vmul.f32 1.442695, %v3962_v59  ;;  %v11609_v63 = vrot.slane %v10069_v13, 2 }
 0x460   :  { %v7748_v48 = vpop.eup %7747  ;;  %v3891_v62 = vmax.f32 %v3889_v51, %v3890_v22  ;;  %7759 = vrcp.f32 %v4335_v34  ;;  %v4486_v54 = vrot.slane %v10447_v18, 2  ;;  %v4498_v26 = vrot.slane %v4497_v35, 4 }
 0x461   :  { %v4347_v31 = vadd.f32 %v11609_v63, %v10069_v13  ;;  %v4633_v27 = vmul.f32 %v7748_v48, %v11610_v52  ;;  %v4356_v42 = vadd.f32 %v4355_v60, %v4354_v28  ;;  %v11611_v40 = vrot.slane %v10071_v36, 2  ;;  %v10465_v45 = vpop.eup %7749 }
 0x462   :  { %v3961_v63 = vsub.f32 %v10399_v9, %v3891_v62  ;;  %v11612_v51 = vrot.slane %v10074_v4, 2  ;;  %v4518_v22 = vsel %vm2870_vm3, %v10465_v45, 0.0  ;;  %v5154_v34 = vmul.f32 %v10348_v17, %v4634_v0 }
 0x463   :  { %v4348_v33 = vrot.slane %v4347_v31, 1  ;;  %v4368_v59 = vadd.f32 %v11611_v40, %v10071_v36  ;;  %v5153_v13 = vmul.f32 %v10335_v41, %v4633_v27  ;;  %7761 = vrcp.f32 %v4356_v42  ;;  %v10489_v42 = vpop.permute.xlu0 %4974 }
 0x464   :  { %v4361_v28 = vadd.f32 %v11612_v51, %v10074_v4  ;;  %v10475_v52 = vadd.f32 %v4505_v44, %v4504_v20  ;;  %7763 = vpow2.f32 %v4089_v15  ;;  %v4087_v36 = vmul.f32 1.442695, %v3961_v63  ;;  %v7752_v9 = vpop.eup %7751  ;;  %v10479_v4 = vpop.permute.xlu1 %4967 }
 0x465   :  { %v4349_v60 = vadd.f32 %v4348_v33, %v4347_v31  ;;  %v4369_v48 = vrot.slane %v4368_v59, 1  ;;  %7501 = vmatprep.mubr.msk.f32.mxu0 %vm2870_vm3, %v5153_v13  ;;  %v11613_v62 = vrot.slane %v10099_v10, 2  ;;  %v11614_v20 = vrot.slane %v10119_v46, 2 }
 0x466   :  { %v4362_v41 = vrot.slane %v4361_v28, 1  ;;  %7502 = vmatmul.mubr.msk.f32.gmra.mxu0 %vm2870_vm3, %v5154_v34  ;;  %v10487_v0 = vadd.f32 %v4498_v26, %v4497_v35  ;;  %v4519_v15 = vrot.slane %v4518_v22, 4  ;;  %v11618_v26 = vrot.slane %v10166_v43, 2 }
 0x467   :  { %7765 = vrcp.f32 %v4349_v60  ;;  %v4370_v27 = vadd.f32 %v4369_v48, %v4368_v59  ;;  %v4382_v17 = vadd.f32 %v11613_v62, %v10099_v10  ;;  %v4375_v44 = vadd.f32 %v11614_v20, %v10119_v46  ;;  %v11616_v10 = vld [vmem:[#allocation87_spill] sm:$0xff] }
 0x468   :  { %7767 = vpow2.f32 %v4087_v36  ;;  %v4363_v31 = vadd.f32 %v4362_v41, %v4361_v28  ;;  %v11615_v59 = vrot.slane %v10145_v29, 2  ;;  %v10494_v63 = vpop.eup %7753  ;;  %v4636_v51 = vmul.f32 %v7752_v9, %v11616_v10  ;;  %v11619_v9 = vld [vmem:[#allocation88_spill] sm:$0xff] }
 0x469   :  { %7769 = vrcp.f32 %v4370_v27  ;;  %v4383_v33 = vrot.slane %v4382_v17, 1  ;;  %v4376_v40 = vrot.slane %v4375_v44, 1  ;;  %v11617_v46 = vrot.slane %v10159_v39, 2  ;;  %v7756_v34 = vpop.eup %7755 }
 0x46a   :  { %v4396_v13 = vadd.f32 %v11615_v59, %v10145_v29  ;;  %7771 = vrcp.f32 %v4363_v31  ;;  %v4410_v28 = vadd.f32 %v11618_v26, %v10166_v43  ;;  %v4511_v60 = vsel %vm2870_vm3, %v10494_v63, 0.0  ;;  %v7758_v41 = vpop.eup %7757 }
 0x46b   :  { %v4389_v35 = vadd.f32 %v11617_v46, %v10159_v39  ;;  %v4384_v48 = vadd.f32 %v4383_v33, %v4382_v17  ;;  %v4377_v36 = vadd.f32 %v4376_v40, %v4375_v44  ;;  %v10505_v27 = vadd.f32 %v4519_v15, %v4518_v22  ;;  %v10508_v39 = vpop.permute.xlu1 %4981  ;;  %v10515_v15 = vpop.permute.xlu0 %4988 }
 0x46c   :  { %v4397_v29 = vrot.slane %v4396_v13, 1  ;;  %v4635_v62 = vmul.f32 %v7756_v34, %v11619_v9  ;;  %v4411_v31 = vrot.slane %v4410_v28, 1  ;;  %v4512_v59 = vrot.slane %v4511_v60, 4 }
 0x46d   :  { %v4390_v20 = vrot.slane %v4389_v35, 1  ;;  %7773 = vrcp.f32 %v4384_v48  ;;  %v11620_v43 = vrot.slane %v10211_v23, 2  ;;  %v4638_v44 = vmul.f32 %v7758_v41, %v9939_v53  ;;  %v7760_v33 = vpop.eup %7759 }
 0x46e   :  { %v4398_v10 = vadd.f32 %v4397_v29, %v4396_v13  ;;  %v5155_v17 = vmul.f32 %v10360_v21, %v4635_v62  ;;  %7775 = vrcp.f32 %v4377_v36  ;;  %v4507_v40 = vrot.slane %v10475_v52, 2 }
 0x46f   :  { %v4403_v46 = vadd.f32 %v11620_v43, %v10211_v23  ;;  %v4391_v22 = vadd.f32 %v4390_v20, %v4389_v35  ;;  %v5156_v26 = vmul.f32 %v10381_v12, %v4636_v51  ;;  %v4637_v13 = vmul.f32 %v7760_v33, %v9977_v3  ;;  %v10536_v62 = vpop.permute.xlu1 %4995  ;;  %v11625_v43 = vld [vmem:[#allocation89_spill] sm:$0xff] }
 0x470   :  { %7777 = vrcp.f32 %v4398_v10  ;;  %7504 = vmatprep.mubr.msk.f32.mxu0 %vm2870_vm3, %v5155_v17  ;;  %v4412_v23 = vadd.f32 %v4411_v31, %v4410_v28  ;;  %v11621_v53 = vrot.slane %v10232_v61, 2  ;;  %v7762_v35 = vpop.eup %7761  ;;  %v4500_v48 = vrot.slane %v10487_v0, 2 }
 0x471   :  { %v4404_v34 = vrot.slane %v4403_v46, 1  ;;  %7779 = vrcp.f32 %v4391_v22  ;;  %v4521_v36 = vrot.slane %v10505_v27, 2  ;;  %7505 = vmatmul.mubr.msk.f32.gmra.mxu0 %vm2870_vm3, %v5156_v26  ;;  %v11622_v51 = vrot.slane %v10240_v1, 2 }
 0x472   :  { %v4424_v21 = vadd.f32 %v11621_v53, %v10232_v61  ;;  %v10530_v41 = vadd.f32 %v4512_v59, %v4511_v60  ;;  %v5158_v3 = vmul.f32 %v10404_v58, %v4638_v44  ;;  %v5157_v28 = vmul.f32 %v10384_v57, %v4637_v13  ;;  %v10534_v61 = vpop.eup %7763 }
 0x473   :  { %v4405_v12 = vadd.f32 %v4404_v34, %v4403_v46  ;;  %v4417_v29 = vadd.f32 %v11622_v51, %v10240_v1  ;;  %v11623_v31 = vrot.slane %v10242_v47, 2  ;;  %v11624_v1 = vrot.slane %v10274_v5, 2  ;;  %v10546_v46 = vpop.permute.xlu0 %5002  ;;  %v11628_v51 = vld [vmem:[#allocation91_spill] sm:$0xff] }
 0x474   :  { %v4425_v9 = vrot.slane %v4424_v21, 1  ;;  %v7766_v59 = vpop.eup %7765  ;;  %v4640_v58 = vmul.f32 %v7762_v35, %v11625_v43  ;;  %7507 = vmatprep.mubr.msk.f32.mxu0 %vm2870_vm3, %v5157_v28  ;;  %v11626_v17 = vrot.slane %v10298_v24, 2 }
 0x475   :  { %7781 = vrcp.f32 %v4405_v12  ;;  %v4418_v20 = vrot.slane %v4417_v29, 1  ;;  %v4438_v10 = vadd.f32 %v11623_v31, %v10242_v47  ;;  %v4431_v60 = vadd.f32 %v11624_v1, %v10274_v5  ;;  %v10551_v22 = vpop.eup %7767  ;;  %v11627_v47 = vld [vmem:[#allocation90_spill] sm:$0xff]  ;;  %7508 = vmatmul.mubr.msk.f32.gmra.mxu0 %vm2870_vm3, %v5158_v3  ;;  %v11629_v3 = vld [vmem:[#allocation73_spill] sm:$0xff] }
 0x476   :  { %7783 = vrcp.f32 %v4412_v23  ;;  %v4426_v57 = vadd.f32 %v4425_v9, %v4424_v21  ;;  %v4452_v44 = vadd.f32 %v11626_v17, %v10298_v24  ;;  %v4639_v33 = vmul.f32 %v7766_v59, %v11627_v47  ;;  %v7770_v13 = vpop.eup %7769  ;;  %v10564_v59 = vpop.permute.xlu1 %5009 }
 0x477   :  { %v4419_v5 = vadd.f32 %v4418_v20, %v4417_v29  ;;  %v4439_v26 = vrot.slane %v4438_v10, 1  ;;  %v4432_v34 = vrot.slane %v4431_v60, 1  ;;  %v4532_v23 = vsel %vm2870_vm3, %v10534_v61, 0.0  ;;  %v7772_v35 = vpop.eup %7771 }
 0x478   :  { %v4525_v53 = vsel %vm2870_vm3, %v10551_v22, 0.0  ;;  %7785 = vrcp.f32 %v4426_v57  ;;  %v4453_v21 = vrot.slane %v4452_v44, 1  ;;  %v5159_v12 = vmul.f32 %v10415_v30, %v4639_v33 }
 0x479   :  { %v4526_v24 = vrot.slane %v4525_v53, 4  ;;  %v4642_v28 = vmul.f32 %v7770_v13, %v11628_v51  ;;  %7787 = vrcp.f32 %v4419_v5  ;;  %v5160_v29 = vmul.f32 %v10430_v38, %v4640_v58 }
 0x47a   :  { %v4641_v9 = vmul.f32 %v7772_v35, %v11629_v3  ;;  %v4440_v20 = vadd.f32 %v4439_v26, %v4438_v10  ;;  %v4433_v31 = vadd.f32 %v4432_v34, %v4431_v60  ;;  %v4533_v1 = vrot.slane %v4532_v23, 4  ;;  %7510 = vmatprep.mubr.msk.f32.mxu0 %vm2870_vm3, %v5159_v12  ;;  %v7774_v33 = vpop.eup %7773  ;;  %v10576_v60 = vpop.permute.xlu0 %5016  ;;  %v11633_v26 = vld [vmem:[#allocation66_spill] sm:$0xff]  ;;  %v11635_v12 = vld [vmem:[#allocation67_spill] sm:$0xff] }
 0x47b   :  { %v4454_v43 = vadd.f32 %v4453_v21, %v4452_v44  ;;  %v11630_v57 = vrot.slane %v10326_v6, 2  ;;  %v11631_v30 = vrot.slane %v10328_v7, 2  ;;  %v10572_v38 = vadd.f32 %v4526_v24, %v4525_v53  ;;  %7511 = vmatmul.mubr.msk.f32.gmra.mxu0 %vm2870_vm3, %v5160_v29  ;;  %v7776_v5 = vpop.eup %7775  ;;  %v11634_v53 = vld [vmem:[#allocation92_spill] sm:$0xff] }
 0x47c   :  { %v5161_v10 = vmul.f32 %v10434_v37, %v4641_v9  ;;  %v11632_v58 = vrot.slane %v10366_v50, 2  ;;  %v4644_v34 = vmul.f32 %v7774_v33, %v11633_v26  ;;  %7789 = vrcp.f32 %v4433_v31 }
 0x47d   :  { %v4445_v17 = vadd.f32 %v11630_v57, %v10326_v6  ;;  %v4466_v47 = vadd.f32 %v11631_v30, %v10328_v7  ;;  %v4480_v6 = vadd.f32 %v4479_v16, %v10393_v56  ;;  %v5162_v7 = vmul.f32 %v10456_v32, %v4642_v28  ;;  %v7778_v37 = vpop.eup %7777  ;;  %v11636_v28 = vld [vmem:[#allocation68_spill] sm:$0xff]  ;;  %v10596_v30 = vpop.permute.xlu1 %5023 }
 0x47e   :  { %v4459_v44 = vadd.f32 %v11632_v58, %v10366_v50  ;;  %7513 = vmatprep.mubr.msk.f32.mxu0 %vm2870_vm3, %v5161_v10  ;;  %v4643_v21 = vmul.f32 %v7776_v5, %v11634_v53  ;;  %7791 = vrcp.f32 %v4440_v20  ;;  %v7780_v50 = vpop.eup %7779  ;;  %v4646_v51 = vmul.f32 %v7778_v37, %v11635_v12  ;;  %v11637_v10 = vld [vmem:[#allocation70_spill] sm:$0xff] }
 0x47f   :  { %v4446_v13 = vrot.slane %v4445_v17, 1  ;;  %v4467_v35 = vrot.slane %v4466_v47, 1  ;;  %7793 = vrcp.f32 %v4454_v43  ;;  %v4481_v16 = vrot.slane %v4480_v6, 1  ;;  %7514 = vmatmul.mubr.msk.f32.gmra.mxu0 %vm2870_vm3, %v5162_v7  ;;  %v11638_v7 = vld [vmem:[#allocation69_spill] sm:$0xff] }
 0x480   :  { %v4460_v24 = vrot.slane %v4459_v44, 1  ;;  %v5163_v32 = vmul.f32 %v10459_v2, %v4643_v21  ;;  %v4645_v29 = vmul.f32 %v7780_v50, %v11636_v28  ;;  %v4514_v31 = vrot.slane %v10530_v41, 2  ;;  %v11640_v50 = vld [vmem:[#allocation3_spill] sm:$0xff] }
 0x481   :  { %v4447_v56 = vadd.f32 %v4446_v13, %v4445_v17  ;;  %v4468_v3 = vadd.f32 %v4467_v35, %v4466_v47  ;;  %v10593_v57 = vadd.f32 %v4533_v1, %v4532_v23  ;;  %v5164_v20 = vmul.f32 %v10479_v4, %v4644_v34  ;;  %v10600_v17 = vpop.permute.xlu0 %5030  ;;  %v11639_v34 = vld [vmem:[#allocation72_spill] sm:$0xff]  ;;  %v10631_v37 = vpop.permute.xlu1 %5037 }
 0x482   :  { %v4461_v9 = vadd.f32 %v4460_v24, %v4459_v44  ;;  %v7782_v43 = vpop.eup %7781  ;;  %7516 = vmatprep.mubr.msk.f32.mxu0 %vm2870_vm3, %v5163_v32  ;;  %v5165_v2 = vmul.f32 %v10489_v42, %v4645_v29  ;;  %v4482_v33 = vadd.f32 %v4481_v16, %v4480_v6  ;;  %v4473_v47 = vadd.f32 %v4472_v14, %v10408_v49  ;;  %v191_v32 = vld [vmem:[%s11325_s3 + $0x18] sm:$0xff] }
 0x483   :  { %7795 = vrcp.f32 %v4447_v56  ;;  %v4494_v23 = vadd.f32 %v4493_v19, %v10419_v8  ;;  %v7784_v4 = vpop.eup %7783  ;;  %v4528_v1 = vrot.slane %v10572_v38, 2  ;;  %v4647_v58 = vmul.f32 %v7782_v43, %v11637_v10  ;;  %7517 = vmatmul.mubr.msk.f32.gmra.mxu0 %vm2870_vm3, %v5164_v20  ;;  %v11642_v20 = vld [vmem:[#allocation75_spill] sm:$0xff]  ;;  %v11643_v10 = vld [vmem:[#allocation2_spill] sm:$0xff] }
 0x484   :  { %7797 = vrcp.f32 %v4461_v9  ;;  %v4487_v42 = vadd.f32 %v4486_v54, %v10447_v18  ;;  %v5166_v44 = vmul.f32 %v10508_v39, %v4646_v51  ;;  %v4474_v49 = vrot.slane %v4473_v47, 1  ;;  %7519 = vmatprep.mubr.msk.f32.mxu0 %vm2870_vm3, %v5165_v2  ;;  %v189_v54 = vld [vmem:[%s11325_s3 + $0x8] sm:$0xff] }
 0x485   :  { %7799 = vrcp.f32 %v4468_v3  ;;  %v4508_v8 = vadd.f32 %v4507_v40, %v10475_v52  ;;  %v7786_v14 = vpop.eup %7785  ;;  %v5167_v19 = vmul.f32 %v10515_v15, %v4647_v58  ;;  %v4495_v6 = vrot.slane %v4494_v23, 1  ;;  %v7458_v15 = vpop.f32.mrf.mxu0 }
 0x486   :  { %v4488_v5 = vrot.slane %v4487_v42, 1  ;;  %v4501_v18 = vadd.f32 %v4500_v48, %v10487_v0  ;;  %v7788_v39 = vpop.eup %7787  ;;  %v4648_v26 = vmul.f32 %v7784_v4, %v11638_v7  ;;  %7801 = vrcp.f32 %v4482_v33  ;;  %v10635_v35 = vpop.permute.xlu0 %5044 }
 0x487   :  { %v4475_v52 = vadd.f32 %v4474_v49, %v4473_v47  ;;  %v4522_v40 = vadd.f32 %v4521_v36, %v10505_v27  ;;  %v4649_v13 = vmul.f32 %v7788_v39, %v11639_v34  ;;  %v4509_v0 = vrot.slane %v4508_v8, 1  ;;  %7520 = vmatmul.mubr.msk.f32.gmra.mxu0 %vm2870_vm3, %v5166_v44  ;;  %v11641_v27 = vld [vmem:[#allocation71_spill] sm:$0xff]  ;;  %v5449_v9 = vpop.f32.mrf.mxu0  ;;  %v10654_v44 = vpop.permute.xlu1 %5051  ;;  %v11644_v49 = vld [vmem:[#allocation74_spill] sm:$0xff]  ;;  %v11647_v39 = vld [vmem:[#allocation77_spill] sm:$0xff] }
 0x488   :  { %v4489_v53 = vadd.f32 %v4488_v5, %v4487_v42  ;;  %v4502_v48 = vrot.slane %v4501_v18, 1  ;;  %v4535_v21 = vrot.slane %v10593_v57, 2  ;;  %v4515_v24 = vadd.f32 %v4514_v31, %v10530_v41  ;;  %7522 = vmatprep.mubr.msk.f32.mxu0 %vm2870_vm3, %v5167_v19 }
 0x489   :  { %7803 = vrcp.f32 %v4475_v52  ;;  %v2170_v12 = vadd.f32 %v11640_v50, %v189_v54  ;;  %v4650_v36 = vmul.f32 %v7786_v14, %v11641_v27  ;;  %v5169_v51 = vmul.f32 %v10546_v46, %v4649_v13  ;;  %v7790_v28 = vpop.eup %7789  ;;  %v11646_v54 = vld [vmem:[#allocation76_spill] sm:$0xff] }
 0x48a   :  { %v4496_v56 = vadd.f32 %v4495_v6, %v4494_v23  ;;  %v4503_v16 = vadd.f32 %v4502_v48, %v4501_v18  ;;  %v5168_v29 = vmul.f32 %v10536_v62, %v4648_v26  ;;  %7805 = vrcp.f32 %v4489_v53  ;;  %v5059_v14 = vpop.permute.xlu0 %5058  ;;  %v7461_v18 = vpop.f32.mrf.mxu0 }
 0x48b   :  { %v4523_v3 = vrot.slane %v4522_v40, 1  ;;  %v4516_v41 = vrot.slane %v4515_v24, 1  ;;  %v7792_v31 = vpop.eup %7791  ;;  %v4651_v43 = vmul.f32 %v7790_v28, %v11642_v20  ;;  %v4510_v2 = vadd.f32 %v4509_v0, %v4508_v8  ;;  %v11650_v20 = vld [vmem:[#allocation80_spill] sm:$0xff] }
 0x48c   :  { %v4529_v33 = vadd.f32 %v4528_v1, %v10572_v38  ;;  %v5769_v46 = vmul.f32 %v7458_v15, %v2170_v12  ;;  %v7794_v47 = vpop.eup %7793  ;;  %7523 = vmatmul.mubr.msk.f32.gmra.mxu0 %vm2870_vm3, %v5168_v29  ;;  %7807 = vrcp.f32 %v4503_v16  ;;  %v4536_v4 = vadd.f32 %v4535_v21, %v10593_v57  ;;  %v11645_v57 = vld [vmem:[#allocation65_spill] sm:$0xff]  ;;  %v11648_v16 = vld [vmem:[#allocation64_spill] sm:$0xff] }
 0x48d   :  { %v4517_v23 = vadd.f32 %v4516_v41, %v4515_v24  ;;  %v2172_v62 = vadd.f32 %v11643_v10, %v191_v32  ;;  %v5170_v58 = vmul.f32 %v10564_v59, %v4650_v36  ;;  %7525 = vmatprep.mubr.msk.f32.mxu0 %vm2870_vm3, %v5169_v51  ;;  %v5171_v42 = vmul.f32 %v10576_v60, %v4651_v43  ;;  %v5066_v36 = vpop.permute.xlu1 %5065 }
 0x48e   :  { %7809 = vrcp.f32 %v4496_v56  ;;  %v4530_v38 = vrot.slane %v4529_v33, 1  ;;  %v4652_v8 = vmul.f32 %v7792_v31, %v11644_v49  ;;  %v4524_v19 = vadd.f32 %v4523_v3, %v4522_v40  ;;  %v5459_v40 = vpop.f32.mrf.mxu0 }
 0x48f   :  { %v5839_v6 = vsel %vm927_vm2, %v5769_v46, 0.0  ;;  %v5768_v5 = vmul.f32 %v5449_v9, %v11645_v57  ;;  %v4654_v59 = vmul.f32 %v7794_v47, %v11646_v54  ;;  %7811 = vrcp.f32 %v4510_v2  ;;  %v11652_v57 = vld [vmem:[#allocation79_spill] sm:$0xff]  ;;  %v10689_v54 = vld [vmem:[%s11327_s16] ss:$0 sm:$0xff] }
 0x490   :  { %v7796_v1 = vpop.eup %7795  ;;  %v5840_v60 = vrot.slane %v5839_v6, 4  ;;  %7526 = vmatmul.mubr.msk.f32.gmra.mxu0 %vm2870_vm3, %v5170_v58  ;;  %7813 = vrcp.f32 %v4517_v23  ;;  %v4537_v52 = vrot.slane %v4536_v4, 1  ;;  %v5771_v34 = vmul.f32 %v7461_v18, %v2172_v62 }
 0x491   :  { %v4653_v7 = vmul.f32 %v7796_v1, %v11647_v39  ;;  %v7798_v26 = vpop.eup %7797  ;;  %v5832_v15 = vsel %vm927_vm2, %v5768_v5, 0.0  ;;  %7528 = vmatprep.mubr.msk.f32.mxu0 %vm2870_vm3, %v5171_v42  ;;  %v4531_v48 = vadd.f32 %v4530_v38, %v4529_v33  ;;  %v5172_v24 = vmul.f32 %v10596_v30, %v4652_v8  ;;  %v5080_v42 = vpop.permute.xlu1 %5079  ;;  %v11651_v38 = vld [vmem:[#allocation82_spill] sm:$0xff] }
 0x492   :  { %v7800_v13 = vpop.eup %7799  ;;  %v4655_v0 = vmul.f32 %v7798_v26, %v10322_v55  ;;  %v5841_v21 = vadd.f32 %v5840_v60, %v5839_v6  ;;  %7815 = vrcp.f32 %v4524_v19  ;;  %v5833_v50 = vrot.slane %v5832_v15, 4  ;;  %v5073_v55 = vpop.permute.xlu0 %5072 }
 0x493   :  { %v5173_v53 = vmul.f32 %v10600_v17, %v4653_v7  ;;  %v7802_v12 = vpop.eup %7801  ;;  %v5174_v27 = vmul.f32 %v10631_v37, %v4654_v59  ;;  %v5853_v56 = vsel %vm927_vm2, %v5771_v34, 0.0  ;;  %v5770_v32 = vmul.f32 %v5459_v40, %v11648_v16  ;;  %v11649_v17 = vld [vmem:[#allocation78_spill] sm:$0xff]  ;;  %v11654_v16 = vld [vmem:[#allocation7_spill] sm:$0xff] }
 0x494   :  { %v5842_v51 = vrot.slane %v5841_v21, 2  ;;  %7529 = vmatmul.mubr.msk.f32.gmra.mxu0 %vm2870_vm3, %v5172_v24  ;;  %v4656_v28 = vmul.f32 %v7800_v13, %v11649_v17  ;;  %v4538_v29 = vadd.f32 %v4537_v52, %v4536_v4  ;;  %v5834_v3 = vadd.f32 %v5833_v50, %v5832_v15  ;;  %v10680_v4 = vld [vmem:[%s11326_s15] ss:$0 sm:$0xff]  ;;  %v193_v15 = vld [vmem:[%s11325_s3 + $0x28] sm:$0xff]  ;;  %v11655_v17 = vld [vmem:[#allocation4_spill] sm:$0xff] }
 0x495   :  { %v5854_v41 = vrot.slane %v5853_v56, 4  ;;  %7531 = vmatprep.mubr.msk.f32.mxu0 %vm2870_vm3, %v5173_v53  ;;  %v5175_v9 = vmul.f32 %v10635_v35, %v4655_v0  ;;  %7817 = vrcp.f32 %v4531_v48  ;;  %v5846_v31 = vsel %vm927_vm2, %v5770_v32, 0.0  ;;  %v192_v34 = vld [vmem:[%s11325_s3 + $0x20] sm:$0xff] }
 0x496   :  { %v7804_v30 = vpop.eup %7803  ;;  %v5843_v37 = vadd.f32 %v5842_v51, %v5841_v21  ;;  %v5835_v2 = vrot.slane %v5834_v3, 2  ;;  %v5847_v46 = vrot.slane %v5846_v31, 4  ;;  %7819 = vrcp.f32 %v4538_v29  ;;  %v5087_v18 = vpop.permute.xlu0 %5086  ;;  %v11653_v21 = vld [vmem:[#allocation81_spill] sm:$0xff] }
 0x497   :  { %v4657_v43 = vmul.f32 %v7804_v30, %v11650_v20  ;;  %v5855_v33 = vadd.f32 %v5854_v41, %v5853_v56  ;;  %v7806_v47 = vpop.eup %7805  ;;  %v5176_v6 = vmul.f32 %v10654_v44, %v4656_v28  ;;  %v4658_v5 = vmul.f32 %v7802_v12, %v11652_v57 }
 0x498   :  { %v5844_v23 = vrot.slane %v5843_v37, 1  ;;  %7532 = vmatmul.mubr.msk.f32.gmra.mxu0 %vm2870_vm3, %v5174_v27  ;;  %v5836_v35 = vadd.f32 %v5835_v2, %v5834_v3  ;;  %v4659_v1 = vmul.f32 %v7806_v47, %v11651_v38  ;;  %v5848_v8 = vadd.f32 %v5847_v46, %v5846_v31  ;;  %v5094_v27 = vpop.permute.xlu1 %5093 }
 0x499   :  { %v5856_v10 = vrot.slane %v5855_v33, 2  ;;  %v7808_v62 = vpop.eup %7807  ;;  %7534 = vmatprep.mubr.msk.f32.mxu0 %vm2870_vm3, %v5175_v9  ;;  %v5177_v58 = vmul.f32 %v5059_v14, %v4657_v43  ;;  %v5178_v48 = vmul.f32 %v5066_v36, %v4658_v5  ;;  %v2174_v32 = vadd.f32 %v11654_v16, %v193_v15 }
 0x49a   :  { %v5845_v49 = vadd.f32 %v5844_v23, %v5843_v37  ;;  %v5837_v59 = vrot.slane %v5836_v35, 1  ;;  %v5849_v7 = vrot.slane %v5848_v8, 2  ;;  %v4661_v26 = vmul.f32 %v7808_v62, %v10444_v11  ;;  %v5101_v29 = vpop.permute.xlu0 %5100 }
 0x49b   :  { %v7810_v19 = vpop.eup %7809  ;;  %v5857_v39 = vadd.f32 %v5856_v10, %v5855_v33  ;;  %v5179_v13 = vmul.f32 %v5073_v55, %v4659_v1  ;;  %v2173_v28 = vadd.f32 %v11655_v17, %v192_v34 }
 0x49c   :  { %v6288_v14 = vmul.f32 %v10680_v4, %v5845_v49  ;;  %v7812_v60 = vpop.eup %7811  ;;  %7535 = vmatmul.mubr.msk.f32.gmra.mxu0 %vm2870_vm3, %v5176_v6  ;;  %v5838_v52 = vadd.f32 %v5837_v59, %v5836_v35  ;;  %v5850_v0 = vadd.f32 %v5849_v7, %v5848_v8  ;;  %v4660_v11 = vmul.f32 %v7810_v19, %v11653_v21  ;;  %v7464_v41 = vpop.f32.mrf.mxu0 }
 0x49d   :  { %v5858_v44 = vrot.slane %v5857_v39, 1  ;;  %v7814_v40 = vpop.eup %7813  ;;  %7537 = vmatprep.mubr.msk.f32.mxu0 %vm2870_vm3, %v5177_v58  ;;  %v5181_v55 = vmul.f32 %v5087_v18, %v4661_v26  ;;  %v5773_v31 = vmul.f32 %v7464_v41, %v2174_v32  ;;  %v4662_v2 = vmul.f32 %v7812_v60, %v10427_v25  ;;  %v195_v25 = vld [vmem:[%s11325_s3 + $0x38] sm:$0xff]  ;;  %v5108_v38 = vpop.permute.xlu1 %5107 }
 0x49e   :  { %v6359_v53 = vadd.f32 %v10689_v54, %v6288_v14  ;;  %v6287_v24 = vmul.f32 %v10680_v4, %v5838_v52  ;;  %v5851_v56 = vrot.slane %v5850_v0, 1  ;;  %v4663_v30 = vmul.f32 %v7814_v40, %v10494_v63  ;;  %v5469_v47 = vpop.f32.mrf.mxu0 }
 0x49f   :  { %v5859_v50 = vadd.f32 %v5858_v44, %v5857_v39  ;;  %v7816_v12 = vpop.eup %7815  ;;  %v5180_v43 = vmul.f32 %v5080_v42, %v4660_v11  ;;  %v5867_v35 = vsel %vm927_vm2, %v5773_v31, 0.0  ;;  %v5772_v10 = vmul.f32 %v5469_v47, %v2173_v28  ;;  %v11656_v39 = vld [vmem:[#allocation5_spill] sm:$0xff]  ;;  %v11657_v11 = vld [vmem:[#allocation6_spill] sm:$0xff] }
 0x4a0   :  { %v6423_v51 = vmax.f32 %v6359_v53, 0.0  ;;  %7538 = vmatmul.mubr.msk.f32.gmra.mxu0 %vm2870_vm3, %v5178_v48  ;;  %v6358_v3 = vadd.f32 %v10689_v54, %v6287_v24  ;;  %v5852_v37 = vadd.f32 %v5851_v56, %v5850_v0  ;;  %v4664_v63 = vmul.f32 %v7816_v12, %v10465_v45  ;;  %v5115_v45 = vpop.permute.xlu0 %5114 }
 0x4a1   :  { %v6290_v36 = vmul.f32 %v10680_v4, %v5859_v50  ;;  %7540 = vmatprep.mubr.msk.f32.mxu0 %vm2870_vm3, %v5179_v13  ;;  %v5868_v58 = vrot.slane %v5867_v35, 4  ;;  %v5183_v1 = vmul.f32 %v5101_v29, %v4663_v30  ;;  %v5860_v19 = vsel %vm927_vm2, %v5772_v10, 0.0  ;;  %v5122_v48 = vpop.permute.xlu1 %5121 }
 0x4a2   :  { %v6550_v9 = vrot.slane %v6423_v51, 7  ;;  %v7818_v20 = vpop.eup %7817  ;;  %v6422_v33 = vmax.f32 %v6358_v3, 0.0  ;;  %v6289_v23 = vmul.f32 %v10680_v4, %v5852_v37  ;;  %v5182_v6 = vmul.f32 %v5094_v27, %v4662_v2 }
 0x4a3   :  { %v6361_v46 = vadd.f32 %v10689_v54, %v6290_v36  ;;  %v7820_v42 = vpop.eup %7819  ;;  %v4665_v49 = vmul.f32 %v7818_v20, %v10551_v22  ;;  %v5869_v5 = vadd.f32 %v5868_v58, %v5867_v35  ;;  %v5861_v18 = vrot.slane %v5860_v19, 4  ;;  %v194_v22 = vld [vmem:[%s11325_s3 + $0x30] sm:$0xff]  ;;  %v197_v20 = vld [vmem:[%s11325_s3 + $0x48] sm:$0xff] }
 0x4a4   :  { %7541 = vmatmul.mubr.msk.f32.gmra.mxu0 %vm2870_vm3, %v5180_v43  ;;  %v6552_v62 = vsel %vm6551_vm4, %v6550_v9, %v6422_v33  ;;  %v6360_v8 = vadd.f32 %v10689_v54, %v6289_v23  ;;  %v2176_v14 = vadd.f32 %v11656_v39, %v195_v25  ;;  %v5184_v26 = vmul.f32 %v5108_v38, %v4664_v63  ;;  %v7467_v34 = vpop.f32.mrf.mxu0  ;;  %v11658_v35 = vld [vmem:[#allocation11_spill] sm:$0xff]  ;;  %v11659_v38 = vld [vmem:[#allocation8_spill] sm:$0xff] }
 0x4a5   :  { %7543 = vmatprep.mubr.msk.f32.mxu0 %vm2870_vm3, %v5181_v55  ;;  %v6425_v57 = vmax.f32 %v6361_v46, 0.0  ;;  %v5870_v7 = vrot.slane %v5869_v5, 2  ;;  %v5862_v60 = vadd.f32 %v5861_v18, %v5860_v19  ;;  %v4666_v52 = vmul.f32 %v7820_v42, %v10534_v61  ;;  %v196_v46 = vld [vmem:[%s11325_s3 + $0x40] sm:$0xff] }
 0x4a6   :  { %v6424_v59 = vmax.f32 %v6360_v8, 0.0  ;;  %v5185_v44 = vmul.f32 %v5115_v45, %v4665_v49  ;;  %v5775_v0 = vmul.f32 %v7467_v34, %v2176_v14  ;;  %v2175_v24 = vadd.f32 %v11657_v11, %v194_v22  ;;  %v5479_v50 = vpop.f32.mrf.mxu0  ;;  %v199_v14 = vld [vmem:[%s11325_s3 + $0x58] sm:$0xff] }
 0x4a7   :  { %v6556_v40 = vrot.slane %v6425_v57, 5  ;;  %v5871_v13 = vadd.f32 %v5870_v7, %v5869_v5  ;;  %v5863_v53 = vrot.slane %v5862_v60, 2  ;;  %v5186_v32 = vmul.f32 %v5122_v48, %v4666_v52  ;;  %v11660_v34 = vld [vmem:[#allocation9_spill] sm:$0xff] }
 0x4a8   :  { %7544 = vmatmul.mubr.msk.f32.gmra.mxu0 %vm2870_vm3, %v5182_v6  ;;  %v6553_v15 = vrot.slane %v6424_v59, 6  ;;  %v5881_v51 = vsel %vm927_vm2, %v5775_v0, 0.0  ;;  %v5774_v16 = vmul.f32 %v5479_v50, %v2175_v24  ;;  %v2178_v10 = vadd.f32 %v11658_v35, %v197_v20  ;;  %v11661_v24 = vld [vmem:[#allocation10_spill] sm:$0xff]  ;;  %v201_v20 = vld [vmem:[%s11325_s3 + $0x68] sm:$0xff] }
 0x4a9   :  { %7546 = vmatprep.mubr.msk.f32.mxu0 %vm2870_vm3, %v5183_v1  ;;  %v5872_v12 = vrot.slane %v5871_v13, 1  ;;  %v5864_v27 = vadd.f32 %v5863_v53, %v5862_v60  ;;  %v5882_v56 = vrot.slane %v5881_v51, 4  ;;  %v2177_v1 = vadd.f32 %v11659_v38, %v196_v46 }
 0x4aa   :  { %v6555_v21 = vsel %vm6554_vm5, %v6553_v15, %v6552_v62  ;;  %v5874_v29 = vsel %vm927_vm2, %v5774_v16, 0.0  ;;  %v198_v15 = vld [vmem:[%s11325_s3 + $0x50] sm:$0xff] }
 0x4ab   :  { %v6558_v61 = vsel %vm6557_vm6, %v6556_v40, %v6555_v21  ;;  %v5873_v17 = vadd.f32 %v5872_v12, %v5871_v13  ;;  %v5865_v28 = vrot.slane %v5864_v27, 1  ;;  %v5883_v55 = vadd.f32 %v5882_v56, %v5881_v51 }
 0x4ac   :  { %7547 = vmatmul.mubr.msk.f32.gmra.mxu0 %vm2870_vm3, %v5184_v26  ;;  %v5875_v41 = vrot.slane %v5874_v29, 4  ;;  %v2180_v40 = vadd.f32 %v11660_v34, %v199_v14  ;;  %v2179_v50 = vadd.f32 %v11661_v24, %v198_v15  ;;  %v202_v34 = vld [vmem:[%s11325_s3 + $0x70] sm:$0xff] }
 0x4ad   :  { %7549 = vmatprep.mubr.msk.f32.mxu0 %vm2870_vm3, %v5185_v44  ;;  %v6292_v3 = vmul.f32 %v10680_v4, %v5873_v17  ;;  %v5866_v36 = vadd.f32 %v5865_v28, %v5864_v27  ;;  %v5884_v30 = vrot.slane %v5883_v55, 2 }
 0x4ae   :  { %v5876_v31 = vadd.f32 %v5875_v41, %v5874_v29 }
 0x4af   :  { %v6363_v9 = vadd.f32 %v10689_v54, %v6292_v3  ;;  %v6291_v37 = vmul.f32 %v10680_v4, %v5866_v36  ;;  %v5885_v43 = vadd.f32 %v5884_v30, %v5883_v55 }
 0x4b0   :  { %7550 = vmatmul.mubr.msk.f32.gmra.mxu0 %vm2870_vm3, %v5186_v32  ;;  %v5877_v33 = vrot.slane %v5876_v31, 2  ;;  %v7470_v58 = vpop.f32.mrf.mxu0 }
 0x4b1   :  { %v6362_v2 = vadd.f32 %v10689_v54, %v6291_v37  ;;  %v6427_v47 = vmax.f32 %v6363_v9, 0.0  ;;  %v5886_v23 = vrot.slane %v5885_v43, 1  ;;  %v5777_v42 = vmul.f32 %v7470_v58, %v2178_v10  ;;  %v11662_v10 = vld [vmem:[#allocation15_spill] sm:$0xff] }
 0x4b2   :  { %v5878_v62 = vadd.f32 %v5877_v33, %v5876_v31  ;;  %v5489_v19 = vpop.f32.mrf.mxu0 }
 0x4b3   :  { %v6426_v63 = vmax.f32 %v6362_v2, 0.0  ;;  %v5887_v25 = vadd.f32 %v5886_v23, %v5885_v43  ;;  %v6562_v6 = vrot.slane %v6427_v47, 3  ;;  %v5895_v57 = vsel %vm927_vm2, %v5777_v42, 0.0 }
 0x4b4   :  { %v5879_v8 = vrot.slane %v5878_v62, 1  ;;  %v5776_v5 = vmul.f32 %v5489_v19, %v2177_v1  ;;  %v5896_v39 = vrot.slane %v5895_v57, 4  ;;  %v11663_v19 = vld [vmem:[#allocation12_spill] sm:$0xff] }
 0x4b5   :  { %v6559_v49 = vrot.slane %v6426_v63, 4  ;;  %v6294_v45 = vmul.f32 %v10680_v4, %v5887_v25  ;;  %v2182_v63 = vadd.f32 %v11662_v10, %v201_v20 }
 0x4b6   :  { %v5880_v59 = vadd.f32 %v5879_v8, %v5878_v62  ;;  %v5888_v22 = vsel %vm927_vm2, %v5776_v5, 0.0  ;;  %v5897_v52 = vadd.f32 %v5896_v39, %v5895_v57  ;;  %v200_v62 = vld [vmem:[%s11325_s3 + $0x60] sm:$0xff] }
 0x4b7   :  { %v6561_v18 = vsel %vm6560_vm7, %v6559_v49, %v6558_v61  ;;  %v6365_v7 = vadd.f32 %v10689_v54, %v6294_v45  ;;  %v5889_v44 = vrot.slane %v5888_v22, 4 }
 0x4b8   :  { %v6564_v60 = vsel %vm6563_vm8, %v6562_v6, %v6561_v18  ;;  %v6293_v26 = vmul.f32 %v10680_v4, %v5880_v59  ;;  %v5898_v53 = vrot.slane %v5897_v52, 2  ;;  %v2181_v6 = vadd.f32 %v11663_v19, %v200_v62 }
 0x4b9   :  { %v5890_v0 = vadd.f32 %v5889_v44, %v5888_v22  ;;  %v7473_v48 = vpop.f32.mrf.mxu0  ;;  %v6429_v21 = vmax.f32 %v6365_v7, 0.0 }
 0x4ba   :  { %v6364_v13 = vadd.f32 %v10689_v54, %v6293_v26  ;;  %v5779_v11 = vmul.f32 %v7473_v48, %v2180_v40  ;;  %v5899_v27 = vadd.f32 %v5898_v53, %v5897_v52  ;;  %v11664_v53 = vld [vmem:[#allocation13_spill] sm:$0xff] }
 0x4bb   :  { %v5891_v61 = vrot.slane %v5890_v0, 2  ;;  %v5499_v51 = vpop.f32.mrf.mxu0  ;;  %v6568_v29 = vrot.slane %v6429_v21, 1 }
 0x4bc   :  { %v6428_v12 = vmax.f32 %v6364_v13, 0.0  ;;  %v5909_v56 = vsel %vm927_vm2, %v5779_v11, 0.0  ;;  %v5778_v16 = vmul.f32 %v5499_v51, %v2179_v50  ;;  %v5900_v17 = vrot.slane %v5899_v27, 1 }
 0x4bd   :  { %v5892_v28 = vadd.f32 %v5891_v61, %v5890_v0  ;;  %v5910_v55 = vrot.slane %v5909_v56, 4 }
 0x4be   :  { %v6565_v32 = vrot.slane %v6428_v12, 2  ;;  %v5902_v3 = vsel %vm927_vm2, %v5778_v16, 0.0  ;;  %v5901_v41 = vadd.f32 %v5900_v17, %v5899_v27  ;;  %v11665_v12 = vld [vmem:[#allocation14_spill] sm:$0xff] }
 0x4bf   :  { %v5893_v30 = vrot.slane %v5892_v28, 1  ;;  %v5911_v9 = vadd.f32 %v5910_v55, %v5909_v56  ;;  %v5903_v31 = vrot.slane %v5902_v3, 4  ;;  %v2183_v27 = vadd.f32 %v11665_v12, %v202_v34 }
 0x4c0   :  { %v6567_v36 = vsel %vm6566_vm9, %v6565_v32, %v6564_v60  ;;  %v6296_v43 = vmul.f32 %v10680_v4, %v5901_v41  ;;  %v203_v60 = vld [vmem:[%s11325_s3 + $0x78] sm:$0xff] }
 0x4c1   :  { %v6570_v37 = vsel %vm6569_vm10, %v6568_v29, %v6567_v36  ;;  %v5894_v2 = vadd.f32 %v5893_v30, %v5892_v28  ;;  %v5912_v33 = vrot.slane %v5911_v9, 2  ;;  %v5904_v46 = vadd.f32 %v5903_v31, %v5902_v3 }
 0x4c2   :  { %6677 = vst.msk [vmem:[%s11328_s18] sm:$0xff] %vm927_vm2, %v6570_v37  ;;  %v6367_v47 = vadd.f32 %v10689_v54, %v6296_v43  ;;  %v2184_v0 = vadd.f32 %v11664_v53, %v203_v60  ;;  %v11667_v60 = vld [vmem:[#allocation16_spill] sm:$0xff]  ;;  %v207_v53 = vld [vmem:[%s11325_s3 + $0x98] sm:$0xff] }
 0x4c3   :  { %v6295_v23 = vmul.f32 %v10680_v4, %v5894_v2  ;;  %v5913_v35 = vadd.f32 %v5912_v33, %v5911_v9  ;;  %v5905_v58 = vrot.slane %v5904_v46, 2  ;;  %v7476_v25 = vpop.f32.mrf.mxu0 }
 0x4c4   :  { %v6431_v42 = vmax.f32 %v6367_v47, 0.0  ;;  %v5781_v49 = vmul.f32 %v7476_v25, %v2182_v63 }
 0x4c5   :  { %v6366_v38 = vadd.f32 %v10689_v54, %v6295_v23  ;;  %v5914_v1 = vrot.slane %v5913_v35, 1  ;;  %v5906_v8 = vadd.f32 %v5905_v58, %v5904_v46  ;;  %v5509_v45 = vpop.f32.mrf.mxu0 }
 0x4c6   :  { %v6571_v57 = vrot.slane %v6431_v42, 7  ;;  %v5923_v59 = vsel %vm927_vm2, %v5781_v49, 0.0  ;;  %v5780_v7 = vmul.f32 %v5509_v45, %v2181_v6  ;;  %v204_v6 = vld [vmem:[%s11325_s3 + $0x80] sm:$0xff] }
 0x4c7   :  { %v6430_v5 = vmax.f32 %v6366_v38, 0.0  ;;  %v5915_v18 = vadd.f32 %v5914_v1, %v5913_v35  ;;  %v5907_v39 = vrot.slane %v5906_v8, 1  ;;  %v5924_v14 = vrot.slane %v5923_v59, 4  ;;  %v205_v38 = vld [vmem:[%s11325_s3 + $0x88] sm:$0xff] }
 0x4c8   :  { %v5916_v15 = vsel %vm927_vm2, %v5780_v7, 0.0 }
 0x4c9   :  { %v6572_v22 = vsel %vm6551_vm4, %v6571_v57, %v6430_v5  ;;  %v6298_v26 = vmul.f32 %v10680_v4, %v5915_v18  ;;  %v5908_v52 = vadd.f32 %v5907_v39, %v5906_v8  ;;  %v5925_v44 = vadd.f32 %v5924_v14, %v5923_v59  ;;  %v11666_v57 = vld [vmem:[#allocation19_spill] sm:$0xff] }
 0x4ca   :  { %v5917_v13 = vrot.slane %v5916_v15, 4  ;;  %v2186_v5 = vadd.f32 %v11666_v57, %v205_v38 }
 0x4cb   :  { %v6369_v40 = vadd.f32 %v10689_v54, %v6298_v26  ;;  %v6297_v48 = vmul.f32 %v10680_v4, %v5908_v52  ;;  %v5926_v21 = vrot.slane %v5925_v44, 2 }
 0x4cc   :  { %v5918_v24 = vadd.f32 %v5917_v13, %v5916_v15 }
 0x4cd   :  { %v7479_v11 = vpop.f32.mrf.mxu0  ;;  %v6368_v61 = vadd.f32 %v10689_v54, %v6297_v48  ;;  %v5927_v51 = vadd.f32 %v5926_v21, %v5925_v44  ;;  %v6433_v16 = vmax.f32 %v6369_v40, 0.0 }
 0x4ce   :  { %v5783_v50 = vmul.f32 %v7479_v11, %v2184_v0  ;;  %v5919_v32 = vrot.slane %v5918_v24, 2 }
 0x4cf   :  { %v5519_v56 = vpop.f32.mrf.mxu0  ;;  %v6432_v55 = vmax.f32 %v6368_v61, 0.0  ;;  %v5928_v29 = vrot.slane %v5927_v51, 1  ;;  %v6575_v20 = vrot.slane %v6433_v16, 5  ;;  %v11668_v61 = vld [vmem:[#allocation17_spill] sm:$0xff] }
 0x4d0   :  { %v5937_v17 = vsel %vm927_vm2, %v5783_v50, 0.0  ;;  %v5782_v28 = vmul.f32 %v5519_v56, %v2183_v27  ;;  %v5920_v36 = vadd.f32 %v5919_v32, %v5918_v24  ;;  %v206_v56 = vld [vmem:[%s11325_s3 + $0x90] sm:$0xff] }
 0x4d1   :  { %v5938_v3 = vrot.slane %v5937_v17, 4  ;;  %v6573_v30 = vrot.slane %v6432_v55, 6  ;;  %v5929_v9 = vadd.f32 %v5928_v29, %v5927_v51  ;;  %v2188_v51 = vadd.f32 %v11668_v61, %v207_v53 }
 0x4d2   :  { %v5930_v41 = vsel %vm927_vm2, %v5782_v28, 0.0  ;;  %v5921_v43 = vrot.slane %v5920_v36, 1 }
 0x4d3   :  { %v5939_v37 = vadd.f32 %v5938_v3, %v5937_v17  ;;  %v5931_v31 = vrot.slane %v5930_v41, 4  ;;  %v6574_v2 = vsel %vm6554_vm5, %v6573_v30, %v6572_v22  ;;  %v6300_v33 = vmul.f32 %v10680_v4, %v5929_v9  ;;  %v11669_v3 = vld [vmem:[#allocation18_spill] sm:$0xff] }
 0x4d4   :  { %v5922_v23 = vadd.f32 %v5921_v43, %v5920_v36  ;;  %v6576_v35 = vsel %vm6557_vm6, %v6575_v20, %v6574_v2  ;;  %v2185_v22 = vadd.f32 %v11667_v60, %v204_v6  ;;  %v2187_v36 = vadd.f32 %v11669_v3, %v206_v56  ;;  %v11672_v56 = vld [vmem:[#allocation21_spill] sm:$0xff]  ;;  %v11673_v3 = vld [vmem:[#allocation22_spill] sm:$0xff] }
 0x4d5   :  { %v5940_v46 = vrot.slane %v5939_v37, 2  ;;  %v5932_v47 = vadd.f32 %v5931_v31, %v5930_v41  ;;  %v6371_v10 = vadd.f32 %v10689_v54, %v6300_v33 }
 0x4d6   :  { %v6299_v58 = vmul.f32 %v10680_v4, %v5922_v23 }
 0x4d7   :  { %v5941_v63 = vadd.f32 %v5940_v46, %v5939_v37  ;;  %v5933_v62 = vrot.slane %v5932_v47, 2  ;;  %v6435_v49 = vmax.f32 %v6371_v10, 0.0 }
 0x4d8   :  { %v6370_v1 = vadd.f32 %v10689_v54, %v6299_v58 }
 0x4d9   :  { %v5942_v25 = vrot.slane %v5941_v63, 1  ;;  %v5934_v42 = vadd.f32 %v5933_v62, %v5932_v47  ;;  %v6579_v26 = vrot.slane %v6435_v49, 3 }
 0x4da   :  { %v6434_v45 = vmax.f32 %v6370_v1, 0.0  ;;  %v11670_v1 = vld [vmem:[#allocation23_spill] sm:$0xff] }
 0x4db   :  { %v5943_v8 = vadd.f32 %v5942_v25, %v5941_v63  ;;  %v5935_v19 = vrot.slane %v5934_v42, 1  ;;  %v7482_v39 = vpop.f32.mrf.mxu0 }
 0x4dc   :  { %v6577_v14 = vrot.slane %v6434_v45, 4  ;;  %v5785_v7 = vmul.f32 %v7482_v39, %v2186_v5  ;;  %v11671_v39 = vld [vmem:[#allocation20_spill] sm:$0xff] }
 0x4dd   :  { %v6302_v18 = vmul.f32 %v10680_v4, %v5943_v8  ;;  %v5936_v59 = vadd.f32 %v5935_v19, %v5934_v42  ;;  %v5529_v15 = vpop.f32.mrf.mxu0  ;;  %v208_v8 = vld [vmem:[%s11325_s3 + $0xa0] sm:$0xff] }
 0x4de   :  { %v6578_v34 = vsel %vm6560_vm7, %v6577_v14, %v6576_v35  ;;  %v5951_v40 = vsel %vm927_vm2, %v5785_v7, 0.0  ;;  %v5784_v13 = vmul.f32 %v5529_v15, %v2185_v22  ;;  %v209_v35 = vld [vmem:[%s11325_s3 + $0xa8] sm:$0xff]  ;;  %v2189_v14 = vadd.f32 %v11671_v39, %v208_v8 }
 0x4df   :  { %v6373_v52 = vadd.f32 %v10689_v54, %v6302_v18  ;;  %v6301_v44 = vmul.f32 %v10680_v4, %v5936_v59  ;;  %v6580_v48 = vsel %vm6563_vm8, %v6579_v26, %v6578_v34  ;;  %v5952_v21 = vrot.slane %v5951_v40, 4 }
 0x4e0   :  { %v5944_v24 = vsel %vm927_vm2, %v5784_v13, 0.0  ;;  %v2190_v49 = vadd.f32 %v11670_v1, %v209_v35 }
 0x4e1   :  { %v6372_v0 = vadd.f32 %v10689_v54, %v6301_v44  ;;  %v6437_v11 = vmax.f32 %v6373_v52, 0.0  ;;  %v5953_v12 = vadd.f32 %v5952_v21, %v5951_v40  ;;  %v5945_v27 = vrot.slane %v5944_v24, 4 }
 0x4e3   :  { %v6436_v50 = vmax.f32 %v6372_v0, 0.0  ;;  %v5954_v17 = vrot.slane %v5953_v12, 2  ;;  %v5946_v28 = vadd.f32 %v5945_v27, %v5944_v24  ;;  %v6583_v29 = vrot.slane %v6437_v11, 1  ;;  %v211_v0 = vld [vmem:[%s11325_s3 + $0xb8] sm:$0xff]  ;;  %v210_v27 = vld [vmem:[%s11325_s3 + $0xb0] sm:$0xff] }
 0x4e4   :  { %v7485_v16 = vpop.f32.mrf.mxu0 }
 0x4e5   :  { %v6581_v32 = vrot.slane %v6436_v50, 2  ;;  %v5787_v55 = vmul.f32 %v7485_v16, %v2188_v51  ;;  %v5955_v9 = vadd.f32 %v5954_v17, %v5953_v12  ;;  %v5947_v37 = vrot.slane %v5946_v28, 2 }
 0x4e6   :  { %v5539_v41 = vpop.f32.mrf.mxu0  ;;  %v2192_v16 = vadd.f32 %v11672_v56, %v211_v0  ;;  %v215_v56 = vld [vmem:[%s11325_s3 + $0xd8] sm:$0xff] }
 0x4e7   :  { %v6582_v30 = vsel %vm6566_vm9, %v6581_v32, %v6580_v48  ;;  %v5965_v31 = vsel %vm927_vm2, %v5787_v55, 0.0  ;;  %v5786_v2 = vmul.f32 %v5539_v41, %v2187_v36  ;;  %v5956_v33 = vrot.slane %v5955_v9, 1 }
 0x4e8   :  { %v6584_v20 = vsel %vm6569_vm10, %v6583_v29, %v6582_v30  ;;  %v5966_v43 = vrot.slane %v5965_v31, 4  ;;  %v5948_v46 = vadd.f32 %v5947_v37, %v5946_v28  ;;  %v2191_v36 = vadd.f32 %v11673_v3, %v210_v27 }
 0x4e9   :  { %6678 = vst.msk [vmem:[%s11328_s18 + $0x8] sm:$0xff] %vm927_vm2, %v6584_v20  ;;  %v5958_v23 = vsel %vm927_vm2, %v5786_v2, 0.0  ;;  %v5957_v10 = vadd.f32 %v5956_v33, %v5955_v9 }
 0x4ea   :  { %v5967_v47 = vadd.f32 %v5966_v43, %v5965_v31  ;;  %v5949_v63 = vrot.slane %v5948_v46, 1  ;;  %v5959_v62 = vrot.slane %v5958_v23, 4 }
 0x4eb   :  { %v6304_v25 = vmul.f32 %v10680_v4, %v5957_v10 }
 0x4ec   :  { %v5968_v58 = vrot.slane %v5967_v47, 2  ;;  %v5950_v42 = vadd.f32 %v5949_v63, %v5948_v46  ;;  %v5960_v38 = vadd.f32 %v5959_v62, %v5958_v23 }
 0x4ed   :  { %v6375_v45 = vadd.f32 %v10689_v54, %v6304_v25 }
 0x4ee   :  { %v5969_v19 = vadd.f32 %v5968_v58, %v5967_v47  ;;  %v7488_v6 = vpop.f32.mrf.mxu0  ;;  %v6303_v57 = vmul.f32 %v10680_v4, %v5950_v42  ;;  %v5961_v5 = vrot.slane %v5960_v38, 2 }
 0x4ef   :  { %v5789_v18 = vmul.f32 %v7488_v6, %v2190_v49  ;;  %v6439_v60 = vmax.f32 %v6375_v45, 0.0  ;;  %v213_v6 = vld [vmem:[%s11325_s3 + $0xc8] sm:$0xff] }
 0x4f0   :  { %v5970_v59 = vrot.slane %v5969_v19, 1  ;;  %v5549_v7 = vpop.f32.mrf.mxu0  ;;  %v6374_v22 = vadd.f32 %v10689_v54, %v6303_v57  ;;  %v5962_v26 = vadd.f32 %v5961_v5, %v5960_v38 }
 0x4f1   :  { %v5979_v52 = vsel %vm927_vm2, %v5789_v18, 0.0  ;;  %v5788_v34 = vmul.f32 %v5549_v7, %v2189_v14  ;;  %v6585_v40 = vrot.slane %v6439_v60, 7  ;;  %v11674_v14 = vld [vmem:[#allocation27_spill] sm:$0xff]  ;;  %v212_v60 = vld [vmem:[%s11325_s3 + $0xc0] sm:$0xff] }
 0x4f2   :  { %v5971_v44 = vadd.f32 %v5970_v59, %v5969_v19  ;;  %v5980_v15 = vrot.slane %v5979_v52, 4  ;;  %v6438_v13 = vmax.f32 %v6374_v22, 0.0  ;;  %v5963_v53 = vrot.slane %v5962_v26, 1 }
 0x4f3   :  { %v5972_v11 = vsel %vm927_vm2, %v5788_v34, 0.0  ;;  %v2194_v7 = vadd.f32 %v11674_v14, %v213_v6 }
 0x4f4   :  { %v6306_v48 = vmul.f32 %v10680_v4, %v5971_v44  ;;  %v5981_v21 = vadd.f32 %v5980_v15, %v5979_v52  ;;  %v6586_v24 = vsel %vm6551_vm4, %v6585_v40, %v6438_v13  ;;  %v5964_v50 = vadd.f32 %v5963_v53, %v5962_v26  ;;  %v11675_v40 = vld [vmem:[#allocation24_spill] sm:$0xff] }
 0x4f5   :  { %v5973_v12 = vrot.slane %v5972_v11, 4  ;;  %v2193_v13 = vadd.f32 %v11675_v40, %v212_v60 }
 0x4f6   :  { %v6377_v61 = vadd.f32 %v10689_v54, %v6306_v48  ;;  %v5982_v51 = vrot.slane %v5981_v21, 2  ;;  %v6305_v32 = vmul.f32 %v10680_v4, %v5964_v50 }
 0x4f7   :  { %v5974_v17 = vadd.f32 %v5973_v12, %v5972_v11 }
 0x4f8   :  { %v7491_v28 = vpop.f32.mrf.mxu0  ;;  %v5983_v55 = vadd.f32 %v5982_v51, %v5981_v21  ;;  %v6376_v41 = vadd.f32 %v10689_v54, %v6305_v32  ;;  %v6441_v37 = vmax.f32 %v6377_v61, 0.0 }
 0x4f9   :  { %v5791_v29 = vmul.f32 %v7491_v28, %v2192_v16  ;;  %v5975_v30 = vrot.slane %v5974_v17, 2 }
 0x4fa   :  { %v5559_v9 = vpop.f32.mrf.mxu0  ;;  %v5984_v31 = vrot.slane %v5983_v55, 1  ;;  %v6440_v2 = vmax.f32 %v6376_v41, 0.0  ;;  %v6589_v58 = vrot.slane %v6441_v37, 5  ;;  %v11676_v41 = vld [vmem:[#allocation25_spill] sm:$0xff] }
 0x4fb   :  { %v5993_v20 = vsel %vm927_vm2, %v5791_v29, 0.0  ;;  %v5790_v43 = vmul.f32 %v5559_v9, %v2191_v36  ;;  %v5976_v33 = vadd.f32 %v5975_v30, %v5974_v17  ;;  %v214_v29 = vld [vmem:[%s11325_s3 + $0xd0] sm:$0xff]  ;;  %v2196_v30 = vadd.f32 %v11676_v41, %v215_v56 }
 0x4fc   :  { %v5994_v46 = vrot.slane %v5993_v20, 4  ;;  %v5985_v47 = vadd.f32 %v5984_v31, %v5983_v55  ;;  %v6587_v35 = vrot.slane %v6440_v2, 6  ;;  %v11677_v2 = vld [vmem:[#allocation26_spill] sm:$0xff] }
 0x4fd   :  { %v5986_v23 = vsel %vm927_vm2, %v5790_v43, 0.0  ;;  %v5977_v10 = vrot.slane %v5976_v33, 1 }
 0x4fe   :  { %v5995_v63 = vadd.f32 %v5994_v46, %v5993_v20  ;;  %v5987_v62 = vrot.slane %v5986_v23, 4  ;;  %v6308_v25 = vmul.f32 %v10680_v4, %v5985_v47  ;;  %v6588_v42 = vsel %vm6554_vm5, %v6587_v35, %v6586_v24 }
 0x4ff   :  { %v5978_v38 = vadd.f32 %v5977_v10, %v5976_v33  ;;  %v6590_v19 = vsel %vm6557_vm6, %v6589_v58, %v6588_v42  ;;  %v2195_v33 = vadd.f32 %v11677_v2, %v214_v29 }
 0x500   :  { %v5996_v1 = vrot.slane %v5995_v63, 2  ;;  %v5988_v49 = vadd.f32 %v5987_v62, %v5986_v23  ;;  %v6379_v8 = vadd.f32 %v10689_v54, %v6308_v25 }
 0x501   :  { %v6307_v45 = vmul.f32 %v10680_v4, %v5978_v38 }
 0x502   :  { %v5997_v57 = vadd.f32 %v5996_v1, %v5995_v63  ;;  %v5989_v5 = vrot.slane %v5988_v49, 2  ;;  %v6443_v22 = vmax.f32 %v6379_v8, 0.0 }
 0x503   :  { %v6378_v18 = vadd.f32 %v10689_v54, %v6307_v45  ;;  %v7494_v26 = vpop.f32.mrf.mxu0 }
 0x504   :  { %v5998_v59 = vrot.slane %v5997_v57, 1  ;;  %v5990_v39 = vadd.f32 %v5989_v5, %v5988_v49  ;;  %v5793_v34 = vmul.f32 %v7494_v26, %v2194_v7  ;;  %v6593_v24 = vrot.slane %v6443_v22, 3  ;;  %v217_v22 = vld [vmem:[%s11325_s3 + $0xe8] sm:$0xff] }
 0x505   :  { %v6442_v52 = vmax.f32 %v6378_v18, 0.0  ;;  %v5569_v53 = vpop.f32.mrf.mxu0 }
 0x506   :  { %v5999_v44 = vadd.f32 %v5998_v59, %v5997_v57  ;;  %v5991_v15 = vrot.slane %v5990_v39, 1  ;;  %v6007_v11 = vsel %vm927_vm2, %v5793_v34, 0.0  ;;  %v5792_v12 = vmul.f32 %v5569_v53, %v2193_v13 }
 0x507   :  { %v6591_v0 = vrot.slane %v6442_v52, 4  ;;  %v6008_v50 = vrot.slane %v6007_v11, 4 }
 0x508   :  { %v6310_v48 = vmul.f32 %v10680_v4, %v5999_v44  ;;  %v5992_v21 = vadd.f32 %v5991_v15, %v5990_v39  ;;  %v6000_v17 = vsel %vm927_vm2, %v5792_v12, 0.0  ;;  %v216_v15 = vld [vmem:[%s11325_s3 + $0xe0] sm:$0xff] }
 0x509   :  { %v6592_v27 = vsel %vm6560_vm7, %v6591_v0, %v6590_v19  ;;  %v6009_v32 = vadd.f32 %v6008_v50, %v6007_v11  ;;  %v6001_v55 = vrot.slane %v6000_v17, 4  ;;  %v11678_v0 = vld [vmem:[#allocation31_spill] sm:$0xff]  ;;  %v11679_v11 = vld [vmem:[#allocation28_spill] sm:$0xff] }
 0x50a   :  { %v6381_v61 = vadd.f32 %v10689_v54, %v6310_v48  ;;  %v6309_v51 = vmul.f32 %v10680_v4, %v5992_v21  ;;  %v6594_v16 = vsel %vm6563_vm8, %v6593_v24, %v6592_v27  ;;  %v2198_v48 = vadd.f32 %v11678_v0, %v217_v22  ;;  %v228_v0 = vld [vmem:[%s11325_s3 + $0x140] sm:$0xff] }
 0x50b   :  { %v6010_v36 = vrot.slane %v6009_v32, 2  ;;  %v6002_v37 = vadd.f32 %v6001_v55, %v6000_v17  ;;  %v2197_v24 = vadd.f32 %v11679_v11, %v216_v15  ;;  %v11685_v15 = vld [vmem:[#allocation35_spill] sm:$0xff] }
 0x50c   :  { %v6380_v28 = vadd.f32 %v10689_v54, %v6309_v51  ;;  %v6445_v3 = vmax.f32 %v6381_v61, 0.0 }
 0x50d   :  { %v7497_v31 = vpop.f32.mrf.mxu0  ;;  %v6011_v20 = vadd.f32 %v6010_v36, %v6009_v32  ;;  %v6003_v47 = vrot.slane %v6002_v37, 2 }
 0x50e   :  { %v6444_v9 = vmax.f32 %v6380_v28, 0.0  ;;  %v5795_v43 = vmul.f32 %v7497_v31, %v2196_v30  ;;  %v6597_v35 = vrot.slane %v6445_v3, 1  ;;  %v219_v3 = vld [vmem:[%s11325_s3 + $0xf8] sm:$0xff] }
 0x50f   :  { %v5579_v23 = vpop.f32.mrf.mxu0  ;;  %v6012_v10 = vrot.slane %v6011_v20, 1  ;;  %v6004_v25 = vadd.f32 %v6003_v47, %v6002_v37 }
 0x510   :  { %v6595_v46 = vrot.slane %v6444_v9, 2  ;;  %v6021_v63 = vsel %vm927_vm2, %v5795_v43, 0.0  ;;  %v5794_v62 = vmul.f32 %v5579_v23, %v2195_v33  ;;  %v218_v43 = vld [vmem:[%s11325_s3 + $0xf0] sm:$0xff] }
 0x511   :  { %v6022_v42 = vrot.slane %v6021_v63, 4  ;;  %v6013_v1 = vadd.f32 %v6012_v10, %v6011_v20  ;;  %v6005_v8 = vrot.slane %v6004_v25, 1  ;;  %v11680_v20 = vld [vmem:[#allocation29_spill] sm:$0xff]  ;;  %v220_v10 = vld [vmem:[%s11325_s3 + $0x100] sm:$0xff] }
 0x512   :  { %v6596_v58 = vsel %vm6566_vm9, %v6595_v46, %v6594_v16  ;;  %v6014_v49 = vsel %vm927_vm2, %v5794_v62, 0.0 }
 0x513   :  { %v6598_v38 = vsel %vm6569_vm10, %v6597_v35, %v6596_v58  ;;  %v6023_v19 = vadd.f32 %v6022_v42, %v6021_v63  ;;  %v6015_v6 = vrot.slane %v6014_v49, 4  ;;  %v6312_v45 = vmul.f32 %v10680_v4, %v6013_v1  ;;  %v223_v63 = vld [vmem:[%s11325_s3 + $0x118] sm:$0xff]  ;;  %v11681_v58 = vld [vmem:[#allocation30_spill] sm:$0xff] }
 0x514   :  { %6679 = vst.msk [vmem:[%s11328_s18 + $0x10] sm:$0xff] %vm927_vm2, %v6598_v38  ;;  %v6006_v57 = vadd.f32 %v6005_v8, %v6004_v25  ;;  %v2199_v25 = vadd.f32 %v11681_v58, %v218_v43  ;;  %v221_v38 = vld [vmem:[%s11325_s3 + $0x108] sm:$0xff]  ;;  %v11682_v1 = vld [vmem:[#allocation34_spill] sm:$0xff]  ;;  %v226_v8 = vld [vmem:[%s11325_s3 + $0x130] sm:$0xff] }
 0x515   :  { %v6024_v5 = vrot.slane %v6023_v19, 2  ;;  %v6016_v18 = vadd.f32 %v6015_v6, %v6014_v49  ;;  %v6383_v59 = vadd.f32 %v10689_v54, %v6312_v45  ;;  %v11027_v43 = vld [vmem:[%s11327_s16] ss:$0 sm:$0xff] }
 0x516   :  { %v6311_v39 = vmul.f32 %v10680_v4, %v6006_v57 }
 0x517   :  { %v6025_v14 = vadd.f32 %v6024_v5, %v6023_v19  ;;  %v6017_v7 = vrot.slane %v6016_v18, 2  ;;  %v6447_v60 = vmax.f32 %v6383_v59, 0.0  ;;  %v224_v5 = vld [vmem:[%s11325_s3 + $0x120] sm:$0xff] }
 0x518   :  { %v6382_v26 = vadd.f32 %v10689_v54, %v6311_v39 }
 0x519   :  { %v6026_v52 = vrot.slane %v6025_v14, 1  ;;  %v6018_v44 = vadd.f32 %v6017_v7, %v6016_v18  ;;  %v6599_v34 = vrot.slane %v6447_v60, 7  ;;  %v227_v18 = vld [vmem:[%s11325_s3 + $0x138] sm:$0xff] }
 0x51a   :  { %v6446_v40 = vmax.f32 %v6382_v26, 0.0  ;;  %v11684_v60 = vld [vmem:[#allocation33_spill] sm:$0xff]  ;;  %v225_v26 = vld [vmem:[%s11325_s3 + $0x128] sm:$0xff] }
 0x51b   :  { %v6027_v13 = vadd.f32 %v6026_v52, %v6025_v14  ;;  %v6019_v53 = vrot.slane %v6018_v44, 1  ;;  %v7500_v21 = vpop.f32.mrf.mxu0  ;;  %v11683_v14 = vld [vmem:[#allocation32_spill] sm:$0xff]  ;;  %v2204_v22 = vadd.f32 %v11684_v60, %v223_v63 }
 0x51c   :  { %v6600_v50 = vsel %vm6551_vm4, %v6599_v34, %v6446_v40  ;;  %v5797_v61 = vmul.f32 %v7500_v21, %v2198_v48  ;;  %v2201_v7 = vadd.f32 %v11683_v14, %v220_v10  ;;  %v2202_v34 = vadd.f32 %v11685_v15, %v221_v38  ;;  %v11686_v40 = vld [vmem:[#allocation38_spill] sm:$0xff]  ;;  %v230_v48 = vld [vmem:[%s11325_s3 + $0x150] sm:$0xff] }
 0x51d   :  { %v6314_v12 = vmul.f32 %v10680_v4, %v6027_v13  ;;  %v6020_v27 = vadd.f32 %v6019_v53, %v6018_v44  ;;  %v5589_v51 = vpop.f32.mrf.mxu0  ;;  %v10973_v13 = vadd.f32 %v11686_v40, %v226_v8  ;;  %v229_v53 = vld [vmem:[%s11325_s3 + $0x148] sm:$0xff]  ;;  %v11696_v38 = vld [vmem:[#allocation46_spill] sm:$0xff] }
 0x51e   :  { %v6035_v32 = vsel %vm927_vm2, %v5797_v61, 0.0  ;;  %v5796_v17 = vmul.f32 %v5589_v51, %v2197_v24  ;;  %v11687_v24 = vld [vmem:[#allocation36_spill] sm:$0xff]  ;;  %v231_v61 = vld [vmem:[%s11325_s3 + $0x158] sm:$0xff]  ;;  %v10997_v51 = vld [vmem:[%s11326_s15] ss:$0 sm:$0xff] }
 0x51f   :  { %v6385_v56 = vadd.f32 %v10689_v54, %v6314_v12  ;;  %v6313_v16 = vmul.f32 %v10680_v4, %v6020_v27  ;;  %v6036_v28 = vrot.slane %v6035_v32, 4  ;;  %v2200_v4 = vadd.f32 %v11680_v20, %v219_v3  ;;  %v11688_v12 = vld [vmem:[#allocation37_spill] sm:$0xff]  ;;  %v234_v3 = vld [vmem:[%s11325_s3 + $0x170] sm:$0xff]  ;;  %v237_v8 = vld [vmem:[%s11325_s3 + $0x188] sm:$0xff] }
 0x520   :  { %v6028_v29 = vsel %vm927_vm2, %v5796_v17, 0.0  ;;  %v10989_v27 = vadd.f32 %v11688_v12, %v227_v18  ;;  %v11689_v17 = vld [vmem:[#allocation39_spill] sm:$0xff] }
 0x521   :  { %v6384_v55 = vadd.f32 %v10689_v54, %v6313_v16  ;;  %v6449_v36 = vmax.f32 %v6385_v56, 0.0  ;;  %v6037_v41 = vadd.f32 %v6036_v28, %v6035_v32  ;;  %v6029_v30 = vrot.slane %v6028_v29, 4  ;;  %v222_v54 = vld [vmem:[%s11325_s3 + $0x110] sm:$0xff] }
 0x522   :  { %v10951_v49 = vadd.f32 %v11682_v1, %v222_v54  ;;  %v11001_v28 = vadd.f32 %v11689_v17, %v225_v26  ;;  %v11047_v1 = vadd.f32 %v11696_v38, %v234_v3  ;;  %v11698_v26 = vld [vmem:[#allocation48_spill] sm:$0xff] }
 0x523   :  { %v6448_v9 = vmax.f32 %v6384_v55, 0.0  ;;  %v6038_v37 = vrot.slane %v6037_v41, 2  ;;  %v6030_v31 = vadd.f32 %v6029_v30, %v6028_v29  ;;  %v6603_v46 = vrot.slane %v6449_v36, 5  ;;  %v232_v55 = vld [vmem:[%s11325_s3 + $0x160] sm:$0xff]  ;;  %v235_v29 = vld [vmem:[%s11325_s3 + $0x178] sm:$0xff] }
 0x525   :  { %v6601_v2 = vrot.slane %v6448_v9, 6  ;;  %v6039_v47 = vadd.f32 %v6038_v37, %v6037_v41  ;;  %v6031_v23 = vrot.slane %v6030_v31, 2  ;;  %v11690_v41 = vld [vmem:[#allocation43_spill] sm:$0xff]  ;;  %v11691_v9 = vld [vmem:[#allocation40_spill] sm:$0xff] }
 0x526   :  { %v7503_v33 = vpop.f32.mrf.mxu0  ;;  %v11013_v30 = vadd.f32 %v11690_v41, %v229_v53  ;;  %v11016_v37 = vadd.f32 %v11691_v9, %v228_v0 }
 0x527   :  { %v5799_v35 = vmul.f32 %v7503_v33, %v2200_v4  ;;  %v6602_v62 = vsel %vm6554_vm5, %v6601_v2, %v6600_v50  ;;  %v6040_v19 = vrot.slane %v6039_v47, 1  ;;  %v6032_v6 = vadd.f32 %v6031_v23, %v6030_v31  ;;  %v11692_v31 = vld [vmem:[#allocation42_spill] sm:$0xff]  ;;  %v233_v4 = vld [vmem:[%s11325_s3 + $0x168] sm:$0xff] }
 0x528   :  { %v5599_v42 = vpop.f32.mrf.mxu0  ;;  %v10957_v45 = vsel %vm6557_vm6, %v6603_v46, %v6602_v62  ;;  %v10986_v50 = vadd.f32 %v11687_v24, %v224_v5  ;;  %v11019_v20 = vadd.f32 %v11692_v31, %v230_v48  ;;  %v11693_v46 = vld [vmem:[#allocation41_spill] sm:$0xff]  ;;  %v236_v23 = vld [vmem:[%s11325_s3 + $0x180] sm:$0xff]  ;;  %v11694_v62 = vld [vmem:[#allocation44_spill] sm:$0xff] }
 0x529   :  { %v6049_v57 = vsel %vm927_vm2, %v5799_v35, 0.0  ;;  %v5798_v39 = vmul.f32 %v5599_v42, %v2199_v25  ;;  %v6041_v52 = vadd.f32 %v6040_v19, %v6039_v47  ;;  %v6033_v44 = vrot.slane %v6032_v6, 1  ;;  %v238_v35 = vld [vmem:[%s11325_s3 + $0x190] sm:$0xff]  ;;  %v11695_v25 = vld [vmem:[#allocation45_spill] sm:$0xff]  ;;  %v11697_v5 = vld [vmem:[#allocation47_spill] sm:$0xff] }
 0x52a   :  { %v6050_v59 = vrot.slane %v6049_v57, 4  ;;  %v11032_v47 = vadd.f32 %v11693_v46, %v231_v61  ;;  %v11041_v58 = vadd.f32 %v11694_v62, %v232_v55  ;;  %v11044_v42 = vadd.f32 %v11695_v25, %v235_v29  ;;  %v11700_v48 = vld [vmem:[#allocation51_spill] sm:$0xff]  ;;  %v11702_v29 = vld [vmem:[#allocation54_spill] sm:$0xff] }
 0x52b   :  { %v6042_v11 = vsel %vm927_vm2, %v5798_v39, 0.0  ;;  %v6316_v56 = vmul.f32 %v10997_v51, %v6041_v52  ;;  %v6034_v16 = vadd.f32 %v6033_v44, %v6032_v6  ;;  %v11054_v18 = vadd.f32 %v11697_v5, %v233_v4  ;;  %v11699_v44 = vld [vmem:[#allocation50_spill] sm:$0xff] }
 0x52c   :  { %v6051_v21 = vadd.f32 %v6050_v59, %v6049_v57  ;;  %v6043_v32 = vrot.slane %v6042_v11, 4  ;;  %v239_v59 = vld [vmem:[%s11325_s3 + $0x198] sm:$0xff]  ;;  %v11060_v52 = vadd.f32 %v11698_v26, %v236_v23  ;;  %v11063_v15 = vadd.f32 %v11699_v44, %v238_v35  ;;  %v11704_v44 = vld [vmem:[#allocation52_spill] sm:$0xff] }
 0x52d   :  { %v6387_v54 = vadd.f32 %v11027_v43, %v6316_v56  ;;  %v6315_v2 = vmul.f32 %v10997_v51, %v6034_v16  ;;  %v11701_v56 = vld [vmem:[#allocation49_spill] sm:$0xff] }
 0x52e   :  { %v6052_v36 = vrot.slane %v6051_v21, 2  ;;  %v6044_v33 = vadd.f32 %v6043_v32, %v6042_v11  ;;  %v11073_v16 = vadd.f32 %v11701_v56, %v239_v59 }
 0x52f   :  { %v6386_v19 = vadd.f32 %v11027_v43, %v6315_v2  ;;  %v6451_v39 = vmax.f32 %v6387_v54, 0.0 }
 0x530   :  { %v6053_v10 = vadd.f32 %v6052_v36, %v6051_v21  ;;  %v6045_v6 = vrot.slane %v6044_v33, 2  ;;  %v11070_v21 = vadd.f32 %v11700_v48, %v237_v8  ;;  %v11703_v8 = vld [vmem:[#allocation55_spill] sm:$0xff] }
 0x531   :  { %v7506_v63 = vpop.f32.mrf.mxu0  ;;  %v6450_v40 = vmax.f32 %v6386_v19, 0.0  ;;  %v6607_v36 = vrot.slane %v6451_v39, 3 }
 0x532   :  { %v5801_v57 = vmul.f32 %v7506_v63, %v2202_v34  ;;  %v6054_v14 = vrot.slane %v6053_v10, 1  ;;  %v242_v34 = vld [vmem:[%s11325_s3 + $0x1b0] sm:$0xff]  ;;  %v6046_v53 = vadd.f32 %v6045_v6, %v6044_v33  ;;  %v240_v63 = vld [vmem:[%s11325_s3 + $0x1a0] sm:$0xff] }
 0x533   :  { %v5609_v60 = vpop.f32.mrf.mxu0  ;;  %v6605_v32 = vrot.slane %v6450_v40, 4  ;;  %v11076_v3 = vadd.f32 %v11702_v29, %v242_v34  ;;  %v11100_v34 = vadd.f32 %v11704_v44, %v240_v63 }
 0x534   :  { %v6063_v0 = vsel %vm927_vm2, %v5801_v57, 0.0  ;;  %v6055_v11 = vadd.f32 %v6054_v14, %v6053_v10  ;;  %v5800_v12 = vmul.f32 %v5609_v60, %v2201_v7  ;;  %v6047_v17 = vrot.slane %v6046_v53, 1  ;;  %v241_v7 = vld [vmem:[%s11325_s3 + $0x1a8] sm:$0xff] }
 0x535   :  { %v6064_v24 = vrot.slane %v6063_v0, 4  ;;  %v7509_v61 = vpop.f32.mrf.mxu0  ;;  %v6606_v54 = vsel %vm6560_vm7, %v6605_v32, %v10957_v45  ;;  %v11094_v19 = vadd.f32 %v11703_v8, %v241_v7 }
 0x536   :  { %v5803_v55 = vmul.f32 %v7509_v61, %v2204_v22  ;;  %v6318_v41 = vmul.f32 %v10997_v51, %v6055_v11  ;;  %v6056_v31 = vsel %vm927_vm2, %v5800_v12, 0.0  ;;  %v6048_v2 = vadd.f32 %v6047_v17, %v6046_v53 }
 0x537   :  { %v6065_v9 = vadd.f32 %v6064_v24, %v6063_v0  ;;  %v5619_v4 = vpop.f32.mrf.mxu0  ;;  %v6057_v33 = vrot.slane %v6056_v31, 4  ;;  %v6608_v23 = vsel %vm6563_vm8, %v6607_v36, %v6606_v54 }
 0x538   :  { %v6077_v22 = vsel %vm927_vm2, %v5803_v55, 0.0  ;;  %v6389_v46 = vadd.f32 %v11027_v43, %v6318_v41  ;;  %v6317_v62 = vmul.f32 %v10997_v51, %v6048_v2  ;;  %v5802_v38 = vmul.f32 %v5619_v4, %v10951_v49 }
 0x539   :  { %v6066_v35 = vrot.slane %v6065_v9, 2  ;;  %v6078_v10 = vrot.slane %v6077_v22, 4  ;;  %v6058_v25 = vadd.f32 %v6057_v33, %v6056_v31 }
 0x53a   :  { %v6453_v6 = vmax.f32 %v6389_v46, 0.0  ;;  %v6388_v39 = vadd.f32 %v11027_v43, %v6317_v62  ;;  %v6070_v60 = vsel %vm927_vm2, %v5802_v38, 0.0 }
 0x53b   :  { %v7512_v45 = vpop.f32.mrf.mxu0  ;;  %v6067_v57 = vadd.f32 %v6066_v35, %v6065_v9  ;;  %v6079_v5 = vadd.f32 %v6078_v10, %v6077_v22  ;;  %v6059_v14 = vrot.slane %v6058_v25, 2  ;;  %v6071_v0 = vrot.slane %v6070_v60, 4 }
 0x53c   :  { %v5805_v59 = vmul.f32 %v7512_v45, %v11001_v28  ;;  %v6611_v40 = vrot.slane %v6453_v6, 1  ;;  %v6452_v48 = vmax.f32 %v6388_v39, 0.0 }
 0x53d   :  { %v5629_v26 = vpop.f32.mrf.mxu0  ;;  %v6068_v49 = vrot.slane %v6067_v57, 1  ;;  %v6080_v53 = vrot.slane %v6079_v5, 2  ;;  %v6060_v11 = vadd.f32 %v6059_v14, %v6058_v25  ;;  %v6072_v32 = vadd.f32 %v6071_v0, %v6070_v60 }
 0x53e   :  { %v6091_v24 = vsel %vm927_vm2, %v5805_v59, 0.0  ;;  %v5804_v12 = vmul.f32 %v5629_v26, %v10986_v50  ;;  %v6609_v55 = vrot.slane %v6452_v48, 2 }
 0x53f   :  { %v7515_v28 = vpop.f32.mrf.mxu0  ;;  %v6069_v61 = vadd.f32 %v6068_v49, %v6067_v57  ;;  %v6081_v56 = vadd.f32 %v6080_v53, %v6079_v5  ;;  %v6092_v17 = vrot.slane %v6091_v24, 4  ;;  %v6061_v29 = vrot.slane %v6060_v11, 1 }
 0x540   :  { %v6084_v36 = vsel %vm927_vm2, %v5804_v12, 0.0  ;;  %v5807_v41 = vmul.f32 %v7515_v28, %v10989_v27  ;;  %v6073_v7 = vrot.slane %v6072_v32, 2  ;;  %v6610_v2 = vsel %vm6566_vm9, %v6609_v55, %v6608_v23 }
 0x541   :  { %v5639_v9 = vpop.f32.mrf.mxu0  ;;  %v6320_v31 = vmul.f32 %v10997_v51, %v6069_v61  ;;  %v6082_v4 = vrot.slane %v6081_v56, 1  ;;  %v6093_v54 = vadd.f32 %v6092_v17, %v6091_v24  ;;  %v6062_v50 = vadd.f32 %v6061_v29, %v6060_v11 }
 0x542   :  { %v6085_v33 = vrot.slane %v6084_v36, 4  ;;  %v6105_v22 = vsel %vm927_vm2, %v5807_v41, 0.0  ;;  %v6612_v35 = vsel %vm6569_vm10, %v6611_v40, %v6610_v2  ;;  %v6074_v62 = vadd.f32 %v6073_v7, %v6072_v32 }
 0x543   :  { %v7518_v46 = vpop.f32.mrf.mxu0  ;;  %v6391_v10 = vadd.f32 %v11027_v43, %v6320_v31  ;;  %v6083_v63 = vadd.f32 %v6082_v4, %v6081_v56  ;;  %6680 = vst.msk [vmem:[%s11328_s18 + $0x18] sm:$0xff] %vm927_vm2, %v6612_v35  ;;  %v6319_v27 = vmul.f32 %v10997_v51, %v6062_v50  ;;  %v6094_v25 = vrot.slane %v6093_v54, 2 }
 0x544   :  { %v6086_v23 = vadd.f32 %v6085_v33, %v6084_v36  ;;  %v6106_v38 = vrot.slane %v6105_v22, 4  ;;  %v6075_v57 = vrot.slane %v6074_v62, 1  ;;  %v5806_v5 = vmul.f32 %v5639_v9, %v10973_v13 }
 0x545   :  { %v5649_v45 = vpop.f32.mrf.mxu0  ;;  %v6455_v8 = vmax.f32 %v6391_v10, 0.0  ;;  %v6322_v6 = vmul.f32 %v10997_v51, %v6083_v63  ;;  %v6390_v59 = vadd.f32 %v11027_v43, %v6319_v27  ;;  %v6095_v39 = vadd.f32 %v6094_v25, %v6093_v54 }
 0x546   :  { %v6087_v14 = vrot.slane %v6086_v23, 2  ;;  %v6107_v60 = vadd.f32 %v6106_v38, %v6105_v22  ;;  %v6076_v49 = vadd.f32 %v6075_v57, %v6074_v62  ;;  %v6098_v53 = vsel %vm927_vm2, %v5806_v5, 0.0 }
 0x547   :  { %v7521_v26 = vpop.f32.mrf.mxu0  ;;  %v6613_v44 = vrot.slane %v6455_v8, 7  ;;  %v6393_v40 = vadd.f32 %v11027_v43, %v6322_v6  ;;  %v6454_v0 = vmax.f32 %v6390_v59, 0.0  ;;  %v6096_v48 = vrot.slane %v6095_v39, 1 }
 0x548   :  { %v6088_v11 = vadd.f32 %v6087_v14, %v6086_v23  ;;  %v6108_v24 = vrot.slane %v6107_v60, 2  ;;  %v6321_v13 = vmul.f32 %v10997_v51, %v6076_v49  ;;  %v6099_v61 = vrot.slane %v6098_v53, 4 }
 0x549   :  { %v5659_v12 = vpop.f32.mrf.mxu0  ;;  %v6457_v28 = vmax.f32 %v6393_v40, 0.0  ;;  %v5809_v56 = vmul.f32 %v7518_v46, %v11013_v30  ;;  %v6614_v32 = vsel %vm6551_vm4, %v6613_v44, %v6454_v0  ;;  %v6097_v17 = vadd.f32 %v6096_v48, %v6095_v39 }
 0x54a   :  { %v6089_v55 = vrot.slane %v6088_v11, 1  ;;  %v6109_v29 = vadd.f32 %v6108_v24, %v6107_v60  ;;  %v6392_v9 = vadd.f32 %v11027_v43, %v6321_v13  ;;  %v6100_v31 = vadd.f32 %v6099_v61, %v6098_v53 }
 0x54b   :  { %v6617_v41 = vrot.slane %v6457_v28, 5  ;;  %v6119_v4 = vsel %vm927_vm2, %v5809_v56, 0.0  ;;  %v6324_v7 = vmul.f32 %v10997_v51, %v6097_v17  ;;  %v5808_v46 = vmul.f32 %v5649_v45, %v11016_v37 }
 0x54c   :  { %v7524_v36 = vpop.f32.mrf.mxu0  ;;  %v6090_v54 = vadd.f32 %v6089_v55, %v6088_v11  ;;  %v6110_v2 = vrot.slane %v6109_v29, 1  ;;  %v6120_v50 = vrot.slane %v6119_v4, 4  ;;  %v6456_v22 = vmax.f32 %v6392_v9, 0.0 }
 0x54d   :  { %v6101_v30 = vrot.slane %v6100_v31, 2  ;;  %v5811_v35 = vmul.f32 %v7521_v26, %v11032_v47  ;;  %v6395_v10 = vadd.f32 %v11027_v43, %v6324_v7  ;;  %v6112_v8 = vsel %vm927_vm2, %v5808_v46, 0.0 }
 0x54e   :  { %v5669_v33 = vpop.f32.mrf.mxu0  ;;  %v6323_v63 = vmul.f32 %v10997_v51, %v6090_v54  ;;  %v6111_v62 = vadd.f32 %v6110_v2, %v6109_v29  ;;  %v6121_v27 = vadd.f32 %v6120_v50, %v6119_v4  ;;  %v6615_v23 = vrot.slane %v6456_v22, 6 }
 0x54f   :  { %v6102_v38 = vadd.f32 %v6101_v30, %v6100_v31  ;;  %v6133_v6 = vsel %vm927_vm2, %v5811_v35, 0.0  ;;  %v6459_v57 = vmax.f32 %v6395_v10, 0.0  ;;  %v6113_v14 = vrot.slane %v6112_v8, 4 }
 0x550   :  { %v7527_v25 = vpop.f32.mrf.mxu0  ;;  %v6394_v5 = vadd.f32 %v11027_v43, %v6323_v63  ;;  %v6326_v37 = vmul.f32 %v10997_v51, %v6111_v62  ;;  %v6122_v45 = vrot.slane %v6121_v27, 2  ;;  %v6616_v59 = vsel %vm6554_vm5, %v6615_v23, %v6614_v32 }
 0x551   :  { %v6103_v39 = vrot.slane %v6102_v38, 1  ;;  %v6134_v60 = vrot.slane %v6133_v6, 4  ;;  %v6621_v26 = vrot.slane %v6459_v57, 3  ;;  %v6618_v40 = vsel %vm6557_vm6, %v6617_v41, %v6616_v59 }
 0x552   :  { %v11135_v47 = vpop.f32.mrf.mxu0  ;;  %v6458_v44 = vmax.f32 %v6394_v5, 0.0  ;;  %v6397_v49 = vadd.f32 %v11027_v43, %v6326_v37  ;;  %v6123_v0 = vadd.f32 %v6122_v45, %v6121_v27  ;;  %v6114_v48 = vadd.f32 %v6113_v14, %v6112_v8 }
 0x553   :  { %v6104_v53 = vadd.f32 %v6103_v39, %v6102_v38  ;;  %v6135_v11 = vadd.f32 %v6134_v60, %v6133_v6  ;;  %v5810_v61 = vmul.f32 %v5659_v12, %v11019_v20  ;;  %v5813_v56 = vmul.f32 %v7524_v36, %v11054_v18 }
 0x554   :  { %v7530_v24 = vpop.f32.mrf.mxu0  ;;  %v6619_v28 = vrot.slane %v6458_v44, 4  ;;  %v6461_v13 = vmax.f32 %v6397_v49, 0.0  ;;  %v6124_v17 = vrot.slane %v6123_v0, 1  ;;  %v6115_v55 = vrot.slane %v6114_v48, 2 }
 0x555   :  { %v6325_v32 = vmul.f32 %v10997_v51, %v6104_v53  ;;  %v6136_v29 = vrot.slane %v6135_v11, 2  ;;  %v6126_v31 = vsel %vm927_vm2, %v5810_v61, 0.0  ;;  %v6147_v4 = vsel %vm927_vm2, %v5813_v56, 0.0 }
 0x556   :  { %v6620_v41 = vsel %vm6560_vm7, %v6619_v28, %v6618_v40  ;;  %v6625_v9 = vrot.slane %v6461_v13, 1  ;;  %v6125_v2 = vadd.f32 %v6124_v17, %v6123_v0  ;;  %v6116_v20 = vadd.f32 %v6115_v55, %v6114_v48  ;;  %v11148_v12 = vpop.f32.mrf.mxu0 }
 0x557   :  { %v6396_v7 = vadd.f32 %v11027_v43, %v6325_v32  ;;  %v6622_v54 = vsel %vm6563_vm8, %v6621_v26, %v6620_v41  ;;  %v6137_v18 = vadd.f32 %v6136_v29, %v6135_v11  ;;  %v6127_v36 = vrot.slane %v6126_v31, 4 }
 0x558   :  { %v6148_v50 = vrot.slane %v6147_v4, 4  ;;  %v5812_v22 = vmul.f32 %v5669_v33, %v11041_v58  ;;  %v6328_v46 = vmul.f32 %v10997_v51, %v6125_v2  ;;  %v6117_v35 = vrot.slane %v6116_v20, 1  ;;  %v7533_v5 = vpop.f32.mrf.mxu0 }
 0x559   :  { %v6460_v30 = vmax.f32 %v6396_v7, 0.0  ;;  %v5815_v10 = vmul.f32 %v7527_v25, %v11044_v42  ;;  %v6138_v63 = vrot.slane %v6137_v18, 1  ;;  %v6128_v62 = vadd.f32 %v6127_v36, %v6126_v31 }
 0x55a   :  { %v6149_v27 = vadd.f32 %v6148_v50, %v6147_v4  ;;  %v6140_v23 = vsel %vm927_vm2, %v5812_v22, 0.0  ;;  %v6399_v8 = vadd.f32 %v11027_v43, %v6328_v46  ;;  %v6118_v6 = vadd.f32 %v6117_v35, %v6116_v20  ;;  %v5699_v48 = vpop.f32.mrf.mxu0 }
 0x55b   :  { %v6623_v38 = vrot.slane %v6460_v30, 2  ;;  %v6141_v57 = vrot.slane %v6140_v23, 4  ;;  %v6139_v37 = vadd.f32 %v6138_v63, %v6137_v18  ;;  %v6129_v45 = vrot.slane %v6128_v62, 2 }
 0x55c   :  { %v6150_v58 = vrot.slane %v6149_v27, 2  ;;  %v6161_v33 = vsel %vm927_vm2, %v5815_v10, 0.0  ;;  %v6463_v39 = vmax.f32 %v6399_v8, 0.0  ;;  %v6327_v42 = vmul.f32 %v10997_v51, %v6118_v6  ;;  %v7536_v20 = vpop.f32.mrf.mxu0 }
 0x55d   :  { %v6624_v59 = vsel %vm6566_vm9, %v6623_v38, %v6622_v54  ;;  %v6142_v25 = vadd.f32 %v6141_v57, %v6140_v23  ;;  %v6330_v60 = vmul.f32 %v10997_v51, %v6139_v37  ;;  %v6130_v26 = vadd.f32 %v6129_v45, %v6128_v62 }
 0x55e   :  { %v6626_v14 = vsel %vm6569_vm10, %v6625_v9, %v6624_v59  ;;  %v6151_v44 = vadd.f32 %v6150_v58, %v6149_v27  ;;  %v6627_v40 = vrot.slane %v6463_v39, 7  ;;  %v6398_v49 = vadd.f32 %v11027_v43, %v6327_v42  ;;  %v5709_v38 = vpop.f32.mrf.mxu0 }
 0x55f   :  { %6681 = vst.msk [vmem:[%s11328_s18 + $0x20] sm:$0xff] %vm927_vm2, %v6626_v14  ;;  %v6143_v53 = vrot.slane %v6142_v25, 2  ;;  %v6162_v0 = vrot.slane %v6161_v33, 4  ;;  %v6401_v11 = vadd.f32 %v11027_v43, %v6330_v60  ;;  %v6131_v28 = vrot.slane %v6130_v26, 1 }
 0x560   :  { %v6152_v13 = vrot.slane %v6151_v44, 1  ;;  %v5814_v61 = vmul.f32 %v11135_v47, %v11047_v1  ;;  %v6462_v56 = vmax.f32 %v6398_v49, 0.0  ;;  %v5817_v55 = vmul.f32 %v7530_v24, %v11070_v21  ;;  %v7539_v60 = vpop.f32.mrf.mxu0 }
 0x561   :  { %v6144_v32 = vadd.f32 %v6143_v53, %v6142_v25  ;;  %v6163_v17 = vadd.f32 %v6162_v0, %v6161_v33  ;;  %v6465_v29 = vmax.f32 %v6401_v11, 0.0  ;;  %v6132_v41 = vadd.f32 %v6131_v28, %v6130_v26  ;;  %v243_v53 = vld [vmem:[%s11325_s3 + $0x1b8] sm:$0xff] }
 0x562   :  { %v6153_v9 = vadd.f32 %v6152_v13, %v6151_v44  ;;  %v6154_v31 = vsel %vm927_vm2, %v5814_v61, 0.0  ;;  %v6628_v4 = vsel %vm6551_vm4, %v6627_v40, %v6462_v56  ;;  %v6175_v47 = vsel %vm927_vm2, %v5817_v55, 0.0  ;;  %v246_v55 = vld [vmem:[%s11325_s3 + $0x1d0] sm:$0xff] }
 0x563   :  { %v6145_v7 = vrot.slane %v6144_v32, 1  ;;  %v6164_v54 = vrot.slane %v6163_v17, 2  ;;  %v6155_v2 = vrot.slane %v6154_v31, 4  ;;  %v6631_v18 = vrot.slane %v6465_v29, 5 }
 0x564   :  { %v6329_v36 = vmul.f32 %v10997_v51, %v6132_v41  ;;  %v6332_v1 = vmul.f32 %v10997_v51, %v6153_v9  ;;  %v6176_v22 = vrot.slane %v6175_v47, 4  ;;  %v5816_v35 = vmul.f32 %v11148_v12, %v11060_v52  ;;  %v11705_v41 = vld [vmem:[#allocation53_spill] sm:$0xff] }
 0x565   :  { %v6146_v50 = vadd.f32 %v6145_v7, %v6144_v32  ;;  %v6165_v21 = vadd.f32 %v6164_v54, %v6163_v17  ;;  %v6156_v24 = vadd.f32 %v6155_v2, %v6154_v31  ;;  %v5819_v10 = vmul.f32 %v7533_v5, %v11073_v16  ;;  %v5719_v31 = vpop.f32.mrf.mxu0 }
 0x566   :  { %v6400_v30 = vadd.f32 %v11027_v43, %v6329_v36  ;;  %v6403_v46 = vadd.f32 %v11027_v43, %v6332_v1  ;;  %v6177_v23 = vadd.f32 %v6176_v22, %v6175_v47  ;;  %v6168_v57 = vsel %vm927_vm2, %v5816_v35, 0.0  ;;  %v244_v47 = vld [vmem:[%s11325_s3 + $0x1c0] sm:$0xff] }
 0x567   :  { %v6331_v63 = vmul.f32 %v10997_v51, %v6146_v50  ;;  %v6166_v62 = vrot.slane %v6165_v21, 1  ;;  %v6157_v27 = vrot.slane %v6156_v24, 2  ;;  %v6189_v37 = vsel %vm927_vm2, %v5819_v10, 0.0  ;;  %v11706_v50 = vld [vmem:[#allocation58_spill] sm:$0xff] }
 0x568   :  { %v6464_v8 = vmax.f32 %v6400_v30, 0.0  ;;  %v6467_v6 = vmax.f32 %v6403_v46, 0.0  ;;  %v6178_v59 = vrot.slane %v6177_v23, 2  ;;  %v6169_v16 = vrot.slane %v6168_v57, 4 }
 0x569   :  { %v6402_v45 = vadd.f32 %v11027_v43, %v6331_v63  ;;  %v6167_v58 = vadd.f32 %v6166_v62, %v6165_v21  ;;  %v6158_v33 = vadd.f32 %v6157_v27, %v6156_v24  ;;  %v6190_v5 = vrot.slane %v6189_v37, 4  ;;  %v7542_v27 = vpop.f32.mrf.mxu0 }
 0x56a   :  { %v6629_v52 = vrot.slane %v6464_v8, 6  ;;  %v6635_v12 = vrot.slane %v6467_v6, 3  ;;  %v6179_v14 = vadd.f32 %v6178_v59, %v6177_v23  ;;  %v6170_v44 = vadd.f32 %v6169_v16, %v6168_v57  ;;  %v11707_v6 = vld [vmem:[#allocation56_spill] sm:$0xff] }
 0x56b   :  { %v6466_v39 = vmax.f32 %v6402_v45, 0.0  ;;  %v6334_v42 = vmul.f32 %v10997_v51, %v6167_v58  ;;  %v6159_v25 = vrot.slane %v6158_v33, 1  ;;  %v6191_v40 = vadd.f32 %v6190_v5, %v6189_v37  ;;  %v245_v58 = vld [vmem:[%s11325_s3 + $0x1c8] sm:$0xff] }
 0x56c   :  { %v6630_v26 = vsel %vm6554_vm5, %v6629_v52, %v6628_v4  ;;  %v5818_v49 = vmul.f32 %v5699_v48, %v11063_v15  ;;  %v6180_v61 = vrot.slane %v6179_v14, 1  ;;  %v6171_v56 = vrot.slane %v6170_v44, 2 }
 0x56d   :  { %v6632_v0 = vsel %vm6557_vm6, %v6631_v18, %v6630_v26  ;;  %v6633_v11 = vrot.slane %v6466_v39, 4  ;;  %v6405_v28 = vadd.f32 %v11027_v43, %v6334_v42  ;;  %v6160_v13 = vadd.f32 %v6159_v25, %v6158_v33 }
 0x56e   :  { %v6192_v32 = vrot.slane %v6191_v40, 2  ;;  %v6182_v17 = vsel %vm927_vm2, %v5818_v49, 0.0  ;;  %v2224_v9 = vadd.f32 %v11705_v41, %v243_v53  ;;  %v6181_v7 = vadd.f32 %v6180_v61, %v6179_v14  ;;  %v5729_v14 = vpop.f32.mrf.mxu0  ;;  %v11709_v49 = vld [vmem:[#allocation59_spill] sm:$0xff] }
 0x56f   :  { %v6634_v15 = vsel %vm6560_vm7, %v6633_v11, %v6632_v0  ;;  %v6333_v48 = vmul.f32 %v10997_v51, %v6160_v13  ;;  %v6183_v29 = vrot.slane %v6182_v17, 4  ;;  %v6172_v54 = vadd.f32 %v6171_v56, %v6170_v44 }
 0x570   :  { %v6636_v4 = vsel %vm6563_vm8, %v6635_v12, %v6634_v15  ;;  %v6193_v2 = vadd.f32 %v6192_v32, %v6191_v40  ;;  %v5821_v1 = vmul.f32 %v7536_v20, %v11094_v19  ;;  %v11205_v21 = vadd.f32 %v11706_v50, %v246_v55  ;;  %v247_v19 = vld [vmem:[%s11325_s3 + $0x1d8] sm:$0xff] }
 0x571   :  { %v6404_v18 = vadd.f32 %v11027_v43, %v6333_v48  ;;  %v6184_v36 = vadd.f32 %v6183_v29, %v6182_v17  ;;  %v6469_v24 = vmax.f32 %v6405_v28, 0.0  ;;  %v6173_v22 = vrot.slane %v6172_v54, 1  ;;  %v11708_v12 = vld [vmem:[#allocation57_spill] sm:$0xff]  ;;  %v11710_v17 = vld [vmem:[#allocation62_spill] sm:$0xff] }
 0x572   :  { %v6194_v30 = vrot.slane %v6193_v2, 1  ;;  %v5820_v46 = vmul.f32 %v5709_v38, %v11100_v34  ;;  %v6203_v63 = vsel %vm927_vm2, %v5821_v1, 0.0  ;;  %v5823_v62 = vmul.f32 %v7539_v60, %v2224_v9  ;;  %v250_v60 = vld [vmem:[%s11325_s3 + $0x1f0] sm:$0xff]  ;;  %v7545_v9 = vpop.f32.mrf.mxu0 }
 0x573   :  { %v6468_v35 = vmax.f32 %v6404_v18, 0.0  ;;  %v6185_v10 = vrot.slane %v6184_v36, 2  ;;  %v6336_v20 = vmul.f32 %v10997_v51, %v6181_v7  ;;  %v6174_v23 = vadd.f32 %v6173_v22, %v6172_v54 }
 0x574   :  { %v6204_v8 = vrot.slane %v6203_v63, 4  ;;  %v2225_v57 = vadd.f32 %v11707_v6, %v244_v47  ;;  %v6196_v34 = vsel %vm927_vm2, %v5820_v46, 0.0  ;;  %v6217_v38 = vsel %vm927_vm2, %v5823_v62, 0.0 }
 0x575   :  { %v6637_v37 = vrot.slane %v6468_v35, 2  ;;  %v6186_v45 = vadd.f32 %v6185_v10, %v6184_v36  ;;  %v6639_v33 = vrot.slane %v6469_v24, 1  ;;  %v6195_v59 = vadd.f32 %v6194_v30, %v6193_v2 }
 0x576   :  { %v6205_v52 = vadd.f32 %v6204_v8, %v6203_v63  ;;  %v2228_v16 = vadd.f32 %v11708_v12, %v247_v19  ;;  %v6197_v42 = vrot.slane %v6196_v34, 4  ;;  %v6218_v25 = vrot.slane %v6217_v38, 4  ;;  %v5739_v19 = vpop.f32.mrf.mxu0 }
 0x577   :  { %v6638_v5 = vsel %vm6566_vm9, %v6637_v37, %v6636_v4  ;;  %v6187_v39 = vrot.slane %v6186_v45, 1  ;;  %v6407_v44 = vadd.f32 %v11027_v43, %v6336_v20  ;;  %v6335_v40 = vmul.f32 %v10997_v51, %v6174_v23 }
 0x578   :  { %v6640_v26 = vsel %vm6569_vm10, %v6639_v33, %v6638_v5  ;;  %v2226_v53 = vadd.f32 %v11709_v49, %v245_v58  ;;  %v6206_v11 = vrot.slane %v6205_v52, 2  ;;  %v6198_v28 = vadd.f32 %v6197_v42, %v6196_v34  ;;  %v249_v42 = vld [vmem:[%s11325_s3 + $0x1e8] sm:$0xff] }
 0x579   :  { %6682 = vst.msk [vmem:[%s11328_s18 + $0x28] sm:$0xff] %vm927_vm2, %v6640_v26  ;;  %v6188_v0 = vadd.f32 %v6187_v39, %v6186_v45  ;;  %v6219_v13 = vadd.f32 %v6218_v25, %v6217_v38  ;;  %v6338_v61 = vmul.f32 %v10997_v51, %v6195_v59  ;;  %v5822_v56 = vmul.f32 %v5719_v31, %v11076_v3  ;;  %v7548_v25 = vpop.f32.mrf.mxu0 }
 0x57a   :  { %v5825_v32 = vmul.f32 %v7542_v27, %v2226_v53  ;;  %v11235_v55 = vadd.f32 %v11710_v17, %v250_v60  ;;  %v6207_v48 = vadd.f32 %v6206_v11, %v6205_v52  ;;  %v6199_v29 = vrot.slane %v6198_v28, 2  ;;  %v248_v52 = vld [vmem:[%s11325_s3 + $0x1e0] sm:$0xff] }
 0x57b   :  { %v6337_v15 = vmul.f32 %v10997_v51, %v6188_v0  ;;  %v6220_v41 = vrot.slane %v6219_v13, 2  ;;  %v6471_v4 = vmax.f32 %v6407_v44, 0.0  ;;  %v6406_v7 = vadd.f32 %v11027_v43, %v6335_v40  ;;  %v11711_v0 = vld [vmem:[#allocation60_spill] sm:$0xff] }
 0x57c   :  { %v6210_v54 = vsel %vm927_vm2, %v5822_v56, 0.0  ;;  %v6231_v2 = vsel %vm927_vm2, %v5825_v32, 0.0  ;;  %v6208_v3 = vrot.slane %v6207_v48, 1  ;;  %v6200_v31 = vadd.f32 %v6199_v29, %v6198_v28  ;;  %v11712_v56 = vld [vmem:[#allocation63_spill] sm:$0xff] }
 0x57d   :  { %v6408_v18 = vadd.f32 %v11027_v43, %v6337_v15  ;;  %v6221_v36 = vadd.f32 %v6220_v41, %v6219_v13  ;;  %v6211_v1 = vrot.slane %v6210_v54, 4  ;;  %v6232_v47 = vrot.slane %v6231_v2, 4  ;;  %v5749_v41 = vpop.f32.mrf.mxu0 }
 0x57e   :  { %v5824_v50 = vmul.f32 %v5729_v14, %v2225_v57  ;;  %v5827_v24 = vmul.f32 %v7545_v9, %v2228_v16  ;;  %v6409_v22 = vadd.f32 %v11027_v43, %v6338_v61  ;;  %v6209_v30 = vadd.f32 %v6208_v3, %v6207_v48  ;;  %v251_v9 = vld [vmem:[%s11325_s3 + $0x1f8] sm:$0xff] }
 0x57f   :  { %v6201_v46 = vrot.slane %v6200_v31, 1  ;;  %v6222_v35 = vrot.slane %v6221_v36, 1  ;;  %v6212_v10 = vadd.f32 %v6211_v1, %v6210_v54  ;;  %v6233_v63 = vadd.f32 %v6232_v47, %v6231_v2 }
 0x580   :  { %v6224_v62 = vsel %vm927_vm2, %v5824_v50, 0.0  ;;  %v6245_v27 = vsel %vm927_vm2, %v5827_v24, 0.0  ;;  %v6472_v20 = vmax.f32 %v6408_v18, 0.0  ;;  %v6340_v23 = vmul.f32 %v10997_v51, %v6209_v30  ;;  %v11713_v50 = vld [vmem:[#allocation61_spill] sm:$0xff] }
 0x581   :  { %v6202_v8 = vadd.f32 %v6201_v46, %v6200_v31  ;;  %v6223_v6 = vadd.f32 %v6222_v35, %v6221_v36  ;;  %v6213_v37 = vrot.slane %v6212_v10, 2  ;;  %v6234_v57 = vrot.slane %v6233_v63, 2 }
 0x582   :  { %v6225_v45 = vrot.slane %v6224_v62, 4  ;;  %v6246_v34 = vrot.slane %v6245_v27, 4  ;;  %v6641_v38 = vrot.slane %v6471_v4, 7  ;;  %v6470_v58 = vmax.f32 %v6406_v7, 0.0 }
 0x583   :  { %v6339_v33 = vmul.f32 %v10997_v51, %v6202_v8  ;;  %v6342_v59 = vmul.f32 %v10997_v51, %v6223_v6  ;;  %v6473_v12 = vmax.f32 %v6409_v22, 0.0  ;;  %v6214_v16 = vadd.f32 %v6213_v37, %v6212_v10  ;;  %v7551_v10 = vpop.f32.mrf.mxu0 }
 0x584   :  { %v6235_v5 = vadd.f32 %v6234_v57, %v6233_v63  ;;  %v6226_v39 = vadd.f32 %v6225_v45, %v6224_v62  ;;  %v6643_v14 = vrot.slane %v6472_v20, 6  ;;  %v6411_v60 = vadd.f32 %v11027_v43, %v6340_v23 }
 0x585   :  { %v6410_v26 = vadd.f32 %v11027_v43, %v6339_v33  ;;  %v6247_v44 = vadd.f32 %v6246_v34, %v6245_v27  ;;  %v6215_v40 = vrot.slane %v6214_v16, 1  ;;  %v5826_v53 = vmul.f32 %v5739_v19, %v11205_v21 }
 0x586   :  { %v6227_v49 = vrot.slane %v6226_v39, 2  ;;  %v2229_v11 = vadd.f32 %v11711_v0, %v248_v52  ;;  %v6642_v28 = vsel %vm6551_vm4, %v6641_v38, %v6470_v58  ;;  %v6413_v61 = vadd.f32 %v11027_v43, %v6342_v59 }
 0x587   :  { %v6474_v13 = vmax.f32 %v6410_v26, 0.0  ;;  %v2230_v32 = vadd.f32 %v11712_v56, %v249_v42  ;;  %v6216_v17 = vadd.f32 %v6215_v40, %v6214_v16  ;;  %v6236_v15 = vrot.slane %v6235_v5, 1 }
 0x588   :  { %v6248_v48 = vrot.slane %v6247_v44, 2  ;;  %v6238_v29 = vsel %vm927_vm2, %v5826_v53, 0.0  ;;  %v6645_v21 = vrot.slane %v6473_v12, 5  ;;  %v6644_v4 = vsel %vm6554_vm5, %v6643_v14, %v6642_v28 }
 0x589   :  { %v6475_v7 = vmax.f32 %v6411_v60, 0.0  ;;  %v6239_v54 = vrot.slane %v6238_v29, 4  ;;  %v6647_v2 = vrot.slane %v6474_v13, 4  ;;  %v6341_v18 = vmul.f32 %v10997_v51, %v6216_v17 }
 0x58a   :  { %v6228_v3 = vadd.f32 %v6227_v49, %v6226_v39  ;;  %v5829_v31 = vmul.f32 %v7548_v25, %v2230_v32  ;;  %v6477_v36 = vmax.f32 %v6413_v61, 0.0  ;;  %v5828_v47 = vmul.f32 %v5749_v41, %v2229_v11  ;;  %v5759_v39 = vpop.f32.mrf.mxu0 }
 0x58b   :  { %v6240_v1 = vadd.f32 %v6239_v54, %v6238_v29  ;;  %v2232_v24 = vadd.f32 %v11713_v50, %v251_v9  ;;  %v6646_v22 = vsel %vm6557_vm6, %v6645_v21, %v6644_v4  ;;  %v6412_v30 = vadd.f32 %v11027_v43, %v6341_v18 }
 0x58c   :  { %v6237_v46 = vadd.f32 %v6236_v15, %v6235_v5  ;;  %v6249_v35 = vadd.f32 %v6248_v48, %v6247_v44  ;;  %v6649_v63 = vrot.slane %v6475_v7, 3  ;;  %v6259_v27 = vsel %vm927_vm2, %v5829_v31, 0.0 }
 0x58d   :  { %v6241_v62 = vrot.slane %v6240_v1, 2  ;;  %v6252_v19 = vsel %vm927_vm2, %v5828_v47, 0.0  ;;  %v6648_v20 = vsel %vm6560_vm7, %v6647_v2, %v6646_v22  ;;  %v6476_v23 = vmax.f32 %v6412_v30, 0.0 }
 0x58e   :  { %v6229_v8 = vrot.slane %v6228_v3, 1  ;;  %v6260_v6 = vrot.slane %v6259_v27, 4  ;;  %v6653_v37 = vrot.slane %v6477_v36, 1  ;;  %v6253_v45 = vrot.slane %v6252_v19, 4 }
 0x58f   :  { %v6242_v57 = vadd.f32 %v6241_v62, %v6240_v1  ;;  %v5831_v34 = vmul.f32 %v7551_v10, %v2232_v24  ;;  %v6651_v38 = vrot.slane %v6476_v23, 2  ;;  %v6344_v58 = vmul.f32 %v10997_v51, %v6237_v46 }
 0x590   :  { %v6250_v33 = vrot.slane %v6249_v35, 1  ;;  %v6261_v59 = vadd.f32 %v6260_v6, %v6259_v27  ;;  %v6650_v52 = vsel %vm6563_vm8, %v6649_v63, %v6648_v20  ;;  %v6254_v16 = vadd.f32 %v6253_v45, %v6252_v19 }
 0x591   :  { %v6243_v12 = vrot.slane %v6242_v57, 1  ;;  %v6273_v5 = vsel %vm927_vm2, %v5831_v34, 0.0  ;;  %v6652_v42 = vsel %vm6566_vm9, %v6651_v38, %v6650_v52  ;;  %v6230_v25 = vadd.f32 %v6229_v8, %v6228_v3 }
 0x592   :  { %v6262_v14 = vrot.slane %v6261_v59, 2  ;;  %v6274_v60 = vrot.slane %v6273_v5, 4  ;;  %v6654_v26 = vsel %vm6569_vm10, %v6653_v37, %v6652_v42  ;;  %v6255_v40 = vrot.slane %v6254_v16, 2 }
 0x593   :  { %v6244_v44 = vadd.f32 %v6243_v12, %v6242_v57  ;;  %6683 = vst.msk [vmem:[%s11328_s18 + $0x30] sm:$0xff] %vm927_vm2, %v6654_v26  ;;  %v6251_v49 = vadd.f32 %v6250_v33, %v6249_v35  ;;  %v5830_v11 = vmul.f32 %v5759_v39, %v11235_v55  ;;  %v6415_v28 = vadd.f32 %v11027_v43, %v6344_v58 }
 0x594   :  { %v6263_v53 = vadd.f32 %v6262_v14, %v6261_v59  ;;  %v6275_v0 = vadd.f32 %v6274_v60, %v6273_v5  ;;  %v6256_v61 = vadd.f32 %v6255_v40, %v6254_v16  ;;  %v6343_v56 = vmul.f32 %v10997_v51, %v6230_v25 }
 0x595   :  { %v6345_v13 = vmul.f32 %v10997_v51, %v6244_v44  ;;  %v6266_v15 = vsel %vm927_vm2, %v5830_v11, 0.0  ;;  %v6346_v9 = vmul.f32 %v10997_v51, %v6251_v49  ;;  %v6479_v54 = vmax.f32 %v6415_v28, 0.0 }
 0x596   :  { %v6264_v32 = vrot.slane %v6263_v53, 1  ;;  %v6276_v17 = vrot.slane %v6275_v0, 2  ;;  %v6257_v29 = vrot.slane %v6256_v61, 1  ;;  %v6267_v41 = vrot.slane %v6266_v15, 4 }
 0x597   :  { %v6416_v48 = vadd.f32 %v11027_v43, %v6345_v13  ;;  %v6414_v2 = vadd.f32 %v11027_v43, %v6343_v56  ;;  %v6417_v1 = vadd.f32 %v11027_v43, %v6346_v9  ;;  %v6655_v30 = vrot.slane %v6479_v54, 7 }
 0x598   :  { %v6265_v21 = vadd.f32 %v6264_v32, %v6263_v53  ;;  %v6277_v4 = vadd.f32 %v6276_v17, %v6275_v0  ;;  %v6258_v55 = vadd.f32 %v6257_v29, %v6256_v61  ;;  %v6268_v7 = vadd.f32 %v6267_v41, %v6266_v15 }
 0x599   :  { %v6480_v3 = vmax.f32 %v6416_v48, 0.0  ;;  %v6478_v46 = vmax.f32 %v6414_v2, 0.0  ;;  %v6481_v27 = vmax.f32 %v6417_v1, 0.0 }
 0x59a   :  { %v6278_v18 = vrot.slane %v6277_v4, 1  ;;  %v6347_v31 = vmul.f32 %v10997_v51, %v6258_v55  ;;  %v6269_v36 = vrot.slane %v6268_v7, 2  ;;  %v6348_v47 = vmul.f32 %v10997_v51, %v6265_v21 }
 0x59b   :  { %v6657_v10 = vrot.slane %v6480_v3, 6  ;;  %v6656_v23 = vsel %vm6551_vm4, %v6655_v30, %v6478_v46  ;;  %v6659_v45 = vrot.slane %v6481_v27, 5 }
 0x59c   :  { %v6279_v50 = vadd.f32 %v6278_v18, %v6277_v4  ;;  %v6418_v24 = vadd.f32 %v11027_v43, %v6347_v31  ;;  %v6270_v22 = vadd.f32 %v6269_v36, %v6268_v7  ;;  %v6419_v19 = vadd.f32 %v11027_v43, %v6348_v47 }
 0x59d   :  { %v6658_v6 = vsel %vm6554_vm5, %v6657_v10, %v6656_v23 }
 0x59e   :  { %v6350_v35 = vmul.f32 %v10997_v51, %v6279_v50  ;;  %v6482_v63 = vmax.f32 %v6418_v24, 0.0  ;;  %v6271_v62 = vrot.slane %v6270_v22, 1  ;;  %v6483_v34 = vmax.f32 %v6419_v19, 0.0 }
 0x59f   :  { %v6660_v58 = vsel %vm6557_vm6, %v6659_v45, %v6658_v6 }
 0x5a0   :  { %v6272_v20 = vadd.f32 %v6271_v62, %v6270_v22  ;;  %v6421_v8 = vadd.f32 %v11027_v43, %v6350_v35  ;;  %v6661_v37 = vrot.slane %v6482_v63, 4  ;;  %v6663_v12 = vrot.slane %v6483_v34, 3 }
 0x5a2   :  { %v6349_v57 = vmul.f32 %v10997_v51, %v6272_v20  ;;  %v6485_v33 = vmax.f32 %v6421_v8, 0.0  ;;  %v6662_v59 = vsel %vm6560_vm7, %v6661_v37, %v6660_v58 }
 0x5a3   :  { %v6664_v39 = vsel %vm6563_vm8, %v6663_v12, %v6662_v59 }
 0x5a4   :  { %v6420_v38 = vadd.f32 %v11027_v43, %v6349_v57  ;;  %v6667_v5 = vrot.slane %v6485_v33, 1 }
 0x5a6   :  { %v6484_v52 = vmax.f32 %v6420_v38, 0.0 }
 0x5a8   :  { %v6665_v16 = vrot.slane %v6484_v52, 2 }
 0x5aa   :  { %v6666_v42 = vsel %vm6566_vm9, %v6665_v16, %v6664_v39 }
 0x5ab   :  { %v6668_v25 = vsel %vm6569_vm10, %v6667_v5, %v6666_v42 }
 0x5ac   :  { %6684 = vst.msk [vmem:[%s11328_s18 + $0x38] sm:$0xff] %vm927_vm2, %v6668_v25 }

</bundles_post_ra>
